<compile_context>
chip_gen: v7x
topology: tpu7x:2x2x1
jax: 0.10.0
libtpu: 0.0.40
codegen_flags: <defaults>
</compile_context>

<pallas_src>
import functools
import math

import jax
import jax.numpy as jnp
from jax.experimental import pallas as pl
from jax.experimental.pallas import tpu as pltpu


MXU_DTYPE = jnp.bfloat16  # matmul input dtype; accumulation / epilogue stay f32


# ------------------------- weight preparation ------------------------------ #

def _prep_w(w):
    """HWIO (3,3,Cin,Cout) -> tap-major (9,Cin,Cout), cast for the MXU."""
    return w.reshape(9, w.shape[2], w.shape[3]).astype(MXU_DTYPE)


def _prep_b(b):
    return b.reshape(1, -1).astype(jnp.float32)


# --------------------------- in-kernel conv -------------------------------- #

def _conv3x3(src_ref, w_ref, b_ref, n, h, w, relu=False, skip=None):
    """3x3 same conv on a zero-padded VMEM ref.

    src_ref: (n, h+2, w+2, cin) f32 padded activations (border is zero)
    w_ref:   (9, cin, cout)     bf16 weights (tap-major: ky*3 + kx)
    b_ref:   (1, cout)          f32 bias
    skip:    optional (n*h*w, cout) f32 residual to add in the epilogue
    returns  (n*h*w, cout) f32
    """
    cin = src_ref.shape[-1]
    cout = w_ref.shape[-1]
    m = n * h * w
    acc = jnp.zeros((m, cout), jnp.float32)
    for ky in range(3):
        for kx in range(3):
            patch = src_ref[:, ky:ky + h, kx:kx + w, :].reshape(m, cin)
            acc = acc + jnp.dot(patch.astype(MXU_DTYPE), w_ref[ky * 3 + kx],
                                preferred_element_type=jnp.float32)
    acc = acc + b_ref[...]
    if skip is not None:
        acc = acc + skip
    if relu:
        acc = jnp.maximum(acc, 0.0)
    return acc


# ----------------------- fused whole-body kernel --------------------------- #

def _make_main_kernel(n, h, w, num_block):
    nw = 4 * num_block + 6  # head(2) + blocks(4 each) + body_tail(2) + last(2)

    def kernel(*refs):
        x_ref = refs[0]
        w_refs = refs[1:1 + nw]
        o_ref = refs[1 + nw]
        pad_in, pad_x, pad_a, pad_t = refs[2 + nw:]

        feat = pad_a.shape[-1]
        cout = o_ref.shape[-1]
        m = n * h * w

        # Zero padded scratch once; interiors are overwritten below, so the
        # 1-pixel zero border (PyTorch padding=1) is preserved throughout.
        for buf in (pad_in, pad_x, pad_a, pad_t):
            buf[...] = jnp.zeros(buf.shape, buf.dtype)
        pad_in[:, 1:1 + h, 1:1 + w, :] = x_ref[...]

        tap = iter(range(0, nw, 2))

        def next_wb():
            i = next(tap)
            return w_refs[i], w_refs[i + 1]

        # -- head conv ------------------------------------------------------
        wv, bv = next_wb()
        head = _conv3x3(pad_in, wv, bv, n, h, w).reshape(n, h, w, feat)
        pad_x[:, 1:1 + h, 1:1 + w, :] = head      # kept for the global skip
        pad_a[:, 1:1 + h, 1:1 + w, :] = head      # running `res`

        # -- ResBlocks: res = res + conv2(relu(conv1(res))) -------------------
        for _ in range(num_block):
            w1, b1 = next_wb()
            w2, b2 = next_wb()
            t = _conv3x3(pad_a, w1, b1, n, h, w, relu=True)
            pad_t[:, 1:1 + h, 1:1 + w, :] = t.reshape(n, h, w, feat)
            skip = pad_a[:, 1:1 + h, 1:1 + w, :].reshape(m, feat)
            r = _conv3x3(pad_t, w2, b2, n, h, w, skip=skip)
            pad_a[:, 1:1 + h, 1:1 + w, :] = r.reshape(n, h, w, feat)

        # -- body-tail conv + global skip (head output) -----------------------
        wv, bv = next_wb()
        gskip = pad_x[:, 1:1 + h, 1:1 + w, :].reshape(m, feat)
        res = _conv3x3(pad_a, wv, bv, n, h, w, skip=gskip)
        pad_a[:, 1:1 + h, 1:1 + w, :] = res.reshape(n, h, w, feat)

        # -- last conv of this stage (first upscale conv, or tail if scale==1)
        wv, bv = next_wb()
        out = _conv3x3(pad_a, wv, bv, n, h, w)
        o_ref[...] = out.reshape(n, h, w, cout).astype(o_ref.dtype)

    return kernel


def _make_conv_kernel(n, h, w):
    def kernel(x_ref, w_ref, b_ref, o_ref, pad_in):
        pad_in[...] = jnp.zeros(pad_in.shape, pad_in.dtype)
        pad_in[:, 1:1 + h, 1:1 + w, :] = x_ref[...]
        cout = o_ref.shape[-1]
        out = _conv3x3(pad_in, w_ref, b_ref, n, h, w)
        o_ref[...] = out.reshape(n, h, w, cout).astype(o_ref.dtype)

    return kernel


# --------------------------- pallas_call wrappers --------------------------- #

def fused_main_stage(x, flat_weights, cout):
    """head + ResBlocks + body-tail + global skip + last conv, one pallas_call."""
    n, h, w, cin = x.shape
    feat = flat_weights[0].shape[-1]                 # head output channels
    num_block = (len(flat_weights) - 6) // 4
    kernel = _make_main_kernel(n, h, w, num_block)
    n_in = 1 + len(flat_weights)
    return pl.pallas_call(
        kernel,
        out_shape=jax.ShapeDtypeStruct((n, h, w, cout), jnp.float32),
        in_specs=[pl.BlockSpec(memory_space=pltpu.MemorySpace.VMEM)
                  for _ in range(n_in)],
        out_specs=pl.BlockSpec(memory_space=pltpu.MemorySpace.VMEM),
        scratch_shapes=[
            pltpu.VMEM((n, h + 2, w + 2, cin), jnp.float32),   # padded input
            pltpu.VMEM((n, h + 2, w + 2, feat), jnp.float32),  # head / skip
            pltpu.VMEM((n, h + 2, w + 2, feat), jnp.float32),  # running res
            pltpu.VMEM((n, h + 2, w + 2, feat), jnp.float32),  # block temp
        ],
    )(x, *flat_weights)


def conv_stage(x, w9, b2, cout):
    """Single 3x3 conv (used for later upsampler convs and the tail conv)."""
    n, h, w, cin = x.shape
    kernel = _make_conv_kernel(n, h, w)
    return pl.pallas_call(
        kernel,
        out_shape=jax.ShapeDtypeStruct((n, h, w, cout), jnp.float32),
        in_specs=[pl.BlockSpec(memory_space=pltpu.MemorySpace.VMEM)
                  for _ in range(3)],
        out_specs=pl.BlockSpec(memory_space=pltpu.MemorySpace.VMEM),
        scratch_shapes=[pltpu.VMEM((n, h + 2, w + 2, cin), jnp.float32)],
    )(x, w9, b2)


# ------------------------------ JAX glue ----------------------------------- #

def pixel_shuffle_nhwc(x, r):
    """PyTorch nn.PixelShuffle semantics, NHWC layout (r is a Python int)."""
    N, H, W, C = x.shape
    c = C // (r * r)
    x = x.reshape(N, H, W, c, r, r)
    x = jnp.transpose(x, (0, 1, 4, 2, 5, 3))       # (N, H, r, W, r, c)
    return x.reshape(N, H * r, W * r, c)


def _upscale_factors(scale):
    if scale == 1:
        return []
    if scale & (scale - 1) == 0:
        return [2] * int(math.log(scale, 2))
    return [3]                                     # scale == 3


def init_conv(key, cin, cout):
    """Deterministic PyTorch-Conv2d-like uniform init (HWIO weights)."""
    kw, kb = jax.random.split(key)
    bound = 1.0 / math.sqrt(cin * 9)
    w = jax.random.uniform(kw, (3, 3, cin, cout), jnp.float32, -bound, bound)
    b = jax.random.uniform(kb, (cout,), jnp.float32, -bound, bound)
    return w, b


def init_single_network(key, num_block, num_feature, num_channel, scale):
    assert scale in (1, 2, 3, 4)
    n_up = len(_upscale_factors(scale))
    keys = iter(jax.random.split(key, 3 + 2 * num_block + n_up))
    params = {}
    params["head"] = init_conv(next(keys), num_channel, num_feature)
    params["blocks"] = [
        (init_conv(next(keys), num_feature, num_feature),
         init_conv(next(keys), num_feature, num_feature))
        for _ in range(num_block)
    ]
    params["body_tail"] = init_conv(next(keys), num_feature, num_feature)
    # NOTE: no python ints inside params (they would become tracers under jit);
    # the pixel-shuffle factors are re-derived statically from `scale`.
    params["upscale"] = [
        init_conv(next(keys), num_feature, (f * f) * num_feature)
        for f in _upscale_factors(scale)
    ]
    params["tail"] = init_conv(next(keys), num_feature, num_channel)
    return params


def single_network_forward(x_nchw, params, scale):
    x = jnp.transpose(x_nchw, (0, 2, 3, 1)).astype(jnp.float32)   # NCHW -> NHWC
    num_channel = params["tail"][0].shape[-1]
    factors = _upscale_factors(scale)                             # static

    # ---- stage 1: fully fused body (+ first upsampler conv or tail conv) ----
    flat = []

    def push(wb):
        wv, bv = wb
        flat.append(_prep_w(wv))
        flat.append(_prep_b(bv))

    push(params["head"])
    for wb1, wb2 in params["blocks"]:
        push(wb1)
        push(wb2)
    push(params["body_tail"])
    if scale > 1:
        push(params["upscale"][0])
        cout0 = params["upscale"][0][0].shape[-1]
    else:
        push(params["tail"])
        cout0 = num_channel
    y = fused_main_stage(x, flat, cout0)

    if scale == 1:
        return jnp.transpose(y, (0, 3, 1, 2))                     # NHWC -> NCHW

    # ---- pixel shuffle(s) + remaining upsampler convs + tail ----------------
    y = pixel_shuffle_nhwc(y, factors[0])
    for i in range(1, len(factors)):
        wv, bv = params["upscale"][i]
        y = conv_stage(y, _prep_w(wv), _prep_b(bv), wv.shape[-1])
        y = pixel_shuffle_nhwc(y, factors[i])

    tw, tb = params["tail"]
    y = conv_stage(y, _prep_w(tw), _prep_b(tb), num_channel)
    return jnp.transpose(y, (0, 3, 1, 2))                         # NHWC -> NCHW


# --------------------------- pure-JAX reference ----------------------------- #

def _conv_ref(x, w, b):
    y = jax.lax.conv_general_dilated(
        x, w, window_strides=(1, 1), padding="SAME",
        dimension_numbers=("NHWC", "HWIO", "NHWC"))
    return y + b.reshape(1, 1, 1, -1)


def reference_forward(x_nchw, params, scale):
    x = jnp.transpose(x_nchw, (0, 2, 3, 1))
    x = _conv_ref(x, *params["head"])
    res = x
    for (w1, b1), (w2, b2) in params["blocks"]:
        r = jnp.maximum(_conv_ref(res, w1, b1), 0.0)
        r = _conv_ref(r, w2, b2)
        res = res + r
    res = _conv_ref(res, *params["body_tail"])
    res = res + x
    if scale > 1:
        for wb, f in zip(params["upscale"], _upscale_factors(scale)):
            res = _conv_ref(res, *wb)
            res = pixel_shuffle_nhwc(res, f)
    out = _conv_ref(res, *params["tail"])
    return jnp.transpose(out, (0, 3, 1, 2))


# -------------------------------- main -------------------------------------- #

if __name__ == "__main__":
    num_block, num_feature, num_channel, scale = 2, 32, 3, 2
    N, H, W = 2, 8, 8

    key = jax.random.PRNGKey(0)
    k_params, k_x = jax.random.split(key)
    params = init_single_network(k_params, num_block, num_feature,
                                 num_channel, scale)
    x = jax.random.normal(k_x, (N, num_channel, H, W), jnp.float32)

    fwd = jax.jit(functools.partial(single_network_forward, scale=scale))
    y = fwd(x, params)
    jax.block_until_ready(y)

    expected = (N, num_channel, H * scale, W * scale)
    assert y.shape == expected, (y.shape, expected)

    # loose tolerance: MXU inputs are bf16 (accumulation is f32)
    y_ref = reference_forward(x, params, scale)
    err = float(jnp.max(jnp.abs(y - y_ref)))
    assert err < 1e-1, f"max abs error vs reference too large: {err}"

    print("KERNEL_OK")
</pallas_src>

<mosaic_0001>
module attributes {stable_mosaic.version = 11 : i64} {
  func.func @kernel(%arg0: memref<2x8x8x3xf32, #tpu.memory_space<vmem>>, %arg1: memref<9x3x32xbf16, #tpu.memory_space<vmem>>, %arg2: memref<1x32xf32, #tpu.memory_space<vmem>>, %arg3: memref<9x32x32xbf16, #tpu.memory_space<vmem>>, %arg4: memref<1x32xf32, #tpu.memory_space<vmem>>, %arg5: memref<9x32x32xbf16, #tpu.memory_space<vmem>>, %arg6: memref<1x32xf32, #tpu.memory_space<vmem>>, %arg7: memref<9x32x32xbf16, #tpu.memory_space<vmem>>, %arg8: memref<1x32xf32, #tpu.memory_space<vmem>>, %arg9: memref<9x32x32xbf16, #tpu.memory_space<vmem>>, %arg10: memref<1x32xf32, #tpu.memory_space<vmem>>, %arg11: memref<9x32x32xbf16, #tpu.memory_space<vmem>>, %arg12: memref<1x32xf32, #tpu.memory_space<vmem>>, %arg13: memref<9x32x128xbf16, #tpu.memory_space<vmem>>, %arg14: memref<1x128xf32, #tpu.memory_space<vmem>>, %arg15: memref<2x8x8x128xf32, #tpu.memory_space<vmem>>, %arg16: memref<2x10x10x3xf32, #tpu.memory_space<vmem>>, %arg17: memref<2x10x10x32xf32, #tpu.memory_space<vmem>>, %arg18: memref<2x10x10x32xf32, #tpu.memory_space<vmem>>, %arg19: memref<2x10x10x32xf32, #tpu.memory_space<vmem>>) attributes {dimension_semantics = [], scalar_prefetch = 0 : i64, scratch_operands = 4 : i64, tpu.core_type = #tpu.core_type<tc>} {
    %cst = arith.constant 0.000000e+00 : f32
    %0 = vector.broadcast %cst : f32 to vector<2x10x10x3xf32>
    %c0 = arith.constant 0 : index
    %c0_0 = arith.constant 0 : index
    %c0_1 = arith.constant 0 : index
    %c0_2 = arith.constant 0 : index
    %1 = vector.load %arg16[%c0, %c0_0, %c0_1, %c0_2] : memref<2x10x10x3xf32, #tpu.memory_space<vmem>>, vector<2x10x10x3xf32>
    tpu.vector_store %arg16[%c0, %c0_0, %c0_1, %c0_2], %0 {strides = array<i32>} : memref<2x10x10x3xf32, #tpu.memory_space<vmem>>, vector<2x10x10x3xf32>,
    %cst_3 = arith.constant 0.000000e+00 : f32
    %2 = vector.broadcast %cst_3 : f32 to vector<2x10x10x32xf32>
    %c0_4 = arith.constant 0 : index
    %c0_5 = arith.constant 0 : index
    %c0_6 = arith.constant 0 : index
    %c0_7 = arith.constant 0 : index
    %3 = vector.load %arg17[%c0_4, %c0_5, %c0_6, %c0_7] : memref<2x10x10x32xf32, #tpu.memory_space<vmem>>, vector<2x10x10x32xf32>
    tpu.vector_store %arg17[%c0_4, %c0_5, %c0_6, %c0_7], %2 {strides = array<i32>} : memref<2x10x10x32xf32, #tpu.memory_space<vmem>>, vector<2x10x10x32xf32>,
    %cst_8 = arith.constant 0.000000e+00 : f32
    %4 = vector.broadcast %cst_8 : f32 to vector<2x10x10x32xf32>
    %c0_9 = arith.constant 0 : index
    %c0_10 = arith.constant 0 : index
    %c0_11 = arith.constant 0 : index
    %c0_12 = arith.constant 0 : index
    %5 = vector.load %arg18[%c0_9, %c0_10, %c0_11, %c0_12] : memref<2x10x10x32xf32, #tpu.memory_space<vmem>>, vector<2x10x10x32xf32>
    tpu.vector_store %arg18[%c0_9, %c0_10, %c0_11, %c0_12], %4 {strides = array<i32>} : memref<2x10x10x32xf32, #tpu.memory_space<vmem>>, vector<2x10x10x32xf32>,
    %cst_13 = arith.constant 0.000000e+00 : f32
    %6 = vector.broadcast %cst_13 : f32 to vector<2x10x10x32xf32>
    %c0_14 = arith.constant 0 : index
    %c0_15 = arith.constant 0 : index
    %c0_16 = arith.constant 0 : index
    %c0_17 = arith.constant 0 : index
    %7 = vector.load %arg19[%c0_14, %c0_15, %c0_16, %c0_17] : memref<2x10x10x32xf32, #tpu.memory_space<vmem>>, vector<2x10x10x32xf32>
    tpu.vector_store %arg19[%c0_14, %c0_15, %c0_16, %c0_17], %6 {strides = array<i32>} : memref<2x10x10x32xf32, #tpu.memory_space<vmem>>, vector<2x10x10x32xf32>,
    %c0_18 = arith.constant 0 : index
    %c0_19 = arith.constant 0 : index
    %c0_20 = arith.constant 0 : index
    %c0_21 = arith.constant 0 : index
    %8 = vector.load %arg0[%c0_18, %c0_19, %c0_20, %c0_21] : memref<2x8x8x3xf32, #tpu.memory_space<vmem>>, vector<2x8x8x3xf32>
    %c0_22 = arith.constant 0 : index
    %c1 = arith.constant 1 : index
    %c1_23 = arith.constant 1 : index
    %c0_24 = arith.constant 0 : index
    %9 = vector.load %arg16[%c0_22, %c1, %c1_23, %c0_24] : memref<2x10x10x3xf32, #tpu.memory_space<vmem>>, vector<2x8x8x3xf32>
    tpu.vector_store %arg16[%c0_22, %c1, %c1_23, %c0_24], %8 {strides = array<i32>} : memref<2x10x10x3xf32, #tpu.memory_space<vmem>>, vector<2x8x8x3xf32>,
    %cst_25 = arith.constant 0.000000e+00 : f32
    %10 = vector.broadcast %cst_25 : f32 to vector<128x32xf32>
    %c0_26 = arith.constant 0 : index
    %c0_27 = arith.constant 0 : index
    %c0_28 = arith.constant 0 : index
    %c0_29 = arith.constant 0 : index
    %11 = vector.load %arg16[%c0_26, %c0_27, %c0_28, %c0_29] : memref<2x10x10x3xf32, #tpu.memory_space<vmem>>, vector<2x8x8x3xf32>
    %12 = vector.shape_cast %11 : vector<2x8x8x3xf32> to vector<128x3xf32>
    %13 = arith.truncf %12 : vector<128x3xf32> to vector<128x3xbf16>
    %c0_30 = arith.constant 0 : index
    %c0_31 = arith.constant 0 : index
    %c0_32 = arith.constant 0 : index
    %14 = vector.load %arg1[%c0_30, %c0_31, %c0_32] : memref<9x3x32xbf16, #tpu.memory_space<vmem>>, vector<1x3x32xbf16>
    %15 = vector.shape_cast %14 : vector<1x3x32xbf16> to vector<3x32xbf16>
    %cst_33 = arith.constant dense<0.000000e+00> : vector<128x32xf32>
    %16 = tpu.matmul %13, %15, %cst_33 {dimension_numbers = #tpu.dot_dimension_numbers<[1], [0], [0], [1], [0, 0, 1, 1], [], []>} : vector<128x3xbf16>, vector<3x32xbf16>, vector<128x32xf32> -> vector<128x32xf32>
    %17 = arith.addf %10, %16 : vector<128x32xf32>
    %c0_34 = arith.constant 0 : index
    %c0_35 = arith.constant 0 : index
    %c1_36 = arith.constant 1 : index
    %c0_37 = arith.constant 0 : index
    %18 = vector.load %arg16[%c0_34, %c0_35, %c1_36, %c0_37] : memref<2x10x10x3xf32, #tpu.memory_space<vmem>>, vector<2x8x8x3xf32>
    %19 = vector.shape_cast %18 : vector<2x8x8x3xf32> to vector<128x3xf32>
    %20 = arith.truncf %19 : vector<128x3xf32> to vector<128x3xbf16>
    %c1_38 = arith.constant 1 : index
    %c0_39 = arith.constant 0 : index
    %c0_40 = arith.constant 0 : index
    %21 = vector.load %arg1[%c1_38, %c0_39, %c0_40] : memref<9x3x32xbf16, #tpu.memory_space<vmem>>, vector<1x3x32xbf16>
    %22 = vector.shape_cast %21 : vector<1x3x32xbf16> to vector<3x32xbf16>
    %cst_41 = arith.constant dense<0.000000e+00> : vector<128x32xf32>
    %23 = tpu.matmul %20, %22, %cst_41 {dimension_numbers = #tpu.dot_dimension_numbers<[1], [0], [0], [1], [0, 0, 1, 1], [], []>} : vector<128x3xbf16>, vector<3x32xbf16>, vector<128x32xf32> -> vector<128x32xf32>
    %24 = arith.addf %17, %23 : vector<128x32xf32>
    %c0_42 = arith.constant 0 : index
    %c0_43 = arith.constant 0 : index
    %c2 = arith.constant 2 : index
    %c0_44 = arith.constant 0 : index
    %25 = vector.load %arg16[%c0_42, %c0_43, %c2, %c0_44] : memref<2x10x10x3xf32, #tpu.memory_space<vmem>>, vector<2x8x8x3xf32>
    %26 = vector.shape_cast %25 : vector<2x8x8x3xf32> to vector<128x3xf32>
    %27 = arith.truncf %26 : vector<128x3xf32> to vector<128x3xbf16>
    %c2_45 = arith.constant 2 : index
    %c0_46 = arith.constant 0 : index
    %c0_47 = arith.constant 0 : index
    %28 = vector.load %arg1[%c2_45, %c0_46, %c0_47] : memref<9x3x32xbf16, #tpu.memory_space<vmem>>, vector<1x3x32xbf16>
    %29 = vector.shape_cast %28 : vector<1x3x32xbf16> to vector<3x32xbf16>
    %cst_48 = arith.constant dense<0.000000e+00> : vector<128x32xf32>
    %30 = tpu.matmul %27, %29, %cst_48 {dimension_numbers = #tpu.dot_dimension_numbers<[1], [0], [0], [1], [0, 0, 1, 1], [], []>} : vector<128x3xbf16>, vector<3x32xbf16>, vector<128x32xf32> -> vector<128x32xf32>
    %31 = arith.addf %24, %30 : vector<128x32xf32>
    %c0_49 = arith.constant 0 : index
    %c1_50 = arith.constant 1 : index
    %c0_51 = arith.constant 0 : index
    %c0_52 = arith.constant 0 : index
    %32 = vector.load %arg16[%c0_49, %c1_50, %c0_51, %c0_52] : memref<2x10x10x3xf32, #tpu.memory_space<vmem>>, vector<2x8x8x3xf32>
    %33 = vector.shape_cast %32 : vector<2x8x8x3xf32> to vector<128x3xf32>
    %34 = arith.truncf %33 : vector<128x3xf32> to vector<128x3xbf16>
    %c3 = arith.constant 3 : index
    %c0_53 = arith.constant 0 : index
    %c0_54 = arith.constant 0 : index
    %35 = vector.load %arg1[%c3, %c0_53, %c0_54] : memref<9x3x32xbf16, #tpu.memory_space<vmem>>, vector<1x3x32xbf16>
    %36 = vector.shape_cast %35 : vector<1x3x32xbf16> to vector<3x32xbf16>
    %cst_55 = arith.constant dense<0.000000e+00> : vector<128x32xf32>
    %37 = tpu.matmul %34, %36, %cst_55 {dimension_numbers = #tpu.dot_dimension_numbers<[1], [0], [0], [1], [0, 0, 1, 1], [], []>} : vector<128x3xbf16>, vector<3x32xbf16>, vector<128x32xf32> -> vector<128x32xf32>
    %38 = arith.addf %31, %37 : vector<128x32xf32>
    %c0_56 = arith.constant 0 : index
    %c1_57 = arith.constant 1 : index
    %c1_58 = arith.constant 1 : index
    %c0_59 = arith.constant 0 : index
    %39 = vector.load %arg16[%c0_56, %c1_57, %c1_58, %c0_59] : memref<2x10x10x3xf32, #tpu.memory_space<vmem>>, vector<2x8x8x3xf32>
    %40 = vector.shape_cast %39 : vector<2x8x8x3xf32> to vector<128x3xf32>
    %41 = arith.truncf %40 : vector<128x3xf32> to vector<128x3xbf16>
    %c4 = arith.constant 4 : index
    %c0_60 = arith.constant 0 : index
    %c0_61 = arith.constant 0 : index
    %42 = vector.load %arg1[%c4, %c0_60, %c0_61] : memref<9x3x32xbf16, #tpu.memory_space<vmem>>, vector<1x3x32xbf16>
    %43 = vector.shape_cast %42 : vector<1x3x32xbf16> to vector<3x32xbf16>
    %cst_62 = arith.constant dense<0.000000e+00> : vector<128x32xf32>
    %44 = tpu.matmul %41, %43, %cst_62 {dimension_numbers = #tpu.dot_dimension_numbers<[1], [0], [0], [1], [0, 0, 1, 1], [], []>} : vector<128x3xbf16>, vector<3x32xbf16>, vector<128x32xf32> -> vector<128x32xf32>
    %45 = arith.addf %38, %44 : vector<128x32xf32>
    %c0_63 = arith.constant 0 : index
    %c1_64 = arith.constant 1 : index
    %c2_65 = arith.constant 2 : index
    %c0_66 = arith.constant 0 : index
    %46 = vector.load %arg16[%c0_63, %c1_64, %c2_65, %c0_66] : memref<2x10x10x3xf32, #tpu.memory_space<vmem>>, vector<2x8x8x3xf32>
    %47 = vector.shape_cast %46 : vector<2x8x8x3xf32> to vector<128x3xf32>
    %48 = arith.truncf %47 : vector<128x3xf32> to vector<128x3xbf16>
    %c5 = arith.constant 5 : index
    %c0_67 = arith.constant 0 : index
    %c0_68 = arith.constant 0 : index
    %49 = vector.load %arg1[%c5, %c0_67, %c0_68] : memref<9x3x32xbf16, #tpu.memory_space<vmem>>, vector<1x3x32xbf16>
    %50 = vector.shape_cast %49 : vector<1x3x32xbf16> to vector<3x32xbf16>
    %cst_69 = arith.constant dense<0.000000e+00> : vector<128x32xf32>
    %51 = tpu.matmul %48, %50, %cst_69 {dimension_numbers = #tpu.dot_dimension_numbers<[1], [0], [0], [1], [0, 0, 1, 1], [], []>} : vector<128x3xbf16>, vector<3x32xbf16>, vector<128x32xf32> -> vector<128x32xf32>
    %52 = arith.addf %45, %51 : vector<128x32xf32>
    %c0_70 = arith.constant 0 : index
    %c2_71 = arith.constant 2 : index
    %c0_72 = arith.constant 0 : index
    %c0_73 = arith.constant 0 : index
    %53 = vector.load %arg16[%c0_70, %c2_71, %c0_72, %c0_73] : memref<2x10x10x3xf32, #tpu.memory_space<vmem>>, vector<2x8x8x3xf32>
    %54 = vector.shape_cast %53 : vector<2x8x8x3xf32> to vector<128x3xf32>
    %55 = arith.truncf %54 : vector<128x3xf32> to vector<128x3xbf16>
    %c6 = arith.constant 6 : index
    %c0_74 = arith.constant 0 : index
    %c0_75 = arith.constant 0 : index
    %56 = vector.load %arg1[%c6, %c0_74, %c0_75] : memref<9x3x32xbf16, #tpu.memory_space<vmem>>, vector<1x3x32xbf16>
    %57 = vector.shape_cast %56 : vector<1x3x32xbf16> to vector<3x32xbf16>
    %cst_76 = arith.constant dense<0.000000e+00> : vector<128x32xf32>
    %58 = tpu.matmul %55, %57, %cst_76 {dimension_numbers = #tpu.dot_dimension_numbers<[1], [0], [0], [1], [0, 0, 1, 1], [], []>} : vector<128x3xbf16>, vector<3x32xbf16>, vector<128x32xf32> -> vector<128x32xf32>
    %59 = arith.addf %52, %58 : vector<128x32xf32>
    %c0_77 = arith.constant 0 : index
    %c2_78 = arith.constant 2 : index
    %c1_79 = arith.constant 1 : index
    %c0_80 = arith.constant 0 : index
    %60 = vector.load %arg16[%c0_77, %c2_78, %c1_79, %c0_80] : memref<2x10x10x3xf32, #tpu.memory_space<vmem>>, vector<2x8x8x3xf32>
    %61 = vector.shape_cast %60 : vector<2x8x8x3xf32> to vector<128x3xf32>
    %62 = arith.truncf %61 : vector<128x3xf32> to vector<128x3xbf16>
    %c7 = arith.constant 7 : index
    %c0_81 = arith.constant 0 : index
    %c0_82 = arith.constant 0 : index
    %63 = vector.load %arg1[%c7, %c0_81, %c0_82] : memref<9x3x32xbf16, #tpu.memory_space<vmem>>, vector<1x3x32xbf16>
    %64 = vector.shape_cast %63 : vector<1x3x32xbf16> to vector<3x32xbf16>
    %cst_83 = arith.constant dense<0.000000e+00> : vector<128x32xf32>
    %65 = tpu.matmul %62, %64, %cst_83 {dimension_numbers = #tpu.dot_dimension_numbers<[1], [0], [0], [1], [0, 0, 1, 1], [], []>} : vector<128x3xbf16>, vector<3x32xbf16>, vector<128x32xf32> -> vector<128x32xf32>
    %66 = arith.addf %59, %65 : vector<128x32xf32>
    %c0_84 = arith.constant 0 : index
    %c2_85 = arith.constant 2 : index
    %c2_86 = arith.constant 2 : index
    %c0_87 = arith.constant 0 : index
    %67 = vector.load %arg16[%c0_84, %c2_85, %c2_86, %c0_87] : memref<2x10x10x3xf32, #tpu.memory_space<vmem>>, vector<2x8x8x3xf32>
    %68 = vector.shape_cast %67 : vector<2x8x8x3xf32> to vector<128x3xf32>
    %69 = arith.truncf %68 : vector<128x3xf32> to vector<128x3xbf16>
    %c8 = arith.constant 8 : index
    %c0_88 = arith.constant 0 : index
    %c0_89 = arith.constant 0 : index
    %70 = vector.load %arg1[%c8, %c0_88, %c0_89] : memref<9x3x32xbf16, #tpu.memory_space<vmem>>, vector<1x3x32xbf16>
    %71 = vector.shape_cast %70 : vector<1x3x32xbf16> to vector<3x32xbf16>
    %cst_90 = arith.constant dense<0.000000e+00> : vector<128x32xf32>
    %72 = tpu.matmul %69, %71, %cst_90 {dimension_numbers = #tpu.dot_dimension_numbers<[1], [0], [0], [1], [0, 0, 1, 1], [], []>} : vector<128x3xbf16>, vector<3x32xbf16>, vector<128x32xf32> -> vector<128x32xf32>
    %73 = arith.addf %66, %72 : vector<128x32xf32>
    %c0_91 = arith.constant 0 : index
    %c0_92 = arith.constant 0 : index
    %74 = vector.load %arg2[%c0_91, %c0_92] : memref<1x32xf32, #tpu.memory_space<vmem>>, vector<1x32xf32>
    %75 = vector.broadcast %74 : vector<1x32xf32> to vector<128x32xf32>
    %76 = arith.addf %73, %75 : vector<128x32xf32>
    %77 = vector.shape_cast %76 : vector<128x32xf32> to vector<2x8x8x32xf32>
    %c0_93 = arith.constant 0 : index
    %c1_94 = arith.constant 1 : index
    %c1_95 = arith.constant 1 : index
    %c0_96 = arith.constant 0 : index
    %78 = vector.load %arg17[%c0_93, %c1_94, %c1_95, %c0_96] : memref<2x10x10x32xf32, #tpu.memory_space<vmem>>, vector<2x8x8x32xf32>
    tpu.vector_store %arg17[%c0_93, %c1_94, %c1_95, %c0_96], %77 {strides = array<i32>} : memref<2x10x10x32xf32, #tpu.memory_space<vmem>>, vector<2x8x8x32xf32>,
    %c0_97 = arith.constant 0 : index
    %c1_98 = arith.constant 1 : index
    %c1_99 = arith.constant 1 : index
    %c0_100 = arith.constant 0 : index
    %79 = vector.load %arg18[%c0_97, %c1_98, %c1_99, %c0_100] : memref<2x10x10x32xf32, #tpu.memory_space<vmem>>, vector<2x8x8x32xf32>
    tpu.vector_store %arg18[%c0_97, %c1_98, %c1_99, %c0_100], %77 {strides = array<i32>} : memref<2x10x10x32xf32, #tpu.memory_space<vmem>>, vector<2x8x8x32xf32>,
    %cst_101 = arith.constant 0.000000e+00 : f32
    %80 = vector.broadcast %cst_101 : f32 to vector<128x32xf32>
    %c0_102 = arith.constant 0 : index
    %c0_103 = arith.constant 0 : index
    %c0_104 = arith.constant 0 : index
    %c0_105 = arith.constant 0 : index
    %81 = vector.load %arg18[%c0_102, %c0_103, %c0_104, %c0_105] : memref<2x10x10x32xf32, #tpu.memory_space<vmem>>, vector<2x8x8x32xf32>
    %82 = vector.shape_cast %81 : vector<2x8x8x32xf32> to vector<128x32xf32>
    %83 = arith.truncf %82 : vector<128x32xf32> to vector<128x32xbf16>
    %c0_106 = arith.constant 0 : index
    %c0_107 = arith.constant 0 : index
    %c0_108 = arith.constant 0 : index
    %84 = vector.load %arg3[%c0_106, %c0_107, %c0_108] : memref<9x32x32xbf16, #tpu.memory_space<vmem>>, vector<1x32x32xbf16>
    %85 = vector.shape_cast %84 : vector<1x32x32xbf16> to vector<32x32xbf16>
    %cst_109 = arith.constant dense<0.000000e+00> : vector<128x32xf32>
    %86 = tpu.matmul %83, %85, %cst_109 {dimension_numbers = #tpu.dot_dimension_numbers<[1], [0], [0], [1], [0, 0, 1, 1], [], []>} : vector<128x32xbf16>, vector<32x32xbf16>, vector<128x32xf32> -> vector<128x32xf32>
    %87 = arith.addf %80, %86 : vector<128x32xf32>
    %c0_110 = arith.constant 0 : index
    %c0_111 = arith.constant 0 : index
    %c1_112 = arith.constant 1 : index
    %c0_113 = arith.constant 0 : index
    %88 = vector.load %arg18[%c0_110, %c0_111, %c1_112, %c0_113] : memref<2x10x10x32xf32, #tpu.memory_space<vmem>>, vector<2x8x8x32xf32>
    %89 = vector.shape_cast %88 : vector<2x8x8x32xf32> to vector<128x32xf32>
    %90 = arith.truncf %89 : vector<128x32xf32> to vector<128x32xbf16>
    %c1_114 = arith.constant 1 : index
    %c0_115 = arith.constant 0 : index
    %c0_116 = arith.constant 0 : index
    %91 = vector.load %arg3[%c1_114, %c0_115, %c0_116] : memref<9x32x32xbf16, #tpu.memory_space<vmem>>, vector<1x32x32xbf16>
    %92 = vector.shape_cast %91 : vector<1x32x32xbf16> to vector<32x32xbf16>
    %cst_117 = arith.constant dense<0.000000e+00> : vector<128x32xf32>
    %93 = tpu.matmul %90, %92, %cst_117 {dimension_numbers = #tpu.dot_dimension_numbers<[1], [0], [0], [1], [0, 0, 1, 1], [], []>} : vector<128x32xbf16>, vector<32x32xbf16>, vector<128x32xf32> -> vector<128x32xf32>
    %94 = arith.addf %87, %93 : vector<128x32xf32>
    %c0_118 = arith.constant 0 : index
    %c0_119 = arith.constant 0 : index
    %c2_120 = arith.constant 2 : index
    %c0_121 = arith.constant 0 : index
    %95 = vector.load %arg18[%c0_118, %c0_119, %c2_120, %c0_121] : memref<2x10x10x32xf32, #tpu.memory_space<vmem>>, vector<2x8x8x32xf32>
    %96 = vector.shape_cast %95 : vector<2x8x8x32xf32> to vector<128x32xf32>
    %97 = arith.truncf %96 : vector<128x32xf32> to vector<128x32xbf16>
    %c2_122 = arith.constant 2 : index
    %c0_123 = arith.constant 0 : index
    %c0_124 = arith.constant 0 : index
    %98 = vector.load %arg3[%c2_122, %c0_123, %c0_124] : memref<9x32x32xbf16, #tpu.memory_space<vmem>>, vector<1x32x32xbf16>
    %99 = vector.shape_cast %98 : vector<1x32x32xbf16> to vector<32x32xbf16>
    %cst_125 = arith.constant dense<0.000000e+00> : vector<128x32xf32>
    %100 = tpu.matmul %97, %99, %cst_125 {dimension_numbers = #tpu.dot_dimension_numbers<[1], [0], [0], [1], [0, 0, 1, 1], [], []>} : vector<128x32xbf16>, vector<32x32xbf16>, vector<128x32xf32> -> vector<128x32xf32>
    %101 = arith.addf %94, %100 : vector<128x32xf32>
    %c0_126 = arith.constant 0 : index
    %c1_127 = arith.constant 1 : index
    %c0_128 = arith.constant 0 : index
    %c0_129 = arith.constant 0 : index
    %102 = vector.load %arg18[%c0_126, %c1_127, %c0_128, %c0_129] : memref<2x10x10x32xf32, #tpu.memory_space<vmem>>, vector<2x8x8x32xf32>
    %103 = vector.shape_cast %102 : vector<2x8x8x32xf32> to vector<128x32xf32>
    %104 = arith.truncf %103 : vector<128x32xf32> to vector<128x32xbf16>
    %c3_130 = arith.constant 3 : index
    %c0_131 = arith.constant 0 : index
    %c0_132 = arith.constant 0 : index
    %105 = vector.load %arg3[%c3_130, %c0_131, %c0_132] : memref<9x32x32xbf16, #tpu.memory_space<vmem>>, vector<1x32x32xbf16>
    %106 = vector.shape_cast %105 : vector<1x32x32xbf16> to vector<32x32xbf16>
    %cst_133 = arith.constant dense<0.000000e+00> : vector<128x32xf32>
    %107 = tpu.matmul %104, %106, %cst_133 {dimension_numbers = #tpu.dot_dimension_numbers<[1], [0], [0], [1], [0, 0, 1, 1], [], []>} : vector<128x32xbf16>, vector<32x32xbf16>, vector<128x32xf32> -> vector<128x32xf32>
    %108 = arith.addf %101, %107 : vector<128x32xf32>
    %c0_134 = arith.constant 0 : index
    %c1_135 = arith.constant 1 : index
    %c1_136 = arith.constant 1 : index
    %c0_137 = arith.constant 0 : index
    %109 = vector.load %arg18[%c0_134, %c1_135, %c1_136, %c0_137] : memref<2x10x10x32xf32, #tpu.memory_space<vmem>>, vector<2x8x8x32xf32>
    %110 = vector.shape_cast %109 : vector<2x8x8x32xf32> to vector<128x32xf32>
    %111 = arith.truncf %110 : vector<128x32xf32> to vector<128x32xbf16>
    %c4_138 = arith.constant 4 : index
    %c0_139 = arith.constant 0 : index
    %c0_140 = arith.constant 0 : index
    %112 = vector.load %arg3[%c4_138, %c0_139, %c0_140] : memref<9x32x32xbf16, #tpu.memory_space<vmem>>, vector<1x32x32xbf16>
    %113 = vector.shape_cast %112 : vector<1x32x32xbf16> to vector<32x32xbf16>
    %cst_141 = arith.constant dense<0.000000e+00> : vector<128x32xf32>
    %114 = tpu.matmul %111, %113, %cst_141 {dimension_numbers = #tpu.dot_dimension_numbers<[1], [0], [0], [1], [0, 0, 1, 1], [], []>} : vector<128x32xbf16>, vector<32x32xbf16>, vector<128x32xf32> -> vector<128x32xf32>
    %115 = arith.addf %108, %114 : vector<128x32xf32>
    %c0_142 = arith.constant 0 : index
    %c1_143 = arith.constant 1 : index
    %c2_144 = arith.constant 2 : index
    %c0_145 = arith.constant 0 : index
    %116 = vector.load %arg18[%c0_142, %c1_143, %c2_144, %c0_145] : memref<2x10x10x32xf32, #tpu.memory_space<vmem>>, vector<2x8x8x32xf32>
    %117 = vector.shape_cast %116 : vector<2x8x8x32xf32> to vector<128x32xf32>
    %118 = arith.truncf %117 : vector<128x32xf32> to vector<128x32xbf16>
    %c5_146 = arith.constant 5 : index
    %c0_147 = arith.constant 0 : index
    %c0_148 = arith.constant 0 : index
    %119 = vector.load %arg3[%c5_146, %c0_147, %c0_148] : memref<9x32x32xbf16, #tpu.memory_space<vmem>>, vector<1x32x32xbf16>
    %120 = vector.shape_cast %119 : vector<1x32x32xbf16> to vector<32x32xbf16>
    %cst_149 = arith.constant dense<0.000000e+00> : vector<128x32xf32>
    %121 = tpu.matmul %118, %120, %cst_149 {dimension_numbers = #tpu.dot_dimension_numbers<[1], [0], [0], [1], [0, 0, 1, 1], [], []>} : vector<128x32xbf16>, vector<32x32xbf16>, vector<128x32xf32> -> vector<128x32xf32>
    %122 = arith.addf %115, %121 : vector<128x32xf32>
    %c0_150 = arith.constant 0 : index
    %c2_151 = arith.constant 2 : index
    %c0_152 = arith.constant 0 : index
    %c0_153 = arith.constant 0 : index
    %123 = vector.load %arg18[%c0_150, %c2_151, %c0_152, %c0_153] : memref<2x10x10x32xf32, #tpu.memory_space<vmem>>, vector<2x8x8x32xf32>
    %124 = vector.shape_cast %123 : vector<2x8x8x32xf32> to vector<128x32xf32>
    %125 = arith.truncf %124 : vector<128x32xf32> to vector<128x32xbf16>
    %c6_154 = arith.constant 6 : index
    %c0_155 = arith.constant 0 : index
    %c0_156 = arith.constant 0 : index
    %126 = vector.load %arg3[%c6_154, %c0_155, %c0_156] : memref<9x32x32xbf16, #tpu.memory_space<vmem>>, vector<1x32x32xbf16>
    %127 = vector.shape_cast %126 : vector<1x32x32xbf16> to vector<32x32xbf16>
    %cst_157 = arith.constant dense<0.000000e+00> : vector<128x32xf32>
    %128 = tpu.matmul %125, %127, %cst_157 {dimension_numbers = #tpu.dot_dimension_numbers<[1], [0], [0], [1], [0, 0, 1, 1], [], []>} : vector<128x32xbf16>, vector<32x32xbf16>, vector<128x32xf32> -> vector<128x32xf32>
    %129 = arith.addf %122, %128 : vector<128x32xf32>
    %c0_158 = arith.constant 0 : index
    %c2_159 = arith.constant 2 : index
    %c1_160 = arith.constant 1 : index
    %c0_161 = arith.constant 0 : index
    %130 = vector.load %arg18[%c0_158, %c2_159, %c1_160, %c0_161] : memref<2x10x10x32xf32, #tpu.memory_space<vmem>>, vector<2x8x8x32xf32>
    %131 = vector.shape_cast %130 : vector<2x8x8x32xf32> to vector<128x32xf32>
    %132 = arith.truncf %131 : vector<128x32xf32> to vector<128x32xbf16>
    %c7_162 = arith.constant 7 : index
    %c0_163 = arith.constant 0 : index
    %c0_164 = arith.constant 0 : index
    %133 = vector.load %arg3[%c7_162, %c0_163, %c0_164] : memref<9x32x32xbf16, #tpu.memory_space<vmem>>, vector<1x32x32xbf16>
    %134 = vector.shape_cast %133 : vector<1x32x32xbf16> to vector<32x32xbf16>
    %cst_165 = arith.constant dense<0.000000e+00> : vector<128x32xf32>
    %135 = tpu.matmul %132, %134, %cst_165 {dimension_numbers = #tpu.dot_dimension_numbers<[1], [0], [0], [1], [0, 0, 1, 1], [], []>} : vector<128x32xbf16>, vector<32x32xbf16>, vector<128x32xf32> -> vector<128x32xf32>
    %136 = arith.addf %129, %135 : vector<128x32xf32>
    %c0_166 = arith.constant 0 : index
    %c2_167 = arith.constant 2 : index
    %c2_168 = arith.constant 2 : index
    %c0_169 = arith.constant 0 : index
    %137 = vector.load %arg18[%c0_166, %c2_167, %c2_168, %c0_169] : memref<2x10x10x32xf32, #tpu.memory_space<vmem>>, vector<2x8x8x32xf32>
    %138 = vector.shape_cast %137 : vector<2x8x8x32xf32> to vector<128x32xf32>
    %139 = arith.truncf %138 : vector<128x32xf32> to vector<128x32xbf16>
    %c8_170 = arith.constant 8 : index
    %c0_171 = arith.constant 0 : index
    %c0_172 = arith.constant 0 : index
    %140 = vector.load %arg3[%c8_170, %c0_171, %c0_172] : memref<9x32x32xbf16, #tpu.memory_space<vmem>>, vector<1x32x32xbf16>
    %141 = vector.shape_cast %140 : vector<1x32x32xbf16> to vector<32x32xbf16>
    %cst_173 = arith.constant dense<0.000000e+00> : vector<128x32xf32>
    %142 = tpu.matmul %139, %141, %cst_173 {dimension_numbers = #tpu.dot_dimension_numbers<[1], [0], [0], [1], [0, 0, 1, 1], [], []>} : vector<128x32xbf16>, vector<32x32xbf16>, vector<128x32xf32> -> vector<128x32xf32>
    %143 = arith.addf %136, %142 : vector<128x32xf32>
    %c0_174 = arith.constant 0 : index
    %c0_175 = arith.constant 0 : index
    %144 = vector.load %arg4[%c0_174, %c0_175] : memref<1x32xf32, #tpu.memory_space<vmem>>, vector<1x32xf32>
    %145 = vector.broadcast %144 : vector<1x32xf32> to vector<128x32xf32>
    %146 = arith.addf %143, %145 : vector<128x32xf32>
    %cst_176 = arith.constant 0.000000e+00 : f32
    %147 = vector.broadcast %cst_176 : f32 to vector<128x32xf32>
    %148 = arith.maximumf %146, %147 : vector<128x32xf32>
    %149 = vector.shape_cast %148 : vector<128x32xf32> to vector<2x8x8x32xf32>
    %c0_177 = arith.constant 0 : index
    %c1_178 = arith.constant 1 : index
    %c1_179 = arith.constant 1 : index
    %c0_180 = arith.constant 0 : index
    %150 = vector.load %arg19[%c0_177, %c1_178, %c1_179, %c0_180] : memref<2x10x10x32xf32, #tpu.memory_space<vmem>>, vector<2x8x8x32xf32>
    tpu.vector_store %arg19[%c0_177, %c1_178, %c1_179, %c0_180], %149 {strides = array<i32>} : memref<2x10x10x32xf32, #tpu.memory_space<vmem>>, vector<2x8x8x32xf32>,
    %c0_181 = arith.constant 0 : index
    %c1_182 = arith.constant 1 : index
    %c1_183 = arith.constant 1 : index
    %c0_184 = arith.constant 0 : index
    %151 = vector.load %arg18[%c0_181, %c1_182, %c1_183, %c0_184] : memref<2x10x10x32xf32, #tpu.memory_space<vmem>>, vector<2x8x8x32xf32>
    %152 = vector.shape_cast %151 : vector<2x8x8x32xf32> to vector<128x32xf32>
    %cst_185 = arith.constant 0.000000e+00 : f32
    %153 = vector.broadcast %cst_185 : f32 to vector<128x32xf32>
    %c0_186 = arith.constant 0 : index
    %c0_187 = arith.constant 0 : index
    %c0_188 = arith.constant 0 : index
    %c0_189 = arith.constant 0 : index
    %154 = vector.load %arg19[%c0_186, %c0_187, %c0_188, %c0_189] : memref<2x10x10x32xf32, #tpu.memory_space<vmem>>, vector<2x8x8x32xf32>
    %155 = vector.shape_cast %154 : vector<2x8x8x32xf32> to vector<128x32xf32>
    %156 = arith.truncf %155 : vector<128x32xf32> to vector<128x32xbf16>
    %c0_190 = arith.constant 0 : index
    %c0_191 = arith.constant 0 : index
    %c0_192 = arith.constant 0 : index
    %157 = vector.load %arg5[%c0_190, %c0_191, %c0_192] : memref<9x32x32xbf16, #tpu.memory_space<vmem>>, vector<1x32x32xbf16>
    %158 = vector.shape_cast %157 : vector<1x32x32xbf16> to vector<32x32xbf16>
    %cst_193 = arith.constant dense<0.000000e+00> : vector<128x32xf32>
    %159 = tpu.matmul %156, %158, %cst_193 {dimension_numbers = #tpu.dot_dimension_numbers<[1], [0], [0], [1], [0, 0, 1, 1], [], []>} : vector<128x32xbf16>, vector<32x32xbf16>, vector<128x32xf32> -> vector<128x32xf32>
    %160 = arith.addf %153, %159 : vector<128x32xf32>
    %c0_194 = arith.constant 0 : index
    %c0_195 = arith.constant 0 : index
    %c1_196 = arith.constant 1 : index
    %c0_197 = arith.constant 0 : index
    %161 = vector.load %arg19[%c0_194, %c0_195, %c1_196, %c0_197] : memref<2x10x10x32xf32, #tpu.memory_space<vmem>>, vector<2x8x8x32xf32>
    %162 = vector.shape_cast %161 : vector<2x8x8x32xf32> to vector<128x32xf32>
    %163 = arith.truncf %162 : vector<128x32xf32> to vector<128x32xbf16>
    %c1_198 = arith.constant 1 : index
    %c0_199 = arith.constant 0 : index
    %c0_200 = arith.constant 0 : index
    %164 = vector.load %arg5[%c1_198, %c0_199, %c0_200] : memref<9x32x32xbf16, #tpu.memory_space<vmem>>, vector<1x32x32xbf16>
    %165 = vector.shape_cast %164 : vector<1x32x32xbf16> to vector<32x32xbf16>
    %cst_201 = arith.constant dense<0.000000e+00> : vector<128x32xf32>
    %166 = tpu.matmul %163, %165, %cst_201 {dimension_numbers = #tpu.dot_dimension_numbers<[1], [0], [0], [1], [0, 0, 1, 1], [], []>} : vector<128x32xbf16>, vector<32x32xbf16>, vector<128x32xf32> -> vector<128x32xf32>
    %167 = arith.addf %160, %166 : vector<128x32xf32>
    %c0_202 = arith.constant 0 : index
    %c0_203 = arith.constant 0 : index
    %c2_204 = arith.constant 2 : index
    %c0_205 = arith.constant 0 : index
    %168 = vector.load %arg19[%c0_202, %c0_203, %c2_204, %c0_205] : memref<2x10x10x32xf32, #tpu.memory_space<vmem>>, vector<2x8x8x32xf32>
    %169 = vector.shape_cast %168 : vector<2x8x8x32xf32> to vector<128x32xf32>
    %170 = arith.truncf %169 : vector<128x32xf32> to vector<128x32xbf16>
    %c2_206 = arith.constant 2 : index
    %c0_207 = arith.constant 0 : index
    %c0_208 = arith.constant 0 : index
    %171 = vector.load %arg5[%c2_206, %c0_207, %c0_208] : memref<9x32x32xbf16, #tpu.memory_space<vmem>>, vector<1x32x32xbf16>
    %172 = vector.shape_cast %171 : vector<1x32x32xbf16> to vector<32x32xbf16>
    %cst_209 = arith.constant dense<0.000000e+00> : vector<128x32xf32>
    %173 = tpu.matmul %170, %172, %cst_209 {dimension_numbers = #tpu.dot_dimension_numbers<[1], [0], [0], [1], [0, 0, 1, 1], [], []>} : vector<128x32xbf16>, vector<32x32xbf16>, vector<128x32xf32> -> vector<128x32xf32>
    %174 = arith.addf %167, %173 : vector<128x32xf32>
    %c0_210 = arith.constant 0 : index
    %c1_211 = arith.constant 1 : index
    %c0_212 = arith.constant 0 : index
    %c0_213 = arith.constant 0 : index
    %175 = vector.load %arg19[%c0_210, %c1_211, %c0_212, %c0_213] : memref<2x10x10x32xf32, #tpu.memory_space<vmem>>, vector<2x8x8x32xf32>
    %176 = vector.shape_cast %175 : vector<2x8x8x32xf32> to vector<128x32xf32>
    %177 = arith.truncf %176 : vector<128x32xf32> to vector<128x32xbf16>
    %c3_214 = arith.constant 3 : index
    %c0_215 = arith.constant 0 : index
    %c0_216 = arith.constant 0 : index
    %178 = vector.load %arg5[%c3_214, %c0_215, %c0_216] : memref<9x32x32xbf16, #tpu.memory_space<vmem>>, vector<1x32x32xbf16>
    %179 = vector.shape_cast %178 : vector<1x32x32xbf16> to vector<32x32xbf16>
    %cst_217 = arith.constant dense<0.000000e+00> : vector<128x32xf32>
    %180 = tpu.matmul %177, %179, %cst_217 {dimension_numbers = #tpu.dot_dimension_numbers<[1], [0], [0], [1], [0, 0, 1, 1], [], []>} : vector<128x32xbf16>, vector<32x32xbf16>, vector<128x32xf32> -> vector<128x32xf32>
    %181 = arith.addf %174, %180 : vector<128x32xf32>
    %c0_218 = arith.constant 0 : index
    %c1_219 = arith.constant 1 : index
    %c1_220 = arith.constant 1 : index
    %c0_221 = arith.constant 0 : index
    %182 = vector.load %arg19[%c0_218, %c1_219, %c1_220, %c0_221] : memref<2x10x10x32xf32, #tpu.memory_space<vmem>>, vector<2x8x8x32xf32>
    %183 = vector.shape_cast %182 : vector<2x8x8x32xf32> to vector<128x32xf32>
    %184 = arith.truncf %183 : vector<128x32xf32> to vector<128x32xbf16>
    %c4_222 = arith.constant 4 : index
    %c0_223 = arith.constant 0 : index
    %c0_224 = arith.constant 0 : index
    %185 = vector.load %arg5[%c4_222, %c0_223, %c0_224] : memref<9x32x32xbf16, #tpu.memory_space<vmem>>, vector<1x32x32xbf16>
    %186 = vector.shape_cast %185 : vector<1x32x32xbf16> to vector<32x32xbf16>
    %cst_225 = arith.constant dense<0.000000e+00> : vector<128x32xf32>
    %187 = tpu.matmul %184, %186, %cst_225 {dimension_numbers = #tpu.dot_dimension_numbers<[1], [0], [0], [1], [0, 0, 1, 1], [], []>} : vector<128x32xbf16>, vector<32x32xbf16>, vector<128x32xf32> -> vector<128x32xf32>
    %188 = arith.addf %181, %187 : vector<128x32xf32>
    %c0_226 = arith.constant 0 : index
    %c1_227 = arith.constant 1 : index
    %c2_228 = arith.constant 2 : index
    %c0_229 = arith.constant 0 : index
    %189 = vector.load %arg19[%c0_226, %c1_227, %c2_228, %c0_229] : memref<2x10x10x32xf32, #tpu.memory_space<vmem>>, vector<2x8x8x32xf32>
    %190 = vector.shape_cast %189 : vector<2x8x8x32xf32> to vector<128x32xf32>
    %191 = arith.truncf %190 : vector<128x32xf32> to vector<128x32xbf16>
    %c5_230 = arith.constant 5 : index
    %c0_231 = arith.constant 0 : index
    %c0_232 = arith.constant 0 : index
    %192 = vector.load %arg5[%c5_230, %c0_231, %c0_232] : memref<9x32x32xbf16, #tpu.memory_space<vmem>>, vector<1x32x32xbf16>
    %193 = vector.shape_cast %192 : vector<1x32x32xbf16> to vector<32x32xbf16>
    %cst_233 = arith.constant dense<0.000000e+00> : vector<128x32xf32>
    %194 = tpu.matmul %191, %193, %cst_233 {dimension_numbers = #tpu.dot_dimension_numbers<[1], [0], [0], [1], [0, 0, 1, 1], [], []>} : vector<128x32xbf16>, vector<32x32xbf16>, vector<128x32xf32> -> vector<128x32xf32>
    %195 = arith.addf %188, %194 : vector<128x32xf32>
    %c0_234 = arith.constant 0 : index
    %c2_235 = arith.constant 2 : index
    %c0_236 = arith.constant 0 : index
    %c0_237 = arith.constant 0 : index
    %196 = vector.load %arg19[%c0_234, %c2_235, %c0_236, %c0_237] : memref<2x10x10x32xf32, #tpu.memory_space<vmem>>, vector<2x8x8x32xf32>
    %197 = vector.shape_cast %196 : vector<2x8x8x32xf32> to vector<128x32xf32>
    %198 = arith.truncf %197 : vector<128x32xf32> to vector<128x32xbf16>
    %c6_238 = arith.constant 6 : index
    %c0_239 = arith.constant 0 : index
    %c0_240 = arith.constant 0 : index
    %199 = vector.load %arg5[%c6_238, %c0_239, %c0_240] : memref<9x32x32xbf16, #tpu.memory_space<vmem>>, vector<1x32x32xbf16>
    %200 = vector.shape_cast %199 : vector<1x32x32xbf16> to vector<32x32xbf16>
    %cst_241 = arith.constant dense<0.000000e+00> : vector<128x32xf32>
    %201 = tpu.matmul %198, %200, %cst_241 {dimension_numbers = #tpu.dot_dimension_numbers<[1], [0], [0], [1], [0, 0, 1, 1], [], []>} : vector<128x32xbf16>, vector<32x32xbf16>, vector<128x32xf32> -> vector<128x32xf32>
    %202 = arith.addf %195, %201 : vector<128x32xf32>
    %c0_242 = arith.constant 0 : index
    %c2_243 = arith.constant 2 : index
    %c1_244 = arith.constant 1 : index
    %c0_245 = arith.constant 0 : index
    %203 = vector.load %arg19[%c0_242, %c2_243, %c1_244, %c0_245] : memref<2x10x10x32xf32, #tpu.memory_space<vmem>>, vector<2x8x8x32xf32>
    %204 = vector.shape_cast %203 : vector<2x8x8x32xf32> to vector<128x32xf32>
    %205 = arith.truncf %204 : vector<128x32xf32> to vector<128x32xbf16>
    %c7_246 = arith.constant 7 : index
    %c0_247 = arith.constant 0 : index
    %c0_248 = arith.constant 0 : index
    %206 = vector.load %arg5[%c7_246, %c0_247, %c0_248] : memref<9x32x32xbf16, #tpu.memory_space<vmem>>, vector<1x32x32xbf16>
    %207 = vector.shape_cast %206 : vector<1x32x32xbf16> to vector<32x32xbf16>
    %cst_249 = arith.constant dense<0.000000e+00> : vector<128x32xf32>
    %208 = tpu.matmul %205, %207, %cst_249 {dimension_numbers = #tpu.dot_dimension_numbers<[1], [0], [0], [1], [0, 0, 1, 1], [], []>} : vector<128x32xbf16>, vector<32x32xbf16>, vector<128x32xf32> -> vector<128x32xf32>
    %209 = arith.addf %202, %208 : vector<128x32xf32>
    %c0_250 = arith.constant 0 : index
    %c2_251 = arith.constant 2 : index
    %c2_252 = arith.constant 2 : index
    %c0_253 = arith.constant 0 : index
    %210 = vector.load %arg19[%c0_250, %c2_251, %c2_252, %c0_253] : memref<2x10x10x32xf32, #tpu.memory_space<vmem>>, vector<2x8x8x32xf32>
    %211 = vector.shape_cast %210 : vector<2x8x8x32xf32> to vector<128x32xf32>
    %212 = arith.truncf %211 : vector<128x32xf32> to vector<128x32xbf16>
    %c8_254 = arith.constant 8 : index
    %c0_255 = arith.constant 0 : index
    %c0_256 = arith.constant 0 : index
    %213 = vector.load %arg5[%c8_254, %c0_255, %c0_256] : memref<9x32x32xbf16, #tpu.memory_space<vmem>>, vector<1x32x32xbf16>
    %214 = vector.shape_cast %213 : vector<1x32x32xbf16> to vector<32x32xbf16>
    %cst_257 = arith.constant dense<0.000000e+00> : vector<128x32xf32>
    %215 = tpu.matmul %212, %214, %cst_257 {dimension_numbers = #tpu.dot_dimension_numbers<[1], [0], [0], [1], [0, 0, 1, 1], [], []>} : vector<128x32xbf16>, vector<32x32xbf16>, vector<128x32xf32> -> vector<128x32xf32>
    %216 = arith.addf %209, %215 : vector<128x32xf32>
    %c0_258 = arith.constant 0 : index
    %c0_259 = arith.constant 0 : index
    %217 = vector.load %arg6[%c0_258, %c0_259] : memref<1x32xf32, #tpu.memory_space<vmem>>, vector<1x32xf32>
    %218 = vector.broadcast %217 : vector<1x32xf32> to vector<128x32xf32>
    %219 = arith.addf %216, %218 : vector<128x32xf32>
    %220 = arith.addf %219, %152 : vector<128x32xf32>
    %221 = vector.shape_cast %220 : vector<128x32xf32> to vector<2x8x8x32xf32>
    %c0_260 = arith.constant 0 : index
    %c1_261 = arith.constant 1 : index
    %c1_262 = arith.constant 1 : index
    %c0_263 = arith.constant 0 : index
    %222 = vector.load %arg18[%c0_260, %c1_261, %c1_262, %c0_263] : memref<2x10x10x32xf32, #tpu.memory_space<vmem>>, vector<2x8x8x32xf32>
    tpu.vector_store %arg18[%c0_260, %c1_261, %c1_262, %c0_263], %221 {strides = array<i32>} : memref<2x10x10x32xf32, #tpu.memory_space<vmem>>, vector<2x8x8x32xf32>,
    %cst_264 = arith.constant 0.000000e+00 : f32
    %223 = vector.broadcast %cst_264 : f32 to vector<128x32xf32>
    %c0_265 = arith.constant 0 : index
    %c0_266 = arith.constant 0 : index
    %c0_267 = arith.constant 0 : index
    %c0_268 = arith.constant 0 : index
    %224 = vector.load %arg18[%c0_265, %c0_266, %c0_267, %c0_268] : memref<2x10x10x32xf32, #tpu.memory_space<vmem>>, vector<2x8x8x32xf32>
    %225 = vector.shape_cast %224 : vector<2x8x8x32xf32> to vector<128x32xf32>
    %226 = arith.truncf %225 : vector<128x32xf32> to vector<128x32xbf16>
    %c0_269 = arith.constant 0 : index
    %c0_270 = arith.constant 0 : index
    %c0_271 = arith.constant 0 : index
    %227 = vector.load %arg7[%c0_269, %c0_270, %c0_271] : memref<9x32x32xbf16, #tpu.memory_space<vmem>>, vector<1x32x32xbf16>
    %228 = vector.shape_cast %227 : vector<1x32x32xbf16> to vector<32x32xbf16>
    %cst_272 = arith.constant dense<0.000000e+00> : vector<128x32xf32>
    %229 = tpu.matmul %226, %228, %cst_272 {dimension_numbers = #tpu.dot_dimension_numbers<[1], [0], [0], [1], [0, 0, 1, 1], [], []>} : vector<128x32xbf16>, vector<32x32xbf16>, vector<128x32xf32> -> vector<128x32xf32>
    %230 = arith.addf %223, %229 : vector<128x32xf32>
    %c0_273 = arith.constant 0 : index
    %c0_274 = arith.constant 0 : index
    %c1_275 = arith.constant 1 : index
    %c0_276 = arith.constant 0 : index
    %231 = vector.load %arg18[%c0_273, %c0_274, %c1_275, %c0_276] : memref<2x10x10x32xf32, #tpu.memory_space<vmem>>, vector<2x8x8x32xf32>
    %232 = vector.shape_cast %231 : vector<2x8x8x32xf32> to vector<128x32xf32>
    %233 = arith.truncf %232 : vector<128x32xf32> to vector<128x32xbf16>
    %c1_277 = arith.constant 1 : index
    %c0_278 = arith.constant 0 : index
    %c0_279 = arith.constant 0 : index
    %234 = vector.load %arg7[%c1_277, %c0_278, %c0_279] : memref<9x32x32xbf16, #tpu.memory_space<vmem>>, vector<1x32x32xbf16>
    %235 = vector.shape_cast %234 : vector<1x32x32xbf16> to vector<32x32xbf16>
    %cst_280 = arith.constant dense<0.000000e+00> : vector<128x32xf32>
    %236 = tpu.matmul %233, %235, %cst_280 {dimension_numbers = #tpu.dot_dimension_numbers<[1], [0], [0], [1], [0, 0, 1, 1], [], []>} : vector<128x32xbf16>, vector<32x32xbf16>, vector<128x32xf32> -> vector<128x32xf32>
    %237 = arith.addf %230, %236 : vector<128x32xf32>
    %c0_281 = arith.constant 0 : index
    %c0_282 = arith.constant 0 : index
    %c2_283 = arith.constant 2 : index
    %c0_284 = arith.constant 0 : index
    %238 = vector.load %arg18[%c0_281, %c0_282, %c2_283, %c0_284] : memref<2x10x10x32xf32, #tpu.memory_space<vmem>>, vector<2x8x8x32xf32>
    %239 = vector.shape_cast %238 : vector<2x8x8x32xf32> to vector<128x32xf32>
    %240 = arith.truncf %239 : vector<128x32xf32> to vector<128x32xbf16>
    %c2_285 = arith.constant 2 : index
    %c0_286 = arith.constant 0 : index
    %c0_287 = arith.constant 0 : index
    %241 = vector.load %arg7[%c2_285, %c0_286, %c0_287] : memref<9x32x32xbf16, #tpu.memory_space<vmem>>, vector<1x32x32xbf16>
    %242 = vector.shape_cast %241 : vector<1x32x32xbf16> to vector<32x32xbf16>
    %cst_288 = arith.constant dense<0.000000e+00> : vector<128x32xf32>
    %243 = tpu.matmul %240, %242, %cst_288 {dimension_numbers = #tpu.dot_dimension_numbers<[1], [0], [0], [1], [0, 0, 1, 1], [], []>} : vector<128x32xbf16>, vector<32x32xbf16>, vector<128x32xf32> -> vector<128x32xf32>
    %244 = arith.addf %237, %243 : vector<128x32xf32>
    %c0_289 = arith.constant 0 : index
    %c1_290 = arith.constant 1 : index
    %c0_291 = arith.constant 0 : index
    %c0_292 = arith.constant 0 : index
    %245 = vector.load %arg18[%c0_289, %c1_290, %c0_291, %c0_292] : memref<2x10x10x32xf32, #tpu.memory_space<vmem>>, vector<2x8x8x32xf32>
    %246 = vector.shape_cast %245 : vector<2x8x8x32xf32> to vector<128x32xf32>
    %247 = arith.truncf %246 : vector<128x32xf32> to vector<128x32xbf16>
    %c3_293 = arith.constant 3 : index
    %c0_294 = arith.constant 0 : index
    %c0_295 = arith.constant 0 : index
    %248 = vector.load %arg7[%c3_293, %c0_294, %c0_295] : memref<9x32x32xbf16, #tpu.memory_space<vmem>>, vector<1x32x32xbf16>
    %249 = vector.shape_cast %248 : vector<1x32x32xbf16> to vector<32x32xbf16>
    %cst_296 = arith.constant dense<0.000000e+00> : vector<128x32xf32>
    %250 = tpu.matmul %247, %249, %cst_296 {dimension_numbers = #tpu.dot_dimension_numbers<[1], [0], [0], [1], [0, 0, 1, 1], [], []>} : vector<128x32xbf16>, vector<32x32xbf16>, vector<128x32xf32> -> vector<128x32xf32>
    %251 = arith.addf %244, %250 : vector<128x32xf32>
    %c0_297 = arith.constant 0 : index
    %c1_298 = arith.constant 1 : index
    %c1_299 = arith.constant 1 : index
    %c0_300 = arith.constant 0 : index
    %252 = vector.load %arg18[%c0_297, %c1_298, %c1_299, %c0_300] : memref<2x10x10x32xf32, #tpu.memory_space<vmem>>, vector<2x8x8x32xf32>
    %253 = vector.shape_cast %252 : vector<2x8x8x32xf32> to vector<128x32xf32>
    %254 = arith.truncf %253 : vector<128x32xf32> to vector<128x32xbf16>
    %c4_301 = arith.constant 4 : index
    %c0_302 = arith.constant 0 : index
    %c0_303 = arith.constant 0 : index
    %255 = vector.load %arg7[%c4_301, %c0_302, %c0_303] : memref<9x32x32xbf16, #tpu.memory_space<vmem>>, vector<1x32x32xbf16>
    %256 = vector.shape_cast %255 : vector<1x32x32xbf16> to vector<32x32xbf16>
    %cst_304 = arith.constant dense<0.000000e+00> : vector<128x32xf32>
    %257 = tpu.matmul %254, %256, %cst_304 {dimension_numbers = #tpu.dot_dimension_numbers<[1], [0], [0], [1], [0, 0, 1, 1], [], []>} : vector<128x32xbf16>, vector<32x32xbf16>, vector<128x32xf32> -> vector<128x32xf32>
    %258 = arith.addf %251, %257 : vector<128x32xf32>
    %c0_305 = arith.constant 0 : index
    %c1_306 = arith.constant 1 : index
    %c2_307 = arith.constant 2 : index
    %c0_308 = arith.constant 0 : index
    %259 = vector.load %arg18[%c0_305, %c1_306, %c2_307, %c0_308] : memref<2x10x10x32xf32, #tpu.memory_space<vmem>>, vector<2x8x8x32xf32>
    %260 = vector.shape_cast %259 : vector<2x8x8x32xf32> to vector<128x32xf32>
    %261 = arith.truncf %260 : vector<128x32xf32> to vector<128x32xbf16>
    %c5_309 = arith.constant 5 : index
    %c0_310 = arith.constant 0 : index
    %c0_311 = arith.constant 0 : index
    %262 = vector.load %arg7[%c5_309, %c0_310, %c0_311] : memref<9x32x32xbf16, #tpu.memory_space<vmem>>, vector<1x32x32xbf16>
    %263 = vector.shape_cast %262 : vector<1x32x32xbf16> to vector<32x32xbf16>
    %cst_312 = arith.constant dense<0.000000e+00> : vector<128x32xf32>
    %264 = tpu.matmul %261, %263, %cst_312 {dimension_numbers = #tpu.dot_dimension_numbers<[1], [0], [0], [1], [0, 0, 1, 1], [], []>} : vector<128x32xbf16>, vector<32x32xbf16>, vector<128x32xf32> -> vector<128x32xf32>
    %265 = arith.addf %258, %264 : vector<128x32xf32>
    %c0_313 = arith.constant 0 : index
    %c2_314 = arith.constant 2 : index
    %c0_315 = arith.constant 0 : index
    %c0_316 = arith.constant 0 : index
    %266 = vector.load %arg18[%c0_313, %c2_314, %c0_315, %c0_316] : memref<2x10x10x32xf32, #tpu.memory_space<vmem>>, vector<2x8x8x32xf32>
    %267 = vector.shape_cast %266 : vector<2x8x8x32xf32> to vector<128x32xf32>
    %268 = arith.truncf %267 : vector<128x32xf32> to vector<128x32xbf16>
    %c6_317 = arith.constant 6 : index
    %c0_318 = arith.constant 0 : index
    %c0_319 = arith.constant 0 : index
    %269 = vector.load %arg7[%c6_317, %c0_318, %c0_319] : memref<9x32x32xbf16, #tpu.memory_space<vmem>>, vector<1x32x32xbf16>
    %270 = vector.shape_cast %269 : vector<1x32x32xbf16> to vector<32x32xbf16>
    %cst_320 = arith.constant dense<0.000000e+00> : vector<128x32xf32>
    %271 = tpu.matmul %268, %270, %cst_320 {dimension_numbers = #tpu.dot_dimension_numbers<[1], [0], [0], [1], [0, 0, 1, 1], [], []>} : vector<128x32xbf16>, vector<32x32xbf16>, vector<128x32xf32> -> vector<128x32xf32>
    %272 = arith.addf %265, %271 : vector<128x32xf32>
    %c0_321 = arith.constant 0 : index
    %c2_322 = arith.constant 2 : index
    %c1_323 = arith.constant 1 : index
    %c0_324 = arith.constant 0 : index
    %273 = vector.load %arg18[%c0_321, %c2_322, %c1_323, %c0_324] : memref<2x10x10x32xf32, #tpu.memory_space<vmem>>, vector<2x8x8x32xf32>
    %274 = vector.shape_cast %273 : vector<2x8x8x32xf32> to vector<128x32xf32>
    %275 = arith.truncf %274 : vector<128x32xf32> to vector<128x32xbf16>
    %c7_325 = arith.constant 7 : index
    %c0_326 = arith.constant 0 : index
    %c0_327 = arith.constant 0 : index
    %276 = vector.load %arg7[%c7_325, %c0_326, %c0_327] : memref<9x32x32xbf16, #tpu.memory_space<vmem>>, vector<1x32x32xbf16>
    %277 = vector.shape_cast %276 : vector<1x32x32xbf16> to vector<32x32xbf16>
    %cst_328 = arith.constant dense<0.000000e+00> : vector<128x32xf32>
    %278 = tpu.matmul %275, %277, %cst_328 {dimension_numbers = #tpu.dot_dimension_numbers<[1], [0], [0], [1], [0, 0, 1, 1], [], []>} : vector<128x32xbf16>, vector<32x32xbf16>, vector<128x32xf32> -> vector<128x32xf32>
    %279 = arith.addf %272, %278 : vector<128x32xf32>
    %c0_329 = arith.constant 0 : index
    %c2_330 = arith.constant 2 : index
    %c2_331 = arith.constant 2 : index
    %c0_332 = arith.constant 0 : index
    %280 = vector.load %arg18[%c0_329, %c2_330, %c2_331, %c0_332] : memref<2x10x10x32xf32, #tpu.memory_space<vmem>>, vector<2x8x8x32xf32>
    %281 = vector.shape_cast %280 : vector<2x8x8x32xf32> to vector<128x32xf32>
    %282 = arith.truncf %281 : vector<128x32xf32> to vector<128x32xbf16>
    %c8_333 = arith.constant 8 : index
    %c0_334 = arith.constant 0 : index
    %c0_335 = arith.constant 0 : index
    %283 = vector.load %arg7[%c8_333, %c0_334, %c0_335] : memref<9x32x32xbf16, #tpu.memory_space<vmem>>, vector<1x32x32xbf16>
    %284 = vector.shape_cast %283 : vector<1x32x32xbf16> to vector<32x32xbf16>
    %cst_336 = arith.constant dense<0.000000e+00> : vector<128x32xf32>
    %285 = tpu.matmul %282, %284, %cst_336 {dimension_numbers = #tpu.dot_dimension_numbers<[1], [0], [0], [1], [0, 0, 1, 1], [], []>} : vector<128x32xbf16>, vector<32x32xbf16>, vector<128x32xf32> -> vector<128x32xf32>
    %286 = arith.addf %279, %285 : vector<128x32xf32>
    %c0_337 = arith.constant 0 : index
    %c0_338 = arith.constant 0 : index
    %287 = vector.load %arg8[%c0_337, %c0_338] : memref<1x32xf32, #tpu.memory_space<vmem>>, vector<1x32xf32>
    %288 = vector.broadcast %287 : vector<1x32xf32> to vector<128x32xf32>
    %289 = arith.addf %286, %288 : vector<128x32xf32>
    %cst_339 = arith.constant 0.000000e+00 : f32
    %290 = vector.broadcast %cst_339 : f32 to vector<128x32xf32>
    %291 = arith.maximumf %289, %290 : vector<128x32xf32>
    %292 = vector.shape_cast %291 : vector<128x32xf32> to vector<2x8x8x32xf32>
    %c0_340 = arith.constant 0 : index
    %c1_341 = arith.constant 1 : index
    %c1_342 = arith.constant 1 : index
    %c0_343 = arith.constant 0 : index
    %293 = vector.load %arg19[%c0_340, %c1_341, %c1_342, %c0_343] : memref<2x10x10x32xf32, #tpu.memory_space<vmem>>, vector<2x8x8x32xf32>
    tpu.vector_store %arg19[%c0_340, %c1_341, %c1_342, %c0_343], %292 {strides = array<i32>} : memref<2x10x10x32xf32, #tpu.memory_space<vmem>>, vector<2x8x8x32xf32>,
    %c0_344 = arith.constant 0 : index
    %c1_345 = arith.constant 1 : index
    %c1_346 = arith.constant 1 : index
    %c0_347 = arith.constant 0 : index
    %294 = vector.load %arg18[%c0_344, %c1_345, %c1_346, %c0_347] : memref<2x10x10x32xf32, #tpu.memory_space<vmem>>, vector<2x8x8x32xf32>
    %295 = vector.shape_cast %294 : vector<2x8x8x32xf32> to vector<128x32xf32>
    %cst_348 = arith.constant 0.000000e+00 : f32
    %296 = vector.broadcast %cst_348 : f32 to vector<128x32xf32>
    %c0_349 = arith.constant 0 : index
    %c0_350 = arith.constant 0 : index
    %c0_351 = arith.constant 0 : index
    %c0_352 = arith.constant 0 : index
    %297 = vector.load %arg19[%c0_349, %c0_350, %c0_351, %c0_352] : memref<2x10x10x32xf32, #tpu.memory_space<vmem>>, vector<2x8x8x32xf32>
    %298 = vector.shape_cast %297 : vector<2x8x8x32xf32> to vector<128x32xf32>
    %299 = arith.truncf %298 : vector<128x32xf32> to vector<128x32xbf16>
    %c0_353 = arith.constant 0 : index
    %c0_354 = arith.constant 0 : index
    %c0_355 = arith.constant 0 : index
    %300 = vector.load %arg9[%c0_353, %c0_354, %c0_355] : memref<9x32x32xbf16, #tpu.memory_space<vmem>>, vector<1x32x32xbf16>
    %301 = vector.shape_cast %300 : vector<1x32x32xbf16> to vector<32x32xbf16>
    %cst_356 = arith.constant dense<0.000000e+00> : vector<128x32xf32>
    %302 = tpu.matmul %299, %301, %cst_356 {dimension_numbers = #tpu.dot_dimension_numbers<[1], [0], [0], [1], [0, 0, 1, 1], [], []>} : vector<128x32xbf16>, vector<32x32xbf16>, vector<128x32xf32> -> vector<128x32xf32>
    %303 = arith.addf %296, %302 : vector<128x32xf32>
    %c0_357 = arith.constant 0 : index
    %c0_358 = arith.constant 0 : index
    %c1_359 = arith.constant 1 : index
    %c0_360 = arith.constant 0 : index
    %304 = vector.load %arg19[%c0_357, %c0_358, %c1_359, %c0_360] : memref<2x10x10x32xf32, #tpu.memory_space<vmem>>, vector<2x8x8x32xf32>
    %305 = vector.shape_cast %304 : vector<2x8x8x32xf32> to vector<128x32xf32>
    %306 = arith.truncf %305 : vector<128x32xf32> to vector<128x32xbf16>
    %c1_361 = arith.constant 1 : index
    %c0_362 = arith.constant 0 : index
    %c0_363 = arith.constant 0 : index
    %307 = vector.load %arg9[%c1_361, %c0_362, %c0_363] : memref<9x32x32xbf16, #tpu.memory_space<vmem>>, vector<1x32x32xbf16>
    %308 = vector.shape_cast %307 : vector<1x32x32xbf16> to vector<32x32xbf16>
    %cst_364 = arith.constant dense<0.000000e+00> : vector<128x32xf32>
    %309 = tpu.matmul %306, %308, %cst_364 {dimension_numbers = #tpu.dot_dimension_numbers<[1], [0], [0], [1], [0, 0, 1, 1], [], []>} : vector<128x32xbf16>, vector<32x32xbf16>, vector<128x32xf32> -> vector<128x32xf32>
    %310 = arith.addf %303, %309 : vector<128x32xf32>
    %c0_365 = arith.constant 0 : index
    %c0_366 = arith.constant 0 : index
    %c2_367 = arith.constant 2 : index
    %c0_368 = arith.constant 0 : index
    %311 = vector.load %arg19[%c0_365, %c0_366, %c2_367, %c0_368] : memref<2x10x10x32xf32, #tpu.memory_space<vmem>>, vector<2x8x8x32xf32>
    %312 = vector.shape_cast %311 : vector<2x8x8x32xf32> to vector<128x32xf32>
    %313 = arith.truncf %312 : vector<128x32xf32> to vector<128x32xbf16>
    %c2_369 = arith.constant 2 : index
    %c0_370 = arith.constant 0 : index
    %c0_371 = arith.constant 0 : index
    %314 = vector.load %arg9[%c2_369, %c0_370, %c0_371] : memref<9x32x32xbf16, #tpu.memory_space<vmem>>, vector<1x32x32xbf16>
    %315 = vector.shape_cast %314 : vector<1x32x32xbf16> to vector<32x32xbf16>
    %cst_372 = arith.constant dense<0.000000e+00> : vector<128x32xf32>
    %316 = tpu.matmul %313, %315, %cst_372 {dimension_numbers = #tpu.dot_dimension_numbers<[1], [0], [0], [1], [0, 0, 1, 1], [], []>} : vector<128x32xbf16>, vector<32x32xbf16>, vector<128x32xf32> -> vector<128x32xf32>
    %317 = arith.addf %310, %316 : vector<128x32xf32>
    %c0_373 = arith.constant 0 : index
    %c1_374 = arith.constant 1 : index
    %c0_375 = arith.constant 0 : index
    %c0_376 = arith.constant 0 : index
    %318 = vector.load %arg19[%c0_373, %c1_374, %c0_375, %c0_376] : memref<2x10x10x32xf32, #tpu.memory_space<vmem>>, vector<2x8x8x32xf32>
    %319 = vector.shape_cast %318 : vector<2x8x8x32xf32> to vector<128x32xf32>
    %320 = arith.truncf %319 : vector<128x32xf32> to vector<128x32xbf16>
    %c3_377 = arith.constant 3 : index
    %c0_378 = arith.constant 0 : index
    %c0_379 = arith.constant 0 : index
    %321 = vector.load %arg9[%c3_377, %c0_378, %c0_379] : memref<9x32x32xbf16, #tpu.memory_space<vmem>>, vector<1x32x32xbf16>
    %322 = vector.shape_cast %321 : vector<1x32x32xbf16> to vector<32x32xbf16>
    %cst_380 = arith.constant dense<0.000000e+00> : vector<128x32xf32>
    %323 = tpu.matmul %320, %322, %cst_380 {dimension_numbers = #tpu.dot_dimension_numbers<[1], [0], [0], [1], [0, 0, 1, 1], [], []>} : vector<128x32xbf16>, vector<32x32xbf16>, vector<128x32xf32> -> vector<128x32xf32>
    %324 = arith.addf %317, %323 : vector<128x32xf32>
    %c0_381 = arith.constant 0 : index
    %c1_382 = arith.constant 1 : index
    %c1_383 = arith.constant 1 : index
    %c0_384 = arith.constant 0 : index
    %325 = vector.load %arg19[%c0_381, %c1_382, %c1_383, %c0_384] : memref<2x10x10x32xf32, #tpu.memory_space<vmem>>, vector<2x8x8x32xf32>
    %326 = vector.shape_cast %325 : vector<2x8x8x32xf32> to vector<128x32xf32>
    %327 = arith.truncf %326 : vector<128x32xf32> to vector<128x32xbf16>
    %c4_385 = arith.constant 4 : index
    %c0_386 = arith.constant 0 : index
    %c0_387 = arith.constant 0 : index
    %328 = vector.load %arg9[%c4_385, %c0_386, %c0_387] : memref<9x32x32xbf16, #tpu.memory_space<vmem>>, vector<1x32x32xbf16>
    %329 = vector.shape_cast %328 : vector<1x32x32xbf16> to vector<32x32xbf16>
    %cst_388 = arith.constant dense<0.000000e+00> : vector<128x32xf32>
    %330 = tpu.matmul %327, %329, %cst_388 {dimension_numbers = #tpu.dot_dimension_numbers<[1], [0], [0], [1], [0, 0, 1, 1], [], []>} : vector<128x32xbf16>, vector<32x32xbf16>, vector<128x32xf32> -> vector<128x32xf32>
    %331 = arith.addf %324, %330 : vector<128x32xf32>
    %c0_389 = arith.constant 0 : index
    %c1_390 = arith.constant 1 : index
    %c2_391 = arith.constant 2 : index
    %c0_392 = arith.constant 0 : index
    %332 = vector.load %arg19[%c0_389, %c1_390, %c2_391, %c0_392] : memref<2x10x10x32xf32, #tpu.memory_space<vmem>>, vector<2x8x8x32xf32>
    %333 = vector.shape_cast %332 : vector<2x8x8x32xf32> to vector<128x32xf32>
    %334 = arith.truncf %333 : vector<128x32xf32> to vector<128x32xbf16>
    %c5_393 = arith.constant 5 : index
    %c0_394 = arith.constant 0 : index
    %c0_395 = arith.constant 0 : index
    %335 = vector.load %arg9[%c5_393, %c0_394, %c0_395] : memref<9x32x32xbf16, #tpu.memory_space<vmem>>, vector<1x32x32xbf16>
    %336 = vector.shape_cast %335 : vector<1x32x32xbf16> to vector<32x32xbf16>
    %cst_396 = arith.constant dense<0.000000e+00> : vector<128x32xf32>
    %337 = tpu.matmul %334, %336, %cst_396 {dimension_numbers = #tpu.dot_dimension_numbers<[1], [0], [0], [1], [0, 0, 1, 1], [], []>} : vector<128x32xbf16>, vector<32x32xbf16>, vector<128x32xf32> -> vector<128x32xf32>
    %338 = arith.addf %331, %337 : vector<128x32xf32>
    %c0_397 = arith.constant 0 : index
    %c2_398 = arith.constant 2 : index
    %c0_399 = arith.constant 0 : index
    %c0_400 = arith.constant 0 : index
    %339 = vector.load %arg19[%c0_397, %c2_398, %c0_399, %c0_400] : memref<2x10x10x32xf32, #tpu.memory_space<vmem>>, vector<2x8x8x32xf32>
    %340 = vector.shape_cast %339 : vector<2x8x8x32xf32> to vector<128x32xf32>
    %341 = arith.truncf %340 : vector<128x32xf32> to vector<128x32xbf16>
    %c6_401 = arith.constant 6 : index
    %c0_402 = arith.constant 0 : index
    %c0_403 = arith.constant 0 : index
    %342 = vector.load %arg9[%c6_401, %c0_402, %c0_403] : memref<9x32x32xbf16, #tpu.memory_space<vmem>>, vector<1x32x32xbf16>
    %343 = vector.shape_cast %342 : vector<1x32x32xbf16> to vector<32x32xbf16>
    %cst_404 = arith.constant dense<0.000000e+00> : vector<128x32xf32>
    %344 = tpu.matmul %341, %343, %cst_404 {dimension_numbers = #tpu.dot_dimension_numbers<[1], [0], [0], [1], [0, 0, 1, 1], [], []>} : vector<128x32xbf16>, vector<32x32xbf16>, vector<128x32xf32> -> vector<128x32xf32>
    %345 = arith.addf %338, %344 : vector<128x32xf32>
    %c0_405 = arith.constant 0 : index
    %c2_406 = arith.constant 2 : index
    %c1_407 = arith.constant 1 : index
    %c0_408 = arith.constant 0 : index
    %346 = vector.load %arg19[%c0_405, %c2_406, %c1_407, %c0_408] : memref<2x10x10x32xf32, #tpu.memory_space<vmem>>, vector<2x8x8x32xf32>
    %347 = vector.shape_cast %346 : vector<2x8x8x32xf32> to vector<128x32xf32>
    %348 = arith.truncf %347 : vector<128x32xf32> to vector<128x32xbf16>
    %c7_409 = arith.constant 7 : index
    %c0_410 = arith.constant 0 : index
    %c0_411 = arith.constant 0 : index
    %349 = vector.load %arg9[%c7_409, %c0_410, %c0_411] : memref<9x32x32xbf16, #tpu.memory_space<vmem>>, vector<1x32x32xbf16>
    %350 = vector.shape_cast %349 : vector<1x32x32xbf16> to vector<32x32xbf16>
    %cst_412 = arith.constant dense<0.000000e+00> : vector<128x32xf32>
    %351 = tpu.matmul %348, %350, %cst_412 {dimension_numbers = #tpu.dot_dimension_numbers<[1], [0], [0], [1], [0, 0, 1, 1], [], []>} : vector<128x32xbf16>, vector<32x32xbf16>, vector<128x32xf32> -> vector<128x32xf32>
    %352 = arith.addf %345, %351 : vector<128x32xf32>
    %c0_413 = arith.constant 0 : index
    %c2_414 = arith.constant 2 : index
    %c2_415 = arith.constant 2 : index
    %c0_416 = arith.constant 0 : index
    %353 = vector.load %arg19[%c0_413, %c2_414, %c2_415, %c0_416] : memref<2x10x10x32xf32, #tpu.memory_space<vmem>>, vector<2x8x8x32xf32>
    %354 = vector.shape_cast %353 : vector<2x8x8x32xf32> to vector<128x32xf32>
    %355 = arith.truncf %354 : vector<128x32xf32> to vector<128x32xbf16>
    %c8_417 = arith.constant 8 : index
    %c0_418 = arith.constant 0 : index
    %c0_419 = arith.constant 0 : index
    %356 = vector.load %arg9[%c8_417, %c0_418, %c0_419] : memref<9x32x32xbf16, #tpu.memory_space<vmem>>, vector<1x32x32xbf16>
    %357 = vector.shape_cast %356 : vector<1x32x32xbf16> to vector<32x32xbf16>
    %cst_420 = arith.constant dense<0.000000e+00> : vector<128x32xf32>
    %358 = tpu.matmul %355, %357, %cst_420 {dimension_numbers = #tpu.dot_dimension_numbers<[1], [0], [0], [1], [0, 0, 1, 1], [], []>} : vector<128x32xbf16>, vector<32x32xbf16>, vector<128x32xf32> -> vector<128x32xf32>
    %359 = arith.addf %352, %358 : vector<128x32xf32>
    %c0_421 = arith.constant 0 : index
    %c0_422 = arith.constant 0 : index
    %360 = vector.load %arg10[%c0_421, %c0_422] : memref<1x32xf32, #tpu.memory_space<vmem>>, vector<1x32xf32>
    %361 = vector.broadcast %360 : vector<1x32xf32> to vector<128x32xf32>
    %362 = arith.addf %359, %361 : vector<128x32xf32>
    %363 = arith.addf %362, %295 : vector<128x32xf32>
    %364 = vector.shape_cast %363 : vector<128x32xf32> to vector<2x8x8x32xf32>
    %c0_423 = arith.constant 0 : index
    %c1_424 = arith.constant 1 : index
    %c1_425 = arith.constant 1 : index
    %c0_426 = arith.constant 0 : index
    %365 = vector.load %arg18[%c0_423, %c1_424, %c1_425, %c0_426] : memref<2x10x10x32xf32, #tpu.memory_space<vmem>>, vector<2x8x8x32xf32>
    tpu.vector_store %arg18[%c0_423, %c1_424, %c1_425, %c0_426], %364 {strides = array<i32>} : memref<2x10x10x32xf32, #tpu.memory_space<vmem>>, vector<2x8x8x32xf32>,
    %c0_427 = arith.constant 0 : index
    %c1_428 = arith.constant 1 : index
    %c1_429 = arith.constant 1 : index
    %c0_430 = arith.constant 0 : index
    %366 = vector.load %arg17[%c0_427, %c1_428, %c1_429, %c0_430] : memref<2x10x10x32xf32, #tpu.memory_space<vmem>>, vector<2x8x8x32xf32>
    %367 = vector.shape_cast %366 : vector<2x8x8x32xf32> to vector<128x32xf32>
    %cst_431 = arith.constant 0.000000e+00 : f32
    %368 = vector.broadcast %cst_431 : f32 to vector<128x32xf32>
    %c0_432 = arith.constant 0 : index
    %c0_433 = arith.constant 0 : index
    %c0_434 = arith.constant 0 : index
    %c0_435 = arith.constant 0 : index
    %369 = vector.load %arg18[%c0_432, %c0_433, %c0_434, %c0_435] : memref<2x10x10x32xf32, #tpu.memory_space<vmem>>, vector<2x8x8x32xf32>
    %370 = vector.shape_cast %369 : vector<2x8x8x32xf32> to vector<128x32xf32>
    %371 = arith.truncf %370 : vector<128x32xf32> to vector<128x32xbf16>
    %c0_436 = arith.constant 0 : index
    %c0_437 = arith.constant 0 : index
    %c0_438 = arith.constant 0 : index
    %372 = vector.load %arg11[%c0_436, %c0_437, %c0_438] : memref<9x32x32xbf16, #tpu.memory_space<vmem>>, vector<1x32x32xbf16>
    %373 = vector.shape_cast %372 : vector<1x32x32xbf16> to vector<32x32xbf16>
    %cst_439 = arith.constant dense<0.000000e+00> : vector<128x32xf32>
    %374 = tpu.matmul %371, %373, %cst_439 {dimension_numbers = #tpu.dot_dimension_numbers<[1], [0], [0], [1], [0, 0, 1, 1], [], []>} : vector<128x32xbf16>, vector<32x32xbf16>, vector<128x32xf32> -> vector<128x32xf32>
    %375 = arith.addf %368, %374 : vector<128x32xf32>
    %c0_440 = arith.constant 0 : index
    %c0_441 = arith.constant 0 : index
    %c1_442 = arith.constant 1 : index
    %c0_443 = arith.constant 0 : index
    %376 = vector.load %arg18[%c0_440, %c0_441, %c1_442, %c0_443] : memref<2x10x10x32xf32, #tpu.memory_space<vmem>>, vector<2x8x8x32xf32>
    %377 = vector.shape_cast %376 : vector<2x8x8x32xf32> to vector<128x32xf32>
    %378 = arith.truncf %377 : vector<128x32xf32> to vector<128x32xbf16>
    %c1_444 = arith.constant 1 : index
    %c0_445 = arith.constant 0 : index
    %c0_446 = arith.constant 0 : index
    %379 = vector.load %arg11[%c1_444, %c0_445, %c0_446] : memref<9x32x32xbf16, #tpu.memory_space<vmem>>, vector<1x32x32xbf16>
    %380 = vector.shape_cast %379 : vector<1x32x32xbf16> to vector<32x32xbf16>
    %cst_447 = arith.constant dense<0.000000e+00> : vector<128x32xf32>
    %381 = tpu.matmul %378, %380, %cst_447 {dimension_numbers = #tpu.dot_dimension_numbers<[1], [0], [0], [1], [0, 0, 1, 1], [], []>} : vector<128x32xbf16>, vector<32x32xbf16>, vector<128x32xf32> -> vector<128x32xf32>
    %382 = arith.addf %375, %381 : vector<128x32xf32>
    %c0_448 = arith.constant 0 : index
    %c0_449 = arith.constant 0 : index
    %c2_450 = arith.constant 2 : index
    %c0_451 = arith.constant 0 : index
    %383 = vector.load %arg18[%c0_448, %c0_449, %c2_450, %c0_451] : memref<2x10x10x32xf32, #tpu.memory_space<vmem>>, vector<2x8x8x32xf32>
    %384 = vector.shape_cast %383 : vector<2x8x8x32xf32> to vector<128x32xf32>
    %385 = arith.truncf %384 : vector<128x32xf32> to vector<128x32xbf16>
    %c2_452 = arith.constant 2 : index
    %c0_453 = arith.constant 0 : index
    %c0_454 = arith.constant 0 : index
    %386 = vector.load %arg11[%c2_452, %c0_453, %c0_454] : memref<9x32x32xbf16, #tpu.memory_space<vmem>>, vector<1x32x32xbf16>
    %387 = vector.shape_cast %386 : vector<1x32x32xbf16> to vector<32x32xbf16>
    %cst_455 = arith.constant dense<0.000000e+00> : vector<128x32xf32>
    %388 = tpu.matmul %385, %387, %cst_455 {dimension_numbers = #tpu.dot_dimension_numbers<[1], [0], [0], [1], [0, 0, 1, 1], [], []>} : vector<128x32xbf16>, vector<32x32xbf16>, vector<128x32xf32> -> vector<128x32xf32>
    %389 = arith.addf %382, %388 : vector<128x32xf32>
    %c0_456 = arith.constant 0 : index
    %c1_457 = arith.constant 1 : index
    %c0_458 = arith.constant 0 : index
    %c0_459 = arith.constant 0 : index
    %390 = vector.load %arg18[%c0_456, %c1_457, %c0_458, %c0_459] : memref<2x10x10x32xf32, #tpu.memory_space<vmem>>, vector<2x8x8x32xf32>
    %391 = vector.shape_cast %390 : vector<2x8x8x32xf32> to vector<128x32xf32>
    %392 = arith.truncf %391 : vector<128x32xf32> to vector<128x32xbf16>
    %c3_460 = arith.constant 3 : index
    %c0_461 = arith.constant 0 : index
    %c0_462 = arith.constant 0 : index
    %393 = vector.load %arg11[%c3_460, %c0_461, %c0_462] : memref<9x32x32xbf16, #tpu.memory_space<vmem>>, vector<1x32x32xbf16>
    %394 = vector.shape_cast %393 : vector<1x32x32xbf16> to vector<32x32xbf16>
    %cst_463 = arith.constant dense<0.000000e+00> : vector<128x32xf32>
    %395 = tpu.matmul %392, %394, %cst_463 {dimension_numbers = #tpu.dot_dimension_numbers<[1], [0], [0], [1], [0, 0, 1, 1], [], []>} : vector<128x32xbf16>, vector<32x32xbf16>, vector<128x32xf32> -> vector<128x32xf32>
    %396 = arith.addf %389, %395 : vector<128x32xf32>
    %c0_464 = arith.constant 0 : index
    %c1_465 = arith.constant 1 : index
    %c1_466 = arith.constant 1 : index
    %c0_467 = arith.constant 0 : index
    %397 = vector.load %arg18[%c0_464, %c1_465, %c1_466, %c0_467] : memref<2x10x10x32xf32, #tpu.memory_space<vmem>>, vector<2x8x8x32xf32>
    %398 = vector.shape_cast %397 : vector<2x8x8x32xf32> to vector<128x32xf32>
    %399 = arith.truncf %398 : vector<128x32xf32> to vector<128x32xbf16>
    %c4_468 = arith.constant 4 : index
    %c0_469 = arith.constant 0 : index
    %c0_470 = arith.constant 0 : index
    %400 = vector.load %arg11[%c4_468, %c0_469, %c0_470] : memref<9x32x32xbf16, #tpu.memory_space<vmem>>, vector<1x32x32xbf16>
    %401 = vector.shape_cast %400 : vector<1x32x32xbf16> to vector<32x32xbf16>
    %cst_471 = arith.constant dense<0.000000e+00> : vector<128x32xf32>
    %402 = tpu.matmul %399, %401, %cst_471 {dimension_numbers = #tpu.dot_dimension_numbers<[1], [0], [0], [1], [0, 0, 1, 1], [], []>} : vector<128x32xbf16>, vector<32x32xbf16>, vector<128x32xf32> -> vector<128x32xf32>
    %403 = arith.addf %396, %402 : vector<128x32xf32>
    %c0_472 = arith.constant 0 : index
    %c1_473 = arith.constant 1 : index
    %c2_474 = arith.constant 2 : index
    %c0_475 = arith.constant 0 : index
    %404 = vector.load %arg18[%c0_472, %c1_473, %c2_474, %c0_475] : memref<2x10x10x32xf32, #tpu.memory_space<vmem>>, vector<2x8x8x32xf32>
    %405 = vector.shape_cast %404 : vector<2x8x8x32xf32> to vector<128x32xf32>
    %406 = arith.truncf %405 : vector<128x32xf32> to vector<128x32xbf16>
    %c5_476 = arith.constant 5 : index
    %c0_477 = arith.constant 0 : index
    %c0_478 = arith.constant 0 : index
    %407 = vector.load %arg11[%c5_476, %c0_477, %c0_478] : memref<9x32x32xbf16, #tpu.memory_space<vmem>>, vector<1x32x32xbf16>
    %408 = vector.shape_cast %407 : vector<1x32x32xbf16> to vector<32x32xbf16>
    %cst_479 = arith.constant dense<0.000000e+00> : vector<128x32xf32>
    %409 = tpu.matmul %406, %408, %cst_479 {dimension_numbers = #tpu.dot_dimension_numbers<[1], [0], [0], [1], [0, 0, 1, 1], [], []>} : vector<128x32xbf16>, vector<32x32xbf16>, vector<128x32xf32> -> vector<128x32xf32>
    %410 = arith.addf %403, %409 : vector<128x32xf32>
    %c0_480 = arith.constant 0 : index
    %c2_481 = arith.constant 2 : index
    %c0_482 = arith.constant 0 : index
    %c0_483 = arith.constant 0 : index
    %411 = vector.load %arg18[%c0_480, %c2_481, %c0_482, %c0_483] : memref<2x10x10x32xf32, #tpu.memory_space<vmem>>, vector<2x8x8x32xf32>
    %412 = vector.shape_cast %411 : vector<2x8x8x32xf32> to vector<128x32xf32>
    %413 = arith.truncf %412 : vector<128x32xf32> to vector<128x32xbf16>
    %c6_484 = arith.constant 6 : index
    %c0_485 = arith.constant 0 : index
    %c0_486 = arith.constant 0 : index
    %414 = vector.load %arg11[%c6_484, %c0_485, %c0_486] : memref<9x32x32xbf16, #tpu.memory_space<vmem>>, vector<1x32x32xbf16>
    %415 = vector.shape_cast %414 : vector<1x32x32xbf16> to vector<32x32xbf16>
    %cst_487 = arith.constant dense<0.000000e+00> : vector<128x32xf32>
    %416 = tpu.matmul %413, %415, %cst_487 {dimension_numbers = #tpu.dot_dimension_numbers<[1], [0], [0], [1], [0, 0, 1, 1], [], []>} : vector<128x32xbf16>, vector<32x32xbf16>, vector<128x32xf32> -> vector<128x32xf32>
    %417 = arith.addf %410, %416 : vector<128x32xf32>
    %c0_488 = arith.constant 0 : index
    %c2_489 = arith.constant 2 : index
    %c1_490 = arith.constant 1 : index
    %c0_491 = arith.constant 0 : index
    %418 = vector.load %arg18[%c0_488, %c2_489, %c1_490, %c0_491] : memref<2x10x10x32xf32, #tpu.memory_space<vmem>>, vector<2x8x8x32xf32>
    %419 = vector.shape_cast %418 : vector<2x8x8x32xf32> to vector<128x32xf32>
    %420 = arith.truncf %419 : vector<128x32xf32> to vector<128x32xbf16>
    %c7_492 = arith.constant 7 : index
    %c0_493 = arith.constant 0 : index
    %c0_494 = arith.constant 0 : index
    %421 = vector.load %arg11[%c7_492, %c0_493, %c0_494] : memref<9x32x32xbf16, #tpu.memory_space<vmem>>, vector<1x32x32xbf16>
    %422 = vector.shape_cast %421 : vector<1x32x32xbf16> to vector<32x32xbf16>
    %cst_495 = arith.constant dense<0.000000e+00> : vector<128x32xf32>
    %423 = tpu.matmul %420, %422, %cst_495 {dimension_numbers = #tpu.dot_dimension_numbers<[1], [0], [0], [1], [0, 0, 1, 1], [], []>} : vector<128x32xbf16>, vector<32x32xbf16>, vector<128x32xf32> -> vector<128x32xf32>
    %424 = arith.addf %417, %423 : vector<128x32xf32>
    %c0_496 = arith.constant 0 : index
    %c2_497 = arith.constant 2 : index
    %c2_498 = arith.constant 2 : index
    %c0_499 = arith.constant 0 : index
    %425 = vector.load %arg18[%c0_496, %c2_497, %c2_498, %c0_499] : memref<2x10x10x32xf32, #tpu.memory_space<vmem>>, vector<2x8x8x32xf32>
    %426 = vector.shape_cast %425 : vector<2x8x8x32xf32> to vector<128x32xf32>
    %427 = arith.truncf %426 : vector<128x32xf32> to vector<128x32xbf16>
    %c8_500 = arith.constant 8 : index
    %c0_501 = arith.constant 0 : index
    %c0_502 = arith.constant 0 : index
    %428 = vector.load %arg11[%c8_500, %c0_501, %c0_502] : memref<9x32x32xbf16, #tpu.memory_space<vmem>>, vector<1x32x32xbf16>
    %429 = vector.shape_cast %428 : vector<1x32x32xbf16> to vector<32x32xbf16>
    %cst_503 = arith.constant dense<0.000000e+00> : vector<128x32xf32>
    %430 = tpu.matmul %427, %429, %cst_503 {dimension_numbers = #tpu.dot_dimension_numbers<[1], [0], [0], [1], [0, 0, 1, 1], [], []>} : vector<128x32xbf16>, vector<32x32xbf16>, vector<128x32xf32> -> vector<128x32xf32>
    %431 = arith.addf %424, %430 : vector<128x32xf32>
    %c0_504 = arith.constant 0 : index
    %c0_505 = arith.constant 0 : index
    %432 = vector.load %arg12[%c0_504, %c0_505] : memref<1x32xf32, #tpu.memory_space<vmem>>, vector<1x32xf32>
    %433 = vector.broadcast %432 : vector<1x32xf32> to vector<128x32xf32>
    %434 = arith.addf %431, %433 : vector<128x32xf32>
    %435 = arith.addf %434, %367 : vector<128x32xf32>
    %436 = vector.shape_cast %435 : vector<128x32xf32> to vector<2x8x8x32xf32>
    %c0_506 = arith.constant 0 : index
    %c1_507 = arith.constant 1 : index
    %c1_508 = arith.constant 1 : index
    %c0_509 = arith.constant 0 : index
    %437 = vector.load %arg18[%c0_506, %c1_507, %c1_508, %c0_509] : memref<2x10x10x32xf32, #tpu.memory_space<vmem>>, vector<2x8x8x32xf32>
    tpu.vector_store %arg18[%c0_506, %c1_507, %c1_508, %c0_509], %436 {strides = array<i32>} : memref<2x10x10x32xf32, #tpu.memory_space<vmem>>, vector<2x8x8x32xf32>,
    %cst_510 = arith.constant 0.000000e+00 : f32
    %438 = vector.broadcast %cst_510 : f32 to vector<128x128xf32>
    %c0_511 = arith.constant 0 : index
    %c0_512 = arith.constant 0 : index
    %c0_513 = arith.constant 0 : index
    %c0_514 = arith.constant 0 : index
    %439 = vector.load %arg18[%c0_511, %c0_512, %c0_513, %c0_514] : memref<2x10x10x32xf32, #tpu.memory_space<vmem>>, vector<2x8x8x32xf32>
    %440 = vector.shape_cast %439 : vector<2x8x8x32xf32> to vector<128x32xf32>
    %441 = arith.truncf %440 : vector<128x32xf32> to vector<128x32xbf16>
    %c0_515 = arith.constant 0 : index
    %c0_516 = arith.constant 0 : index
    %c0_517 = arith.constant 0 : index
    %442 = vector.load %arg13[%c0_515, %c0_516, %c0_517] : memref<9x32x128xbf16, #tpu.memory_space<vmem>>, vector<1x32x128xbf16>
    %443 = vector.shape_cast %442 : vector<1x32x128xbf16> to vector<32x128xbf16>
    %cst_518 = arith.constant dense<0.000000e+00> : vector<128x128xf32>
    %444 = tpu.matmul %441, %443, %cst_518 {dimension_numbers = #tpu.dot_dimension_numbers<[1], [0], [0], [1], [0, 0, 1, 1], [], []>} : vector<128x32xbf16>, vector<32x128xbf16>, vector<128x128xf32> -> vector<128x128xf32>
    %445 = arith.addf %438, %444 : vector<128x128xf32>
    %c0_519 = arith.constant 0 : index
    %c0_520 = arith.constant 0 : index
    %c1_521 = arith.constant 1 : index
    %c0_522 = arith.constant 0 : index
    %446 = vector.load %arg18[%c0_519, %c0_520, %c1_521, %c0_522] : memref<2x10x10x32xf32, #tpu.memory_space<vmem>>, vector<2x8x8x32xf32>
    %447 = vector.shape_cast %446 : vector<2x8x8x32xf32> to vector<128x32xf32>
    %448 = arith.truncf %447 : vector<128x32xf32> to vector<128x32xbf16>
    %c1_523 = arith.constant 1 : index
    %c0_524 = arith.constant 0 : index
    %c0_525 = arith.constant 0 : index
    %449 = vector.load %arg13[%c1_523, %c0_524, %c0_525] : memref<9x32x128xbf16, #tpu.memory_space<vmem>>, vector<1x32x128xbf16>
    %450 = vector.shape_cast %449 : vector<1x32x128xbf16> to vector<32x128xbf16>
    %cst_526 = arith.constant dense<0.000000e+00> : vector<128x128xf32>
    %451 = tpu.matmul %448, %450, %cst_526 {dimension_numbers = #tpu.dot_dimension_numbers<[1], [0], [0], [1], [0, 0, 1, 1], [], []>} : vector<128x32xbf16>, vector<32x128xbf16>, vector<128x128xf32> -> vector<128x128xf32>
    %452 = arith.addf %445, %451 : vector<128x128xf32>
    %c0_527 = arith.constant 0 : index
    %c0_528 = arith.constant 0 : index
    %c2_529 = arith.constant 2 : index
    %c0_530 = arith.constant 0 : index
    %453 = vector.load %arg18[%c0_527, %c0_528, %c2_529, %c0_530] : memref<2x10x10x32xf32, #tpu.memory_space<vmem>>, vector<2x8x8x32xf32>
    %454 = vector.shape_cast %453 : vector<2x8x8x32xf32> to vector<128x32xf32>
    %455 = arith.truncf %454 : vector<128x32xf32> to vector<128x32xbf16>
    %c2_531 = arith.constant 2 : index
    %c0_532 = arith.constant 0 : index
    %c0_533 = arith.constant 0 : index
    %456 = vector.load %arg13[%c2_531, %c0_532, %c0_533] : memref<9x32x128xbf16, #tpu.memory_space<vmem>>, vector<1x32x128xbf16>
    %457 = vector.shape_cast %456 : vector<1x32x128xbf16> to vector<32x128xbf16>
    %cst_534 = arith.constant dense<0.000000e+00> : vector<128x128xf32>
    %458 = tpu.matmul %455, %457, %cst_534 {dimension_numbers = #tpu.dot_dimension_numbers<[1], [0], [0], [1], [0, 0, 1, 1], [], []>} : vector<128x32xbf16>, vector<32x128xbf16>, vector<128x128xf32> -> vector<128x128xf32>
    %459 = arith.addf %452, %458 : vector<128x128xf32>
    %c0_535 = arith.constant 0 : index
    %c1_536 = arith.constant 1 : index
    %c0_537 = arith.constant 0 : index
    %c0_538 = arith.constant 0 : index
    %460 = vector.load %arg18[%c0_535, %c1_536, %c0_537, %c0_538] : memref<2x10x10x32xf32, #tpu.memory_space<vmem>>, vector<2x8x8x32xf32>
    %461 = vector.shape_cast %460 : vector<2x8x8x32xf32> to vector<128x32xf32>
    %462 = arith.truncf %461 : vector<128x32xf32> to vector<128x32xbf16>
    %c3_539 = arith.constant 3 : index
    %c0_540 = arith.constant 0 : index
    %c0_541 = arith.constant 0 : index
    %463 = vector.load %arg13[%c3_539, %c0_540, %c0_541] : memref<9x32x128xbf16, #tpu.memory_space<vmem>>, vector<1x32x128xbf16>
    %464 = vector.shape_cast %463 : vector<1x32x128xbf16> to vector<32x128xbf16>
    %cst_542 = arith.constant dense<0.000000e+00> : vector<128x128xf32>
    %465 = tpu.matmul %462, %464, %cst_542 {dimension_numbers = #tpu.dot_dimension_numbers<[1], [0], [0], [1], [0, 0, 1, 1], [], []>} : vector<128x32xbf16>, vector<32x128xbf16>, vector<128x128xf32> -> vector<128x128xf32>
    %466 = arith.addf %459, %465 : vector<128x128xf32>
    %c0_543 = arith.constant 0 : index
    %c1_544 = arith.constant 1 : index
    %c1_545 = arith.constant 1 : index
    %c0_546 = arith.constant 0 : index
    %467 = vector.load %arg18[%c0_543, %c1_544, %c1_545, %c0_546] : memref<2x10x10x32xf32, #tpu.memory_space<vmem>>, vector<2x8x8x32xf32>
    %468 = vector.shape_cast %467 : vector<2x8x8x32xf32> to vector<128x32xf32>
    %469 = arith.truncf %468 : vector<128x32xf32> to vector<128x32xbf16>
    %c4_547 = arith.constant 4 : index
    %c0_548 = arith.constant 0 : index
    %c0_549 = arith.constant 0 : index
    %470 = vector.load %arg13[%c4_547, %c0_548, %c0_549] : memref<9x32x128xbf16, #tpu.memory_space<vmem>>, vector<1x32x128xbf16>
    %471 = vector.shape_cast %470 : vector<1x32x128xbf16> to vector<32x128xbf16>
    %cst_550 = arith.constant dense<0.000000e+00> : vector<128x128xf32>
    %472 = tpu.matmul %469, %471, %cst_550 {dimension_numbers = #tpu.dot_dimension_numbers<[1], [0], [0], [1], [0, 0, 1, 1], [], []>} : vector<128x32xbf16>, vector<32x128xbf16>, vector<128x128xf32> -> vector<128x128xf32>
    %473 = arith.addf %466, %472 : vector<128x128xf32>
    %c0_551 = arith.constant 0 : index
    %c1_552 = arith.constant 1 : index
    %c2_553 = arith.constant 2 : index
    %c0_554 = arith.constant 0 : index
    %474 = vector.load %arg18[%c0_551, %c1_552, %c2_553, %c0_554] : memref<2x10x10x32xf32, #tpu.memory_space<vmem>>, vector<2x8x8x32xf32>
    %475 = vector.shape_cast %474 : vector<2x8x8x32xf32> to vector<128x32xf32>
    %476 = arith.truncf %475 : vector<128x32xf32> to vector<128x32xbf16>
    %c5_555 = arith.constant 5 : index
    %c0_556 = arith.constant 0 : index
    %c0_557 = arith.constant 0 : index
    %477 = vector.load %arg13[%c5_555, %c0_556, %c0_557] : memref<9x32x128xbf16, #tpu.memory_space<vmem>>, vector<1x32x128xbf16>
    %478 = vector.shape_cast %477 : vector<1x32x128xbf16> to vector<32x128xbf16>
    %cst_558 = arith.constant dense<0.000000e+00> : vector<128x128xf32>
    %479 = tpu.matmul %476, %478, %cst_558 {dimension_numbers = #tpu.dot_dimension_numbers<[1], [0], [0], [1], [0, 0, 1, 1], [], []>} : vector<128x32xbf16>, vector<32x128xbf16>, vector<128x128xf32> -> vector<128x128xf32>
    %480 = arith.addf %473, %479 : vector<128x128xf32>
    %c0_559 = arith.constant 0 : index
    %c2_560 = arith.constant 2 : index
    %c0_561 = arith.constant 0 : index
    %c0_562 = arith.constant 0 : index
    %481 = vector.load %arg18[%c0_559, %c2_560, %c0_561, %c0_562] : memref<2x10x10x32xf32, #tpu.memory_space<vmem>>, vector<2x8x8x32xf32>
    %482 = vector.shape_cast %481 : vector<2x8x8x32xf32> to vector<128x32xf32>
    %483 = arith.truncf %482 : vector<128x32xf32> to vector<128x32xbf16>
    %c6_563 = arith.constant 6 : index
    %c0_564 = arith.constant 0 : index
    %c0_565 = arith.constant 0 : index
    %484 = vector.load %arg13[%c6_563, %c0_564, %c0_565] : memref<9x32x128xbf16, #tpu.memory_space<vmem>>, vector<1x32x128xbf16>
    %485 = vector.shape_cast %484 : vector<1x32x128xbf16> to vector<32x128xbf16>
    %cst_566 = arith.constant dense<0.000000e+00> : vector<128x128xf32>
    %486 = tpu.matmul %483, %485, %cst_566 {dimension_numbers = #tpu.dot_dimension_numbers<[1], [0], [0], [1], [0, 0, 1, 1], [], []>} : vector<128x32xbf16>, vector<32x128xbf16>, vector<128x128xf32> -> vector<128x128xf32>
    %487 = arith.addf %480, %486 : vector<128x128xf32>
    %c0_567 = arith.constant 0 : index
    %c2_568 = arith.constant 2 : index
    %c1_569 = arith.constant 1 : index
    %c0_570 = arith.constant 0 : index
    %488 = vector.load %arg18[%c0_567, %c2_568, %c1_569, %c0_570] : memref<2x10x10x32xf32, #tpu.memory_space<vmem>>, vector<2x8x8x32xf32>
    %489 = vector.shape_cast %488 : vector<2x8x8x32xf32> to vector<128x32xf32>
    %490 = arith.truncf %489 : vector<128x32xf32> to vector<128x32xbf16>
    %c7_571 = arith.constant 7 : index
    %c0_572 = arith.constant 0 : index
    %c0_573 = arith.constant 0 : index
    %491 = vector.load %arg13[%c7_571, %c0_572, %c0_573] : memref<9x32x128xbf16, #tpu.memory_space<vmem>>, vector<1x32x128xbf16>
    %492 = vector.shape_cast %491 : vector<1x32x128xbf16> to vector<32x128xbf16>
    %cst_574 = arith.constant dense<0.000000e+00> : vector<128x128xf32>
    %493 = tpu.matmul %490, %492, %cst_574 {dimension_numbers = #tpu.dot_dimension_numbers<[1], [0], [0], [1], [0, 0, 1, 1], [], []>} : vector<128x32xbf16>, vector<32x128xbf16>, vector<128x128xf32> -> vector<128x128xf32>
    %494 = arith.addf %487, %493 : vector<128x128xf32>
    %c0_575 = arith.constant 0 : index
    %c2_576 = arith.constant 2 : index
    %c2_577 = arith.constant 2 : index
    %c0_578 = arith.constant 0 : index
    %495 = vector.load %arg18[%c0_575, %c2_576, %c2_577, %c0_578] : memref<2x10x10x32xf32, #tpu.memory_space<vmem>>, vector<2x8x8x32xf32>
    %496 = vector.shape_cast %495 : vector<2x8x8x32xf32> to vector<128x32xf32>
    %497 = arith.truncf %496 : vector<128x32xf32> to vector<128x32xbf16>
    %c8_579 = arith.constant 8 : index
    %c0_580 = arith.constant 0 : index
    %c0_581 = arith.constant 0 : index
    %498 = vector.load %arg13[%c8_579, %c0_580, %c0_581] : memref<9x32x128xbf16, #tpu.memory_space<vmem>>, vector<1x32x128xbf16>
    %499 = vector.shape_cast %498 : vector<1x32x128xbf16> to vector<32x128xbf16>
    %cst_582 = arith.constant dense<0.000000e+00> : vector<128x128xf32>
    %500 = tpu.matmul %497, %499, %cst_582 {dimension_numbers = #tpu.dot_dimension_numbers<[1], [0], [0], [1], [0, 0, 1, 1], [], []>} : vector<128x32xbf16>, vector<32x128xbf16>, vector<128x128xf32> -> vector<128x128xf32>
    %501 = arith.addf %494, %500 : vector<128x128xf32>
    %c0_583 = arith.constant 0 : index
    %c0_584 = arith.constant 0 : index
    %502 = vector.load %arg14[%c0_583, %c0_584] : memref<1x128xf32, #tpu.memory_space<vmem>>, vector<1x128xf32>
    %503 = vector.broadcast %502 : vector<1x128xf32> to vector<128x128xf32>
    %504 = arith.addf %501, %503 : vector<128x128xf32>
    %505 = vector.shape_cast %504 : vector<128x128xf32> to vector<2x8x8x128xf32>
    %c0_585 = arith.constant 0 : index
    %c0_586 = arith.constant 0 : index
    %c0_587 = arith.constant 0 : index
    %c0_588 = arith.constant 0 : index
    %506 = vector.load %arg15[%c0_585, %c0_586, %c0_587, %c0_588] : memref<2x8x8x128xf32, #tpu.memory_space<vmem>>, vector<2x8x8x128xf32>
    tpu.vector_store %arg15[%c0_585, %c0_586, %c0_587, %c0_588], %505 {strides = array<i32>} : memref<2x8x8x128xf32, #tpu.memory_space<vmem>>, vector<2x8x8x128xf32>,
    return
  }
}

module attributes {stable_mosaic.version = 11 : i64} {
  func.func @kernel(%arg0: memref<2x16x16x32xf32, #tpu.memory_space<vmem>>, %arg1: memref<9x32x3xbf16, #tpu.memory_space<vmem>>, %arg2: memref<1x3xf32, #tpu.memory_space<vmem>>, %arg3: memref<2x16x16x3xf32, #tpu.memory_space<vmem>>, %arg4: memref<2x18x18x32xf32, #tpu.memory_space<vmem>>) attributes {dimension_semantics = [], scalar_prefetch = 0 : i64, scratch_operands = 1 : i64, tpu.core_type = #tpu.core_type<tc>} {
    %cst = arith.constant 0.000000e+00 : f32
    %0 = vector.broadcast %cst : f32 to vector<2x18x18x32xf32>
    %c0 = arith.constant 0 : index
    %c0_0 = arith.constant 0 : index
    %c0_1 = arith.constant 0 : index
    %c0_2 = arith.constant 0 : index
    %1 = vector.load %arg4[%c0, %c0_0, %c0_1, %c0_2] : memref<2x18x18x32xf32, #tpu.memory_space<vmem>>, vector<2x18x18x32xf32>
    tpu.vector_store %arg4[%c0, %c0_0, %c0_1, %c0_2], %0 {strides = array<i32>} : memref<2x18x18x32xf32, #tpu.memory_space<vmem>>, vector<2x18x18x32xf32>,
    %c0_3 = arith.constant 0 : index
    %c0_4 = arith.constant 0 : index
    %c0_5 = arith.constant 0 : index
    %c0_6 = arith.constant 0 : index
    %2 = vector.load %arg0[%c0_3, %c0_4, %c0_5, %c0_6] : memref<2x16x16x32xf32, #tpu.memory_space<vmem>>, vector<2x16x16x32xf32>
    %c0_7 = arith.constant 0 : index
    %c1 = arith.constant 1 : index
    %c1_8 = arith.constant 1 : index
    %c0_9 = arith.constant 0 : index
    %3 = vector.load %arg4[%c0_7, %c1, %c1_8, %c0_9] : memref<2x18x18x32xf32, #tpu.memory_space<vmem>>, vector<2x16x16x32xf32>
    tpu.vector_store %arg4[%c0_7, %c1, %c1_8, %c0_9], %2 {strides = array<i32>} : memref<2x18x18x32xf32, #tpu.memory_space<vmem>>, vector<2x16x16x32xf32>,
    %cst_10 = arith.constant 0.000000e+00 : f32
    %4 = vector.broadcast %cst_10 : f32 to vector<512x3xf32>
    %c0_11 = arith.constant 0 : index
    %c0_12 = arith.constant 0 : index
    %c0_13 = arith.constant 0 : index
    %c0_14 = arith.constant 0 : index
    %5 = vector.load %arg4[%c0_11, %c0_12, %c0_13, %c0_14] : memref<2x18x18x32xf32, #tpu.memory_space<vmem>>, vector<2x16x16x32xf32>
    %6 = vector.shape_cast %5 : vector<2x16x16x32xf32> to vector<512x32xf32>
    %7 = arith.truncf %6 : vector<512x32xf32> to vector<512x32xbf16>
    %c0_15 = arith.constant 0 : index
    %c0_16 = arith.constant 0 : index
    %c0_17 = arith.constant 0 : index
    %8 = vector.load %arg1[%c0_15, %c0_16, %c0_17] : memref<9x32x3xbf16, #tpu.memory_space<vmem>>, vector<1x32x3xbf16>
    %9 = vector.shape_cast %8 : vector<1x32x3xbf16> to vector<32x3xbf16>
    %cst_18 = arith.constant dense<0.000000e+00> : vector<512x3xf32>
    %10 = tpu.matmul %7, %9, %cst_18 {dimension_numbers = #tpu.dot_dimension_numbers<[1], [0], [0], [1], [0, 0, 1, 1], [], []>} : vector<512x32xbf16>, vector<32x3xbf16>, vector<512x3xf32> -> vector<512x3xf32>
    %11 = arith.addf %4, %10 : vector<512x3xf32>
    %c0_19 = arith.constant 0 : index
    %c0_20 = arith.constant 0 : index
    %c1_21 = arith.constant 1 : index
    %c0_22 = arith.constant 0 : index
    %12 = vector.load %arg4[%c0_19, %c0_20, %c1_21, %c0_22] : memref<2x18x18x32xf32, #tpu.memory_space<vmem>>, vector<2x16x16x32xf32>
    %13 = vector.shape_cast %12 : vector<2x16x16x32xf32> to vector<512x32xf32>
    %14 = arith.truncf %13 : vector<512x32xf32> to vector<512x32xbf16>
    %c1_23 = arith.constant 1 : index
    %c0_24 = arith.constant 0 : index
    %c0_25 = arith.constant 0 : index
    %15 = vector.load %arg1[%c1_23, %c0_24, %c0_25] : memref<9x32x3xbf16, #tpu.memory_space<vmem>>, vector<1x32x3xbf16>
    %16 = vector.shape_cast %15 : vector<1x32x3xbf16> to vector<32x3xbf16>
    %cst_26 = arith.constant dense<0.000000e+00> : vector<512x3xf32>
    %17 = tpu.matmul %14, %16, %cst_26 {dimension_numbers = #tpu.dot_dimension_numbers<[1], [0], [0], [1], [0, 0, 1, 1], [], []>} : vector<512x32xbf16>, vector<32x3xbf16>, vector<512x3xf32> -> vector<512x3xf32>
    %18 = arith.addf %11, %17 : vector<512x3xf32>
    %c0_27 = arith.constant 0 : index
    %c0_28 = arith.constant 0 : index
    %c2 = arith.constant 2 : index
    %c0_29 = arith.constant 0 : index
    %19 = vector.load %arg4[%c0_27, %c0_28, %c2, %c0_29] : memref<2x18x18x32xf32, #tpu.memory_space<vmem>>, vector<2x16x16x32xf32>
    %20 = vector.shape_cast %19 : vector<2x16x16x32xf32> to vector<512x32xf32>
    %21 = arith.truncf %20 : vector<512x32xf32> to vector<512x32xbf16>
    %c2_30 = arith.constant 2 : index
    %c0_31 = arith.constant 0 : index
    %c0_32 = arith.constant 0 : index
    %22 = vector.load %arg1[%c2_30, %c0_31, %c0_32] : memref<9x32x3xbf16, #tpu.memory_space<vmem>>, vector<1x32x3xbf16>
    %23 = vector.shape_cast %22 : vector<1x32x3xbf16> to vector<32x3xbf16>
    %cst_33 = arith.constant dense<0.000000e+00> : vector<512x3xf32>
    %24 = tpu.matmul %21, %23, %cst_33 {dimension_numbers = #tpu.dot_dimension_numbers<[1], [0], [0], [1], [0, 0, 1, 1], [], []>} : vector<512x32xbf16>, vector<32x3xbf16>, vector<512x3xf32> -> vector<512x3xf32>
    %25 = arith.addf %18, %24 : vector<512x3xf32>
    %c0_34 = arith.constant 0 : index
    %c1_35 = arith.constant 1 : index
    %c0_36 = arith.constant 0 : index
    %c0_37 = arith.constant 0 : index
    %26 = vector.load %arg4[%c0_34, %c1_35, %c0_36, %c0_37] : memref<2x18x18x32xf32, #tpu.memory_space<vmem>>, vector<2x16x16x32xf32>
    %27 = vector.shape_cast %26 : vector<2x16x16x32xf32> to vector<512x32xf32>
    %28 = arith.truncf %27 : vector<512x32xf32> to vector<512x32xbf16>
    %c3 = arith.constant 3 : index
    %c0_38 = arith.constant 0 : index
    %c0_39 = arith.constant 0 : index
    %29 = vector.load %arg1[%c3, %c0_38, %c0_39] : memref<9x32x3xbf16, #tpu.memory_space<vmem>>, vector<1x32x3xbf16>
    %30 = vector.shape_cast %29 : vector<1x32x3xbf16> to vector<32x3xbf16>
    %cst_40 = arith.constant dense<0.000000e+00> : vector<512x3xf32>
    %31 = tpu.matmul %28, %30, %cst_40 {dimension_numbers = #tpu.dot_dimension_numbers<[1], [0], [0], [1], [0, 0, 1, 1], [], []>} : vector<512x32xbf16>, vector<32x3xbf16>, vector<512x3xf32> -> vector<512x3xf32>
    %32 = arith.addf %25, %31 : vector<512x3xf32>
    %c0_41 = arith.constant 0 : index
    %c1_42 = arith.constant 1 : index
    %c1_43 = arith.constant 1 : index
    %c0_44 = arith.constant 0 : index
    %33 = vector.load %arg4[%c0_41, %c1_42, %c1_43, %c0_44] : memref<2x18x18x32xf32, #tpu.memory_space<vmem>>, vector<2x16x16x32xf32>
    %34 = vector.shape_cast %33 : vector<2x16x16x32xf32> to vector<512x32xf32>
    %35 = arith.truncf %34 : vector<512x32xf32> to vector<512x32xbf16>
    %c4 = arith.constant 4 : index
    %c0_45 = arith.constant 0 : index
    %c0_46 = arith.constant 0 : index
    %36 = vector.load %arg1[%c4, %c0_45, %c0_46] : memref<9x32x3xbf16, #tpu.memory_space<vmem>>, vector<1x32x3xbf16>
    %37 = vector.shape_cast %36 : vector<1x32x3xbf16> to vector<32x3xbf16>
    %cst_47 = arith.constant dense<0.000000e+00> : vector<512x3xf32>
    %38 = tpu.matmul %35, %37, %cst_47 {dimension_numbers = #tpu.dot_dimension_numbers<[1], [0], [0], [1], [0, 0, 1, 1], [], []>} : vector<512x32xbf16>, vector<32x3xbf16>, vector<512x3xf32> -> vector<512x3xf32>
    %39 = arith.addf %32, %38 : vector<512x3xf32>
    %c0_48 = arith.constant 0 : index
    %c1_49 = arith.constant 1 : index
    %c2_50 = arith.constant 2 : index
    %c0_51 = arith.constant 0 : index
    %40 = vector.load %arg4[%c0_48, %c1_49, %c2_50, %c0_51] : memref<2x18x18x32xf32, #tpu.memory_space<vmem>>, vector<2x16x16x32xf32>
    %41 = vector.shape_cast %40 : vector<2x16x16x32xf32> to vector<512x32xf32>
    %42 = arith.truncf %41 : vector<512x32xf32> to vector<512x32xbf16>
    %c5 = arith.constant 5 : index
    %c0_52 = arith.constant 0 : index
    %c0_53 = arith.constant 0 : index
    %43 = vector.load %arg1[%c5, %c0_52, %c0_53] : memref<9x32x3xbf16, #tpu.memory_space<vmem>>, vector<1x32x3xbf16>
    %44 = vector.shape_cast %43 : vector<1x32x3xbf16> to vector<32x3xbf16>
    %cst_54 = arith.constant dense<0.000000e+00> : vector<512x3xf32>
    %45 = tpu.matmul %42, %44, %cst_54 {dimension_numbers = #tpu.dot_dimension_numbers<[1], [0], [0], [1], [0, 0, 1, 1], [], []>} : vector<512x32xbf16>, vector<32x3xbf16>, vector<512x3xf32> -> vector<512x3xf32>
    %46 = arith.addf %39, %45 : vector<512x3xf32>
    %c0_55 = arith.constant 0 : index
    %c2_56 = arith.constant 2 : index
    %c0_57 = arith.constant 0 : index
    %c0_58 = arith.constant 0 : index
    %47 = vector.load %arg4[%c0_55, %c2_56, %c0_57, %c0_58] : memref<2x18x18x32xf32, #tpu.memory_space<vmem>>, vector<2x16x16x32xf32>
    %48 = vector.shape_cast %47 : vector<2x16x16x32xf32> to vector<512x32xf32>
    %49 = arith.truncf %48 : vector<512x32xf32> to vector<512x32xbf16>
    %c6 = arith.constant 6 : index
    %c0_59 = arith.constant 0 : index
    %c0_60 = arith.constant 0 : index
    %50 = vector.load %arg1[%c6, %c0_59, %c0_60] : memref<9x32x3xbf16, #tpu.memory_space<vmem>>, vector<1x32x3xbf16>
    %51 = vector.shape_cast %50 : vector<1x32x3xbf16> to vector<32x3xbf16>
    %cst_61 = arith.constant dense<0.000000e+00> : vector<512x3xf32>
    %52 = tpu.matmul %49, %51, %cst_61 {dimension_numbers = #tpu.dot_dimension_numbers<[1], [0], [0], [1], [0, 0, 1, 1], [], []>} : vector<512x32xbf16>, vector<32x3xbf16>, vector<512x3xf32> -> vector<512x3xf32>
    %53 = arith.addf %46, %52 : vector<512x3xf32>
    %c0_62 = arith.constant 0 : index
    %c2_63 = arith.constant 2 : index
    %c1_64 = arith.constant 1 : index
    %c0_65 = arith.constant 0 : index
    %54 = vector.load %arg4[%c0_62, %c2_63, %c1_64, %c0_65] : memref<2x18x18x32xf32, #tpu.memory_space<vmem>>, vector<2x16x16x32xf32>
    %55 = vector.shape_cast %54 : vector<2x16x16x32xf32> to vector<512x32xf32>
    %56 = arith.truncf %55 : vector<512x32xf32> to vector<512x32xbf16>
    %c7 = arith.constant 7 : index
    %c0_66 = arith.constant 0 : index
    %c0_67 = arith.constant 0 : index
    %57 = vector.load %arg1[%c7, %c0_66, %c0_67] : memref<9x32x3xbf16, #tpu.memory_space<vmem>>, vector<1x32x3xbf16>
    %58 = vector.shape_cast %57 : vector<1x32x3xbf16> to vector<32x3xbf16>
    %cst_68 = arith.constant dense<0.000000e+00> : vector<512x3xf32>
    %59 = tpu.matmul %56, %58, %cst_68 {dimension_numbers = #tpu.dot_dimension_numbers<[1], [0], [0], [1], [0, 0, 1, 1], [], []>} : vector<512x32xbf16>, vector<32x3xbf16>, vector<512x3xf32> -> vector<512x3xf32>
    %60 = arith.addf %53, %59 : vector<512x3xf32>
    %c0_69 = arith.constant 0 : index
    %c2_70 = arith.constant 2 : index
    %c2_71 = arith.constant 2 : index
    %c0_72 = arith.constant 0 : index
    %61 = vector.load %arg4[%c0_69, %c2_70, %c2_71, %c0_72] : memref<2x18x18x32xf32, #tpu.memory_space<vmem>>, vector<2x16x16x32xf32>
    %62 = vector.shape_cast %61 : vector<2x16x16x32xf32> to vector<512x32xf32>
    %63 = arith.truncf %62 : vector<512x32xf32> to vector<512x32xbf16>
    %c8 = arith.constant 8 : index
    %c0_73 = arith.constant 0 : index
    %c0_74 = arith.constant 0 : index
    %64 = vector.load %arg1[%c8, %c0_73, %c0_74] : memref<9x32x3xbf16, #tpu.memory_space<vmem>>, vector<1x32x3xbf16>
    %65 = vector.shape_cast %64 : vector<1x32x3xbf16> to vector<32x3xbf16>
    %cst_75 = arith.constant dense<0.000000e+00> : vector<512x3xf32>
    %66 = tpu.matmul %63, %65, %cst_75 {dimension_numbers = #tpu.dot_dimension_numbers<[1], [0], [0], [1], [0, 0, 1, 1], [], []>} : vector<512x32xbf16>, vector<32x3xbf16>, vector<512x3xf32> -> vector<512x3xf32>
    %67 = arith.addf %60, %66 : vector<512x3xf32>
    %c0_76 = arith.constant 0 : index
    %c0_77 = arith.constant 0 : index
    %68 = vector.load %arg2[%c0_76, %c0_77] : memref<1x3xf32, #tpu.memory_space<vmem>>, vector<1x3xf32>
    %69 = vector.broadcast %68 : vector<1x3xf32> to vector<512x3xf32>
    %70 = arith.addf %67, %69 : vector<512x3xf32>
    %71 = vector.shape_cast %70 : vector<512x3xf32> to vector<2x16x16x3xf32>
    %c0_78 = arith.constant 0 : index
    %c0_79 = arith.constant 0 : index
    %c0_80 = arith.constant 0 : index
    %c0_81 = arith.constant 0 : index
    %72 = vector.load %arg3[%c0_78, %c0_79, %c0_80, %c0_81] : memref<2x16x16x3xf32, #tpu.memory_space<vmem>>, vector<2x16x16x3xf32>
    tpu.vector_store %arg3[%c0_78, %c0_79, %c0_80, %c0_81], %71 {strides = array<i32>} : memref<2x16x16x3xf32, #tpu.memory_space<vmem>>, vector<2x16x16x3xf32>,
    return
  }
}

</mosaic_0001>

<bundles_post_ra>
// kernel: single_network_forward.3
= control target key start
LH: loop header
LB: loop body
LE: loop exit
PB: predicated region body
PF: predicated region fallthrough
CT: control target
= control target key end

     0   :  { %vm15_vm0 = vcmask 261120   ;;  %vm18_vm1 = vcmask 254976   ;;  %v7118_v1 = vmov 0.0   ;;  %vm5255_vm2 = vcmask 23552   ;;  %s8654_s1 = inlined_call_operand.vmem [shape: bf16[9,32,3], index: 1, kind: input, shape index: {}]   ;;  %s8655_s0 = inlined_call_operand.vmem [shape: f32[2,16,16,32], index: 0, kind: input, shape index: {}]   ;;  %s8656_s2 = inlined_call_operand.vmem [shape: f32[1,3], index: 2, kind: input, shape index: {}]   ;;  %s8657_s3 = inlined_call_operand.vmem [shape: f32[2,16,16,3], index: 3, kind: output, shape index: {}]  }
   0x1   :  { %v7142_v0 = vld [vmem:[%s8654_s1 + $0x10] sm:$0xff]   ;;  %16 = vst.msk [vmem:[#allocation2] sm:$0xff] %vm15_vm0, %v7118_v1  ;;  %17 = vst.msk [vmem:[#allocation2 + $0x8] sm:$0xff] %vm15_vm0, %v7118_v1  ;;  %v7099_v2 = vld [vmem:[%s8654_s1 + $0x40] sm:$0xff]  }
   0x2   :  { %19 = vst.msk [vmem:[#allocation2 + $0x10] sm:$0x3] %vm18_vm1, %v7118_v1  ;;  %22 = vst.msk [vmem:[#allocation2 + $0x28] sm:$0x3] %vm18_vm1, %v7118_v1  ;;  %5969 = vmatprep.subr.bf16.mxu1 %v7142_v0  ;;  %v7100_v3 = vld [vmem:[%s8654_s1 + $0x18] sm:$0xff]   ;;  %6241 = vmatprep.subr.bf16.mxu0 %v7099_v2  ;;  %v7101_v4 = vld [vmem:[%s8654_s1 + $0x48] sm:$0xff]  }
   0x3   :  { %20 = vst.msk [vmem:[#allocation2 + $0x18] sm:$0xff] %vm15_vm0, %v7118_v1  ;;  %21 = vst.msk [vmem:[#allocation2 + $0x20] sm:$0xff] %vm15_vm0, %v7118_v1  ;;  %5970 = vmatpush3.bf16.msra.mxu1 %v7142_v0  ;;  %6242 = vmatpush3.bf16.msra.mxu0 %v7099_v2  ;;  %v125_v5 = vld [vmem:[%s8655_s0] sm:$0xff]  ;;  %v126_v6 = vld [vmem:[%s8655_s0 + $0x8] sm:$0xff] }
   0x4   :  { %23 = vst.msk [vmem:[#allocation2 + $0x30] sm:$0xff] %vm15_vm0, %v7118_v1  ;;  %24 = vst.msk [vmem:[#allocation2 + $0x38] sm:$0xff] %vm15_vm0, %v7118_v1  ;;  %5971 = vmatprep.subr.bf16.mxu1 %v7100_v3  ;;  %6243 = vmatprep.subr.bf16.mxu0 %v7101_v4  ;;  %v7102_v7 = vld [vmem:[%s8654_s1] sm:$0xff]   ;;  %v7103_v8 = vld [vmem:[%s8654_s1 + $0x50] sm:$0xff]  }
   0x5   :  { %25 = vst.msk [vmem:[#allocation2 + $0x40] sm:$0x3] %vm18_vm1, %v7118_v1  ;;  %28 = vst.msk [vmem:[#allocation2 + $0x58] sm:$0x3] %vm18_vm1, %v7118_v1  ;;  %v127_v9 = vld [vmem:[%s8655_s0 + $0x10] sm:$0xff]  ;;  %v128_v12 = vld [vmem:[%s8655_s0 + $0x18] sm:$0xff] }
   0x6   :  { %26 = vst.msk [vmem:[#allocation2 + $0x48] sm:$0xff] %vm15_vm0, %v7118_v1  ;;  %27 = vst.msk [vmem:[#allocation2 + $0x50] sm:$0xff] %vm15_vm0, %v7118_v1  ;;  %v129_v14 = vld [vmem:[%s8655_s0 + $0x20] sm:$0xff]  ;;  %v130_v15 = vld [vmem:[%s8655_s0 + $0x28] sm:$0xff] }
   0x7   :  { %29 = vst.msk [vmem:[#allocation2 + $0x60] sm:$0xff] %vm15_vm0, %v7118_v1  ;;  %30 = vst.msk [vmem:[#allocation2 + $0x68] sm:$0xff] %vm15_vm0, %v7118_v1  ;;  %5972 = vmatpush3.bf16.msra.mxu1 %v7100_v3  ;;  %6244 = vmatpush3.bf16.msra.mxu0 %v7101_v4  ;;  %v131_v16 = vld [vmem:[%s8655_s0 + $0x30] sm:$0xff]  ;;  %v132_v17 = vld [vmem:[%s8655_s0 + $0x38] sm:$0xff] }
   0x8   :  { %31 = vst.msk [vmem:[#allocation2 + $0x70] sm:$0x3] %vm18_vm1, %v7118_v1  ;;  %34 = vst.msk [vmem:[#allocation2 + $0x88] sm:$0x3] %vm18_vm1, %v7118_v1  ;;  %v354_v10 = vld [vmem:[#allocation2 + $0x1] sm:$0xff]  ;;  %6037 = vmatprep.subr.bf16.mxu1 %v7102_v7  ;;  %6309 = vmatprep.subr.bf16.mxu0 %v7103_v8  ;;  %v135_v20 = vld [vmem:[%s8655_s0 + $0x50] sm:$0xff] }
   0x9   :  { %32 = vst.msk [vmem:[#allocation2 + $0x78] sm:$0xff] %vm15_vm0, %v7118_v1  ;;  %33 = vst.msk [vmem:[#allocation2 + $0x80] sm:$0xff] %vm15_vm0, %v7118_v1  ;;  %v355_v11 = vld [vmem:[#allocation2 + $0x9] sm:$0xff]  ;;  %v133_v18 = vld [vmem:[%s8655_s0 + $0x40] sm:$0xff] }
   0xa   :  { %35 = vst.msk [vmem:[#allocation2 + $0x90] sm:$0xff] %vm15_vm0, %v7118_v1  ;;  %36 = vst.msk [vmem:[#allocation2 + $0x98] sm:$0xff] %vm15_vm0, %v7118_v1  ;;  %v418_v13 = vpack.c.bf16 %v355_v11, %v354_v10  ;;  %v134_v19 = vld [vmem:[%s8655_s0 + $0x48] sm:$0xff]  ;;  %v136_v21 = vld [vmem:[%s8655_s0 + $0x58] sm:$0xff] }
   0xb   :  { %37 = vst.msk [vmem:[#allocation2 + $0xa0] sm:$0x3] %vm18_vm1, %v7118_v1  ;;  %40 = vst.msk [vmem:[#allocation2 + $0xb8] sm:$0x3] %vm18_vm1, %v7118_v1  ;;  %v137_v22 = vld [vmem:[%s8655_s0 + $0x60] sm:$0xff]  ;;  %v138_v23 = vld [vmem:[%s8655_s0 + $0x68] sm:$0xff] }
   0xc   :  { %38 = vst.msk [vmem:[#allocation2 + $0xa8] sm:$0xff] %vm15_vm0, %v7118_v1  ;;  %39 = vst.msk [vmem:[#allocation2 + $0xb0] sm:$0xff] %vm15_vm0, %v7118_v1  ;;  %5973 = vmatprep.mubr.msk.bf16.mxu1 %vm15_vm0, %v418_v13  ;;  %v139_v24 = vld [vmem:[%s8655_s0 + $0x70] sm:$0xff]  ;;  %v140_v25 = vld [vmem:[%s8655_s0 + $0x78] sm:$0xff] }
   0xd   :  { %41 = vst.msk [vmem:[#allocation2 + $0xc0] sm:$0xff] %vm15_vm0, %v7118_v1  ;;  %42 = vst.msk [vmem:[#allocation2 + $0xc8] sm:$0xff] %vm15_vm0, %v7118_v1  ;;  %v141_v28 = vld [vmem:[%s8655_s0 + $0x80] sm:$0xff]  ;;  %v142_v30 = vld [vmem:[%s8655_s0 + $0x88] sm:$0xff] }
   0xe   :  { %43 = vst.msk [vmem:[#allocation2 + $0xd0] sm:$0x3] %vm18_vm1, %v7118_v1  ;;  %46 = vst.msk [vmem:[#allocation2 + $0xe8] sm:$0x3] %vm18_vm1, %v7118_v1  ;;  %v143_v32 = vld [vmem:[%s8655_s0 + $0x90] sm:$0xff]  ;;  %v144_v34 = vld [vmem:[%s8655_s0 + $0x98] sm:$0xff] }
   0xf   :  { %44 = vst.msk [vmem:[#allocation2 + $0xd8] sm:$0xff] %vm15_vm0, %v7118_v1  ;;  %45 = vst.msk [vmem:[#allocation2 + $0xe0] sm:$0xff] %vm15_vm0, %v7118_v1  ;;  %v145_v35 = vld [vmem:[%s8655_s0 + $0xa0] sm:$0xff]  ;;  %v7104_v39 = vld [vmem:[%s8654_s1 + $0x58] sm:$0xff]  }
  0x10   :  { %47 = vst.msk [vmem:[#allocation2 + $0xf0] sm:$0xff] %vm15_vm0, %v7118_v1  ;;  %48 = vst.msk [vmem:[#allocation2 + $0xf8] sm:$0xff] %vm15_vm0, %v7118_v1  ;;  %v146_v45 = vld [vmem:[%s8655_s0 + $0xa8] sm:$0xff]  ;;  %v147_v46 = vld [vmem:[%s8655_s0 + $0xb0] sm:$0xff] }
  0x11   :  { %49 = vst.msk [vmem:[#allocation2 + $0x100] sm:$0x3] %vm18_vm1, %v7118_v1  ;;  %52 = vst.msk [vmem:[#allocation2 + $0x118] sm:$0x3] %vm18_vm1, %v7118_v1  ;;  %v148_v47 = vld [vmem:[%s8655_s0 + $0xb8] sm:$0xff]  ;;  %v149_v48 = vld [vmem:[%s8655_s0 + $0xc0] sm:$0xff] }
  0x12   :  { %50 = vst.msk [vmem:[#allocation2 + $0x108] sm:$0xff] %vm15_vm0, %v7118_v1  ;;  %51 = vst.msk [vmem:[#allocation2 + $0x110] sm:$0xff] %vm15_vm0, %v7118_v1  ;;  %v150_v50 = vld [vmem:[%s8655_s0 + $0xc8] sm:$0xff]  ;;  %v151_v51 = vld [vmem:[%s8655_s0 + $0xd0] sm:$0xff] }
  0x13   :  { %53 = vst.msk [vmem:[#allocation2 + $0x120] sm:$0xff] %vm15_vm0, %v7118_v1  ;;  %54 = vst.msk [vmem:[#allocation2 + $0x128] sm:$0xff] %vm15_vm0, %v7118_v1  ;;  %v152_v53 = vld [vmem:[%s8655_s0 + $0xd8] sm:$0xff]  ;;  %v153_v54 = vld [vmem:[%s8655_s0 + $0xe0] sm:$0xff] }
  0x14   :  { %55 = vst.msk [vmem:[#allocation2 + $0x130] sm:$0x3] %vm18_vm1, %v7118_v1  ;;  %58 = vst.msk [vmem:[#allocation2 + $0x148] sm:$0x3] %vm18_vm1, %v7118_v1  ;;  %v154_v55 = vld [vmem:[%s8655_s0 + $0xe8] sm:$0xff]  ;;  %v155_v56 = vld [vmem:[%s8655_s0 + $0xf0] sm:$0xff] }
  0x15   :  { %56 = vst.msk [vmem:[#allocation2 + $0x138] sm:$0xff] %vm15_vm0, %v7118_v1  ;;  %57 = vst.msk [vmem:[#allocation2 + $0x140] sm:$0xff] %vm15_vm0, %v7118_v1  ;;  %v156_v58 = vld [vmem:[%s8655_s0 + $0xf8] sm:$0xff]  ;;  %v157_v59 = vld [vmem:[%s8655_s0 + $0x100] sm:$0xff] }
  0x16   :  { %59 = vst.msk [vmem:[#allocation2 + $0x150] sm:$0xff] %vm15_vm0, %v7118_v1  ;;  %60 = vst.msk [vmem:[#allocation2 + $0x158] sm:$0xff] %vm15_vm0, %v7118_v1  ;;  %v158_v60 = vld [vmem:[%s8655_s0 + $0x108] sm:$0xff]  ;;  %v7533_v3 = vld [vmem:[%s8654_s1 + $0x60] sm:$0xff]  }
  0x17   :  { %61 = vst.msk [vmem:[#allocation2 + $0x160] sm:$0x3] %vm18_vm1, %v7118_v1  ;;  %64 = vst.msk [vmem:[#allocation2 + $0x178] sm:$0x3] %vm18_vm1, %v7118_v1  ;;  %v7105_v62 = vld [vmem:[%s8654_s1 + $0x8] sm:$0xff]   ;;  %v159_v4 = vld [vmem:[%s8655_s0 + $0x110] sm:$0xff] }
  0x18   :  { %62 = vst.msk [vmem:[#allocation2 + $0x168] sm:$0xff] %vm15_vm0, %v7118_v1  ;;  %63 = vst.msk [vmem:[#allocation2 + $0x170] sm:$0xff] %vm15_vm0, %v7118_v1  ;;  %v164_v13 = vld [vmem:[%s8655_s0 + $0x138] sm:$0xff] }
  0x19   :  { %65 = vst.msk [vmem:[#allocation2 + $0x180] sm:$0xff] %vm15_vm0, %v7118_v1  ;;  %66 = vst.msk [vmem:[#allocation2 + $0x188] sm:$0xff] %vm15_vm0, %v7118_v1 }
  0x1a   :  { %67 = vst.msk [vmem:[#allocation2 + $0x190] sm:$0x3] %vm18_vm1, %v7118_v1  ;;  %70 = vst.msk [vmem:[#allocation2 + $0x1a8] sm:$0x3] %vm18_vm1, %v7118_v1 }
  0x1b   :  { %68 = vst.msk [vmem:[#allocation2 + $0x198] sm:$0xff] %vm15_vm0, %v7118_v1  ;;  %69 = vst.msk [vmem:[#allocation2 + $0x1a0] sm:$0xff] %vm15_vm0, %v7118_v1 }
  0x1c   :  { %71 = vst.msk [vmem:[#allocation2 + $0x1b0] sm:$0xff] %vm15_vm0, %v7118_v1  ;;  %72 = vst.msk [vmem:[#allocation2 + $0x1b8] sm:$0xff] %vm15_vm0, %v7118_v1 }
  0x1d   :  { %73 = vst.msk [vmem:[#allocation2 + $0x1c0] sm:$0x3] %vm18_vm1, %v7118_v1  ;;  %76 = vst.msk [vmem:[#allocation2 + $0x1d8] sm:$0x3] %vm18_vm1, %v7118_v1 }
  0x1e   :  { %74 = vst.msk [vmem:[#allocation2 + $0x1c8] sm:$0xff] %vm15_vm0, %v7118_v1  ;;  %75 = vst.msk [vmem:[#allocation2 + $0x1d0] sm:$0xff] %vm15_vm0, %v7118_v1 }
  0x1f   :  { %77 = vst.msk [vmem:[#allocation2 + $0x1e0] sm:$0xff] %vm15_vm0, %v7118_v1  ;;  %78 = vst.msk [vmem:[#allocation2 + $0x1e8] sm:$0xff] %vm15_vm0, %v7118_v1 }
  0x20   :  { %79 = vst.msk [vmem:[#allocation2 + $0x1f0] sm:$0x3] %vm18_vm1, %v7118_v1  ;;  %82 = vst.msk [vmem:[#allocation2 + $0x208] sm:$0x3] %vm18_vm1, %v7118_v1 }
  0x21   :  { %80 = vst.msk [vmem:[#allocation2 + $0x1f8] sm:$0xff] %vm15_vm0, %v7118_v1  ;;  %81 = vst.msk [vmem:[#allocation2 + $0x200] sm:$0xff] %vm15_vm0, %v7118_v1 }
  0x22   :  { %83 = vst.msk [vmem:[#allocation2 + $0x210] sm:$0xff] %vm15_vm0, %v7118_v1  ;;  %84 = vst.msk [vmem:[#allocation2 + $0x218] sm:$0xff] %vm15_vm0, %v7118_v1 }
  0x23   :  { %85 = vst.msk [vmem:[#allocation2 + $0x220] sm:$0x3] %vm18_vm1, %v7118_v1  ;;  %88 = vst.msk [vmem:[#allocation2 + $0x238] sm:$0x3] %vm18_vm1, %v7118_v1 }
  0x24   :  { %86 = vst.msk [vmem:[#allocation2 + $0x228] sm:$0xff] %vm15_vm0, %v7118_v1  ;;  %87 = vst.msk [vmem:[#allocation2 + $0x230] sm:$0xff] %vm15_vm0, %v7118_v1 }
  0x25   :  { %89 = vst.msk [vmem:[#allocation2 + $0x240] sm:$0xff] %vm15_vm0, %v7118_v1  ;;  %90 = vst.msk [vmem:[#allocation2 + $0x248] sm:$0xff] %vm15_vm0, %v7118_v1 }
  0x26   :  { %91 = vst.msk [vmem:[#allocation2 + $0x250] sm:$0x3] %vm18_vm1, %v7118_v1  ;;  %94 = vst.msk [vmem:[#allocation2 + $0x268] sm:$0x3] %vm18_vm1, %v7118_v1 }
  0x27   :  { %92 = vst.msk [vmem:[#allocation2 + $0x258] sm:$0xff] %vm15_vm0, %v7118_v1  ;;  %93 = vst.msk [vmem:[#allocation2 + $0x260] sm:$0xff] %vm15_vm0, %v7118_v1 }
  0x28   :  { %95 = vst.msk [vmem:[#allocation2 + $0x270] sm:$0xff] %vm15_vm0, %v7118_v1  ;;  %96 = vst.msk [vmem:[#allocation2 + $0x278] sm:$0xff] %vm15_vm0, %v7118_v1 }
  0x29   :  { %97 = vst.msk [vmem:[#allocation2 + $0x280] sm:$0x3] %vm18_vm1, %v7118_v1  ;;  %100 = vst.msk [vmem:[#allocation2 + $0x298] sm:$0x3] %vm18_vm1, %v7118_v1 }
  0x2a   :  { %98 = vst.msk [vmem:[#allocation2 + $0x288] sm:$0xff] %vm15_vm0, %v7118_v1  ;;  %99 = vst.msk [vmem:[#allocation2 + $0x290] sm:$0xff] %vm15_vm0, %v7118_v1 }
  0x2b   :  { %101 = vst.msk [vmem:[#allocation2 + $0x2a0] sm:$0xff] %vm15_vm0, %v7118_v1  ;;  %102 = vst.msk [vmem:[#allocation2 + $0x2a8] sm:$0xff] %vm15_vm0, %v7118_v1 }
  0x2c   :  { %103 = vst.msk [vmem:[#allocation2 + $0x2b0] sm:$0x3] %vm18_vm1, %v7118_v1  ;;  %106 = vst.msk [vmem:[#allocation2 + $0x2c8] sm:$0x3] %vm18_vm1, %v7118_v1 }
  0x2d   :  { %104 = vst.msk [vmem:[#allocation2 + $0x2b8] sm:$0xff] %vm15_vm0, %v7118_v1  ;;  %105 = vst.msk [vmem:[#allocation2 + $0x2c0] sm:$0xff] %vm15_vm0, %v7118_v1 }
  0x2e   :  { %107 = vst.msk [vmem:[#allocation2 + $0x2d0] sm:$0xff] %vm15_vm0, %v7118_v1  ;;  %108 = vst.msk [vmem:[#allocation2 + $0x2d8] sm:$0xff] %vm15_vm0, %v7118_v1 }
  0x2f   :  { %109 = vst.msk [vmem:[#allocation2 + $0x2e0] sm:$0x3] %vm18_vm1, %v7118_v1  ;;  %112 = vst.msk [vmem:[#allocation2 + $0x2f8] sm:$0x3] %vm18_vm1, %v7118_v1 }
  0x30   :  { %110 = vst.msk [vmem:[#allocation2 + $0x2e8] sm:$0xff] %vm15_vm0, %v7118_v1  ;;  %111 = vst.msk [vmem:[#allocation2 + $0x2f0] sm:$0xff] %vm15_vm0, %v7118_v1 }
  0x31   :  { %113 = vst.msk [vmem:[#allocation2 + $0x300] sm:$0xff] %vm15_vm0, %v7118_v1  ;;  %114 = vst.msk [vmem:[#allocation2 + $0x308] sm:$0xff] %vm15_vm0, %v7118_v1 }
  0x32   :  { %115 = vst.msk [vmem:[#allocation2 + $0x310] sm:$0x3] %vm18_vm1, %v7118_v1  ;;  %118 = vst.msk [vmem:[#allocation2 + $0x328] sm:$0x3] %vm18_vm1, %v7118_v1 }
  0x33   :  { %116 = vst.msk [vmem:[#allocation2 + $0x318] sm:$0xff] %vm15_vm0, %v7118_v1  ;;  %117 = vst.msk [vmem:[#allocation2 + $0x320] sm:$0xff] %vm15_vm0, %v7118_v1 }
  0x34   :  { %119 = vst.msk [vmem:[#allocation2 + $0x330] sm:$0xff] %vm15_vm0, %v7118_v1  ;;  %120 = vst.msk [vmem:[#allocation2 + $0x338] sm:$0xff] %vm15_vm0, %v7118_v1 }
  0x35   :  { %121 = vst.msk [vmem:[#allocation2 + $0x340] sm:$0x3] %vm18_vm1, %v7118_v1  ;;  %124 = vst.msk [vmem:[#allocation2 + $0x358] sm:$0x3] %vm18_vm1, %v7118_v1 }
  0x36   :  { %122 = vst.msk [vmem:[#allocation2 + $0x348] sm:$0xff] %vm15_vm0, %v7118_v1  ;;  %123 = vst.msk [vmem:[#allocation2 + $0x350] sm:$0xff] %vm15_vm0, %v7118_v1 }
  0x37   :  { %190 = vst.msk [vmem:[#allocation2 + $0x19] sm:$0xff] %vm15_vm0, %v125_v5  ;;  %191 = vst.msk [vmem:[#allocation2 + $0x21] sm:$0xff] %vm15_vm0, %v126_v6  ;;  %v160_v6 = vld [vmem:[%s8655_s0 + $0x118] sm:$0xff] }
  0x38   :  { %192 = vst.msk [vmem:[#allocation2 + $0x31] sm:$0xff] %vm15_vm0, %v127_v9  ;;  %193 = vst.msk [vmem:[#allocation2 + $0x39] sm:$0xff] %vm15_vm0, %v128_v12  ;;  %v162_v9 = vld [vmem:[%s8655_s0 + $0x128] sm:$0xff]  ;;  %v163_v12 = vld [vmem:[%s8655_s0 + $0x130] sm:$0xff] }
  0x39   :  { %194 = vst.msk [vmem:[#allocation2 + $0x49] sm:$0xff] %vm15_vm0, %v129_v14  ;;  %195 = vst.msk [vmem:[#allocation2 + $0x51] sm:$0xff] %vm15_vm0, %v130_v15  ;;  %v165_v14 = vld [vmem:[%s8655_s0 + $0x140] sm:$0xff] }
  0x3a   :  { %196 = vst.msk [vmem:[#allocation2 + $0x61] sm:$0xff] %vm15_vm0, %v131_v16  ;;  %197 = vst.msk [vmem:[#allocation2 + $0x69] sm:$0xff] %vm15_vm0, %v132_v17  ;;  %v166_v16 = vld [vmem:[%s8655_s0 + $0x148] sm:$0xff] }
  0x3b   :  { %198 = vst.msk [vmem:[#allocation2 + $0x79] sm:$0xff] %vm15_vm0, %v133_v18  ;;  %199 = vst.msk [vmem:[#allocation2 + $0x81] sm:$0xff] %vm15_vm0, %v134_v19  ;;  %v167_v18 = vld [vmem:[%s8655_s0 + $0x150] sm:$0xff]  ;;  %v168_v19 = vld [vmem:[%s8655_s0 + $0x158] sm:$0xff] }
  0x3c   :  { %200 = vst.msk [vmem:[#allocation2 + $0x91] sm:$0xff] %vm15_vm0, %v135_v20  ;;  %201 = vst.msk [vmem:[#allocation2 + $0x99] sm:$0xff] %vm15_vm0, %v136_v21  ;;  %v169_v20 = vld [vmem:[%s8655_s0 + $0x160] sm:$0xff]  ;;  %v170_v21 = vld [vmem:[%s8655_s0 + $0x168] sm:$0xff] }
  0x3d   :  { %202 = vst.msk [vmem:[#allocation2 + $0xa9] sm:$0xff] %vm15_vm0, %v137_v22  ;;  %203 = vst.msk [vmem:[#allocation2 + $0xb1] sm:$0xff] %vm15_vm0, %v138_v23 }
  0x3e   :  { %v356_v26 = vld [vmem:[#allocation2 + $0x19] sm:$0xff]  ;;  %v357_v27 = vld [vmem:[#allocation2 + $0x21] sm:$0xff]  ;;  %204 = vst.msk [vmem:[#allocation2 + $0xc1] sm:$0xff] %vm15_vm0, %v139_v24  ;;  %205 = vst.msk [vmem:[#allocation2 + $0xc9] sm:$0xff] %vm15_vm0, %v140_v25 }
  0x3f   :  { %v419_v29 = vpack.c.bf16 %v357_v27, %v356_v26  ;;  %206 = vst.msk [vmem:[#allocation2 + $0xd9] sm:$0xff] %vm15_vm0, %v141_v28  ;;  %v2375_v31 = vld [vmem:[#allocation2 + $0x31] sm:$0xff]  ;;  %207 = vst.msk [vmem:[#allocation2 + $0xe1] sm:$0xff] %vm15_vm0, %v142_v30  ;;  %v2376_v33 = vld [vmem:[#allocation2 + $0x39] sm:$0xff] }
  0x40   :  { %208 = vst.msk [vmem:[#allocation2 + $0xf1] sm:$0xff] %vm15_vm0, %v143_v32  ;;  %v2438_v36 = vpack.c.bf16 %v2376_v33, %v2375_v31  ;;  %v360_v37 = vld [vmem:[#allocation2 + $0x49] sm:$0xff]  ;;  %v361_v38 = vld [vmem:[#allocation2 + $0x51] sm:$0xff]  ;;  %209 = vst.msk [vmem:[#allocation2 + $0xf9] sm:$0xff] %vm15_vm0, %v144_v34 }
  0x41   :  { %5974 = vmatmul.mubr.msk.bf16.vlgmr.msra.gmra.mrb[0].mxu1 %vm15_vm0, %v419_v29  ;;  %6245 = vmatprep.mubr.msk.bf16.mxu0 %vm15_vm0, %v419_v29  ;;  %210 = vst.msk [vmem:[#allocation2 + $0x109] sm:$0xff] %vm15_vm0, %v145_v35  ;;  %v421_v40 = vpack.c.bf16 %v361_v38, %v360_v37  ;;  %v2379_v41 = vld [vmem:[#allocation2 + $0x61] sm:$0xff]  ;;  %v2380_v42 = vld [vmem:[#allocation2 + $0x69] sm:$0xff]  ;;  %211 = vst.msk [vmem:[#allocation2 + $0x111] sm:$0xff] %vm15_vm0, %v146_v45 }
  0x42   :  { %6038 = vmatpush3.bf16.msra.mxu1 %v7102_v7  ;;  %6246 = vmatmul.mubr.msk.bf16.vlgmr.msra.gmra.mrb[0].mxu0 %vm15_vm0, %v2438_v36  ;;  %v364_v43 = vld [vmem:[#allocation2 + $0x79] sm:$0xff]  ;;  %v365_v44 = vld [vmem:[#allocation2 + $0x81] sm:$0xff]  ;;  %212 = vst.msk [vmem:[#allocation2 + $0x121] sm:$0xff] %vm15_vm0, %v147_v46  ;;  %v2440_v49 = vpack.c.bf16 %v2380_v42, %v2379_v41  ;;  %213 = vst.msk [vmem:[#allocation2 + $0x129] sm:$0xff] %vm15_vm0, %v148_v47 }
  0x43   :  { %5977 = vmatprep.mubr.msk.bf16.mxu1 %vm15_vm0, %v2438_v36  ;;  %6310 = vmatpush3.bf16.msra.mxu0 %v7103_v8  ;;  %214 = vst.msk [vmem:[#allocation2 + $0x139] sm:$0xff] %vm15_vm0, %v149_v48  ;;  %v423_v52 = vpack.c.bf16 %v365_v44, %v364_v43  ;;  %215 = vst.msk [vmem:[#allocation2 + $0x141] sm:$0xff] %vm15_vm0, %v150_v50  ;;  %v2383_v57 = vld [vmem:[#allocation2 + $0x91] sm:$0xff]  ;;  %v2384_v61 = vld [vmem:[#allocation2 + $0x99] sm:$0xff] }
  0x44   :  { %6249 = vmatprep.mubr.msk.bf16.mxu0 %vm15_vm0, %v421_v40  ;;  %6311 = vmatprep.subr.bf16.mxu0 %v7104_v39  ;;  %216 = vst.msk [vmem:[#allocation2 + $0x151] sm:$0xff] %vm15_vm0, %v151_v51  ;;  %217 = vst.msk [vmem:[#allocation2 + $0x159] sm:$0xff] %vm15_vm0, %v152_v53  ;;  %v368_v63 = vld [vmem:[#allocation2 + $0xa9] sm:$0xff]  ;;  %v369_v0 = vld [vmem:[#allocation2 + $0xb1] sm:$0xff]  ;;  %v2442_v1 = vpack.c.bf16 %v2384_v61, %v2383_v57 }
  0x45   :  { %218 = vst.msk [vmem:[#allocation2 + $0x169] sm:$0xff] %vm15_vm0, %v153_v54  ;;  %219 = vst.msk [vmem:[#allocation2 + $0x171] sm:$0xff] %vm15_vm0, %v154_v55  ;;  %6039 = vmatprep.subr.bf16.mxu1 %v7105_v62  ;;  %v425_v2 = vpack.c.bf16 %v369_v0, %v368_v63  ;;  %v2387_v5 = vld [vmem:[#allocation2 + $0xc1] sm:$0xff]  ;;  %v2388_v7 = vld [vmem:[#allocation2 + $0xc9] sm:$0xff] }
  0x46   :  { %220 = vst.msk [vmem:[#allocation2 + $0x181] sm:$0xff] %vm15_vm0, %v155_v56  ;;  %221 = vst.msk [vmem:[#allocation2 + $0x189] sm:$0xff] %vm15_vm0, %v156_v58  ;;  %6040 = vmatpush3.bf16.msra.mxu1 %v7105_v62  ;;  %v161_v8 = vld [vmem:[%s8655_s0 + $0x120] sm:$0xff]  ;;  %v2444_v15 = vpack.c.bf16 %v2388_v7, %v2387_v5  ;;  %v171_v26 = vld [vmem:[%s8655_s0 + $0x170] sm:$0xff] }
  0x47   :  { %6312 = vmatpush3.bf16.msra.mxu0 %v7104_v39  ;;  %222 = vst.msk [vmem:[#allocation2 + $0x1c9] sm:$0xff] %vm15_vm0, %v157_v59  ;;  %223 = vst.msk [vmem:[#allocation2 + $0x1d1] sm:$0xff] %vm15_vm0, %v158_v60  ;;  %v372_v10 = vld [vmem:[#allocation2 + $0xd9] sm:$0xff]  ;;  %v373_v11 = vld [vmem:[#allocation2 + $0xe1] sm:$0xff] }
  0x48   :  { %6377 = vmatprep.subr.bf16.mxu0 %v7533_v3  ;;  %224 = vst.msk [vmem:[#allocation2 + $0x1e1] sm:$0xff] %vm15_vm0, %v159_v4  ;;  %225 = vst.msk [vmem:[#allocation2 + $0x1e9] sm:$0xff] %vm15_vm0, %v160_v6  ;;  %v427_v17 = vpack.c.bf16 %v373_v11, %v372_v10  ;;  %v2391_v22 = vld [vmem:[#allocation2 + $0xf1] sm:$0xff]  ;;  %v2392_v23 = vld [vmem:[#allocation2 + $0xf9] sm:$0xff] }
  0x49   :  { %5978 = vmatmul.mubr.msk.bf16.gmra.mrb[4].mxu1 %vm15_vm0, %v421_v40  ;;  %226 = vst.msk [vmem:[#allocation2 + $0x1f9] sm:$0xff] %vm15_vm0, %v161_v8  ;;  %227 = vst.msk [vmem:[#allocation2 + $0x201] sm:$0xff] %vm15_vm0, %v162_v9  ;;  %v376_v24 = vld [vmem:[#allocation2 + $0x109] sm:$0xff]  ;;  %v377_v25 = vld [vmem:[#allocation2 + $0x111] sm:$0xff]  ;;  %v2446_v30 = vpack.c.bf16 %v2392_v23, %v2391_v22 }
  0x4a   :  { %5981 = vmatprep.mubr.msk.bf16.mxu1 %vm15_vm0, %v2440_v49  ;;  %6250 = vmatmul.mubr.msk.bf16.gmra.mrb[4].mxu0 %vm15_vm0, %v2440_v49  ;;  %228 = vst.msk [vmem:[#allocation2 + $0x211] sm:$0xff] %vm15_vm0, %v163_v12  ;;  %229 = vst.msk [vmem:[#allocation2 + $0x219] sm:$0xff] %vm15_vm0, %v164_v13  ;;  %v172_v27 = vld [vmem:[%s8655_s0 + $0x178] sm:$0xff]  ;;  %v173_v28 = vld [vmem:[%s8655_s0 + $0x180] sm:$0xff]  ;;  %v429_v31 = vpack.c.bf16 %v377_v25, %v376_v24 }
  0x4b   :  { %6253 = vmatprep.mubr.msk.bf16.mxu0 %vm15_vm0, %v423_v52  ;;  %230 = vst.msk [vmem:[#allocation2 + $0x229] sm:$0xff] %vm15_vm0, %v165_v14  ;;  %231 = vst.msk [vmem:[#allocation2 + $0x231] sm:$0xff] %vm15_vm0, %v166_v16  ;;  %v174_v29 = vld [vmem:[%s8655_s0 + $0x188] sm:$0xff]  ;;  %v175_v32 = vld [vmem:[%s8655_s0 + $0x190] sm:$0xff] }
  0x4c   :  { %232 = vst.msk [vmem:[#allocation2 + $0x241] sm:$0xff] %vm15_vm0, %v167_v18  ;;  %233 = vst.msk [vmem:[#allocation2 + $0x249] sm:$0xff] %vm15_vm0, %v168_v19  ;;  %v176_v33 = vld [vmem:[%s8655_s0 + $0x198] sm:$0xff]  ;;  %v177_v34 = vld [vmem:[%s8655_s0 + $0x1a0] sm:$0xff] }
  0x4d   :  { %234 = vst.msk [vmem:[#allocation2 + $0x259] sm:$0xff] %vm15_vm0, %v169_v20  ;;  %235 = vst.msk [vmem:[#allocation2 + $0x261] sm:$0xff] %vm15_vm0, %v170_v21  ;;  %v178_v35 = vld [vmem:[%s8655_s0 + $0x1a8] sm:$0xff]  ;;  %v380_v38 = vld [vmem:[#allocation2 + $0x139] sm:$0xff] }
  0x4e   :  { %236 = vst.msk [vmem:[#allocation2 + $0x271] sm:$0xff] %vm15_vm0, %v171_v26  ;;  %237 = vst.msk [vmem:[#allocation2 + $0x279] sm:$0xff] %vm15_vm0, %v172_v27  ;;  %v2395_v36 = vld [vmem:[#allocation2 + $0x121] sm:$0xff]  ;;  %v2396_v37 = vld [vmem:[#allocation2 + $0x129] sm:$0xff] }
  0x4f   :  { %238 = vst.msk [vmem:[#allocation2 + $0x289] sm:$0xff] %vm15_vm0, %v173_v28  ;;  %239 = vst.msk [vmem:[#allocation2 + $0x291] sm:$0xff] %vm15_vm0, %v174_v29  ;;  %v381_v39 = vld [vmem:[#allocation2 + $0x141] sm:$0xff]  ;;  %v179_v40 = vld [vmem:[%s8655_s0 + $0x1b0] sm:$0xff]  ;;  %v2448_v43 = vpack.c.bf16 %v2396_v37, %v2395_v36 }
  0x50   :  { %240 = vst.msk [vmem:[#allocation2 + $0x2a1] sm:$0xff] %vm15_vm0, %v175_v32  ;;  %241 = vst.msk [vmem:[#allocation2 + $0x2a9] sm:$0xff] %vm15_vm0, %v176_v33  ;;  %v180_v41 = vld [vmem:[%s8655_s0 + $0x1b8] sm:$0xff]  ;;  %v181_v42 = vld [vmem:[%s8655_s0 + $0x1c0] sm:$0xff]  ;;  %v431_v45 = vpack.c.bf16 %v381_v39, %v380_v38 }
  0x51   :  { %5982 = vmatmul.mubr.msk.bf16.gmra.mrb[8].mxu1 %vm15_vm0, %v423_v52  ;;  %242 = vst.msk [vmem:[#allocation2 + $0x2b9] sm:$0xff] %vm15_vm0, %v177_v34  ;;  %243 = vst.msk [vmem:[#allocation2 + $0x2c1] sm:$0xff] %vm15_vm0, %v178_v35  ;;  %v182_v44 = vld [vmem:[%s8655_s0 + $0x1c8] sm:$0xff]  ;;  %v183_v46 = vld [vmem:[%s8655_s0 + $0x1d0] sm:$0xff] }
  0x52   :  { %5985 = vmatprep.mubr.msk.bf16.mxu1 %vm15_vm0, %v2442_v1  ;;  %6254 = vmatmul.mubr.msk.bf16.gmra.mrb[8].mxu0 %vm15_vm0, %v2442_v1  ;;  %244 = vst.msk [vmem:[#allocation2 + $0x2d1] sm:$0xff] %vm15_vm0, %v179_v40  ;;  %245 = vst.msk [vmem:[#allocation2 + $0x2d9] sm:$0xff] %vm15_vm0, %v180_v41  ;;  %v184_v47 = vld [vmem:[%s8655_s0 + $0x1d8] sm:$0xff]  ;;  %v185_v48 = vld [vmem:[%s8655_s0 + $0x1e0] sm:$0xff] }
  0x53   :  { %6257 = vmatprep.mubr.msk.bf16.mxu0 %vm15_vm0, %v425_v2  ;;  %246 = vst.msk [vmem:[#allocation2 + $0x2e9] sm:$0xff] %vm15_vm0, %v181_v42  ;;  %247 = vst.msk [vmem:[#allocation2 + $0x2f1] sm:$0xff] %vm15_vm0, %v182_v44  ;;  %v186_v49 = vld [vmem:[%s8655_s0 + $0x1e8] sm:$0xff]  ;;  %v2399_v50 = vld [vmem:[#allocation2 + $0x151] sm:$0xff] }
  0x54   :  { %248 = vst.msk [vmem:[#allocation2 + $0x301] sm:$0xff] %vm15_vm0, %v183_v46  ;;  %249 = vst.msk [vmem:[#allocation2 + $0x309] sm:$0xff] %vm15_vm0, %v184_v47  ;;  %v2400_v51 = vld [vmem:[#allocation2 + $0x159] sm:$0xff]  ;;  %v384_v52 = vld [vmem:[#allocation2 + $0x169] sm:$0xff] }
  0x55   :  { %250 = vst.msk [vmem:[#allocation2 + $0x319] sm:$0xff] %vm15_vm0, %v185_v48  ;;  %251 = vst.msk [vmem:[#allocation2 + $0x321] sm:$0xff] %vm15_vm0, %v186_v49  ;;  %v385_v53 = vld [vmem:[#allocation2 + $0x171] sm:$0xff]  ;;  %v2450_v54 = vpack.c.bf16 %v2400_v51, %v2399_v50  ;;  %v7667_v56 = vld [vmem:[%s8654_s1 + $0x20] sm:$0xff]  }
  0x56   :  { %v433_v55 = vpack.c.bf16 %v385_v53, %v384_v52  ;;  %v386_v57 = vld [vmem:[#allocation2 + $0x1b1] sm:$0xff]  ;;  %v387_v58 = vld [vmem:[#allocation2 + $0x1b9] sm:$0xff]  ;;  %6105 = vmatprep.subr.bf16.mxu1 %v7667_v56  ;;  %v2403_v59 = vld [vmem:[#allocation2 + $0x181] sm:$0xff] }
  0x57   :  { %v2404_v60 = vld [vmem:[#allocation2 + $0x189] sm:$0xff]  ;;  %v434_v61 = vpack.c.bf16 %v387_v58, %v386_v57  ;;  %v2935_v62 = vld [vmem:[#allocation2 + $0x1a] sm:$0xff]  ;;  %v389_v4 = vld [vmem:[#allocation2 + $0x1d1] sm:$0xff] }
  0x58   :  { %v2936_v63 = vld [vmem:[#allocation2 + $0x22] sm:$0xff]  ;;  %v2452_v0 = vpack.c.bf16 %v2404_v60, %v2403_v59  ;;  %v2937_v8 = vld [vmem:[#allocation2 + $0x32] sm:$0xff]  ;;  %v2938_v9 = vld [vmem:[#allocation2 + $0x3a] sm:$0xff] }
  0x59   :  { %5986 = vmatmul.mubr.msk.bf16.gmra.mrb[12].mxu1 %vm15_vm0, %v425_v2  ;;  %v7674_v1 = vpack.c.bf16 %v2936_v63, %v2935_v62  ;;  %v388_v2 = vld [vmem:[#allocation2 + $0x1c9] sm:$0xff]  ;;  %v390_v5 = vld [vmem:[#allocation2 + $0x1e1] sm:$0xff]  ;;  %v2940_v12 = vld [vmem:[#allocation2 + $0x52] sm:$0xff]  ;;  %v7680_v13 = vpack.c.bf16 %v2938_v9, %v2937_v8 }
  0x5a   :  { %5989 = vmatprep.mubr.msk.bf16.mxu1 %vm15_vm0, %v2444_v15  ;;  %6258 = vmatmul.mubr.msk.bf16.gmra.mrb[12].mxu0 %vm15_vm0, %v2444_v15  ;;  %v391_v6 = vld [vmem:[#allocation2 + $0x1e9] sm:$0xff]  ;;  %v435_v7 = vpack.c.bf16 %v389_v4, %v388_v2  ;;  %v392_v15 = vld [vmem:[#allocation2 + $0x1f9] sm:$0xff]  ;;  %v393_v16 = vld [vmem:[#allocation2 + $0x201] sm:$0xff] }
  0x5b   :  { %6261 = vmatprep.mubr.msk.bf16.mxu0 %vm15_vm0, %v427_v17  ;;  %v436_v10 = vpack.c.bf16 %v391_v6, %v390_v5  ;;  %v2939_v11 = vld [vmem:[#allocation2 + $0x4a] sm:$0xff]  ;;  %v395_v19 = vld [vmem:[#allocation2 + $0x219] sm:$0xff]  ;;  %v437_v20 = vpack.c.bf16 %v393_v16, %v392_v15  ;;  %v2941_v21 = vld [vmem:[#allocation2 + $0x62] sm:$0xff] }
  0x5c   :  { %v7683_v14 = vpack.c.bf16 %v2940_v12, %v2939_v11  ;;  %v394_v18 = vld [vmem:[#allocation2 + $0x211] sm:$0xff]  ;;  %v2943_v24 = vld [vmem:[#allocation2 + $0x7a] sm:$0xff]  ;;  %v2944_v25 = vld [vmem:[#allocation2 + $0x82] sm:$0xff] }
  0x5d   :  { %v2942_v22 = vld [vmem:[#allocation2 + $0x6a] sm:$0xff]  ;;  %v438_v23 = vpack.c.bf16 %v395_v19, %v394_v18  ;;  %v188_v27 = vld [vmem:[%s8655_s0 + $0x1f8] sm:$0xff]  ;;  %v398_v32 = vld [vmem:[#allocation2 + $0x241] sm:$0xff] }
  0x5e   :  { %v187_v26 = vld [vmem:[%s8655_s0 + $0x1f0] sm:$0xff]  ;;  %v7700_v28 = vpack.c.bf16 %v2942_v22, %v2941_v21  ;;  %253 = vst.msk [vmem:[#allocation2 + $0x339] sm:$0xff] %vm15_vm0, %v188_v27  ;;  %v2946_v35 = vld [vmem:[#allocation2 + $0x9a] sm:$0xff]  ;;  %v2949_v47 = vld [vmem:[#allocation2 + $0xc2] sm:$0xff] }
  0x5f   :  { %252 = vst.msk [vmem:[#allocation2 + $0x331] sm:$0xff] %vm15_vm0, %v187_v26  ;;  %v397_v29 = vld [vmem:[#allocation2 + $0x231] sm:$0xff]  ;;  %v399_v33 = vld [vmem:[#allocation2 + $0x249] sm:$0xff]  ;;  %v400_v42 = vld [vmem:[#allocation2 + $0x259] sm:$0xff] }
  0x60   :  { %v2945_v34 = vld [vmem:[#allocation2 + $0x92] sm:$0xff]  ;;  %v2947_v37 = vld [vmem:[#allocation2 + $0xaa] sm:$0xff]  ;;  %v440_v39 = vpack.c.bf16 %v399_v33, %v398_v32  ;;  %v2951_v50 = vld [vmem:[#allocation2 + $0xda] sm:$0xff] }
  0x61   :  { %5990 = vmatmul.mubr.msk.bf16.gmra.mrb[16].mxu1 %vm15_vm0, %v427_v17  ;;  %v7108_v17 = vld [vmem:[%s8654_s1 + $0x68] sm:$0xff]   ;;  %v2948_v38 = vld [vmem:[#allocation2 + $0xb2] sm:$0xff]  ;;  %v7718_v40 = vpack.c.bf16 %v2946_v35, %v2945_v34  ;;  %v2959_v15 = vld [vmem:[#allocation2 + $0x13a] sm:$0xff] }
  0x62   :  { %5993 = vmatprep.mubr.msk.bf16.mxu1 %vm15_vm0, %v2446_v30  ;;  %6262 = vmatmul.mubr.msk.bf16.gmra.mrb[16].mxu0 %vm15_vm0, %v2446_v30  ;;  %v7705_v30 = vpack.c.bf16 %v2944_v25, %v2943_v24  ;;  %v7721_v41 = vpack.c.bf16 %v2948_v38, %v2947_v37  ;;  %v402_v44 = vld [vmem:[#allocation2 + $0x271] sm:$0xff]  ;;  %v2952_v51 = vld [vmem:[#allocation2 + $0xe2] sm:$0xff]  ;;  %v408_v5 = vld [vmem:[#allocation2 + $0x2b9] sm:$0xff] }
  0x63   :  { %6265 = vmatprep.mubr.msk.bf16.mxu0 %vm15_vm0, %v429_v31  ;;  %v2950_v48 = vld [vmem:[#allocation2 + $0xca] sm:$0xff]  ;;  %v7731_v53 = vpack.c.bf16 %v2952_v51, %v2951_v50  ;;  %v406_v57 = vld [vmem:[#allocation2 + $0x2a1] sm:$0xff]  ;;  %v2953_v60 = vld [vmem:[#allocation2 + $0xf2] sm:$0xff] }
  0x64   :  { %v7728_v52 = vpack.c.bf16 %v2950_v48, %v2949_v47  ;;  %v407_v58 = vld [vmem:[#allocation2 + $0x2a9] sm:$0xff]  ;;  %v409_v6 = vld [vmem:[#allocation2 + $0x2c1] sm:$0xff]  ;;  %v411_v8 = vld [vmem:[#allocation2 + $0x2d9] sm:$0xff] }
  0x65   :  { %v444_v62 = vpack.c.bf16 %v407_v58, %v406_v57  ;;  %v2955_v63 = vld [vmem:[#allocation2 + $0x10a] sm:$0xff]  ;;  %v445_v9 = vpack.c.bf16 %v409_v6, %v408_v5  ;;  %v2960_v16 = vld [vmem:[#allocation2 + $0x142] sm:$0xff]  ;;  %v2961_v24 = vld [vmem:[#allocation2 + $0x152] sm:$0xff] }
  0x66   :  { %v2958_v11 = vld [vmem:[#allocation2 + $0x12a] sm:$0xff]  ;;  %v7751_v18 = vpack.c.bf16 %v2960_v16, %v2959_v15  ;;  %v414_v21 = vld [vmem:[#allocation2 + $0x301] sm:$0xff]  ;;  %v416_v33 = vld [vmem:[#allocation2 + $0x319] sm:$0xff] }
  0x67   :  { %v412_v19 = vld [vmem:[#allocation2 + $0x2e9] sm:$0xff]  ;;  %v2962_v25 = vld [vmem:[#allocation2 + $0x15a] sm:$0xff] }
  0x68   :  { %v415_v22 = vld [vmem:[#allocation2 + $0x309] sm:$0xff]  ;;  %v417_v34 = vld [vmem:[#allocation2 + $0x321] sm:$0xff]  ;;  %v256_v47 = vld [vmem:[#allocation2 + $0x18] sm:$0xff] }
  0x69   :  { %5994 = vmatmul.mubr.msk.bf16.gmra.mrb[20].mxu1 %vm15_vm0, %v429_v31  ;;  %v7711_v31 = vld [vmem:[%s8654_s1 + $0x70] sm:$0xff]   ;;  %v448_v26 = vpack.c.bf16 %v415_v22, %v414_v21  ;;  %v254_v35 = vld [vmem:[#allocation2] sm:$0xff]  ;;  %v449_v37 = vpack.c.bf16 %v417_v34, %v416_v33  ;;  %v259_v50 = vld [vmem:[#allocation2 + $0x38] sm:$0xff] }
  0x6a   :  { %5997 = vmatprep.mubr.msk.bf16.mxu1 %vm15_vm0, %v2448_v43  ;;  %6266 = vmatmul.mubr.msk.bf16.gmra.mrb[20].mxu0 %vm15_vm0, %v2448_v43  ;;  %v401_v43 = vld [vmem:[#allocation2 + $0x261] sm:$0xff]  ;;  %v2963_v27 = vld [vmem:[#allocation2 + $0x16a] sm:$0xff]  ;;  %v267_v22 = vld [vmem:[#allocation2 + $0x98] sm:$0xff] }
  0x6b   :  { %6269 = vmatprep.mubr.msk.bf16.mxu0 %vm15_vm0, %v431_v45  ;;  %v441_v46 = vpack.c.bf16 %v401_v43, %v400_v42  ;;  %v2965_v38 = vld [vmem:[#allocation2 + $0x182] sm:$0xff]  ;;  %v2967_v43 = vld [vmem:[#allocation2 + $0x1ca] sm:$0xff]  ;;  %v2971_v58 = vld [vmem:[#allocation2 + $0x1fa] sm:$0xff] }
  0x6c   :  { %v257_v48 = vld [vmem:[#allocation2 + $0x20] sm:$0xff]  ;;  %v263_v6 = vld [vmem:[#allocation2 + $0x68] sm:$0xff]  ;;  %v266_v21 = vld [vmem:[#allocation2 + $0x90] sm:$0xff] }
  0x6d   :  { %v319_v51 = vpack.c.bf16 %v257_v48, %v256_v47  ;;  %v262_v5 = vld [vmem:[#allocation2 + $0x60] sm:$0xff]  ;;  %v2984_v47 = vld [vmem:[#allocation2 + $0x292] sm:$0xff] }
  0x71   :  { %5998 = vmatmul.mubr.msk.bf16.gmra.mrb[24].mxu1 %vm15_vm0, %v431_v45  ;;  %v403_v45 = vld [vmem:[#allocation2 + $0x279] sm:$0xff] }
  0x72   :  { %6001 = vmatprep.mubr.msk.bf16.mxu1 %vm15_vm0, %v2450_v54  ;;  %6270 = vmatmul.mubr.msk.bf16.gmra.mrb[24].mxu0 %vm15_vm0, %v2450_v54  ;;  %v442_v49 = vpack.c.bf16 %v403_v45, %v402_v44  ;;  %v404_v54 = vld [vmem:[#allocation2 + $0x289] sm:$0xff]  ;;  %v2968_v44 = vld [vmem:[#allocation2 + $0x1d2] sm:$0xff] }
  0x73   :  { %6273 = vmatprep.mubr.msk.bf16.mxu0 %vm15_vm0, %v433_v55 }
  0x79   :  { %6002 = vmatmul.mubr.msk.bf16.gmra.mrb[28].mxu1 %vm15_vm0, %v433_v55  ;;  %v405_v55 = vld [vmem:[#allocation2 + $0x291] sm:$0xff] }
  0x7a   :  { %6005 = vmatprep.mubr.msk.bf16.mxu1 %vm15_vm0, %v434_v61  ;;  %6274 = vmatmul.mubr.msk.bf16.gmra.mrb[28].mxu0 %vm15_vm0, %v2452_v0  ;;  %v443_v59 = vpack.c.bf16 %v405_v55, %v404_v54  ;;  %v2954_v61 = vld [vmem:[#allocation2 + $0xfa] sm:$0xff]  ;;  %v2956_v0 = vld [vmem:[#allocation2 + $0x112] sm:$0xff]  ;;  %v2969_v54 = vld [vmem:[#allocation2 + $0x1e2] sm:$0xff] }
  0x7b   :  { %6313 = vmatprep.mubr.msk.bf16.mxu0 %vm15_vm0, %v7674_v1  ;;  %v7738_v2 = vpack.c.bf16 %v2954_v61, %v2953_v60  ;;  %v7741_v4 = vpack.c.bf16 %v2956_v0, %v2955_v63  ;;  %v2970_v55 = vld [vmem:[#allocation2 + $0x1ea] sm:$0xff] }
  0x7c   :  { %v7109_v60 = vld [vmem:[%s8654_s1 + $0x28] sm:$0xff]   ;;  %v7780_v61 = vpack.c.bf16 %v2970_v55, %v2969_v54  ;;  %v261_v0 = vld [vmem:[#allocation2 + $0x50] sm:$0xff]  ;;  %v275_v55 = vld [vmem:[#allocation2 + $0xf8] sm:$0xff] }
  0x7d   :  { %v260_v63 = vld [vmem:[#allocation2 + $0x48] sm:$0xff]  ;;  %v274_v54 = vld [vmem:[#allocation2 + $0xf0] sm:$0xff] }
  0x81   :  { %6006 = vmatmul.mubr.msk.bf16.gmra.mrb[32].mxu1 %vm15_vm0, %v435_v7  ;;  %v410_v7 = vld [vmem:[#allocation2 + $0x2d1] sm:$0xff] }
  0x82   :  { %6009 = vmatprep.mubr.msk.bf16.mxu1 %vm15_vm0, %v436_v10  ;;  %6314 = vmatmul.mubr.msk.bf16.vlgmr.msra.gmra.mrb[0].mxu0 %vm15_vm0, %v7680_v13  ;;  %v2957_v10 = vld [vmem:[#allocation2 + $0x122] sm:$0xff]  ;;  %v446_v12 = vpack.c.bf16 %v411_v8, %v410_v7  ;;  %v7791_v7 = vld [vmem:[%s8654_s1 + $0x30] sm:$0xff]   ;;  %v7795_v8 = vpack.c.bf16 %v261_v0, %v260_v63  ;;  %v7848_v63 = vpack.c.bf16 %v275_v55, %v274_v54  ;;  %v2987_v0 = vld [vmem:[#allocation2 + $0x2ba] sm:$0xff] }
  0x83   :  { %6378 = vmatpush3.bf16.msra.mxu0 %v7533_v3  ;;  %6317 = vmatprep.mubr.msk.bf16.mxu0 %vm15_vm0, %v7683_v14  ;;  %v396_v3 = vld [vmem:[#allocation2 + $0x229] sm:$0xff] }
  0x84   :  { %6379 = vmatprep.subr.bf16.mxu0 %v7108_v17  ;;  %v439_v36 = vpack.c.bf16 %v397_v29, %v396_v3  ;;  %v2964_v3 = vld [vmem:[#allocation2 + $0x172] sm:$0xff]  ;;  %v7758_v29 = vpack.c.bf16 %v2962_v25, %v2961_v24  ;;  %v2977_v24 = vld [vmem:[#allocation2 + $0x242] sm:$0xff]  ;;  %v2978_v25 = vld [vmem:[#allocation2 + $0x24a] sm:$0xff] }
  0x85   :  { %v7761_v32 = vpack.c.bf16 %v2964_v3, %v2963_v27  ;;  %v2979_v27 = vld [vmem:[#allocation2 + $0x25a] sm:$0xff]  ;;  %v2980_v3 = vld [vmem:[#allocation2 + $0x262] sm:$0xff]  ;;  %v7818_v33 = vpack.c.bf16 %v2978_v25, %v2977_v24  ;;  %v2991_v25 = vld [vmem:[#allocation2 + $0x2ea] sm:$0xff] }
  0x86   :  { %v7822_v34 = vpack.c.bf16 %v2980_v3, %v2979_v27  ;;  %v2992_v27 = vld [vmem:[#allocation2 + $0x2f2] sm:$0xff]  ;;  %v2996_v54 = vld [vmem:[#allocation2 + $0x322] sm:$0xff] }
  0x87   :  { %6380 = vmatpush3.bf16.msra.mxu0 %v7108_v17  ;;  %v7748_v17 = vpack.c.bf16 %v2958_v11, %v2957_v10  ;;  %v7799_v10 = vpack.c.bf16 %v263_v6, %v262_v5  ;;  %v2975_v11 = vld [vmem:[#allocation2 + $0x22a] sm:$0xff]  ;;  %v2988_v5 = vld [vmem:[#allocation2 + $0x2c2] sm:$0xff] }
  0x88   :  { %6445 = vmatprep.subr.bf16.mxu0 %v7711_v31 }
  0x89   :  { %6010 = vmatmul.mubr.msk.bf16.gmra.mrb[36].mxu1 %vm15_vm0, %v437_v20  ;;  %v413_v20 = vld [vmem:[#allocation2 + $0x2f1] sm:$0xff] }
  0x8a   :  { %6013 = vmatprep.mubr.msk.bf16.mxu1 %vm15_vm0, %v438_v23  ;;  %6318 = vmatmul.mubr.msk.bf16.gmra.mrb[4].mxu0 %vm15_vm0, %v7700_v28  ;;  %v447_v23 = vpack.c.bf16 %v413_v20, %v412_v19  ;;  %v264_v19 = vld [vmem:[#allocation2 + $0x78] sm:$0xff]  ;;  %v265_v20 = vld [vmem:[#allocation2 + $0x80] sm:$0xff] }
  0x8b   :  { %6321 = vmatprep.mubr.msk.bf16.mxu0 %vm15_vm0, %v7705_v30 }
  0x91   :  { %6014 = vmatmul.mubr.msk.bf16.gmra.mrb[40].mxu1 %vm15_vm0, %v439_v36  ;;  %v255_v36 = vld [vmem:[#allocation2 + $0x8] sm:$0xff] }
  0x92   :  { %6017 = vmatprep.mubr.msk.bf16.mxu1 %vm15_vm0, %v440_v39  ;;  %6322 = vmatmul.mubr.msk.bf16.gmra.mrb[8].mxu0 %vm15_vm0, %v7718_v40  ;;  %v2966_v39 = vld [vmem:[#allocation2 + $0x18a] sm:$0xff]  ;;  %v318_v42 = vpack.c.bf16 %v255_v36, %v254_v35 }
  0x93   :  { %6325 = vmatprep.mubr.msk.bf16.mxu0 %vm15_vm0, %v7721_v41  ;;  %v3014_v45 = vpack.c.bf16 %v2966_v39, %v2965_v38  ;;  %v268_v35 = vld [vmem:[#allocation2 + $0xa8] sm:$0xff]  ;;  %v269_v36 = vld [vmem:[#allocation2 + $0xb0] sm:$0xff] }
  0x94   :  { %v271_v38 = vld [vmem:[#allocation2 + $0xc8] sm:$0xff]  ;;  %v7828_v39 = vpack.c.bf16 %v269_v36, %v268_v35  ;;  %v7870_v35 = vpack.c.bf16 %v2992_v27, %v2991_v25  ;;  %v280_v36 = vld [vmem:[#allocation2 + $0x138] sm:$0xff]  ;;  %v289_v27 = vld [vmem:[#allocation2 + $0x1d0] sm:$0xff] }
  0x95   :  { %v288_v25 = vld [vmem:[#allocation2 + $0x1c8] sm:$0xff] }
  0x99   :  { %6018 = vmatmul.mubr.msk.bf16.gmra.mrb[44].mxu1 %vm15_vm0, %v441_v46  ;;  %v7769_v46 = vpack.c.bf16 %v2968_v44, %v2967_v43  ;;  %v2982_v43 = vld [vmem:[#allocation2 + $0x27a] sm:$0xff] }
  0x9a   :  { %6021 = vmatprep.mubr.msk.bf16.mxu1 %vm15_vm0, %v442_v49  ;;  %6326 = vmatmul.mubr.msk.bf16.gmra.mrb[12].mxu0 %vm15_vm0, %v7728_v52  ;;  %v258_v49 = vld [vmem:[#allocation2 + $0x30] sm:$0xff] }
  0x9b   :  { %6329 = vmatprep.mubr.msk.bf16.mxu0 %vm15_vm0, %v7731_v53  ;;  %v7775_v57 = vpack.c.bf16 %v259_v50, %v258_v49  ;;  %v272_v50 = vld [vmem:[#allocation2 + $0xd8] sm:$0xff] }
  0xa1   :  { %6022 = vmatmul.mubr.msk.bf16.gmra.mrb[48].mxu1 %vm15_vm0, %v443_v59  ;;  %v2972_v59 = vld [vmem:[#allocation2 + $0x202] sm:$0xff] }
  0xa2   :  { %6025 = vmatprep.mubr.msk.bf16.mxu1 %vm15_vm0, %v444_v62  ;;  %6330 = vmatmul.mubr.msk.bf16.gmra.mrb[16].mxu0 %vm15_vm0, %v7738_v2  ;;  %v7783_v62 = vpack.c.bf16 %v2972_v59, %v2971_v58  ;;  %v2985_v59 = vld [vmem:[#allocation2 + $0x2a2] sm:$0xff] }
  0xa3   :  { %6333 = vmatprep.mubr.msk.bf16.mxu0 %vm15_vm0, %v7741_v4 }
  0xa9   :  { %6026 = vmatmul.mubr.msk.bf16.gmra.mrb[52].mxu1 %vm15_vm0, %v445_v9  ;;  %v2974_v9 = vld [vmem:[#allocation2 + $0x21a] sm:$0xff] }
  0xaa   :  { %6029 = vmatprep.mubr.msk.bf16.mxu1 %vm15_vm0, %v446_v12  ;;  %6334 = vmatmul.mubr.msk.bf16.gmra.mrb[20].mxu0 %vm15_vm0, %v7748_v17  ;;  %v2976_v12 = vld [vmem:[#allocation2 + $0x232] sm:$0xff] }
  0xab   :  { %6337 = vmatprep.mubr.msk.bf16.mxu0 %vm15_vm0, %v7751_v18  ;;  %v7806_v16 = vpack.c.bf16 %v2976_v12, %v2975_v11  ;;  %v277_v11 = vld [vmem:[#allocation2 + $0x110] sm:$0xff]  ;;  %v278_v12 = vld [vmem:[#allocation2 + $0x120] sm:$0xff] }
  0xb1   :  { %6030 = vmatmul.mubr.msk.bf16.gmra.mrb[56].mxu1 %vm15_vm0, %v447_v23  ;;  %v7812_v23 = vpack.c.bf16 %v265_v20, %v264_v19  ;;  %v279_v19 = vld [vmem:[#allocation2 + $0x128] sm:$0xff] }
  0xb2   :  { %6033 = vmatprep.mubr.msk.bf16.mxu1 %vm15_vm0, %v448_v26  ;;  %6338 = vmatmul.mubr.msk.bf16.gmra.mrb[24].mxu0 %vm15_vm0, %v7758_v29  ;;  %v7816_v26 = vpack.c.bf16 %v267_v22, %v266_v21  ;;  %v2989_v21 = vld [vmem:[#allocation2 + $0x2d2] sm:$0xff]  ;;  %v2990_v22 = vld [vmem:[#allocation2 + $0x2da] sm:$0xff]  ;;  %v7864_v24 = vpack.c.bf16 %v279_v19, %v278_v12 }
  0xb3   :  { %6341 = vmatprep.mubr.msk.bf16.mxu0 %vm15_vm0, %v7761_v32  ;;  %v7866_v3 = vpack.c.bf16 %v2990_v22, %v2989_v21  ;;  %v2997_v12 = vld [vmem:[#allocation2 + $0x332] sm:$0xff]  ;;  %v2998_v19 = vld [vmem:[#allocation2 + $0x33a] sm:$0xff] }
  0xb4   :  { %v3030_v22 = vpack.c.bf16 %v2998_v19, %v2997_v12 }
  0xb9   :  { %6034 = vmatmul.mubr.msk.bf16.gmra.mrb[60].mxu1 %vm15_vm0, %v449_v37  ;;  %v270_v37 = vld [vmem:[#allocation2 + $0xc0] sm:$0xff] }
  0xba   :  { %6041 = vmatprep.mubr.msk.bf16.mxu1 %vm15_vm0, %v318_v42  ;;  %6342 = vmatmul.mubr.msk.bf16.gmra.mrb[28].mxu0 %vm15_vm0, %v3014_v45  ;;  %v2981_v42 = vld [vmem:[#allocation2 + $0x272] sm:$0xff]  ;;  %v7832_v44 = vpack.c.bf16 %v271_v38, %v270_v37  ;;  %v2983_v45 = vld [vmem:[#allocation2 + $0x28a] sm:$0xff]  ;;  %v281_v37 = vld [vmem:[#allocation2 + $0x140] sm:$0xff] }
  0xbb   :  { %6345 = vmatprep.mubr.msk.bf16.mxu0 %vm15_vm0, %v7769_v46  ;;  %v7834_v48 = vpack.c.bf16 %v2982_v43, %v2981_v42  ;;  %v7838_v49 = vpack.c.bf16 %v2984_v47, %v2983_v45  ;;  %v282_v38 = vld [vmem:[#allocation2 + $0x150] sm:$0xff]  ;;  %v283_v42 = vld [vmem:[#allocation2 + $0x158] sm:$0xff]  ;;  %v7876_v43 = vpack.c.bf16 %v281_v37, %v280_v36  ;;  %v2993_v45 = vld [vmem:[#allocation2 + $0x302] sm:$0xff] }
  0xbc   :  { %v2994_v47 = vld [vmem:[#allocation2 + $0x30a] sm:$0xff]  ;;  %v290_v36 = vld [vmem:[#allocation2 + $0x1e0] sm:$0xff] }
  0xbd   :  { %v7882_v55 = vpack.c.bf16 %v2994_v47, %v2993_v45  ;;  %v291_v37 = vld [vmem:[#allocation2 + $0x1e8] sm:$0xff]  ;;  %v292_v45 = vld [vmem:[#allocation2 + $0x1f8] sm:$0xff]  ;;  %v293_v47 = vld [vmem:[#allocation2 + $0x200] sm:$0xff] }
  0xc1   :  { %6042 = vmatmul.mubr.msk.bf16.vlgmr.msra.gmra.mrb[0].mxu1 %vm15_vm0, %v319_v51  ;;  %v273_v51 = vld [vmem:[#allocation2 + $0xe0] sm:$0xff] }
  0xc2   :  { %6106 = vmatpush3.bf16.msra.mxu1 %v7667_v56  ;;  %6045 = vmatprep.mubr.msk.bf16.mxu1 %vm15_vm0, %v7775_v57  ;;  %v2973_v56 = vld [vmem:[#allocation2 + $0x212] sm:$0xff]  ;;  %v7844_v58 = vpack.c.bf16 %v273_v51, %v272_v50  ;;  %v7880_v50 = vpack.c.bf16 %v283_v42, %v282_v38  ;;  %v2995_v51 = vld [vmem:[#allocation2 + $0x31a] sm:$0xff]  ;;  %v335_v38 = vpack.c.bf16 %v289_v27, %v288_v25 }
  0xc3   :  { %6107 = vmatprep.subr.bf16.mxu1 %v7109_v60  ;;  %6346 = vmatmul.mubr.msk.bf16.gmra.mrb[32].mxu0 %vm15_vm0, %v7780_v61  ;;  %v7802_v15 = vpack.c.bf16 %v2974_v9, %v2973_v56  ;;  %v7854_v56 = vpack.c.bf16 %v2988_v5, %v2987_v0  ;;  %v276_v9 = vld [vmem:[#allocation2 + $0x108] sm:$0xff]  ;;  %v285_v0 = vld [vmem:[#allocation2 + $0x170] sm:$0xff]  ;;  %v7902_v42 = vpack.c.bf16 %v291_v37, %v290_v36  ;;  %v303_v27 = vld [vmem:[#allocation2 + $0x278] sm:$0xff] }
  0xc4   :  { %6349 = vmatprep.mubr.msk.bf16.mxu0 %vm15_vm0, %v7783_v62  ;;  %v7860_v20 = vpack.c.bf16 %v277_v11, %v276_v9  ;;  %v286_v5 = vld [vmem:[#allocation2 + $0x1b0] sm:$0xff]  ;;  %v287_v9 = vld [vmem:[#allocation2 + $0x1b8] sm:$0xff]  ;;  %v304_v36 = vld [vmem:[#allocation2 + $0x288] sm:$0xff] }
  0xc5   :  { %v334_v21 = vpack.c.bf16 %v287_v9, %v286_v5  ;;  %v7922_v5 = vld [vmem:[%s8654_s1 + $0x80] sm:$0xff]   ;;  %v299_v9 = vld [vmem:[#allocation2 + $0x248] sm:$0xff]  ;;  %v302_v25 = vld [vmem:[#allocation2 + $0x270] sm:$0xff] }
  0xc6   :  { %6108 = vmatpush3.bf16.msra.mxu1 %v7109_v60  ;;  %v2986_v60 = vld [vmem:[#allocation2 + $0x2aa] sm:$0xff] }
  0xc7   :  { %6173 = vmatprep.subr.bf16.mxu1 %v7791_v7  ;;  %v7850_v6 = vpack.c.bf16 %v2986_v60, %v2985_v59  ;;  %v7886_v59 = vpack.c.bf16 %v2996_v54, %v2995_v51  ;;  %v284_v60 = vld [vmem:[#allocation2 + $0x168] sm:$0xff]  ;;  %v7112_v51 = vld [vmem:[%s8654_s1 + $0x78] sm:$0xff]   ;;  %v294_v54 = vld [vmem:[#allocation2 + $0x210] sm:$0xff] }
  0xc8   :  { %v7892_v11 = vpack.c.bf16 %v285_v0, %v284_v60  ;;  %v295_v60 = vld [vmem:[#allocation2 + $0x218] sm:$0xff]  ;;  %v305_v37 = vld [vmem:[#allocation2 + $0x290] sm:$0xff] }
  0xc9   :  { %6046 = vmatmul.mubr.msk.bf16.gmra.mrb[4].mxu1 %vm15_vm0, %v7795_v8  ;;  %v7917_v0 = vpack.c.bf16 %v295_v60, %v294_v54  ;;  %v310_v54 = vld [vmem:[#allocation2 + $0x2d0] sm:$0xff]  ;;  %v311_v60 = vld [vmem:[#allocation2 + $0x2d8] sm:$0xff] }
  0xca   :  { %6049 = vmatprep.mubr.msk.bf16.mxu1 %vm15_vm0, %v7799_v10 }
  0xcb   :  { %6350 = vmatmul.mubr.msk.bf16.gmra.mrb[36].mxu0 %vm15_vm0, %v7802_v15 }
  0xcc   :  { %6353 = vmatprep.mubr.msk.bf16.mxu0 %vm15_vm0, %v7806_v16 }
  0xd1   :  { %6050 = vmatmul.mubr.msk.bf16.gmra.mrb[8].mxu1 %vm15_vm0, %v7812_v23 }
  0xd2   :  { %6053 = vmatprep.mubr.msk.bf16.mxu1 %vm15_vm0, %v7816_v26 }
  0xd3   :  { %6354 = vmatmul.mubr.msk.bf16.gmra.mrb[40].mxu0 %vm15_vm0, %v7818_v33 }
  0xd4   :  { %6357 = vmatprep.mubr.msk.bf16.mxu0 %vm15_vm0, %v7822_v34 }
  0xd9   :  { %6054 = vmatmul.mubr.msk.bf16.gmra.mrb[12].mxu1 %vm15_vm0, %v7828_v39 }
  0xda   :  { %6057 = vmatprep.mubr.msk.bf16.mxu1 %vm15_vm0, %v7832_v44 }
  0xdb   :  { %6358 = vmatmul.mubr.msk.bf16.gmra.mrb[44].mxu0 %vm15_vm0, %v7834_v48 }
  0xdc   :  { %6361 = vmatprep.mubr.msk.bf16.mxu0 %vm15_vm0, %v7838_v49 }
  0xe1   :  { %6058 = vmatmul.mubr.msk.bf16.gmra.mrb[16].mxu1 %vm15_vm0, %v7844_v58 }
  0xe2   :  { %6061 = vmatprep.mubr.msk.bf16.mxu1 %vm15_vm0, %v7848_v63 }
  0xe3   :  { %6362 = vmatmul.mubr.msk.bf16.gmra.mrb[48].mxu0 %vm15_vm0, %v7850_v6 }
  0xe4   :  { %6365 = vmatprep.mubr.msk.bf16.mxu0 %vm15_vm0, %v7854_v56 }
  0xe9   :  { %6062 = vmatmul.mubr.msk.bf16.gmra.mrb[20].mxu1 %vm15_vm0, %v7860_v20 }
  0xea   :  { %6065 = vmatprep.mubr.msk.bf16.mxu1 %vm15_vm0, %v7864_v24 }
  0xeb   :  { %6366 = vmatmul.mubr.msk.bf16.gmra.mrb[52].mxu0 %vm15_vm0, %v7866_v3 }
  0xec   :  { %6369 = vmatprep.mubr.msk.bf16.mxu0 %vm15_vm0, %v7870_v35 }
  0xf1   :  { %6066 = vmatmul.mubr.msk.bf16.gmra.mrb[24].mxu1 %vm15_vm0, %v7876_v43 }
  0xf2   :  { %6069 = vmatprep.mubr.msk.bf16.mxu1 %vm15_vm0, %v7880_v50 }
  0xf3   :  { %6370 = vmatmul.mubr.msk.bf16.gmra.mrb[56].mxu0 %vm15_vm0, %v7882_v55 }
  0xf4   :  { %6373 = vmatprep.mubr.msk.bf16.mxu0 %vm15_vm0, %v7886_v59 }
  0xf9   :  { %6070 = vmatmul.mubr.msk.bf16.gmra.mrb[28].mxu1 %vm15_vm0, %v7892_v11 }
  0xfa   :  { %6073 = vmatprep.mubr.msk.bf16.mxu1 %vm15_vm0, %v334_v21  ;;  %v300_v21 = vld [vmem:[#allocation2 + $0x258] sm:$0xff] }
  0xfb   :  { %6374 = vmatmul.mubr.msk.bf16.gmra.mrb[60].mxu0 %vm15_vm0, %v3030_v22  ;;  %v301_v22 = vld [vmem:[#allocation2 + $0x260] sm:$0xff] }
  0xfc   :  { %6381 = vmatprep.mubr.msk.bf16.mxu0 %vm15_vm0, %v7775_v57  ;;  %v7913_v57 = vpack.c.bf16 %v293_v47, %v292_v45  ;;  %v307_v45 = vld [vmem:[#allocation2 + $0x2a8] sm:$0xff]  ;;  %v308_v47 = vld [vmem:[#allocation2 + $0x2b8] sm:$0xff] }
 0x101   :  { %6074 = vmatmul.mubr.msk.bf16.gmra.mrb[32].mxu1 %vm15_vm0, %v335_v38  ;;  %v306_v38 = vld [vmem:[#allocation2 + $0x2a0] sm:$0xff] }
 0x102   :  { %6077 = vmatprep.mubr.msk.bf16.mxu1 %vm15_vm0, %v7902_v42 }
 0x103   :  { %6382 = vmatmul.mubr.msk.bf16.vlgmr.msra.gmra.mrb[0].mxu0 %vm15_vm0, %v7795_v8  ;;  %v297_v8 = vld [vmem:[#allocation2 + $0x230] sm:$0xff] }
 0x104   :  { %6446 = vmatpush3.bf16.msra.mxu0 %v7711_v31  ;;  %6385 = vmatprep.mubr.msk.bf16.mxu0 %vm15_vm0, %v7799_v10  ;;  %v296_v31 = vld [vmem:[#allocation2 + $0x228] sm:$0xff]  ;;  %v298_v10 = vld [vmem:[#allocation2 + $0x240] sm:$0xff] }
 0x105   :  { %6447 = vmatprep.subr.bf16.mxu0 %v7112_v51  ;;  %v7931_v12 = vpack.c.bf16 %v297_v8, %v296_v31  ;;  %v7935_v19 = vpack.c.bf16 %v299_v9, %v298_v10  ;;  %v313_v8 = vld [vmem:[#allocation2 + $0x2f0] sm:$0xff]  ;;  %v314_v10 = vld [vmem:[#allocation2 + $0x300] sm:$0xff]  ;;  %v315_v9 = vld [vmem:[#allocation2 + $0x308] sm:$0xff] }
 0x108   :  { %6448 = vmatpush3.bf16.msra.mxu0 %v7112_v51  ;;  %v309_v51 = vld [vmem:[#allocation2 + $0x2c0] sm:$0xff] }
 0x109   :  { %6078 = vmatmul.mubr.msk.bf16.gmra.mrb[36].mxu1 %vm15_vm0, %v7913_v57  ;;  %6513 = vmatprep.subr.bf16.mxu0 %v7922_v5  ;;  %v345_v31 = vpack.c.bf16 %v309_v51, %v308_v47 }
 0x10a   :  { %6081 = vmatprep.mubr.msk.bf16.mxu1 %vm15_vm0, %v7917_v0 }
 0x10b   :  { %6386 = vmatmul.mubr.msk.bf16.gmra.mrb[4].mxu0 %vm15_vm0, %v7812_v23  ;;  %v7943_v23 = vpack.c.bf16 %v301_v22, %v300_v21  ;;  %v3526_v22 = vld [vmem:[#allocation2 + $0x180] sm:$0xff] }
 0x10c   :  { %6389 = vmatprep.mubr.msk.bf16.mxu0 %vm15_vm0, %v7816_v26  ;;  %v7947_v26 = vpack.c.bf16 %v303_v27, %v302_v25  ;;  %v3527_v25 = vld [vmem:[#allocation2 + $0x188] sm:$0xff]  ;;  %v316_v27 = vld [vmem:[#allocation2 + $0x318] sm:$0xff] }
 0x111   :  { %6082 = vmatmul.mubr.msk.bf16.gmra.mrb[40].mxu1 %vm15_vm0, %v7931_v12 }
 0x112   :  { %6085 = vmatprep.mubr.msk.bf16.mxu1 %vm15_vm0, %v7935_v19 }
 0x113   :  { %6390 = vmatmul.mubr.msk.bf16.gmra.mrb[8].mxu0 %vm15_vm0, %v7828_v39  ;;  %v7955_v39 = vpack.c.bf16 %v305_v37, %v304_v36  ;;  %v317_v36 = vld [vmem:[#allocation2 + $0x320] sm:$0xff] }
 0x114   :  { %6393 = vmatprep.mubr.msk.bf16.mxu0 %vm15_vm0, %v7832_v44  ;;  %v344_v44 = vpack.c.bf16 %v307_v45, %v306_v38  ;;  %v1249_v37 = vld [vmem:[#allocation2 + $0x2] sm:$0xff]  ;;  %v1250_v38 = vld [vmem:[#allocation2 + $0xa] sm:$0xff] }
 0x115   :  { %v3529_v45 = vld [vmem:[#allocation2 + $0x1a0] sm:$0xff]  ;;  %v1313_v47 = vpack.c.bf16 %v1250_v38, %v1249_v37 }
 0x119   :  { %6086 = vmatmul.mubr.msk.bf16.gmra.mrb[44].mxu1 %vm15_vm0, %v7943_v23 }
 0x11a   :  { %6089 = vmatprep.mubr.msk.bf16.mxu1 %vm15_vm0, %v7947_v26 }
 0x11b   :  { %6394 = vmatmul.mubr.msk.bf16.gmra.mrb[12].mxu0 %vm15_vm0, %v7844_v58  ;;  %v346_v58 = vpack.c.bf16 %v311_v60, %v310_v54  ;;  %v4072_v54 = vld [vmem:[#allocation2 + $0xc1] sm:$0xff]  ;;  %v4073_v60 = vld [vmem:[#allocation2 + $0xc9] sm:$0xff] }
 0x11c   :  { %6397 = vmatprep.mubr.msk.bf16.mxu0 %vm15_vm0, %v7848_v63  ;;  %v312_v63 = vld [vmem:[#allocation2 + $0x2e8] sm:$0xff] }
 0x11d   :  { %v347_v21 = vpack.c.bf16 %v313_v8, %v312_v63  ;;  %v4076_v63 = vld [vmem:[#allocation2 + $0xf1] sm:$0xff]  ;;  %v4077_v8 = vld [vmem:[#allocation2 + $0xf9] sm:$0xff] }
 0x121   :  { %6090 = vmatmul.mubr.msk.bf16.gmra.mrb[48].mxu1 %vm15_vm0, %v7955_v39 }
 0x122   :  { %6093 = vmatprep.mubr.msk.bf16.mxu1 %vm15_vm0, %v344_v44 }
 0x123   :  { %6398 = vmatmul.mubr.msk.bf16.gmra.mrb[16].mxu0 %vm15_vm0, %v7860_v20  ;;  %v348_v20 = vpack.c.bf16 %v315_v9, %v314_v10  ;;  %v4132_v9 = vpack.c.bf16 %v4077_v8, %v4076_v63  ;;  %v4103_v63 = vld [vmem:[#allocation2 + $0x261] sm:$0xff] }
 0x124   :  { %6401 = vmatprep.mubr.msk.bf16.mxu0 %vm15_vm0, %v7864_v24  ;;  %v7973_v24 = vpack.c.bf16 %v3527_v25, %v3526_v22 }
 0x129   :  { %6094 = vmatmul.mubr.msk.bf16.gmra.mrb[52].mxu1 %vm15_vm0, %v345_v31 }
 0x12a   :  { %6097 = vmatprep.mubr.msk.bf16.mxu1 %vm15_vm0, %v346_v58 }
 0x12b   :  { %6402 = vmatmul.mubr.msk.bf16.gmra.mrb[20].mxu0 %vm15_vm0, %v7876_v43  ;;  %v349_v43 = vpack.c.bf16 %v317_v36, %v316_v27  ;;  %v4084_v27 = vld [vmem:[#allocation2 + $0x151] sm:$0xff]  ;;  %v4085_v36 = vld [vmem:[#allocation2 + $0x159] sm:$0xff] }
 0x12c   :  { %6405 = vmatprep.mubr.msk.bf16.mxu0 %vm15_vm0, %v7880_v50  ;;  %v3528_v50 = vld [vmem:[#allocation2 + $0x198] sm:$0xff]  ;;  %v4136_v38 = vpack.c.bf16 %v4085_v36, %v4084_v27 }
 0x12d   :  { %v3577_v51 = vpack.c.bf16 %v3529_v45, %v3528_v50  ;;  %v4089_v50 = vld [vmem:[#allocation2 + $0x189] sm:$0xff]  ;;  %v4107_v27 = vld [vmem:[#allocation2 + $0x291] sm:$0xff] }
 0x131   :  { %6098 = vmatmul.mubr.msk.bf16.gmra.mrb[56].mxu1 %vm15_vm0, %v347_v21 }
 0x132   :  { %6101 = vmatprep.mubr.msk.bf16.mxu1 %vm15_vm0, %v348_v20 }
 0x133   :  { %6406 = vmatmul.mubr.msk.bf16.gmra.mrb[24].mxu0 %vm15_vm0, %v7892_v11  ;;  %v7113_v11 = vld [vmem:[%s8654_s1 + $0x38] sm:$0xff]  }
 0x134   :  { %6409 = vmatprep.mubr.msk.bf16.mxu0 %vm15_vm0, %v7973_v24 }
 0x139   :  { %6102 = vmatmul.mubr.msk.bf16.gmra.mrb[60].mxu1 %vm15_vm0, %v349_v43 }
 0x13a   :  { %6109 = vmatprep.mubr.msk.bf16.mxu1 %vm15_vm0, %v1313_v47 }
 0x13b   :  { %6410 = vmatmul.mubr.msk.bf16.gmra.mrb[28].mxu0 %vm15_vm0, %v3577_v51  ;;  %v1812_v51 = vld [vmem:[#allocation2 + $0x20] sm:$0xff] }
 0x13c   :  { %6413 = vmatprep.mubr.msk.bf16.mxu0 %vm15_vm0, %v7902_v42  ;;  %v8000_v42 = vld [vmem:[%s8654_s1 + $0x40] sm:$0xff]  }
 0x141   :  { %6110 = vmatmul.mubr.msk.bf16.vlgmr.msra.gmra.mrb[0].mxu1 %vm15_vm0, %v7674_v1  ;;  %v3558_v1 = vld [vmem:[#allocation2 + $0x330] sm:$0xff] }
 0x142   :  { %6174 = vmatpush3.bf16.msra.mxu1 %v7791_v7  ;;  %6113 = vmatprep.mubr.msk.bf16.mxu1 %vm15_vm0, %v7680_v13  ;;  %v3559_v13 = vld [vmem:[#allocation2 + $0x338] sm:$0xff]  ;;  %v4064_v7 = vld [vmem:[#allocation2 + $0x61] sm:$0xff] }
 0x143   :  { %6175 = vmatprep.subr.bf16.mxu1 %v7113_v11  ;;  %6414 = vmatmul.mubr.msk.bf16.gmra.mrb[32].mxu0 %vm15_vm0, %v7913_v57  ;;  %v4065_v57 = vld [vmem:[#allocation2 + $0x69] sm:$0xff] }
 0x144   :  { %6417 = vmatprep.mubr.msk.bf16.mxu0 %vm15_vm0, %v7917_v0 }
 0x146   :  { %6176 = vmatpush3.bf16.msra.mxu1 %v7113_v11  ;;  %v4091_v11 = vld [vmem:[#allocation2 + $0x1a1] sm:$0xff] }
 0x147   :  { %6581 = vmatprep.subr.bf16.mxu1 %v8000_v42 }
 0x149   :  { %6114 = vmatmul.mubr.msk.bf16.gmra.mrb[4].mxu1 %vm15_vm0, %v7683_v14  ;;  %v8040_v14 = vpack.c.bf16 %v3559_v13, %v3558_v1  ;;  %v4092_v13 = vld [vmem:[#allocation2 + $0x1e1] sm:$0xff] }
 0x14a   :  { %6117 = vmatprep.mubr.msk.bf16.mxu1 %vm15_vm0, %v7700_v28  ;;  %v1281_v28 = vld [vmem:[#allocation2 + $0x1b2] sm:$0xff] }
 0x14b   :  { %6418 = vmatmul.mubr.msk.bf16.gmra.mrb[36].mxu0 %vm15_vm0, %v7931_v12  ;;  %v4126_v12 = vpack.c.bf16 %v4065_v57, %v4064_v7  ;;  %v1817_v57 = vld [vmem:[#allocation2 + $0x60] sm:$0xff] }
 0x14c   :  { %6421 = vmatprep.mubr.msk.bf16.mxu0 %vm15_vm0, %v7935_v19  ;;  %v4066_v19 = vld [vmem:[#allocation2 + $0x79] sm:$0xff] }
 0x151   :  { %6118 = vmatmul.mubr.msk.bf16.gmra.mrb[8].mxu1 %vm15_vm0, %v7705_v30  ;;  %v1282_v30 = vld [vmem:[#allocation2 + $0x1ba] sm:$0xff] }
 0x152   :  { %6121 = vmatprep.mubr.msk.bf16.mxu1 %vm15_vm0, %v7718_v40  ;;  %v3560_v40 = vld [vmem:[#allocation2 + $0x348] sm:$0xff] }
 0x153   :  { %6422 = vmatmul.mubr.msk.bf16.gmra.mrb[40].mxu0 %vm15_vm0, %v7943_v23  ;;  %v4067_v23 = vld [vmem:[#allocation2 + $0x81] sm:$0xff] }
 0x154   :  { %6425 = vmatprep.mubr.msk.bf16.mxu0 %vm15_vm0, %v7947_v26  ;;  %v4068_v26 = vld [vmem:[#allocation2 + $0x91] sm:$0xff] }
 0x159   :  { %6122 = vmatmul.mubr.msk.bf16.gmra.mrb[12].mxu1 %vm15_vm0, %v7721_v41  ;;  %v3561_v41 = vld [vmem:[#allocation2 + $0x350] sm:$0xff] }
 0x15a   :  { %6125 = vmatprep.mubr.msk.bf16.mxu1 %vm15_vm0, %v7728_v52  ;;  %v1329_v52 = vpack.c.bf16 %v1282_v30, %v1281_v28  ;;  %v4093_v28 = vld [vmem:[#allocation2 + $0x1e9] sm:$0xff] }
 0x15b   :  { %6426 = vmatmul.mubr.msk.bf16.gmra.mrb[44].mxu0 %vm15_vm0, %v7955_v39  ;;  %v4069_v39 = vld [vmem:[#allocation2 + $0x99] sm:$0xff] }
 0x15c   :  { %6429 = vmatprep.mubr.msk.bf16.mxu0 %vm15_vm0, %v344_v44  ;;  %v4071_v44 = vld [vmem:[#allocation2 + $0xb1] sm:$0xff] }
 0x161   :  { %6126 = vmatmul.mubr.msk.bf16.gmra.mrb[16].mxu1 %vm15_vm0, %v7731_v53  ;;  %v4060_v53 = vld [vmem:[#allocation2 + $0x31] sm:$0xff] }
 0x162   :  { %6129 = vmatprep.mubr.msk.bf16.mxu1 %vm15_vm0, %v7738_v2  ;;  %v4061_v2 = vld [vmem:[#allocation2 + $0x39] sm:$0xff] }
 0x163   :  { %6430 = vmatmul.mubr.msk.bf16.gmra.mrb[48].mxu0 %vm15_vm0, %v345_v31 }
 0x164   :  { %6433 = vmatprep.mubr.msk.bf16.mxu0 %vm15_vm0, %v346_v58  ;;  %v4130_v58 = vpack.c.bf16 %v4073_v60, %v4072_v54  ;;  %v1821_v54 = vld [vmem:[#allocation2 + $0x90] sm:$0xff]  ;;  %v1822_v60 = vld [vmem:[#allocation2 + $0x98] sm:$0xff] }
 0x169   :  { %6130 = vmatmul.mubr.msk.bf16.gmra.mrb[20].mxu1 %vm15_vm0, %v7741_v4  ;;  %v3593_v4 = vpack.c.bf16 %v3561_v41, %v3560_v40  ;;  %v1814_v40 = vld [vmem:[#allocation2 + $0x38] sm:$0xff]  ;;  %v1815_v41 = vld [vmem:[#allocation2 + $0x48] sm:$0xff] }
 0x16a   :  { %6133 = vmatprep.mubr.msk.bf16.mxu1 %vm15_vm0, %v7748_v17  ;;  %v4124_v17 = vpack.c.bf16 %v4061_v2, %v4060_v53  ;;  %v4094_v2 = vld [vmem:[#allocation2 + $0x1f9] sm:$0xff] }
 0x16b   :  { %6434 = vmatmul.mubr.msk.bf16.gmra.mrb[52].mxu0 %vm15_vm0, %v347_v21  ;;  %v4080_v21 = vld [vmem:[#allocation2 + $0x121] sm:$0xff] }
 0x16c   :  { %6437 = vmatprep.mubr.msk.bf16.mxu0 %vm15_vm0, %v348_v20  ;;  %v4081_v20 = vld [vmem:[#allocation2 + $0x129] sm:$0xff] }
 0x16d   :  { %v4134_v25 = vpack.c.bf16 %v4081_v20, %v4080_v21  ;;  %v1825_v21 = vld [vmem:[#allocation2 + $0xc0] sm:$0xff]  ;;  %v1826_v20 = vld [vmem:[#allocation2 + $0xc8] sm:$0xff] }
 0x171   :  { %6134 = vmatmul.mubr.msk.bf16.gmra.mrb[24].mxu1 %vm15_vm0, %v7751_v18  ;;  %v4062_v18 = vld [vmem:[#allocation2 + $0x49] sm:$0xff] }
 0x172   :  { %6137 = vmatprep.mubr.msk.bf16.mxu1 %vm15_vm0, %v7758_v29  ;;  %v4063_v29 = vld [vmem:[#allocation2 + $0x51] sm:$0xff] }
 0x173   :  { %6438 = vmatmul.mubr.msk.bf16.gmra.mrb[56].mxu0 %vm15_vm0, %v349_v43  ;;  %v4125_v0 = vpack.c.bf16 %v4063_v29, %v4062_v18  ;;  %v4088_v43 = vld [vmem:[#allocation2 + $0x181] sm:$0xff]  ;;  %v4096_v18 = vld [vmem:[#allocation2 + $0x211] sm:$0xff]  ;;  %v4097_v29 = vld [vmem:[#allocation2 + $0x219] sm:$0xff] }
 0x174   :  { %6441 = vmatprep.mubr.msk.bf16.mxu0 %vm15_vm0, %v8040_v14  ;;  %v4138_v47 = vpack.c.bf16 %v4089_v50, %v4088_v43  ;;  %v8109_v7 = vpack.c.bf16 %v4097_v29, %v4096_v18  ;;  %v1829_v43 = vld [vmem:[#allocation2 + $0xf0] sm:$0xff]  ;;  %v1830_v50 = vld [vmem:[#allocation2 + $0xf8] sm:$0xff]  ;;  %v4116_v18 = vld [vmem:[#allocation2 + $0x301] sm:$0xff] }
 0x175   :  { %v4117_v29 = vld [vmem:[#allocation2 + $0x309] sm:$0xff] }
 0x179   :  { %6138 = vmatmul.mubr.msk.bf16.gmra.mrb[28].mxu1 %vm15_vm0, %v7761_v32  ;;  %v7115_v32 = vld [vmem:[%s8654_s1 + $0x88] sm:$0xff]  }
 0x17a   :  { %6141 = vmatprep.mubr.msk.bf16.mxu1 %vm15_vm0, %v1329_v52  ;;  %v1816_v52 = vld [vmem:[#allocation2 + $0x50] sm:$0xff] }
 0x17b   :  { %6442 = vmatmul.mubr.msk.bf16.gmra.mrb[60].mxu0 %vm15_vm0, %v3593_v4  ;;  %v4095_v4 = vld [vmem:[#allocation2 + $0x201] sm:$0xff] }
 0x17c   :  { %6449 = vmatprep.mubr.msk.bf16.mxu0 %vm15_vm0, %v4124_v17  ;;  %v1877_v17 = vpack.c.bf16 %v1816_v52, %v1815_v41  ;;  %v1835_v41 = vld [vmem:[#allocation2 + $0x138] sm:$0xff]  ;;  %v1836_v52 = vld [vmem:[#allocation2 + $0x140] sm:$0xff] }
 0x181   :  { %6142 = vmatmul.mubr.msk.bf16.gmra.mrb[32].mxu1 %vm15_vm0, %v7769_v46  ;;  %v4127_v46 = vpack.c.bf16 %v4067_v23, %v4066_v19  ;;  %v7117_v19 = vld [vmem:[%s8654_s1 + $0x48] sm:$0xff]  }
 0x182   :  { %6145 = vmatprep.mubr.msk.bf16.mxu1 %vm15_vm0, %v7780_v61  ;;  %v4128_v61 = vpack.c.bf16 %v4069_v39, %v4068_v26  ;;  %v4098_v26 = vld [vmem:[#allocation2 + $0x229] sm:$0xff] }
 0x183   :  { %6450 = vmatmul.mubr.msk.bf16.vlgmr.msra.gmra.mrb[0].mxu0 %vm15_vm0, %v4125_v0  ;;  %v1818_v0 = vld [vmem:[#allocation2 + $0x68] sm:$0xff] }
 0x184   :  { %6514 = vmatpush3.bf16.msra.mxu0 %v7922_v5  ;;  %6453 = vmatprep.mubr.msk.bf16.mxu0 %vm15_vm0, %v4126_v12  ;;  %v4070_v5 = vld [vmem:[#allocation2 + $0xa9] sm:$0xff]  ;;  %v1819_v12 = vld [vmem:[#allocation2 + $0x78] sm:$0xff]  ;;  %v1878_v23 = vpack.c.bf16 %v1818_v0, %v1817_v57  ;;  %v8163_v0 = vpack.c.bf16 %v4117_v29, %v4116_v18  ;;  %v1856_v18 = vld [vmem:[#allocation2 + $0x260] sm:$0xff] }
 0x185   :  { %6515 = vmatprep.subr.bf16.mxu0 %v7115_v32  ;;  %v4129_v31 = vpack.c.bf16 %v4071_v44, %v4070_v5 }
 0x188   :  { %6516 = vmatpush3.bf16.msra.mxu0 %v7115_v32  ;;  %v1820_v32 = vld [vmem:[#allocation2 + $0x80] sm:$0xff] }
 0x189   :  { %6146 = vmatmul.mubr.msk.bf16.gmra.mrb[36].mxu1 %vm15_vm0, %v7783_v62  ;;  %v4074_v62 = vld [vmem:[#allocation2 + $0xd9] sm:$0xff]  ;;  %v1879_v39 = vpack.c.bf16 %v1820_v32, %v1819_v12  ;;  %v1837_v12 = vld [vmem:[#allocation2 + $0x150] sm:$0xff] }
 0x18a   :  { %6149 = vmatprep.mubr.msk.bf16.mxu1 %vm15_vm0, %v7802_v15  ;;  %v4075_v15 = vld [vmem:[#allocation2 + $0xe1] sm:$0xff]  ;;  %v1838_v32 = vld [vmem:[#allocation2 + $0x158] sm:$0xff] }
 0x18b   :  { %6454 = vmatmul.mubr.msk.bf16.gmra.mrb[4].mxu0 %vm15_vm0, %v4127_v46  ;;  %v4131_v10 = vpack.c.bf16 %v4075_v15, %v4074_v62  ;;  %v4100_v46 = vld [vmem:[#allocation2 + $0x241] sm:$0xff]  ;;  %v1880_v62 = vpack.c.bf16 %v1822_v60, %v1821_v54  ;;  %v4102_v15 = vld [vmem:[#allocation2 + $0x259] sm:$0xff] }
 0x18c   :  { %6457 = vmatprep.mubr.msk.bf16.mxu0 %vm15_vm0, %v4128_v61  ;;  %v4101_v61 = vld [vmem:[#allocation2 + $0x249] sm:$0xff]  ;;  %v4121_v54 = vld [vmem:[#allocation2 + $0x339] sm:$0xff] }
 0x18d   :  { %v8123_v44 = vpack.c.bf16 %v4101_v61, %v4100_v46  ;;  %v4120_v61 = vld [vmem:[#allocation2 + $0x331] sm:$0xff] }
 0x191   :  { %6150 = vmatmul.mubr.msk.bf16.gmra.mrb[40].mxu1 %vm15_vm0, %v7806_v16  ;;  %v4078_v16 = vld [vmem:[#allocation2 + $0x109] sm:$0xff] }
 0x192   :  { %6153 = vmatprep.mubr.msk.bf16.mxu1 %vm15_vm0, %v7818_v33  ;;  %v4079_v33 = vld [vmem:[#allocation2 + $0x111] sm:$0xff] }
 0x193   :  { %6458 = vmatmul.mubr.msk.bf16.gmra.mrb[8].mxu0 %vm15_vm0, %v4129_v31  ;;  %v4133_v22 = vpack.c.bf16 %v4079_v33, %v4078_v16  ;;  %v1823_v31 = vld [vmem:[#allocation2 + $0xa8] sm:$0xff]  ;;  %v8130_v16 = vpack.c.bf16 %v4103_v63, %v4102_v15  ;;  %v4123_v63 = vld [vmem:[#allocation2 + $0x351] sm:$0xff] }
 0x194   :  { %6461 = vmatprep.mubr.msk.bf16.mxu0 %vm15_vm0, %v4130_v58  ;;  %v1824_v58 = vld [vmem:[#allocation2 + $0xb0] sm:$0xff] }
 0x195   :  { %v1881_v8 = vpack.c.bf16 %v1824_v58, %v1823_v31  ;;  %v8173_v31 = vpack.c.bf16 %v4121_v54, %v4120_v61  ;;  %v1843_v58 = vld [vmem:[#allocation2 + $0x1c8] sm:$0xff]  ;;  %v1858_v61 = vld [vmem:[#allocation2 + $0x278] sm:$0xff] }
 0x196   :  { %v4122_v15 = vld [vmem:[#allocation2 + $0x349] sm:$0xff] }
 0x197   :  { %v1859_v54 = vld [vmem:[#allocation2 + $0x288] sm:$0xff] }
 0x199   :  { %6154 = vmatmul.mubr.msk.bf16.gmra.mrb[44].mxu1 %vm15_vm0, %v7822_v34  ;;  %v4082_v34 = vld [vmem:[#allocation2 + $0x139] sm:$0xff] }
 0x19a   :  { %6157 = vmatprep.mubr.msk.bf16.mxu1 %vm15_vm0, %v7834_v48  ;;  %v4083_v48 = vld [vmem:[#allocation2 + $0x141] sm:$0xff] }
 0x19b   :  { %6462 = vmatmul.mubr.msk.bf16.gmra.mrb[12].mxu0 %vm15_vm0, %v4131_v10  ;;  %v4135_v37 = vpack.c.bf16 %v4083_v48, %v4082_v34  ;;  %v4104_v10 = vld [vmem:[#allocation2 + $0x271] sm:$0xff]  ;;  %v1882_v34 = vpack.c.bf16 %v1826_v20, %v1825_v21  ;;  %v4106_v48 = vld [vmem:[#allocation2 + $0x289] sm:$0xff]  ;;  %v4155_v21 = vpack.c.bf16 %v4123_v63, %v4122_v15  ;;  %v4636_v15 = vld [vmem:[#allocation2 + $0xda] sm:$0xff] }
 0x19c   :  { %6465 = vmatprep.mubr.msk.bf16.mxu0 %vm15_vm0, %v4132_v9  ;;  %v4105_v9 = vld [vmem:[#allocation2 + $0x279] sm:$0xff]  ;;  %v4637_v63 = vld [vmem:[#allocation2 + $0xe2] sm:$0xff] }
 0x19d   :  { %v8133_v33 = vpack.c.bf16 %v4105_v9, %v4104_v10  ;;  %v4622_v10 = vld [vmem:[#allocation2 + $0x32] sm:$0xff]  ;;  %v4623_v9 = vld [vmem:[#allocation2 + $0x3a] sm:$0xff] }
 0x19e   :  { %v4686_v20 = vpack.c.bf16 %v4623_v9, %v4622_v10  ;;  %v4638_v10 = vld [vmem:[#allocation2 + $0xf2] sm:$0xff]  ;;  %v4639_v9 = vld [vmem:[#allocation2 + $0xfa] sm:$0xff] }
 0x1a1   :  { %6158 = vmatmul.mubr.msk.bf16.gmra.mrb[48].mxu1 %vm15_vm0, %v7838_v49  ;;  %v4086_v49 = vld [vmem:[#allocation2 + $0x169] sm:$0xff] }
 0x1a2   :  { %6161 = vmatprep.mubr.msk.bf16.mxu1 %vm15_vm0, %v7850_v6  ;;  %v4087_v6 = vld [vmem:[#allocation2 + $0x171] sm:$0xff] }
 0x1a3   :  { %6466 = vmatmul.mubr.msk.bf16.gmra.mrb[16].mxu0 %vm15_vm0, %v4133_v22  ;;  %v4137_v45 = vpack.c.bf16 %v4087_v6, %v4086_v49  ;;  %v1827_v22 = vld [vmem:[#allocation2 + $0xd8] sm:$0xff]  ;;  %v8140_v49 = vpack.c.bf16 %v4107_v27, %v4106_v48  ;;  %v1848_v48 = vld [vmem:[#allocation2 + $0x200] sm:$0xff] }
 0x1a4   :  { %6469 = vmatprep.mubr.msk.bf16.mxu0 %vm15_vm0, %v4134_v25  ;;  %v1828_v25 = vld [vmem:[#allocation2 + $0xe0] sm:$0xff] }
 0x1a5   :  { %v1883_v36 = vpack.c.bf16 %v1828_v25, %v1827_v22  ;;  %v1845_v22 = vld [vmem:[#allocation2 + $0x1e0] sm:$0xff]  ;;  %v1846_v25 = vld [vmem:[#allocation2 + $0x1e8] sm:$0xff] }
 0x1a6   :  { %v1892_v27 = vpack.c.bf16 %v1846_v25, %v1845_v22  ;;  %v1861_v22 = vld [vmem:[#allocation2 + $0x2a0] sm:$0xff]  ;;  %v1862_v25 = vld [vmem:[#allocation2 + $0x2a8] sm:$0xff] }
 0x1a9   :  { %6162 = vmatmul.mubr.msk.bf16.gmra.mrb[52].mxu1 %vm15_vm0, %v7854_v56  ;;  %v1811_v56 = vld [vmem:[#allocation2 + $0x18] sm:$0xff] }
 0x1aa   :  { %6165 = vmatprep.mubr.msk.bf16.mxu1 %vm15_vm0, %v7866_v3  ;;  %v4090_v3 = vld [vmem:[#allocation2 + $0x199] sm:$0xff]  ;;  %v1875_v1 = vpack.c.bf16 %v1812_v51, %v1811_v56  ;;  %v1884_v56 = vpack.c.bf16 %v1830_v50, %v1829_v43  ;;  %v4626_v43 = vld [vmem:[#allocation2 + $0x62] sm:$0xff]  ;;  %v4627_v50 = vld [vmem:[#allocation2 + $0x6a] sm:$0xff] }
 0x1ab   :  { %6470 = vmatmul.mubr.msk.bf16.gmra.mrb[20].mxu0 %vm15_vm0, %v4135_v37  ;;  %v4139_v30 = vpack.c.bf16 %v4091_v11, %v4090_v3  ;;  %v4108_v37 = vld [vmem:[#allocation2 + $0x2a1] sm:$0xff]  ;;  %v4110_v51 = vld [vmem:[#allocation2 + $0x2b9] sm:$0xff] }
 0x1ac   :  { %6473 = vmatprep.mubr.msk.bf16.mxu0 %vm15_vm0, %v4136_v38  ;;  %v4109_v38 = vld [vmem:[#allocation2 + $0x2a9] sm:$0xff]  ;;  %v4111_v3 = vld [vmem:[#allocation2 + $0x2c1] sm:$0xff] }
 0x1ad   :  { %v8143_v6 = vpack.c.bf16 %v4109_v38, %v4108_v37  ;;  %v4625_v37 = vld [vmem:[#allocation2 + $0x52] sm:$0xff] }
 0x1b1   :  { %6166 = vmatmul.mubr.msk.bf16.gmra.mrb[56].mxu1 %vm15_vm0, %v7870_v35  ;;  %v8100_v35 = vpack.c.bf16 %v4093_v28, %v4092_v13  ;;  %v4113_v13 = vld [vmem:[#allocation2 + $0x2d9] sm:$0xff]  ;;  %v8150_v28 = vpack.c.bf16 %v4111_v3, %v4110_v51  ;;  %v1851_v51 = vld [vmem:[#allocation2 + $0x228] sm:$0xff]  ;;  %v1852_v3 = vld [vmem:[#allocation2 + $0x230] sm:$0xff] }
 0x1b2   :  { %6169 = vmatprep.mubr.msk.bf16.mxu1 %vm15_vm0, %v7882_v55  ;;  %v1813_v55 = vld [vmem:[#allocation2 + $0x30] sm:$0xff] }
 0x1b3   :  { %6474 = vmatmul.mubr.msk.bf16.gmra.mrb[24].mxu0 %vm15_vm0, %v4137_v45  ;;  %v1876_v53 = vpack.c.bf16 %v1814_v40, %v1813_v55  ;;  %v1831_v45 = vld [vmem:[#allocation2 + $0x108] sm:$0xff]  ;;  %v1833_v55 = vld [vmem:[#allocation2 + $0x120] sm:$0xff] }
 0x1b4   :  { %6477 = vmatprep.mubr.msk.bf16.mxu0 %vm15_vm0, %v4138_v47  ;;  %v1832_v47 = vld [vmem:[#allocation2 + $0x110] sm:$0xff]  ;;  %v1834_v40 = vld [vmem:[#allocation2 + $0x128] sm:$0xff] }
 0x1b5   :  { %v1885_v11 = vpack.c.bf16 %v1832_v47, %v1831_v45  ;;  %v1849_v47 = vld [vmem:[#allocation2 + $0x210] sm:$0xff] }
 0x1b9   :  { %6170 = vmatmul.mubr.msk.bf16.gmra.mrb[60].mxu1 %vm15_vm0, %v7886_v59  ;;  %v8106_v59 = vpack.c.bf16 %v4095_v4, %v4094_v2  ;;  %v4114_v2 = vld [vmem:[#allocation2 + $0x2e9] sm:$0xff]  ;;  %v4115_v4 = vld [vmem:[#allocation2 + $0x2f1] sm:$0xff] }
 0x1ba   :  { %6177 = vmatprep.mubr.msk.bf16.mxu1 %vm15_vm0, %v1875_v1  ;;  %v4112_v1 = vld [vmem:[#allocation2 + $0x2d1] sm:$0xff]  ;;  %v8160_v57 = vpack.c.bf16 %v4115_v4, %v4114_v2  ;;  %v1853_v2 = vld [vmem:[#allocation2 + $0x240] sm:$0xff]  ;;  %v1854_v4 = vld [vmem:[#allocation2 + $0x248] sm:$0xff] }
 0x1bb   :  { %6478 = vmatmul.mubr.msk.bf16.gmra.mrb[28].mxu0 %vm15_vm0, %v4139_v30  ;;  %v8153_v30 = vpack.c.bf16 %v4113_v13, %v4112_v1  ;;  %v4628_v1 = vld [vmem:[#allocation2 + $0x7a] sm:$0xff]  ;;  %v4629_v13 = vld [vmem:[#allocation2 + $0x82] sm:$0xff]  ;;  %v1896_v29 = vpack.c.bf16 %v1854_v4, %v1853_v2 }
 0x1bc   :  { %6481 = vmatprep.mubr.msk.bf16.mxu0 %vm15_vm0, %v8100_v35  ;;  %v1869_v2 = vld [vmem:[#allocation2 + $0x300] sm:$0xff]  ;;  %v1870_v4 = vld [vmem:[#allocation2 + $0x308] sm:$0xff] }
 0x1c1   :  { %6178 = vmatmul.mubr.msk.bf16.vlgmr.msra.gmra.mrb[0].mxu1 %vm15_vm0, %v1876_v53  ;;  %v1886_v53 = vpack.c.bf16 %v1834_v40, %v1833_v55  ;;  %v1895_v55 = vpack.c.bf16 %v1852_v3, %v1851_v51  ;;  %v4630_v40 = vld [vmem:[#allocation2 + $0x92] sm:$0xff]  ;;  %v1867_v51 = vld [vmem:[#allocation2 + $0x2e8] sm:$0xff] }
 0x1c2   :  { %6583 = vmatpush3.bf16.msra.mxu1 %v8000_v42  ;;  %6181 = vmatprep.mubr.msk.bf16.mxu1 %vm15_vm0, %v1877_v17  ;;  %v4099_v42 = vld [vmem:[#allocation2 + $0x231] sm:$0xff]  ;;  %v1887_v17 = vpack.c.bf16 %v1836_v52, %v1835_v41  ;;  %v4631_v41 = vld [vmem:[#allocation2 + $0x9a] sm:$0xff]  ;;  %v4689_v52 = vpack.c.bf16 %v4629_v13, %v4628_v1  ;;  %v4645_v13 = vld [vmem:[#allocation2 + $0x142] sm:$0xff] }
 0x1c3   :  { %6582 = vmatprep.subr.bf16.mxu1 %v7117_v19  ;;  %6482 = vmatmul.mubr.msk.bf16.gmra.mrb[32].mxu0 %vm15_vm0, %v8106_v59  ;;  %v8120_v5 = vpack.c.bf16 %v4099_v42, %v4098_v26  ;;  %v1888_v26 = vpack.c.bf16 %v1838_v32, %v1837_v12  ;;  %v4118_v42 = vld [vmem:[#allocation2 + $0x319] sm:$0xff]  ;;  %v4632_v12 = vld [vmem:[#allocation2 + $0xaa] sm:$0xff] }
 0x1c4   :  { %6485 = vmatprep.mubr.msk.bf16.mxu0 %vm15_vm0, %v8109_v7  ;;  %v4633_v32 = vld [vmem:[#allocation2 + $0xb2] sm:$0xff]  ;;  %v4644_v1 = vld [vmem:[#allocation2 + $0x13a] sm:$0xff] }
 0x1c5   :  { %v1868_v3 = vld [vmem:[#allocation2 + $0x2f0] sm:$0xff] }
 0x1c6   :  { %6584 = vmatpush3.bf16.msra.mxu1 %v7117_v19  ;;  %v1839_v19 = vld [vmem:[#allocation2 + $0x168] sm:$0xff] }
 0x1c9   :  { %6182 = vmatmul.mubr.msk.bf16.gmra.mrb[4].mxu1 %vm15_vm0, %v1878_v23  ;;  %v1840_v23 = vld [vmem:[#allocation2 + $0x170] sm:$0xff] }
 0x1ca   :  { %6185 = vmatprep.mubr.msk.bf16.mxu1 %vm15_vm0, %v1879_v39  ;;  %v4119_v39 = vld [vmem:[#allocation2 + $0x321] sm:$0xff]  ;;  %v1889_v46 = vpack.c.bf16 %v1840_v23, %v1839_v19 }
 0x1cb   :  { %6486 = vmatmul.mubr.msk.bf16.gmra.mrb[36].mxu0 %vm15_vm0, %v8120_v5  ;;  %v8170_v60 = vpack.c.bf16 %v4119_v39, %v4118_v42  ;;  %v4634_v23 = vld [vmem:[#allocation2 + $0xc2] sm:$0xff]  ;;  %v4691_v42 = vpack.c.bf16 %v4633_v32, %v4632_v12  ;;  %v4648_v12 = vld [vmem:[#allocation2 + $0x16a] sm:$0xff]  ;;  %v4649_v32 = vld [vmem:[#allocation2 + $0x172] sm:$0xff] }
 0x1cc   :  { %6489 = vmatprep.mubr.msk.bf16.mxu0 %vm15_vm0, %v8123_v44 }
 0x1d1   :  { %6186 = vmatmul.mubr.msk.bf16.gmra.mrb[8].mxu1 %vm15_vm0, %v1880_v62  ;;  %v1844_v62 = vld [vmem:[#allocation2 + $0x1d0] sm:$0xff] }
 0x1d2   :  { %6189 = vmatprep.mubr.msk.bf16.mxu1 %vm15_vm0, %v1881_v8  ;;  %v1891_v8 = vpack.c.bf16 %v1844_v62, %v1843_v58  ;;  %v1860_v58 = vld [vmem:[#allocation2 + $0x290] sm:$0xff] }
 0x1d3   :  { %6490 = vmatmul.mubr.msk.bf16.gmra.mrb[40].mxu0 %vm15_vm0, %v8130_v16 }
 0x1d4   :  { %6493 = vmatprep.mubr.msk.bf16.mxu0 %vm15_vm0, %v8133_v33 }
 0x1d9   :  { %6190 = vmatmul.mubr.msk.bf16.gmra.mrb[12].mxu1 %vm15_vm0, %v1882_v34  ;;  %v1847_v34 = vld [vmem:[#allocation2 + $0x1f8] sm:$0xff] }
 0x1da   :  { %6193 = vmatprep.mubr.msk.bf16.mxu1 %vm15_vm0, %v1883_v36  ;;  %v4624_v36 = vld [vmem:[#allocation2 + $0x4a] sm:$0xff]  ;;  %v1893_v38 = vpack.c.bf16 %v1848_v48, %v1847_v34  ;;  %v1863_v34 = vld [vmem:[#allocation2 + $0x2b8] sm:$0xff]  ;;  %v1864_v48 = vld [vmem:[#allocation2 + $0x2c0] sm:$0xff] }
 0x1db   :  { %6494 = vmatmul.mubr.msk.bf16.gmra.mrb[44].mxu0 %vm15_vm0, %v8140_v49  ;;  %v4687_v45 = vpack.c.bf16 %v4625_v37, %v4624_v36  ;;  %v4640_v36 = vld [vmem:[#allocation2 + $0x10a] sm:$0xff]  ;;  %v4641_v37 = vld [vmem:[#allocation2 + $0x112] sm:$0xff] }
 0x1dc   :  { %6497 = vmatprep.mubr.msk.bf16.mxu0 %vm15_vm0, %v8143_v6 }
 0x1e1   :  { %6194 = vmatmul.mubr.msk.bf16.gmra.mrb[16].mxu1 %vm15_vm0, %v1884_v56  ;;  %v1850_v56 = vld [vmem:[#allocation2 + $0x218] sm:$0xff] }
 0x1e2   :  { %6197 = vmatprep.mubr.msk.bf16.mxu1 %vm15_vm0, %v1885_v11  ;;  %v1894_v11 = vpack.c.bf16 %v1850_v56, %v1849_v47  ;;  %v1865_v47 = vld [vmem:[#allocation2 + $0x2d0] sm:$0xff]  ;;  %v1866_v56 = vld [vmem:[#allocation2 + $0x2d8] sm:$0xff] }
 0x1e3   :  { %6498 = vmatmul.mubr.msk.bf16.gmra.mrb[48].mxu0 %vm15_vm0, %v8150_v28 }
 0x1e4   :  { %6501 = vmatprep.mubr.msk.bf16.mxu0 %vm15_vm0, %v8153_v30 }
 0x1e9   :  { %6198 = vmatmul.mubr.msk.bf16.gmra.mrb[20].mxu1 %vm15_vm0, %v1886_v53  ;;  %v4690_v53 = vpack.c.bf16 %v4631_v41, %v4630_v40  ;;  %v4646_v40 = vld [vmem:[#allocation2 + $0x152] sm:$0xff]  ;;  %v4647_v41 = vld [vmem:[#allocation2 + $0x15a] sm:$0xff] }
 0x1ea   :  { %6201 = vmatprep.mubr.msk.bf16.mxu1 %vm15_vm0, %v1887_v17  ;;  %v1855_v17 = vld [vmem:[#allocation2 + $0x258] sm:$0xff] }
 0x1eb   :  { %6502 = vmatmul.mubr.msk.bf16.gmra.mrb[52].mxu0 %vm15_vm0, %v8160_v57  ;;  %v1897_v19 = vpack.c.bf16 %v1856_v18, %v1855_v17  ;;  %v1871_v17 = vld [vmem:[#allocation2 + $0x318] sm:$0xff]  ;;  %v1872_v18 = vld [vmem:[#allocation2 + $0x320] sm:$0xff] }
 0x1ec   :  { %6505 = vmatprep.mubr.msk.bf16.mxu0 %vm15_vm0, %v8163_v0 }
 0x1f1   :  { %6202 = vmatmul.mubr.msk.bf16.gmra.mrb[24].mxu1 %vm15_vm0, %v1888_v26  ;;  %v4635_v26 = vld [vmem:[#allocation2 + $0xca] sm:$0xff] }
 0x1f2   :  { %6205 = vmatprep.mubr.msk.bf16.mxu1 %vm15_vm0, %v1889_v46  ;;  %v4692_v39 = vpack.c.bf16 %v4635_v26, %v4634_v23  ;;  %v1857_v46 = vld [vmem:[#allocation2 + $0x270] sm:$0xff]  ;;  %v4650_v23 = vld [vmem:[#allocation2 + $0x182] sm:$0xff] }
 0x1f3   :  { %6506 = vmatmul.mubr.msk.bf16.gmra.mrb[56].mxu0 %vm15_vm0, %v8170_v60  ;;  %v1898_v62 = vpack.c.bf16 %v1858_v61, %v1857_v46  ;;  %v4651_v26 = vld [vmem:[#allocation2 + $0x18a] sm:$0xff] }
 0x1f4   :  { %6509 = vmatprep.mubr.msk.bf16.mxu0 %vm15_vm0, %v8173_v31  ;;  %v2405_v46 = vld [vmem:[#allocation2 + $0x1c9] sm:$0xff]  ;;  %v2406_v61 = vld [vmem:[#allocation2 + $0x1d1] sm:$0xff] }
 0x1f9   :  { %6206 = vmatmul.mubr.msk.bf16.gmra.mrb[28].mxu1 %vm15_vm0, %v7973_v24  ;;  %v4688_v24 = vpack.c.bf16 %v4627_v50, %v4626_v43  ;;  %v4642_v43 = vld [vmem:[#allocation2 + $0x122] sm:$0xff]  ;;  %v4643_v50 = vld [vmem:[#allocation2 + $0x12a] sm:$0xff] }
 0x1fa   :  { %6209 = vmatprep.mubr.msk.bf16.mxu1 %vm15_vm0, %v1891_v8  ;;  %v1899_v8 = vpack.c.bf16 %v1860_v58, %v1859_v54  ;;  %v4652_v54 = vld [vmem:[#allocation2 + $0x19a] sm:$0xff]  ;;  %v4653_v58 = vld [vmem:[#allocation2 + $0x1a2] sm:$0xff] }
 0x1fb   :  { %6510 = vmatmul.mubr.msk.bf16.gmra.mrb[60].mxu0 %vm15_vm0, %v4155_v21  ;;  %v4693_v21 = vpack.c.bf16 %v4637_v63, %v4636_v15  ;;  %v4654_v15 = vld [vmem:[#allocation2 + $0x1e2] sm:$0xff]  ;;  %v4655_v63 = vld [vmem:[#allocation2 + $0x1ea] sm:$0xff] }
 0x1fc   :  { %6517 = vmatprep.mubr.msk.bf16.mxu0 %vm15_vm0, %v4686_v20  ;;  %v4694_v20 = vpack.c.bf16 %v4639_v9, %v4638_v10  ;;  %v4702_v10 = vpack.c.bf16 %v4655_v63, %v4654_v15  ;;  %v4656_v9 = vld [vmem:[#allocation2 + $0x1fa] sm:$0xff] }
 0x201   :  { %6210 = vmatmul.mubr.msk.bf16.gmra.mrb[32].mxu1 %vm15_vm0, %v1892_v27  ;;  %v1900_v27 = vpack.c.bf16 %v1862_v25, %v1861_v22  ;;  %v4659_v22 = vld [vmem:[#allocation2 + $0x21a] sm:$0xff] }
 0x202   :  { %6213 = vmatprep.mubr.msk.bf16.mxu1 %vm15_vm0, %v1893_v38  ;;  %v1901_v38 = vpack.c.bf16 %v1864_v48, %v1863_v34  ;;  %v4661_v48 = vld [vmem:[#allocation2 + $0x232] sm:$0xff] }
 0x203   :  { %6518 = vmatmul.mubr.msk.bf16.vlgmr.msra.gmra.mrb[0].mxu0 %vm15_vm0, %v4687_v45  ;;  %v4695_v45 = vpack.c.bf16 %v4641_v37, %v4640_v36  ;;  %v4663_v36 = vld [vmem:[#allocation2 + $0x24a] sm:$0xff] }
 0x204   :  { %6521 = vmatprep.mubr.msk.bf16.mxu0 %vm15_vm0, %v4688_v24  ;;  %v4696_v24 = vpack.c.bf16 %v4643_v50, %v4642_v43  ;;  %v4666_v43 = vld [vmem:[#allocation2 + $0x272] sm:$0xff]  ;;  %v4667_v50 = vld [vmem:[#allocation2 + $0x27a] sm:$0xff] }
 0x209   :  { %6214 = vmatmul.mubr.msk.bf16.gmra.mrb[36].mxu1 %vm15_vm0, %v1894_v11  ;;  %v1902_v11 = vpack.c.bf16 %v1866_v56, %v1865_v47  ;;  %v4670_v47 = vld [vmem:[#allocation2 + $0x2a2] sm:$0xff]  ;;  %v4671_v56 = vld [vmem:[#allocation2 + $0x2aa] sm:$0xff] }
 0x20a   :  { %6217 = vmatprep.mubr.msk.bf16.mxu1 %vm15_vm0, %v1895_v55  ;;  %v1903_v55 = vpack.c.bf16 %v1868_v3, %v1867_v51  ;;  %v4710_v3 = vpack.c.bf16 %v4671_v56, %v4670_v47 }
 0x20b   :  { %6522 = vmatmul.mubr.msk.bf16.gmra.mrb[4].mxu0 %vm15_vm0, %v4689_v52  ;;  %v4697_v52 = vpack.c.bf16 %v4645_v13, %v4644_v1  ;;  %v4675_v1 = vld [vmem:[#allocation2 + $0x2da] sm:$0xff] }
 0x20c   :  { %6525 = vmatprep.mubr.msk.bf16.mxu0 %vm15_vm0, %v4690_v53  ;;  %v4698_v53 = vpack.c.bf16 %v4647_v41, %v4646_v40  ;;  %v4678_v40 = vld [vmem:[#allocation2 + $0x302] sm:$0xff]  ;;  %v4679_v41 = vld [vmem:[#allocation2 + $0x30a] sm:$0xff] }
 0x211   :  { %6218 = vmatmul.mubr.msk.bf16.gmra.mrb[40].mxu1 %vm15_vm0, %v1896_v29  ;;  %v1904_v29 = vpack.c.bf16 %v1870_v4, %v1869_v2  ;;  %v4682_v2 = vld [vmem:[#allocation2 + $0x332] sm:$0xff]  ;;  %v4683_v4 = vld [vmem:[#allocation2 + $0x33a] sm:$0xff] }
 0x212   :  { %6221 = vmatprep.mubr.msk.bf16.mxu1 %vm15_vm0, %v1897_v19  ;;  %v1905_v19 = vpack.c.bf16 %v1872_v18, %v1871_v17  ;;  %v4716_v18 = vpack.c.bf16 %v4683_v4, %v4682_v2 }
 0x213   :  { %6526 = vmatmul.mubr.msk.bf16.gmra.mrb[8].mxu0 %vm15_vm0, %v4691_v42  ;;  %v4699_v42 = vpack.c.bf16 %v4649_v32, %v4648_v12 }
 0x214   :  { %6529 = vmatprep.mubr.msk.bf16.mxu0 %vm15_vm0, %v4692_v39  ;;  %v4700_v39 = vpack.c.bf16 %v4651_v26, %v4650_v23 }
 0x219   :  { %6222 = vmatmul.mubr.msk.bf16.gmra.mrb[44].mxu1 %vm15_vm0, %v1898_v62  ;;  %v2453_v62 = vpack.c.bf16 %v2406_v61, %v2405_v46 }
 0x21a   :  { %6225 = vmatprep.mubr.msk.bf16.mxu1 %vm15_vm0, %v1899_v8  ;;  %v4701_v8 = vpack.c.bf16 %v4653_v58, %v4652_v54 }
 0x21b   :  { %6530 = vmatmul.mubr.msk.bf16.gmra.mrb[12].mxu0 %vm15_vm0, %v4693_v21  ;;  %v4657_v21 = vld [vmem:[#allocation2 + $0x202] sm:$0xff] }
 0x21c   :  { %6533 = vmatprep.mubr.msk.bf16.mxu0 %vm15_vm0, %v4694_v20  ;;  %v4658_v20 = vld [vmem:[#allocation2 + $0x212] sm:$0xff]  ;;  %v4703_v25 = vpack.c.bf16 %v4657_v21, %v4656_v9 }
 0x21d   :  { %v4704_v34 = vpack.c.bf16 %v4659_v22, %v4658_v20 }
 0x221   :  { %6226 = vmatmul.mubr.msk.bf16.gmra.mrb[48].mxu1 %vm15_vm0, %v1900_v27  ;;  %v4662_v27 = vld [vmem:[#allocation2 + $0x242] sm:$0xff] }
 0x222   :  { %6229 = vmatprep.mubr.msk.bf16.mxu1 %vm15_vm0, %v1901_v38  ;;  %v4706_v38 = vpack.c.bf16 %v4663_v36, %v4662_v27 }
 0x223   :  { %6534 = vmatmul.mubr.msk.bf16.gmra.mrb[16].mxu0 %vm15_vm0, %v4695_v45 }
 0x224   :  { %6537 = vmatprep.mubr.msk.bf16.mxu0 %vm15_vm0, %v4696_v24  ;;  %v4708_v24 = vpack.c.bf16 %v4667_v50, %v4666_v43  ;;  %v8310_v43 = vld [vmem:[%s8656_s2] ss:$0 sm:$0xff] }
 0x229   :  { %6230 = vmatmul.mubr.msk.bf16.gmra.mrb[52].mxu1 %vm15_vm0, %v1902_v11  ;;  %v4674_v11 = vld [vmem:[#allocation2 + $0x2d2] sm:$0xff] }
 0x22a   :  { %6233 = vmatprep.mubr.msk.bf16.mxu1 %vm15_vm0, %v1903_v55  ;;  %v4712_v55 = vpack.c.bf16 %v4675_v1, %v4674_v11 }
 0x22b   :  { %6538 = vmatmul.mubr.msk.bf16.gmra.mrb[20].mxu0 %vm15_vm0, %v4697_v52 }
 0x22c   :  { %6541 = vmatprep.mubr.msk.bf16.mxu0 %vm15_vm0, %v4698_v53  ;;  %v4714_v53 = vpack.c.bf16 %v4679_v41, %v4678_v40 }
 0x231   :  { %6234 = vmatmul.mubr.msk.bf16.gmra.mrb[56].mxu1 %vm15_vm0, %v1904_v29 }
 0x232   :  { %6237 = vmatprep.mubr.msk.bf16.mxu1 %vm15_vm0, %v1905_v19 }
 0x233   :  { %6542 = vmatmul.mubr.msk.bf16.gmra.mrb[24].mxu0 %vm15_vm0, %v4699_v42 }
 0x234   :  { %6545 = vmatprep.mubr.msk.bf16.mxu0 %vm15_vm0, %v4700_v39 }
 0x239   :  { %6238 = vmatmul.mubr.msk.bf16.gmra.mrb[60].mxu1 %vm15_vm0, %v8040_v14  ;;  %v4660_v14 = vld [vmem:[#allocation2 + $0x22a] sm:$0xff] }
 0x23a   :  { %6277 = vmatprep.mubr.msk.bf16.mxu1 %vm15_vm0, %v2453_v62  ;;  %v4705_v37 = vpack.c.bf16 %v4661_v48, %v4660_v14 }
 0x23b   :  { %6546 = vmatmul.mubr.msk.bf16.gmra.mrb[28].mxu0 %vm15_vm0, %v4701_v8 }
 0x23c   :  { %6549 = vmatprep.mubr.msk.bf16.mxu0 %vm15_vm0, %v4702_v10 }
 0x241   :  { %6278 = vmatmul.mubr.msk.bf16.vlgmr.msra.gmra.mrb[32].mxu1 %vm15_vm0, %v8100_v35  ;;  %v4664_v35 = vld [vmem:[#allocation2 + $0x25a] sm:$0xff] }
 0x242   :  { %6281 = vmatprep.mubr.msk.bf16.mxu1 %vm15_vm0, %v8106_v59  ;;  %v4665_v59 = vld [vmem:[#allocation2 + $0x262] sm:$0xff] }
 0x243   :  { %6550 = vmatmul.mubr.msk.bf16.gmra.mrb[32].mxu0 %vm15_vm0, %v4703_v25  ;;  %v4707_v45 = vpack.c.bf16 %v4665_v59, %v4664_v35 }
 0x244   :  { %6553 = vmatprep.mubr.msk.bf16.mxu0 %vm15_vm0, %v4704_v34 }
 0x249   :  { %6282 = vmatmul.mubr.msk.bf16.gmra.mrb[36].mxu1 %vm15_vm0, %v8109_v7  ;;  %v4668_v7 = vld [vmem:[#allocation2 + $0x28a] sm:$0xff] }
 0x24a   :  { %6285 = vmatprep.mubr.msk.bf16.mxu1 %vm15_vm0, %v8120_v5  ;;  %v4669_v5 = vld [vmem:[#allocation2 + $0x292] sm:$0xff] }
 0x24b   :  { %6554 = vmatmul.mubr.msk.bf16.gmra.mrb[36].mxu0 %vm15_vm0, %v4705_v37  ;;  %v4709_v51 = vpack.c.bf16 %v4669_v5, %v4668_v7 }
 0x24c   :  { %6557 = vmatprep.mubr.msk.bf16.mxu0 %vm15_vm0, %v4706_v38 }
 0x251   :  { %6286 = vmatmul.mubr.msk.bf16.gmra.mrb[40].mxu1 %vm15_vm0, %v8123_v44  ;;  %v4672_v44 = vld [vmem:[#allocation2 + $0x2ba] sm:$0xff] }
 0x252   :  { %6289 = vmatprep.mubr.msk.bf16.mxu1 %vm15_vm0, %v8130_v16  ;;  %v4673_v16 = vld [vmem:[#allocation2 + $0x2c2] sm:$0xff] }
 0x253   :  { %6558 = vmatmul.mubr.msk.bf16.gmra.mrb[40].mxu0 %vm15_vm0, %v4707_v45  ;;  %v4711_v13 = vpack.c.bf16 %v4673_v16, %v4672_v44 }
 0x254   :  { %6561 = vmatprep.mubr.msk.bf16.mxu0 %vm15_vm0, %v4708_v24 }
 0x259   :  { %6290 = vmatmul.mubr.msk.bf16.gmra.mrb[44].mxu1 %vm15_vm0, %v8133_v33  ;;  %v4676_v33 = vld [vmem:[#allocation2 + $0x2ea] sm:$0xff] }
 0x25a   :  { %6293 = vmatprep.mubr.msk.bf16.mxu1 %vm15_vm0, %v8140_v49  ;;  %v4677_v49 = vld [vmem:[#allocation2 + $0x2f2] sm:$0xff] }
 0x25b   :  { %6562 = vmatmul.mubr.msk.bf16.gmra.mrb[44].mxu0 %vm15_vm0, %v4709_v51  ;;  %v4713_v52 = vpack.c.bf16 %v4677_v49, %v4676_v33 }
 0x25c   :  { %6565 = vmatprep.mubr.msk.bf16.mxu0 %vm15_vm0, %v4710_v3 }
 0x261   :  { %6294 = vmatmul.mubr.msk.bf16.gmra.mrb[48].mxu1 %vm15_vm0, %v8143_v6  ;;  %v4680_v6 = vld [vmem:[#allocation2 + $0x31a] sm:$0xff] }
 0x262   :  { %6297 = vmatprep.mubr.msk.bf16.mxu1 %vm15_vm0, %v8150_v28  ;;  %v4681_v28 = vld [vmem:[#allocation2 + $0x322] sm:$0xff] }
 0x263   :  { %6566 = vmatmul.mubr.msk.bf16.gmra.mrb[48].mxu0 %vm15_vm0, %v4711_v13  ;;  %v4715_v17 = vpack.c.bf16 %v4681_v28, %v4680_v6 }
 0x264   :  { %6569 = vmatprep.mubr.msk.bf16.mxu0 %vm15_vm0, %v4712_v55 }
 0x269   :  { %6298 = vmatmul.mubr.msk.bf16.gmra.mrb[52].mxu1 %vm15_vm0, %v8153_v30  ;;  %v4684_v30 = vld [vmem:[#allocation2 + $0x34a] sm:$0xff] }
 0x26a   :  { %6301 = vmatprep.mubr.msk.bf16.mxu1 %vm15_vm0, %v8160_v57  ;;  %v4685_v57 = vld [vmem:[#allocation2 + $0x352] sm:$0xff] }
 0x26b   :  { %6570 = vmatmul.mubr.msk.bf16.gmra.mrb[52].mxu0 %vm15_vm0, %v4713_v52  ;;  %v4717_v29 = vpack.c.bf16 %v4685_v57, %v4684_v30 }
 0x26c   :  { %6573 = vmatprep.mubr.msk.bf16.mxu0 %vm15_vm0, %v4714_v53 }
 0x271   :  { %6302 = vmatmul.mubr.msk.bf16.gmra.mrb[56].mxu1 %vm15_vm0, %v8163_v0 }
 0x272   :  { %6305 = vmatprep.mubr.msk.bf16.mxu1 %vm15_vm0, %v8170_v60 }
 0x273   :  { %6574 = vmatmul.mubr.msk.bf16.gmra.mrb[56].mxu0 %vm15_vm0, %v4715_v17 }
 0x274   :  { %6577 = vmatprep.mubr.msk.bf16.mxu0 %vm15_vm0, %v4716_v18 }
 0x279   :  { %6306 = vmatmul.mubr.msk.bf16.gmra.mrb[60].mxu1 %vm15_vm0, %v8173_v31 }
 0x27b   :  { %6578 = vmatmul.mubr.msk.bf16.gmra.mrb[60].mxu0 %vm15_vm0, %v4717_v29 }
 0x294   :  { %v6179_v12 = vpop.f32.mrb[0].mxu1 }
 0x295   :  { %v2054_v32 = vpop.f32.mrb[1].mxu1 }
 0x296   :  { %v6180_v19 = vpop.f32.mrb[2].mxu1 }
 0x297   :  { %v2057_v0 = vpop.f32.mrb[3].mxu1 }
 0x29c   :  { %v6183_v23 = vpop.f32.mrb[4].mxu1 }
 0x29d   :  { %v2070_v26 = vpop.f32.mrb[5].mxu1 }
 0x29e   :  { %v6184_v42 = vpop.f32.mrb[6].mxu1 }
 0x29f   :  { %v2073_v60 = vpop.f32.mrb[7].mxu1 }
 0x2a4   :  { %v6187_v39 = vpop.f32.mrb[8].mxu1 }
 0x2a5   :  { %v2086_v46 = vpop.f32.mrb[9].mxu1 }
 0x2a6   :  { %v8263_v61 = vpop.f32.mrb[10].mxu1 }
 0x2a7   :  { %v8265_v54 = vpop.f32.mrb[11].mxu1 }
 0x2ac   :  { %v8267_v58 = vpop.f32.mrb[12].mxu1 }
 0x2ad   :  { %v8269_v62 = vpop.f32.mrb[13].mxu1 }
 0x2ae   :  { %v8271_v31 = vpop.f32.mrb[14].mxu1 }
 0x2af   :  { %v8273_v15 = vpop.f32.mrb[15].mxu1 }
 0x2b4   :  { %v8275_v63 = vpop.f32.mrb[16].mxu1 }
 0x2b5   :  { %v8277_v8 = vpop.f32.mrb[17].mxu1 }
 0x2b6   :  { %v8279_v10 = vpop.f32.mrb[18].mxu1 }
 0x2b7   :  { %v8281_v9 = vpop.f32.mrb[19].mxu1 }
 0x2bc   :  { %v8283_v21 = vpop.f32.mrb[20].mxu1 }
 0x2bd   :  { %v8285_v20 = vpop.f32.mrb[21].mxu1 }
 0x2be   :  { %v8287_v22 = vpop.f32.mrb[22].mxu1 }
 0x2bf   :  { %v8289_v25 = vpop.f32.mrb[23].mxu1 }
 0x2c4   :  { %v8291_v34 = vpop.f32.mrb[24].mxu1 }
 0x2c5   :  { %v8293_v14 = vpop.f32.mrb[25].mxu1 }
 0x2c6   :  { %v8295_v48 = vpop.f32.mrb[26].mxu1 }
 0x2c7   :  { %v8297_v27 = vpop.f32.mrb[27].mxu1 }
 0x2cc   :  { %v8299_v36 = vpop.f32.mrb[28].mxu1 }
 0x2cd   :  { %v8301_v37 = vpop.f32.mrb[29].mxu1 }
 0x2ce   :  { %v8303_v38 = vpop.f32.mrb[30].mxu1 }
 0x2cf   :  { %v8305_v35 = vpop.f32.mrb[31].mxu1 }
 0x2d6   :  { %v6519_v59 = vpop.f32.mrb[0].mxu0 }
 0x2d7   :  { %v6585_v50 = vadd.f32 %v6519_v59, %v6179_v12  ;;  %v4865_v45 = vpop.f32.mrb[1].mxu0 }
 0x2d8   :  { %v6586_v24 = vadd.f32 %v4865_v45, %v2054_v32  ;;  %v6520_v7 = vpop.f32.mrb[2].mxu0 }
 0x2d9   :  { %v5193_v5 = vadd.f32 %v6585_v50, %v8310_v43  ;;  %v6587_v47 = vadd.f32 %v6520_v7, %v6180_v19  ;;  %v4868_v56 = vpop.f32.mrb[3].mxu0 }
 0x2da   :  { %v5191_v51 = vadd.f32 %v6586_v24, %v8310_v43  ;;  %v6588_v3 = vadd.f32 %v4868_v56, %v2057_v0 }
 0x2db   :  { %5258 = vst.msk [vmem:[%s8657_s3 + $0x10] sm:$0xff] %vm5255_vm2, %v5193_v5  ;;  %v5194_v44 = vadd.f32 %v6587_v47, %v8310_v43 }
 0x2dc   :  { %5256 = vst.msk [vmem:[%s8657_s3] sm:$0xff] %vm5255_vm2, %v5191_v51  ;;  %v5192_v16 = vadd.f32 %v6588_v3, %v8310_v43 }
 0x2dd   :  { %5259 = vst.msk [vmem:[%s8657_s3 + $0x18] sm:$0xff] %vm5255_vm2, %v5194_v44 }
 0x2de   :  { %5257 = vst.msk [vmem:[%s8657_s3 + $0x8] sm:$0xff] %vm5255_vm2, %v5192_v16  ;;  %v6523_v11 = vpop.f32.mrb[4].mxu0 }
 0x2df   :  { %v6589_v1 = vadd.f32 %v6523_v11, %v6183_v23  ;;  %v4881_v13 = vpop.f32.mrb[5].mxu0 }
 0x2e0   :  { %v6590_v55 = vadd.f32 %v4881_v13, %v2070_v26  ;;  %v6524_v33 = vpop.f32.mrb[6].mxu0 }
 0x2e1   :  { %v5197_v49 = vadd.f32 %v6589_v1, %v8310_v43  ;;  %v6591_v40 = vadd.f32 %v6524_v33, %v6184_v42  ;;  %v4884_v41 = vpop.f32.mrb[7].mxu0 }
 0x2e2   :  { %v5195_v52 = vadd.f32 %v6590_v55, %v8310_v43  ;;  %v6592_v53 = vadd.f32 %v4884_v41, %v2073_v60 }
 0x2e3   :  { %5262 = vst.msk [vmem:[%s8657_s3 + $0x30] sm:$0xff] %vm5255_vm2, %v5197_v49  ;;  %v5198_v6 = vadd.f32 %v6591_v40, %v8310_v43 }
 0x2e4   :  { %5260 = vst.msk [vmem:[%s8657_s3 + $0x20] sm:$0xff] %vm5255_vm2, %v5195_v52  ;;  %v5196_v28 = vadd.f32 %v6592_v53, %v8310_v43 }
 0x2e5   :  { %5263 = vst.msk [vmem:[%s8657_s3 + $0x38] sm:$0xff] %vm5255_vm2, %v5198_v6 }
 0x2e6   :  { %5261 = vst.msk [vmem:[%s8657_s3 + $0x28] sm:$0xff] %vm5255_vm2, %v5196_v28  ;;  %v6527_v2 = vpop.f32.mrb[8].mxu0 }
 0x2e7   :  { %v6593_v4 = vadd.f32 %v6527_v2, %v6187_v39  ;;  %v4897_v17 = vpop.f32.mrb[9].mxu0 }
 0x2e8   :  { %v6594_v18 = vadd.f32 %v4897_v17, %v2086_v46  ;;  %v6528_v30 = vpop.f32.mrb[10].mxu0 }
 0x2e9   :  { %v5201_v57 = vadd.f32 %v6593_v4, %v8310_v43  ;;  %v6595_v29 = vadd.f32 %v6528_v30, %v8263_v61  ;;  %v4900_v12 = vpop.f32.mrb[11].mxu0 }
 0x2ea   :  { %v5199_v32 = vadd.f32 %v6594_v18, %v8310_v43  ;;  %v6596_v19 = vadd.f32 %v4900_v12, %v8265_v54 }
 0x2eb   :  { %5266 = vst.msk [vmem:[%s8657_s3 + $0x50] sm:$0xff] %vm5255_vm2, %v5201_v57  ;;  %v5202_v0 = vadd.f32 %v6595_v29, %v8310_v43 }
 0x2ec   :  { %5264 = vst.msk [vmem:[%s8657_s3 + $0x40] sm:$0xff] %vm5255_vm2, %v5199_v32  ;;  %v5200_v23 = vadd.f32 %v6596_v19, %v8310_v43 }
 0x2ed   :  { %5267 = vst.msk [vmem:[%s8657_s3 + $0x58] sm:$0xff] %vm5255_vm2, %v5202_v0 }
 0x2ee   :  { %5265 = vst.msk [vmem:[%s8657_s3 + $0x48] sm:$0xff] %vm5255_vm2, %v5200_v23  ;;  %v6531_v26 = vpop.f32.mrb[12].mxu0 }
 0x2ef   :  { %v6597_v42 = vadd.f32 %v6531_v26, %v8267_v58  ;;  %v4913_v60 = vpop.f32.mrb[13].mxu0 }
 0x2f0   :  { %v6598_v39 = vadd.f32 %v4913_v60, %v8269_v62  ;;  %v6532_v46 = vpop.f32.mrb[14].mxu0 }
 0x2f1   :  { %v5205_v61 = vadd.f32 %v6597_v42, %v8310_v43  ;;  %v6599_v54 = vadd.f32 %v6532_v46, %v8271_v31  ;;  %v4916_v59 = vpop.f32.mrb[15].mxu0 }
 0x2f2   :  { %v5203_v50 = vadd.f32 %v6598_v39, %v8310_v43  ;;  %v6600_v45 = vadd.f32 %v4916_v59, %v8273_v15 }
 0x2f3   :  { %5270 = vst.msk [vmem:[%s8657_s3 + $0x70] sm:$0xff] %vm5255_vm2, %v5205_v61  ;;  %v5206_v58 = vadd.f32 %v6599_v54, %v8310_v43 }
 0x2f4   :  { %5268 = vst.msk [vmem:[%s8657_s3 + $0x60] sm:$0xff] %vm5255_vm2, %v5203_v50  ;;  %v5204_v62 = vadd.f32 %v6600_v45, %v8310_v43 }
 0x2f5   :  { %5271 = vst.msk [vmem:[%s8657_s3 + $0x78] sm:$0xff] %vm5255_vm2, %v5206_v58 }
 0x2f6   :  { %5269 = vst.msk [vmem:[%s8657_s3 + $0x68] sm:$0xff] %vm5255_vm2, %v5204_v62  ;;  %v6535_v31 = vpop.f32.mrb[16].mxu0 }
 0x2f7   :  { %v6601_v15 = vadd.f32 %v6535_v31, %v8275_v63  ;;  %v4929_v24 = vpop.f32.mrb[17].mxu0 }
 0x2f8   :  { %v6602_v7 = vadd.f32 %v4929_v24, %v8277_v8  ;;  %v6536_v5 = vpop.f32.mrb[18].mxu0 }
 0x2f9   :  { %v5209_v47 = vadd.f32 %v6601_v15, %v8310_v43  ;;  %v6603_v56 = vadd.f32 %v6536_v5, %v8279_v10  ;;  %v4932_v51 = vpop.f32.mrb[19].mxu0 }
 0x2fa   :  { %v5207_v3 = vadd.f32 %v6602_v7, %v8310_v43  ;;  %v6604_v44 = vadd.f32 %v4932_v51, %v8281_v9 }
 0x2fb   :  { %5274 = vst.msk [vmem:[%s8657_s3 + $0x90] sm:$0xff] %vm5255_vm2, %v5209_v47  ;;  %v5210_v63 = vadd.f32 %v6603_v56, %v8310_v43 }
 0x2fc   :  { %5272 = vst.msk [vmem:[%s8657_s3 + $0x80] sm:$0xff] %vm5255_vm2, %v5207_v3  ;;  %v5208_v8 = vadd.f32 %v6604_v44, %v8310_v43 }
 0x2fd   :  { %5275 = vst.msk [vmem:[%s8657_s3 + $0x98] sm:$0xff] %vm5255_vm2, %v5210_v63 }
 0x2fe   :  { %5273 = vst.msk [vmem:[%s8657_s3 + $0x88] sm:$0xff] %vm5255_vm2, %v5208_v8  ;;  %v6539_v10 = vpop.f32.mrb[20].mxu0 }
 0x2ff   :  { %v6605_v9 = vadd.f32 %v6539_v10, %v8283_v21  ;;  %v4945_v16 = vpop.f32.mrb[21].mxu0 }
 0x300   :  { %v6606_v11 = vadd.f32 %v4945_v16, %v8285_v20  ;;  %v6540_v1 = vpop.f32.mrb[22].mxu0 }
 0x301   :  { %v5213_v13 = vadd.f32 %v6605_v9, %v8310_v43  ;;  %v6607_v55 = vadd.f32 %v6540_v1, %v8287_v22  ;;  %v4948_v33 = vpop.f32.mrb[23].mxu0 }
 0x302   :  { %v5211_v49 = vadd.f32 %v6606_v11, %v8310_v43  ;;  %v6608_v40 = vadd.f32 %v4948_v33, %v8289_v25 }
 0x303   :  { %5278 = vst.msk [vmem:[%s8657_s3 + $0xb0] sm:$0xff] %vm5255_vm2, %v5213_v13  ;;  %v5214_v21 = vadd.f32 %v6607_v55, %v8310_v43 }
 0x304   :  { %5276 = vst.msk [vmem:[%s8657_s3 + $0xa0] sm:$0xff] %vm5255_vm2, %v5211_v49  ;;  %v5212_v20 = vadd.f32 %v6608_v40, %v8310_v43 }
 0x305   :  { %5279 = vst.msk [vmem:[%s8657_s3 + $0xb8] sm:$0xff] %vm5255_vm2, %v5214_v21 }
 0x306   :  { %5277 = vst.msk [vmem:[%s8657_s3 + $0xa8] sm:$0xff] %vm5255_vm2, %v5212_v20  ;;  %v6543_v22 = vpop.f32.mrb[24].mxu0 }
 0x307   :  { %v6609_v25 = vadd.f32 %v6543_v22, %v8291_v34  ;;  %v4961_v41 = vpop.f32.mrb[25].mxu0 }
 0x308   :  { %v6610_v52 = vadd.f32 %v4961_v41, %v8293_v14  ;;  %v6544_v53 = vpop.f32.mrb[26].mxu0 }
 0x309   :  { %v5217_v6 = vadd.f32 %v6609_v25, %v8310_v43  ;;  %v6611_v28 = vadd.f32 %v6544_v53, %v8295_v48  ;;  %v4964_v2 = vpop.f32.mrb[27].mxu0 }
 0x30a   :  { %v5215_v4 = vadd.f32 %v6610_v52, %v8310_v43  ;;  %v6612_v17 = vadd.f32 %v4964_v2, %v8297_v27 }
 0x30b   :  { %5282 = vst.msk [vmem:[%s8657_s3 + $0xd0] sm:$0xff] %vm5255_vm2, %v5217_v6  ;;  %v5218_v34 = vadd.f32 %v6611_v28, %v8310_v43 }
 0x30c   :  { %5280 = vst.msk [vmem:[%s8657_s3 + $0xc0] sm:$0xff] %vm5255_vm2, %v5215_v4  ;;  %v5216_v14 = vadd.f32 %v6612_v17, %v8310_v43 }
 0x30d   :  { %5283 = vst.msk [vmem:[%s8657_s3 + $0xd8] sm:$0xff] %vm5255_vm2, %v5218_v34 }
 0x30e   :  { %5281 = vst.msk [vmem:[%s8657_s3 + $0xc8] sm:$0xff] %vm5255_vm2, %v5216_v14  ;;  %v6547_v48 = vpop.f32.mrb[28].mxu0 }
 0x30f   :  { %v6613_v27 = vadd.f32 %v6547_v48, %v8299_v36  ;;  %v4977_v18 = vpop.f32.mrb[29].mxu0 }
 0x310   :  { %v6614_v30 = vadd.f32 %v4977_v18, %v8301_v37  ;;  %v6548_v57 = vpop.f32.mrb[30].mxu0 }
 0x311   :  { %v5221_v29 = vadd.f32 %v6613_v27, %v8310_v43  ;;  %v6615_v12 = vadd.f32 %v6548_v57, %v8303_v38  ;;  %v4980_v32 = vpop.f32.mrb[31].mxu0 }
 0x312   :  { %v5219_v19 = vadd.f32 %v6614_v30, %v8310_v43  ;;  %v6616_v0 = vadd.f32 %v4980_v32, %v8305_v35 }
 0x313   :  { %5286 = vst.msk [vmem:[%s8657_s3 + $0xf0] sm:$0xff] %vm5255_vm2, %v5221_v29  ;;  %v5222_v36 = vadd.f32 %v6615_v12, %v8310_v43 }
 0x314   :  { %v6279_v23 = vpop.f32.mrb[32].mxu1  ;;  %5284 = vst.msk [vmem:[%s8657_s3 + $0xe0] sm:$0xff] %vm5255_vm2, %v5219_v19  ;;  %v5220_v37 = vadd.f32 %v6616_v0, %v8310_v43 }
 0x315   :  { %v2744_v38 = vpop.f32.mrb[33].mxu1  ;;  %5287 = vst.msk [vmem:[%s8657_s3 + $0xf8] sm:$0xff] %vm5255_vm2, %v5222_v36 }
 0x316   :  { %v6280_v35 = vpop.f32.mrb[34].mxu1  ;;  %5285 = vst.msk [vmem:[%s8657_s3 + $0xe8] sm:$0xff] %vm5255_vm2, %v5220_v37  ;;  %v6551_v26 = vpop.f32.mrb[32].mxu0 }
 0x317   :  { %v2747_v42 = vpop.f32.mrb[35].mxu1  ;;  %v6617_v60 = vadd.f32 %v6551_v26, %v6279_v23  ;;  %v4993_v39 = vpop.f32.mrb[33].mxu0 }
 0x318   :  { %v6618_v46 = vadd.f32 %v4993_v39, %v2744_v38  ;;  %v6552_v61 = vpop.f32.mrb[34].mxu0 }
 0x319   :  { %v5225_v54 = vadd.f32 %v6617_v60, %v8310_v43  ;;  %v6619_v59 = vadd.f32 %v6552_v61, %v6280_v35  ;;  %v4996_v50 = vpop.f32.mrb[35].mxu0 }
 0x31a   :  { %v5223_v45 = vadd.f32 %v6618_v46, %v8310_v43  ;;  %v6620_v58 = vadd.f32 %v4996_v50, %v2747_v42 }
 0x31b   :  { %5290 = vst.msk [vmem:[%s8657_s3 + $0x110] sm:$0xff] %vm5255_vm2, %v5225_v54  ;;  %v5226_v62 = vadd.f32 %v6619_v59, %v8310_v43 }
 0x31c   :  { %v6283_v31 = vpop.f32.mrb[36].mxu1  ;;  %5288 = vst.msk [vmem:[%s8657_s3 + $0x100] sm:$0xff] %vm5255_vm2, %v5223_v45  ;;  %v5224_v15 = vadd.f32 %v6620_v58, %v8310_v43 }
 0x31d   :  { %v2760_v24 = vpop.f32.mrb[37].mxu1  ;;  %5291 = vst.msk [vmem:[%s8657_s3 + $0x118] sm:$0xff] %vm5255_vm2, %v5226_v62 }
 0x31e   :  { %v6284_v7 = vpop.f32.mrb[38].mxu1  ;;  %5289 = vst.msk [vmem:[%s8657_s3 + $0x108] sm:$0xff] %vm5255_vm2, %v5224_v15  ;;  %v6555_v5 = vpop.f32.mrb[36].mxu0 }
 0x31f   :  { %v2763_v47 = vpop.f32.mrb[39].mxu1  ;;  %v6621_v56 = vadd.f32 %v6555_v5, %v6283_v31  ;;  %v5009_v51 = vpop.f32.mrb[37].mxu0 }
 0x320   :  { %v6622_v3 = vadd.f32 %v5009_v51, %v2760_v24  ;;  %v6556_v44 = vpop.f32.mrb[38].mxu0 }
 0x321   :  { %v5229_v63 = vadd.f32 %v6621_v56, %v8310_v43  ;;  %v6623_v8 = vadd.f32 %v6556_v44, %v6284_v7  ;;  %v5012_v10 = vpop.f32.mrb[39].mxu0 }
 0x322   :  { %v5227_v9 = vadd.f32 %v6622_v3, %v8310_v43  ;;  %v6624_v16 = vadd.f32 %v5012_v10, %v2763_v47 }
 0x323   :  { %5294 = vst.msk [vmem:[%s8657_s3 + $0x130] sm:$0xff] %vm5255_vm2, %v5229_v63  ;;  %v5230_v11 = vadd.f32 %v6623_v8, %v8310_v43 }
 0x324   :  { %v6287_v1 = vpop.f32.mrb[40].mxu1  ;;  %5292 = vst.msk [vmem:[%s8657_s3 + $0x120] sm:$0xff] %vm5255_vm2, %v5227_v9  ;;  %v5228_v13 = vadd.f32 %v6624_v16, %v8310_v43 }
 0x325   :  { %v2776_v55 = vpop.f32.mrb[41].mxu1  ;;  %5295 = vst.msk [vmem:[%s8657_s3 + $0x138] sm:$0xff] %vm5255_vm2, %v5230_v11 }
 0x326   :  { %v6288_v33 = vpop.f32.mrb[42].mxu1  ;;  %5293 = vst.msk [vmem:[%s8657_s3 + $0x128] sm:$0xff] %vm5255_vm2, %v5228_v13  ;;  %v6559_v49 = vpop.f32.mrb[40].mxu0 }
 0x327   :  { %v2779_v40 = vpop.f32.mrb[43].mxu1  ;;  %v6625_v21 = vadd.f32 %v6559_v49, %v6287_v1  ;;  %v5025_v20 = vpop.f32.mrb[41].mxu0 }
 0x328   :  { %v6626_v22 = vadd.f32 %v5025_v20, %v2776_v55  ;;  %v6560_v25 = vpop.f32.mrb[42].mxu0 }
 0x329   :  { %v5233_v41 = vadd.f32 %v6625_v21, %v8310_v43  ;;  %v6627_v52 = vadd.f32 %v6560_v25, %v6288_v33  ;;  %v5028_v53 = vpop.f32.mrb[43].mxu0 }
 0x32a   :  { %v5231_v6 = vadd.f32 %v6626_v22, %v8310_v43  ;;  %v6628_v28 = vadd.f32 %v5028_v53, %v2779_v40 }
 0x32b   :  { %5298 = vst.msk [vmem:[%s8657_s3 + $0x150] sm:$0xff] %vm5255_vm2, %v5233_v41  ;;  %v5234_v2 = vadd.f32 %v6627_v52, %v8310_v43 }
 0x32c   :  { %v6291_v4 = vpop.f32.mrb[44].mxu1  ;;  %5296 = vst.msk [vmem:[%s8657_s3 + $0x140] sm:$0xff] %vm5255_vm2, %v5231_v6  ;;  %v5232_v17 = vadd.f32 %v6628_v28, %v8310_v43 }
 0x32d   :  { %v2792_v34 = vpop.f32.mrb[45].mxu1  ;;  %5299 = vst.msk [vmem:[%s8657_s3 + $0x158] sm:$0xff] %vm5255_vm2, %v5234_v2 }
 0x32e   :  { %v6292_v14 = vpop.f32.mrb[46].mxu1  ;;  %5297 = vst.msk [vmem:[%s8657_s3 + $0x148] sm:$0xff] %vm5255_vm2, %v5232_v17  ;;  %v6563_v48 = vpop.f32.mrb[44].mxu0 }
 0x32f   :  { %v2795_v27 = vpop.f32.mrb[47].mxu1  ;;  %v6629_v18 = vadd.f32 %v6563_v48, %v6291_v4  ;;  %v5041_v30 = vpop.f32.mrb[45].mxu0 }
 0x330   :  { %v6630_v57 = vadd.f32 %v5041_v30, %v2792_v34  ;;  %v6564_v29 = vpop.f32.mrb[46].mxu0 }
 0x331   :  { %v5237_v12 = vadd.f32 %v6629_v18, %v8310_v43  ;;  %v6631_v32 = vadd.f32 %v6564_v29, %v6292_v14  ;;  %v5044_v19 = vpop.f32.mrb[47].mxu0 }
 0x332   :  { %v5235_v0 = vadd.f32 %v6630_v57, %v8310_v43  ;;  %v6632_v36 = vadd.f32 %v5044_v19, %v2795_v27 }
 0x333   :  { %5302 = vst.msk [vmem:[%s8657_s3 + $0x170] sm:$0xff] %vm5255_vm2, %v5237_v12  ;;  %v5238_v23 = vadd.f32 %v6631_v32, %v8310_v43 }
 0x334   :  { %v6295_v37 = vpop.f32.mrb[48].mxu1  ;;  %5300 = vst.msk [vmem:[%s8657_s3 + $0x160] sm:$0xff] %vm5255_vm2, %v5235_v0  ;;  %v5236_v38 = vadd.f32 %v6632_v36, %v8310_v43 }
 0x335   :  { %v2808_v35 = vpop.f32.mrb[49].mxu1  ;;  %5303 = vst.msk [vmem:[%s8657_s3 + $0x178] sm:$0xff] %vm5255_vm2, %v5238_v23 }
 0x336   :  { %v6296_v26 = vpop.f32.mrb[50].mxu1  ;;  %5301 = vst.msk [vmem:[%s8657_s3 + $0x168] sm:$0xff] %vm5255_vm2, %v5236_v38  ;;  %v6567_v42 = vpop.f32.mrb[48].mxu0 }
 0x337   :  { %v2811_v60 = vpop.f32.mrb[51].mxu1  ;;  %v6633_v39 = vadd.f32 %v6567_v42, %v6295_v37  ;;  %v5057_v46 = vpop.f32.mrb[49].mxu0 }
 0x338   :  { %v6634_v61 = vadd.f32 %v5057_v46, %v2808_v35  ;;  %v6568_v54 = vpop.f32.mrb[50].mxu0 }
 0x339   :  { %v5241_v59 = vadd.f32 %v6633_v39, %v8310_v43  ;;  %v6635_v50 = vadd.f32 %v6568_v54, %v6296_v26  ;;  %v5060_v45 = vpop.f32.mrb[51].mxu0 }
 0x33a   :  { %v5239_v58 = vadd.f32 %v6634_v61, %v8310_v43  ;;  %v6636_v62 = vadd.f32 %v5060_v45, %v2811_v60 }
 0x33b   :  { %5306 = vst.msk [vmem:[%s8657_s3 + $0x190] sm:$0xff] %vm5255_vm2, %v5241_v59  ;;  %v5242_v31 = vadd.f32 %v6635_v50, %v8310_v43 }
 0x33c   :  { %v6299_v15 = vpop.f32.mrb[52].mxu1  ;;  %5304 = vst.msk [vmem:[%s8657_s3 + $0x180] sm:$0xff] %vm5255_vm2, %v5239_v58  ;;  %v5240_v24 = vadd.f32 %v6636_v62, %v8310_v43 }
 0x33d   :  { %v2824_v7 = vpop.f32.mrb[53].mxu1  ;;  %5307 = vst.msk [vmem:[%s8657_s3 + $0x198] sm:$0xff] %vm5255_vm2, %v5242_v31 }
 0x33e   :  { %v6300_v5 = vpop.f32.mrb[54].mxu1  ;;  %5305 = vst.msk [vmem:[%s8657_s3 + $0x188] sm:$0xff] %vm5255_vm2, %v5240_v24  ;;  %v6571_v47 = vpop.f32.mrb[52].mxu0 }
 0x33f   :  { %v2827_v56 = vpop.f32.mrb[55].mxu1  ;;  %v6637_v51 = vadd.f32 %v6571_v47, %v6299_v15  ;;  %v5073_v3 = vpop.f32.mrb[53].mxu0 }
 0x340   :  { %v6638_v44 = vadd.f32 %v5073_v3, %v2824_v7  ;;  %v6572_v63 = vpop.f32.mrb[54].mxu0 }
 0x341   :  { %v5245_v8 = vadd.f32 %v6637_v51, %v8310_v43  ;;  %v6639_v10 = vadd.f32 %v6572_v63, %v6300_v5  ;;  %v5076_v9 = vpop.f32.mrb[55].mxu0 }
 0x342   :  { %v5243_v16 = vadd.f32 %v6638_v44, %v8310_v43  ;;  %v6640_v11 = vadd.f32 %v5076_v9, %v2827_v56 }
 0x343   :  { %5310 = vst.msk [vmem:[%s8657_s3 + $0x1b0] sm:$0xff] %vm5255_vm2, %v5245_v8  ;;  %v5246_v1 = vadd.f32 %v6639_v10, %v8310_v43 }
 0x344   :  { %v6303_v13 = vpop.f32.mrb[56].mxu1  ;;  %5308 = vst.msk [vmem:[%s8657_s3 + $0x1a0] sm:$0xff] %vm5255_vm2, %v5243_v16  ;;  %v5244_v55 = vadd.f32 %v6640_v11, %v8310_v43 }
 0x345   :  { %v2840_v33 = vpop.f32.mrb[57].mxu1  ;;  %5311 = vst.msk [vmem:[%s8657_s3 + $0x1b8] sm:$0xff] %vm5255_vm2, %v5246_v1 }
 0x346   :  { %v6304_v49 = vpop.f32.mrb[58].mxu1  ;;  %5309 = vst.msk [vmem:[%s8657_s3 + $0x1a8] sm:$0xff] %vm5255_vm2, %v5244_v55  ;;  %v6575_v40 = vpop.f32.mrb[56].mxu0 }
 0x347   :  { %v2843_v21 = vpop.f32.mrb[59].mxu1  ;;  %v6641_v20 = vadd.f32 %v6575_v40, %v6303_v13  ;;  %v5089_v22 = vpop.f32.mrb[57].mxu0 }
 0x348   :  { %v6642_v25 = vadd.f32 %v5089_v22, %v2840_v33  ;;  %v6576_v41 = vpop.f32.mrb[58].mxu0 }
 0x349   :  { %v5249_v52 = vadd.f32 %v6641_v20, %v8310_v43  ;;  %v6643_v53 = vadd.f32 %v6576_v41, %v6304_v49  ;;  %v5092_v6 = vpop.f32.mrb[59].mxu0 }
 0x34a   :  { %v5247_v28 = vadd.f32 %v6642_v25, %v8310_v43  ;;  %v6644_v2 = vadd.f32 %v5092_v6, %v2843_v21 }
 0x34b   :  { %5314 = vst.msk [vmem:[%s8657_s3 + $0x1d0] sm:$0xff] %vm5255_vm2, %v5249_v52  ;;  %v5250_v4 = vadd.f32 %v6643_v53, %v8310_v43 }
 0x34c   :  { %v6307_v17 = vpop.f32.mrb[60].mxu1  ;;  %5312 = vst.msk [vmem:[%s8657_s3 + $0x1c0] sm:$0xff] %vm5255_vm2, %v5247_v28  ;;  %v5248_v34 = vadd.f32 %v6644_v2, %v8310_v43 }
 0x34d   :  { %v2856_v14 = vpop.f32.mrb[61].mxu1  ;;  %5315 = vst.msk [vmem:[%s8657_s3 + $0x1d8] sm:$0xff] %vm5255_vm2, %v5250_v4 }
 0x34e   :  { %v6308_v48 = vpop.f32.mrb[62].mxu1  ;;  %5313 = vst.msk [vmem:[%s8657_s3 + $0x1c8] sm:$0xff] %vm5255_vm2, %v5248_v34  ;;  %v6579_v27 = vpop.f32.mrb[60].mxu0 }
 0x34f   :  { %v2859_v18 = vpop.f32.mrb[63].mxu1  ;;  %v6645_v30 = vadd.f32 %v6579_v27, %v6307_v17  ;;  %v5105_v57 = vpop.f32.mrb[61].mxu0 }
 0x350   :  { %v6646_v29 = vadd.f32 %v5105_v57, %v2856_v14  ;;  %v6580_v12 = vpop.f32.mrb[62].mxu0 }
 0x351   :  { %v5253_v32 = vadd.f32 %v6645_v30, %v8310_v43  ;;  %v6647_v19 = vadd.f32 %v6580_v12, %v6308_v48  ;;  %v5108_v0 = vpop.f32.mrb[63].mxu0 }
 0x352   :  { %v5251_v36 = vadd.f32 %v6646_v29, %v8310_v43  ;;  %v6648_v23 = vadd.f32 %v5108_v0, %v2859_v18 }
 0x353   :  { %5318 = vst.msk [vmem:[%s8657_s3 + $0x1f0] sm:$0xff] %vm5255_vm2, %v5253_v32  ;;  %v5254_v37 = vadd.f32 %v6647_v19, %v8310_v43 }
 0x354   :  { %5316 = vst.msk [vmem:[%s8657_s3 + $0x1e0] sm:$0xff] %vm5255_vm2, %v5251_v36  ;;  %v5252_v38 = vadd.f32 %v6648_v23, %v8310_v43 }
 0x355   :  { %5319 = vst.msk [vmem:[%s8657_s3 + $0x1f8] sm:$0xff] %vm5255_vm2, %v5254_v37 }
 0x356   :  { %5317 = vst.msk [vmem:[%s8657_s3 + $0x1e8] sm:$0xff] %vm5255_vm2, %v5252_v38 }

// kernel: single_network_forward.2
= control target key start
LH: loop header
LB: loop body
LE: loop exit
PB: predicated region body
PF: predicated region fallthrough
CT: control target
= control target key end

     0   :  { %vm323_vm0 = vcmask 1040384   ;;  %vm324_vm1 = vcmask 1041408   ;;  %vm51_vm2 = vcmask 23552   ;;  %v15244_v1 = vmov 65535   ;;  %s18620_s1 = inlined_call_operand.vmem [shape: bf16[9,3,32], index: 1, kind: input, shape index: {}]   ;;  %s18621_s0 = inlined_call_operand.vmem [shape: f32[2,8,8,3], index: 0, kind: input, shape index: {}]   ;;  %s18622_s3 = inlined_call_operand.vmem [shape: bf16[9,32,32], index: 3, kind: input, shape index: {}]   ;;  %s18623_s2 = inlined_call_operand.vmem [shape: f32[1,32], index: 2, kind: input, shape index: {}]   ;;  %s18624_s5 = inlined_call_operand.vmem [shape: bf16[9,32,32], index: 5, kind: input, shape index: {}]   ;;  %s18625_s4 = inlined_call_operand.vmem [shape: f32[1,32], index: 4, kind: input, shape index: {}]   ;;  %s18626_s7 = inlined_call_operand.vmem [shape: bf16[9,32,32], index: 7, kind: input, shape index: {}]   ;;  %s18627_s6 = inlined_call_operand.vmem [shape: f32[1,32], index: 6, kind: input, shape index: {}]   ;;  %s18628_s9 = inlined_call_operand.vmem [shape: bf16[9,32,32], index: 9, kind: input, shape index: {}]   ;;  %s18629_s8 = inlined_call_operand.vmem [shape: f32[1,32], index: 8, kind: input, shape index: {}]   ;;  %s18630_s11 = inlined_call_operand.vmem [shape: bf16[9,32,32], index: 11, kind: input, shape index: {}]   ;;  %s18631_s10 = inlined_call_operand.vmem [shape: f32[1,32], index: 10, kind: input, shape index: {}]   ;;  %s18632_s13 = inlined_call_operand.vmem [shape: bf16[9,32,128], index: 13, kind: input, shape index: {}]   ;;  %s18633_s12 = inlined_call_operand.vmem [shape: f32[1,32], index: 12, kind: input, shape index: {}]   ;;  %s18634_s14 = inlined_call_operand.vmem [shape: f32[1,128], index: 14, kind: input, shape index: {}]   ;;  %s18635_s15 = inlined_call_operand.vmem [shape: f32[2,8,8,128], index: 15, kind: output, shape index: {}]  }
   0x1   :  { %v11554_v0 = vld [vmem:[%s18620_s1 + $0x2] sm:$0x3]  ;;  %v325_v2 = vsel %vm323_vm0, 4294967295, %v15244_v1  ;;  %v11589_v3 = vld [vmem:[%s18620_s1 + $0x8] sm:$0x3]  ;;  %v15245_v5 = vmov 0.0  }
   0x2   :  { %v15332_v4 = vsel %vm324_vm1, %v325_v2, 0  ;;  %52 = vst.msk [vmem:[#allocation2] sm:$0xff] %vm51_vm2, %v15245_v5  ;;  %vm53_vm3 = vcmask 17408   ;;  %55 = vst.msk [vmem:[#allocation2 + $0x10] sm:$0xff] %vm51_vm2, %v15245_v5  ;;  %v215_v6 = vld [vmem:[%s18621_s0] sm:$0xff]  ;;  %v216_v8 = vld [vmem:[%s18621_s0 + $0x8] sm:$0xff] }
   0x3   :  { %57 = vst.msk [vmem:[#allocation2 + $0x20] sm:$0xff] %vm51_vm2, %v15245_v5  ;;  %59 = vst.msk [vmem:[#allocation2 + $0x30] sm:$0xff] %vm51_vm2, %v15245_v5  ;;  %v272_v7 = vld [vmem:[%s18620_s1] sm:$0x3]  ;;  %v328_v9 = vand.u32 %v11554_v0, %v15332_v4  ;;  %v15385_v10 = vand.u32 %v11589_v3, %v15332_v4  ;;  %v11598_v12 = vld [vmem:[%s18620_s1 + $0xa] sm:$0x3] }
   0x4   :  { %61 = vst.msk [vmem:[#allocation2 + $0x40] sm:$0xff] %vm51_vm2, %v15245_v5  ;;  %63 = vst.msk [vmem:[#allocation2 + $0x50] sm:$0xff] %vm51_vm2, %v15245_v5  ;;  %v15428_v11 = vand.u32 %v15332_v4, %v272_v7  ;;  %v217_v13 = vld [vmem:[%s18621_s0 + $0x10] sm:$0xff]  ;;  %v218_v14 = vld [vmem:[%s18621_s0 + $0x18] sm:$0xff]  ;;  %v1100_v15 = vand.u32 %v11598_v12, %v15332_v4  ;;  %vm93_vm4 = vcmask 261120   ;;  %vm95_vm5 = vcmask 254976  }
   0x5   :  { %65 = vst.msk [vmem:[#allocation2 + $0x60] sm:$0xff] %vm51_vm2, %v15245_v5  ;;  %67 = vst.msk [vmem:[#allocation2 + $0x70] sm:$0xff] %vm51_vm2, %v15245_v5  ;;  %v219_v16 = vld [vmem:[%s18621_s0 + $0x20] sm:$0xff]  ;;  %v220_v17 = vld [vmem:[%s18621_s0 + $0x28] sm:$0xff]  ;;  %12994 = vmatprep.subr.bf16.mxu1 %v328_v9  ;;  %13066 = vmatprep.subr.bf16.mxu0 %v15385_v10 }
   0x6   :  { %69 = vst.msk [vmem:[#allocation2 + $0x80] sm:$0xff] %vm51_vm2, %v15245_v5  ;;  %71 = vst.msk [vmem:[#allocation2 + $0x90] sm:$0xff] %vm51_vm2, %v15245_v5  ;;  %v221_v18 = vld [vmem:[%s18621_s0 + $0x30] sm:$0xff]  ;;  %v222_v19 = vld [vmem:[%s18621_s0 + $0x38] sm:$0xff]  ;;  %12995 = vmatpush3.bf16.msra.mxu1 %v328_v9  ;;  %13067 = vmatpush3.bf16.msra.mxu0 %v15385_v10 }
   0x7   :  { %73 = vst.msk [vmem:[#allocation2 + $0xa0] sm:$0xff] %vm51_vm2, %v15245_v5  ;;  %75 = vst.msk [vmem:[#allocation2 + $0xb0] sm:$0xff] %vm51_vm2, %v15245_v5  ;;  %v223_v20 = vld [vmem:[%s18621_s0 + $0x40] sm:$0xff]  ;;  %v224_v21 = vld [vmem:[%s18621_s0 + $0x48] sm:$0xff]  ;;  %13012 = vmatprep.subr.bf16.mxu1 %v15428_v11  ;;  %13084 = vmatprep.subr.bf16.mxu0 %v1100_v15 }
   0x8   :  { %77 = vst.msk [vmem:[#allocation2 + $0xc0] sm:$0xff] %vm51_vm2, %v15245_v5  ;;  %79 = vst.msk [vmem:[#allocation2 + $0xd0] sm:$0xff] %vm51_vm2, %v15245_v5  ;;  %v225_v22 = vld [vmem:[%s18621_s0 + $0x50] sm:$0xff]  ;;  %v226_v23 = vld [vmem:[%s18621_s0 + $0x58] sm:$0xff] }
   0x9   :  { %81 = vst.msk [vmem:[#allocation2 + $0xe0] sm:$0xff] %vm51_vm2, %v15245_v5  ;;  %83 = vst.msk [vmem:[#allocation2 + $0xf0] sm:$0xff] %vm51_vm2, %v15245_v5  ;;  %v227_v24 = vld [vmem:[%s18621_s0 + $0x60] sm:$0xff]  ;;  %v228_v25 = vld [vmem:[%s18621_s0 + $0x68] sm:$0xff] }
   0xa   :  { %85 = vst.msk [vmem:[#allocation2 + $0x100] sm:$0xff] %vm51_vm2, %v15245_v5  ;;  %87 = vst.msk [vmem:[#allocation2 + $0x110] sm:$0xff] %vm51_vm2, %v15245_v5  ;;  %v229_v26 = vld [vmem:[%s18621_s0 + $0x70] sm:$0xff]  ;;  %v230_v27 = vld [vmem:[%s18621_s0 + $0x78] sm:$0xff] }
   0xb   :  { %89 = vst.msk [vmem:[#allocation2 + $0x120] sm:$0xff] %vm51_vm2, %v15245_v5  ;;  %91 = vst.msk [vmem:[#allocation2 + $0x130] sm:$0xff] %vm51_vm2, %v15245_v5  ;;  %v11607_v29 = vld [vmem:[%s18620_s1 + $0xc] sm:$0x3]  ;;  %v11571_v30 = vld [vmem:[%s18620_s1 + $0x4] sm:$0x3] }
   0xc   :  { %54 = vst.msk [vmem:[#allocation2 + $0x8] sm:$0x3] %vm53_vm3, %v15245_v5  ;;  %56 = vst.msk [vmem:[#allocation2 + $0x18] sm:$0x3] %vm53_vm3, %v15245_v5  ;;  %v1267_v44 = vand.u32 %v11607_v29, %v15332_v4  ;;  %v15513_v46 = vand.u32 %v11571_v30, %v15332_v4  ;;  %v11616_v3 = vld [vmem:[%s18620_s1 + $0xe] sm:$0x3] }
   0xd   :  { %58 = vst.msk [vmem:[#allocation2 + $0x28] sm:$0x3] %vm53_vm3, %v15245_v5  ;;  %60 = vst.msk [vmem:[#allocation2 + $0x38] sm:$0x3] %vm53_vm3, %v15245_v5  ;;  %v248_v12 = vld [vmem:[#allocation2] sm:$0xff] }
   0xe   :  { %62 = vst.msk [vmem:[#allocation2 + $0x48] sm:$0x3] %vm53_vm3, %v15245_v5  ;;  %64 = vst.msk [vmem:[#allocation2 + $0x58] sm:$0x3] %vm53_vm3, %v15245_v5 }
   0xf   :  { %66 = vst.msk [vmem:[#allocation2 + $0x68] sm:$0x3] %vm53_vm3, %v15245_v5  ;;  %68 = vst.msk [vmem:[#allocation2 + $0x78] sm:$0x3] %vm53_vm3, %v15245_v5 }
  0x10   :  { %70 = vst.msk [vmem:[#allocation2 + $0x88] sm:$0x3] %vm53_vm3, %v15245_v5  ;;  %72 = vst.msk [vmem:[#allocation2 + $0x98] sm:$0x3] %vm53_vm3, %v15245_v5 }
  0x11   :  { %74 = vst.msk [vmem:[#allocation2 + $0xa8] sm:$0x3] %vm53_vm3, %v15245_v5  ;;  %76 = vst.msk [vmem:[#allocation2 + $0xb8] sm:$0x3] %vm53_vm3, %v15245_v5 }
  0x12   :  { %78 = vst.msk [vmem:[#allocation2 + $0xc8] sm:$0x3] %vm53_vm3, %v15245_v5  ;;  %80 = vst.msk [vmem:[#allocation2 + $0xd8] sm:$0x3] %vm53_vm3, %v15245_v5 }
  0x13   :  { %82 = vst.msk [vmem:[#allocation2 + $0xe8] sm:$0x3] %vm53_vm3, %v15245_v5  ;;  %84 = vst.msk [vmem:[#allocation2 + $0xf8] sm:$0x3] %vm53_vm3, %v15245_v5  ;;  %v273_v28 = vld [vmem:[#allocation2 + $0x1] sm:$0xff] }
  0x14   :  { %86 = vst.msk [vmem:[#allocation2 + $0x108] sm:$0x3] %vm53_vm3, %v15245_v5  ;;  %88 = vst.msk [vmem:[#allocation2 + $0x118] sm:$0x3] %vm53_vm3, %v15245_v5 }
  0x15   :  { %90 = vst.msk [vmem:[#allocation2 + $0x128] sm:$0x3] %vm53_vm3, %v15245_v5  ;;  %92 = vst.msk [vmem:[#allocation2 + $0x138] sm:$0x3] %vm53_vm3, %v15245_v5 }
  0x16   :  { %232 = vst.msk [vmem:[#allocation2 + $0x11] sm:$0xff] %vm51_vm2, %v215_v6  ;;  %233 = vst.msk [vmem:[#allocation2 + $0x21] sm:$0xff] %vm51_vm2, %v216_v8 }
  0x17   :  { %234 = vst.msk [vmem:[#allocation2 + $0x31] sm:$0xff] %vm51_vm2, %v217_v13  ;;  %235 = vst.msk [vmem:[#allocation2 + $0x41] sm:$0xff] %vm51_vm2, %v218_v14 }
  0x18   :  { %236 = vst.msk [vmem:[#allocation2 + $0x51] sm:$0xff] %vm51_vm2, %v219_v16  ;;  %237 = vst.msk [vmem:[#allocation2 + $0x61] sm:$0xff] %vm51_vm2, %v220_v17  ;;  %v281_v49 = vld [vmem:[#allocation2 + $0xa1] sm:$0xff] }
  0x19   :  { %238 = vst.msk [vmem:[#allocation2 + $0x71] sm:$0xff] %vm51_vm2, %v221_v18  ;;  %239 = vst.msk [vmem:[#allocation2 + $0x81] sm:$0xff] %vm51_vm2, %v222_v19 }
  0x1a   :  { %240 = vst.msk [vmem:[#allocation2 + $0xb1] sm:$0xff] %vm51_vm2, %v223_v20  ;;  %241 = vst.msk [vmem:[#allocation2 + $0xc1] sm:$0xff] %vm51_vm2, %v224_v21 }
  0x1b   :  { %242 = vst.msk [vmem:[#allocation2 + $0xd1] sm:$0xff] %vm51_vm2, %v225_v22  ;;  %243 = vst.msk [vmem:[#allocation2 + $0xe1] sm:$0xff] %vm51_vm2, %v226_v23 }
  0x1c   :  { %244 = vst.msk [vmem:[#allocation2 + $0xf1] sm:$0xff] %vm51_vm2, %v227_v24  ;;  %245 = vst.msk [vmem:[#allocation2 + $0x101] sm:$0xff] %vm51_vm2, %v228_v25 }
  0x1d   :  { %246 = vst.msk [vmem:[#allocation2 + $0x111] sm:$0xff] %vm51_vm2, %v229_v26  ;;  %247 = vst.msk [vmem:[#allocation2 + $0x121] sm:$0xff] %vm51_vm2, %v230_v27  ;;  %v274_v31 = vld [vmem:[#allocation2 + $0x11] sm:$0xff]  ;;  %v884_v32 = vld [vmem:[#allocation2 + $0x21] sm:$0xff] }
  0x1e   :  { %v276_v33 = vld [vmem:[#allocation2 + $0x31] sm:$0xff]  ;;  %v289_v34 = vpack.c.bf16 %v274_v31, %v273_v28  ;;  %v899_v35 = vpack.c.bf16 %v884_v32, %v274_v31  ;;  %v886_v37 = vld [vmem:[#allocation2 + $0x41] sm:$0xff]  ;;  %101 = vst.msk [vmem:[#allocation3 + $0x30] sm:$0xff] %vm93_vm4, %v15245_v5  ;;  %141 = vst.msk [vmem:[#allocation4 + $0x30] sm:$0xff] %vm93_vm4, %v15245_v5 }
  0x1f   :  { %v15501_v36 = vpack.c.bf16 %v276_v33, %v884_v32  ;;  %v278_v38 = vld [vmem:[#allocation2 + $0x51] sm:$0xff]  ;;  %v888_v39 = vld [vmem:[#allocation2 + $0x61] sm:$0xff]  ;;  %v900_v40 = vpack.c.bf16 %v886_v37, %v276_v33  ;;  %102 = vst.msk [vmem:[#allocation3 + $0x38] sm:$0x3] %vm95_vm5, %v15245_v5  ;;  %142 = vst.msk [vmem:[#allocation4 + $0x38] sm:$0x3] %vm95_vm5, %v15245_v5 }
  0x20   :  { %v15503_v41 = vpack.c.bf16 %v278_v38, %v886_v37  ;;  %v901_v42 = vpack.c.bf16 %v888_v39, %v278_v38  ;;  %12996 = vmatprep.mubr.msk.bf16.mxu1 %vm51_vm2, %v289_v34  ;;  %13068 = vmatprep.mubr.msk.bf16.mxu0 %vm51_vm2, %v899_v35  ;;  %v280_v47 = vld [vmem:[#allocation2 + $0x71] sm:$0xff]  ;;  %v15518_v48 = vld [vmem:[#allocation2 + $0x81] sm:$0xff]  ;;  %97 = vst.msk [vmem:[#allocation3 + $0x10] sm:$0xff] %vm93_vm4, %v15245_v5  ;;  %99 = vst.msk [vmem:[#allocation3 + $0x20] sm:$0xff] %vm93_vm4, %v15245_v5 }
  0x21   :  { %v15507_v43 = vld [vmem:[#allocation2 + $0xb1] sm:$0xff]  ;;  %v15510_v45 = vld [vmem:[#allocation2 + $0xc1] sm:$0xff]  ;;  %12997 = vmatmul.mubr.msk.bf16.vlgmr.msra.gmra.mrb[0].mxu1 %vm51_vm2, %v15501_v36  ;;  %13069 = vmatmul.mubr.msk.bf16.vlgmr.msra.gmra.mrb[0].mxu0 %vm51_vm2, %v900_v40  ;;  %v15543_v59 = vpack.c.bf16 %v280_v47, %v888_v39  ;;  %v902_v60 = vpack.c.bf16 %v15518_v48, %v280_v47  ;;  %98 = vst.msk [vmem:[#allocation3 + $0x18] sm:$0x3] %vm95_vm5, %v15245_v5  ;;  %100 = vst.msk [vmem:[#allocation3 + $0x28] sm:$0x3] %vm95_vm5, %v15245_v5 }
  0x22   :  { %v903_v50 = vpack.c.bf16 %v15510_v45, %v15507_v43  ;;  %13013 = vmatpush3.bf16.msra.mxu1 %v15428_v11  ;;  %13085 = vmatpush3.bf16.msra.mxu0 %v1100_v15  ;;  %v15523_v51 = vld [vmem:[#allocation2 + $0x12] sm:$0xff]  ;;  %v15527_v53 = vld [vmem:[#allocation2 + $0xe1] sm:$0xff]  ;;  %v293_v61 = vpack.c.bf16 %v15507_v43, %v281_v49  ;;  %v15578_v11 = vand.u32 %v11616_v3, %v15332_v4 }
  0x23   :  { %v15525_v52 = vld [vmem:[#allocation2 + $0xd1] sm:$0xff]  ;;  %13000 = vmatprep.mubr.msk.bf16.mxu1 %vm51_vm2, %v15503_v41  ;;  %13072 = vmatprep.mubr.msk.bf16.mxu0 %vm51_vm2, %v901_v42  ;;  %v15532_v54 = vld [vmem:[#allocation2 + $0x22] sm:$0xff]  ;;  %103 = vst.msk [vmem:[#allocation3 + $0x40] sm:$0xff] %vm93_vm4, %v15245_v5  ;;  %105 = vst.msk [vmem:[#allocation3 + $0x50] sm:$0xff] %vm93_vm4, %v15245_v5 }
  0x24   :  { %v15534_v55 = vld [vmem:[#allocation2 + $0xf1] sm:$0xff]  ;;  %v15536_v56 = vld [vmem:[#allocation2 + $0x101] sm:$0xff]  ;;  %v904_v57 = vpack.c.bf16 %v15527_v53, %v15525_v52  ;;  %13102 = vmatprep.subr.bf16.mxu0 %v1267_v44  ;;  %13030 = vmatprep.subr.bf16.mxu1 %v15513_v46  ;;  %v1065_v62 = vpack.c.bf16 %v15532_v54, %v15523_v51  ;;  %v15567_v6 = vpack.c.bf16 %v15525_v52, %v15510_v45 }
  0x25   :  { %v905_v58 = vpack.c.bf16 %v15536_v56, %v15534_v55  ;;  %v15554_v63 = vld [vmem:[#allocation2 + $0x32] sm:$0xff]  ;;  %v15556_v0 = vld [vmem:[#allocation2 + $0x42] sm:$0xff]  ;;  %v15573_v8 = vpack.c.bf16 %v15534_v55, %v15527_v53  ;;  %104 = vst.msk [vmem:[#allocation3 + $0x48] sm:$0x3] %vm95_vm5, %v15245_v5  ;;  %106 = vst.msk [vmem:[#allocation3 + $0x58] sm:$0x3] %vm95_vm5, %v15245_v5 }
  0x26   :  { %v15558_v1 = vld [vmem:[#allocation2 + $0x52] sm:$0xff]  ;;  %v15560_v2 = vld [vmem:[#allocation2 + $0x62] sm:$0xff]  ;;  %v1066_v7 = vpack.c.bf16 %v15556_v0, %v15554_v63  ;;  %107 = vst.msk [vmem:[#allocation3 + $0x60] sm:$0xff] %vm93_vm4, %v15245_v5  ;;  %109 = vst.msk [vmem:[#allocation3 + $0x70] sm:$0xff] %vm93_vm4, %v15245_v5 }
  0x27   :  { %v1067_v9 = vpack.c.bf16 %v15560_v2, %v15558_v1  ;;  %v15585_v13 = vld [vmem:[#allocation2 + $0x111] sm:$0xff]  ;;  %v15589_v15 = vld [vmem:[#allocation2 + $0x82] sm:$0xff]  ;;  %108 = vst.msk [vmem:[#allocation3 + $0x68] sm:$0x3] %vm95_vm5, %v15245_v5  ;;  %110 = vst.msk [vmem:[#allocation3 + $0x78] sm:$0x3] %vm95_vm5, %v15245_v5 }
  0x28   :  { %v15587_v14 = vld [vmem:[#allocation2 + $0x72] sm:$0xff]  ;;  %v15596_v18 = vld [vmem:[#allocation2 + $0xc2] sm:$0xff]  ;;  %v15601_v19 = vpack.c.bf16 %v15585_v13, %v15536_v56  ;;  %111 = vst.msk [vmem:[#allocation3 + $0x80] sm:$0xff] %vm93_vm4, %v15245_v5  ;;  %117 = vst.msk [vmem:[#allocation3 + $0xb0] sm:$0xff] %vm93_vm4, %v15245_v5 }
  0x29   :  { %13001 = vmatmul.mubr.msk.bf16.gmra.mrb[4].mxu1 %vm51_vm2, %v15543_v59  ;;  %13073 = vmatmul.mubr.msk.bf16.gmra.mrb[4].mxu0 %vm51_vm2, %v902_v60  ;;  %v15592_v16 = vld [vmem:[#allocation2 + $0x10] sm:$0xff]  ;;  %v1068_v20 = vpack.c.bf16 %v15589_v15, %v15587_v14  ;;  %v15611_v23 = vld [vmem:[#allocation2 + $0x20] sm:$0xff]  ;;  %112 = vst.msk [vmem:[#allocation3 + $0x88] sm:$0x3] %vm95_vm5, %v15245_v5  ;;  %118 = vst.msk [vmem:[#allocation3 + $0xb8] sm:$0x3] %vm95_vm5, %v15245_v5 }
  0x2a   :  { %13004 = vmatprep.mubr.msk.bf16.mxu1 %vm51_vm2, %v293_v61  ;;  %13086 = vmatprep.mubr.msk.bf16.mxu0 %vm51_vm2, %v1065_v62  ;;  %v15594_v17 = vld [vmem:[#allocation2 + $0xb2] sm:$0xff]  ;;  %v264_v21 = vpack.c.bf16 %v15592_v16, %v248_v12  ;;  %v15619_v26 = vld [vmem:[#allocation2 + $0xe2] sm:$0xff]  ;;  %119 = vst.msk [vmem:[#allocation3 + $0xc0] sm:$0xff] %vm93_vm4, %v15245_v5  ;;  %121 = vst.msk [vmem:[#allocation3 + $0xd0] sm:$0xff] %vm93_vm4, %v15245_v5 }
  0x2b   :  { %v1069_v22 = vpack.c.bf16 %v15596_v18, %v15594_v17  ;;  %v15615_v24 = vld [vmem:[#allocation2 + $0x30] sm:$0xff]  ;;  %v15621_v27 = vld [vmem:[#allocation2 + $0x40] sm:$0xff]  ;;  %120 = vst.msk [vmem:[#allocation3 + $0xc8] sm:$0x3] %vm95_vm5, %v15245_v5  ;;  %122 = vst.msk [vmem:[#allocation3 + $0xd8] sm:$0x3] %vm95_vm5, %v15245_v5 }
  0x2c   :  { %v15617_v25 = vld [vmem:[#allocation2 + $0xd2] sm:$0xff]  ;;  %v15627_v30 = vld [vmem:[#allocation2 + $0x102] sm:$0xff]  ;;  %v265_v32 = vpack.c.bf16 %v15615_v24, %v15611_v23  ;;  %123 = vst.msk [vmem:[#allocation3 + $0xe0] sm:$0xff] %vm93_vm4, %v15245_v5  ;;  %125 = vst.msk [vmem:[#allocation3 + $0xf0] sm:$0xff] %vm93_vm4, %v15245_v5 }
  0x2d   :  { %v15623_v28 = vld [vmem:[#allocation2 + $0x50] sm:$0xff]  ;;  %v11580_v31 = vld [vmem:[%s18620_s1 + $0x6] sm:$0x3]  ;;  %v1070_v33 = vpack.c.bf16 %v15619_v26, %v15617_v25  ;;  %124 = vst.msk [vmem:[#allocation3 + $0xe8] sm:$0x3] %vm95_vm5, %v15245_v5  ;;  %v15137_v52 = vld [vmem:[%s18622_s3 + $0x18] sm:$0xff]  }
  0x2e   :  { %v15625_v29 = vld [vmem:[#allocation2 + $0xf2] sm:$0xff]  ;;  %v266_v34 = vpack.c.bf16 %v15623_v28, %v15621_v27  ;;  %v768_v37 = vand.u32 %v11580_v31, %v15332_v4  ;;  %v15643_v38 = vld [vmem:[#allocation2 + $0x60] sm:$0xff]  ;;  %126 = vst.msk [vmem:[#allocation3 + $0xf8] sm:$0x3] %vm95_vm5, %v15245_v5  ;;  %128 = vst.msk [vmem:[#allocation3 + $0x108] sm:$0x3] %vm95_vm5, %v15245_v5 }
  0x2f   :  { %v1071_v35 = vpack.c.bf16 %v15627_v30, %v15625_v29  ;;  %v15647_v39 = vld [vmem:[#allocation2 + $0x70] sm:$0xff]  ;;  %v15651_v42 = vld [vmem:[#allocation2 + $0x122] sm:$0xff]  ;;  %127 = vst.msk [vmem:[#allocation3 + $0x100] sm:$0xff] %vm93_vm4, %v15245_v5  ;;  %129 = vst.msk [vmem:[#allocation3 + $0x110] sm:$0xff] %vm93_vm4, %v15245_v5 }
  0x30   :  { %v15649_v40 = vld [vmem:[#allocation2 + $0x112] sm:$0xff]  ;;  %v267_v49 = vpack.c.bf16 %v15647_v39, %v15643_v38  ;;  %v15665_v61 = vld [vmem:[#allocation2 + $0xc0] sm:$0xff]  ;;  %130 = vst.msk [vmem:[#allocation3 + $0x118] sm:$0x3] %vm95_vm5, %v15245_v5  ;;  %132 = vst.msk [vmem:[#allocation3 + $0x128] sm:$0x3] %vm95_vm5, %v15245_v5 }
  0x31   :  { %13005 = vmatmul.mubr.msk.bf16.gmra.mrb[8].mxu1 %vm51_vm2, %v15567_v6  ;;  %13087 = vmatmul.mubr.msk.bf16.vlgmr.msra.gmra.mrb[0].mxu0 %vm51_vm2, %v1066_v7  ;;  %v15654_v47 = vld [vmem:[#allocation2 + $0xb0] sm:$0xff]  ;;  %v15669_v3 = vld [vmem:[#allocation2 + $0xe0] sm:$0xff]  ;;  %131 = vst.msk [vmem:[#allocation3 + $0x120] sm:$0xff] %vm93_vm4, %v15245_v5  ;;  %135 = vst.msk [vmem:[#allocation4] sm:$0xff] %vm93_vm4, %v15245_v5 }
  0x32   :  { %13103 = vmatpush3.bf16.msra.mxu0 %v1267_v44  ;;  %13008 = vmatprep.mubr.msk.bf16.mxu1 %vm51_vm2, %v15573_v8  ;;  %v256_v44 = vld [vmem:[#allocation2 + $0xa0] sm:$0xff]  ;;  %v15667_v62 = vld [vmem:[#allocation2 + $0xd0] sm:$0xff]  ;;  %136 = vst.msk [vmem:[#allocation4 + $0x8] sm:$0x3] %vm95_vm5, %v15245_v5  ;;  %138 = vst.msk [vmem:[#allocation4 + $0x18] sm:$0x3] %vm95_vm5, %v15245_v5 }
  0x33   :  { %13090 = vmatprep.mubr.msk.bf16.mxu0 %vm51_vm2, %v1067_v9  ;;  %13120 = vmatprep.subr.bf16.mxu0 %v15578_v11  ;;  %v268_v60 = vpack.c.bf16 %v15654_v47, %v256_v44  ;;  %v15671_v7 = vld [vmem:[#allocation2 + $0xf0] sm:$0xff]  ;;  %v269_v12 = vpack.c.bf16 %v15667_v62, %v15665_v61  ;;  %v15685_v31 = vld [vmem:[#allocation2 + $0x100] sm:$0xff]  ;;  %137 = vst.msk [vmem:[#allocation4 + $0x10] sm:$0xff] %vm93_vm4, %v15245_v5  ;;  %139 = vst.msk [vmem:[#allocation4 + $0x20] sm:$0xff] %vm93_vm4, %v15245_v5 }
  0x34   :  { %v11625_v9 = vld [vmem:[%s18620_s1 + $0x10] sm:$0x3]  ;;  %140 = vst.msk [vmem:[#allocation4 + $0x28] sm:$0x3] %vm95_vm5, %v15245_v5  ;;  %144 = vst.msk [vmem:[#allocation4 + $0x48] sm:$0x3] %vm95_vm5, %v15245_v5 }
  0x35   :  { %143 = vst.msk [vmem:[#allocation4 + $0x40] sm:$0xff] %vm93_vm4, %v15245_v5  ;;  %145 = vst.msk [vmem:[#allocation4 + $0x50] sm:$0xff] %vm93_vm4, %v15245_v5  ;;  %v16016_v53 = vld [vmem:[%s18622_s3] sm:$0xff]  }
  0x36   :  { %146 = vst.msk [vmem:[#allocation4 + $0x58] sm:$0x3] %vm95_vm5, %v15245_v5  ;;  %148 = vst.msk [vmem:[#allocation4 + $0x68] sm:$0x3] %vm95_vm5, %v15245_v5 }
  0x37   :  { %147 = vst.msk [vmem:[#allocation4 + $0x60] sm:$0xff] %vm93_vm4, %v15245_v5  ;;  %149 = vst.msk [vmem:[#allocation4 + $0x70] sm:$0xff] %vm93_vm4, %v15245_v5 }
  0x38   :  { %150 = vst.msk [vmem:[#allocation4 + $0x78] sm:$0x3] %vm95_vm5, %v15245_v5  ;;  %152 = vst.msk [vmem:[#allocation4 + $0x88] sm:$0x3] %vm95_vm5, %v15245_v5 }
  0x39   :  { %13009 = vmatmul.mubr.msk.bf16.gmra.mrb[12].mxu1 %vm51_vm2, %v15601_v19  ;;  %13091 = vmatmul.mubr.msk.bf16.gmra.mrb[4].mxu0 %vm51_vm2, %v1068_v20  ;;  %v270_v20 = vpack.c.bf16 %v15671_v7, %v15669_v3  ;;  %151 = vst.msk [vmem:[#allocation4 + $0x80] sm:$0xff] %vm93_vm4, %v15245_v5  ;;  %153 = vst.msk [vmem:[#allocation4 + $0x90] sm:$0xff] %vm93_vm4, %v15245_v5 }
  0x3a   :  { %13014 = vmatprep.mubr.msk.bf16.mxu1 %vm51_vm2, %v264_v21  ;;  %13094 = vmatprep.mubr.msk.bf16.mxu0 %vm51_vm2, %v1069_v22  ;;  %v1599_v21 = vand.u32 %v11625_v9, %v15332_v4  ;;  %v1223_v22 = vld [vmem:[#allocation2 + $0x90] sm:$0xff]  ;;  %154 = vst.msk [vmem:[#allocation4 + $0x98] sm:$0x3] %vm95_vm5, %v15245_v5  ;;  %156 = vst.msk [vmem:[#allocation4 + $0xa8] sm:$0x3] %vm95_vm5, %v15245_v5 }
  0x3b   :  { %155 = vst.msk [vmem:[#allocation4 + $0xa0] sm:$0xff] %vm93_vm4, %v15245_v5  ;;  %157 = vst.msk [vmem:[#allocation4 + $0xb0] sm:$0xff] %vm93_vm4, %v15245_v5 }
  0x3c   :  { %158 = vst.msk [vmem:[#allocation4 + $0xb8] sm:$0x3] %vm95_vm5, %v15245_v5  ;;  %160 = vst.msk [vmem:[#allocation4 + $0xc8] sm:$0x3] %vm95_vm5, %v15245_v5 }
  0x3d   :  { %159 = vst.msk [vmem:[#allocation4 + $0xc0] sm:$0xff] %vm93_vm4, %v15245_v5  ;;  %161 = vst.msk [vmem:[#allocation4 + $0xd0] sm:$0xff] %vm93_vm4, %v15245_v5 }
  0x3e   :  { %162 = vst.msk [vmem:[#allocation4 + $0xd8] sm:$0x3] %vm95_vm5, %v15245_v5  ;;  %164 = vst.msk [vmem:[#allocation4 + $0xe8] sm:$0x3] %vm95_vm5, %v15245_v5 }
  0x3f   :  { %163 = vst.msk [vmem:[#allocation4 + $0xe0] sm:$0xff] %vm93_vm4, %v15245_v5  ;;  %165 = vst.msk [vmem:[#allocation4 + $0xf0] sm:$0xff] %vm93_vm4, %v15245_v5 }
  0x40   :  { %166 = vst.msk [vmem:[#allocation4 + $0xf8] sm:$0x3] %vm95_vm5, %v15245_v5  ;;  %168 = vst.msk [vmem:[#allocation4 + $0x108] sm:$0x3] %vm95_vm5, %v15245_v5 }
  0x41   :  { %13015 = vmatmul.mubr.msk.bf16.vlgmr.msra.gmra.mrb[0].mxu1 %vm51_vm2, %v265_v32  ;;  %13095 = vmatmul.mubr.msk.bf16.gmra.mrb[8].mxu0 %vm51_vm2, %v1070_v33  ;;  %v1222_v33 = vld [vmem:[#allocation2 + $0x80] sm:$0xff]  ;;  %167 = vst.msk [vmem:[#allocation4 + $0x100] sm:$0xff] %vm93_vm4, %v15245_v5  ;;  %169 = vst.msk [vmem:[#allocation4 + $0x110] sm:$0xff] %vm93_vm4, %v15245_v5 }
  0x42   :  { %13031 = vmatpush3.bf16.msra.mxu1 %v15513_v46  ;;  %13018 = vmatprep.mubr.msk.bf16.mxu1 %vm51_vm2, %v266_v34  ;;  %v1072_v46 = vpack.c.bf16 %v15651_v42, %v15649_v40  ;;  %v1235_v44 = vpack.c.bf16 %v1223_v22, %v1222_v33  ;;  %170 = vst.msk [vmem:[#allocation4 + $0x118] sm:$0x3] %vm95_vm5, %v15245_v5  ;;  %172 = vst.msk [vmem:[#allocation4 + $0x128] sm:$0x3] %vm95_vm5, %v15245_v5 }
  0x43   :  { %13098 = vmatprep.mubr.msk.bf16.mxu0 %vm51_vm2, %v1071_v35  ;;  %13048 = vmatprep.subr.bf16.mxu1 %v768_v37  ;;  %v551_v35 = vld [vmem:[#allocation2 + $0x2] sm:$0xff]  ;;  %171 = vst.msk [vmem:[#allocation4 + $0x120] sm:$0xff] %vm93_vm4, %v15245_v5  ;;  %173 = vst.msk [vmem:[#allocation4 + $0x130] sm:$0xff] %vm93_vm4, %v15245_v5 }
  0x44   :  { %174 = vst.msk [vmem:[#allocation4 + $0x138] sm:$0x3] %vm95_vm5, %v15245_v5  ;;  %176 = vst.msk [vmem:[#allocation5 + $0x8] sm:$0x3] %vm95_vm5, %v15245_v5 }
  0x45   :  { %175 = vst.msk [vmem:[#allocation5] sm:$0xff] %vm93_vm4, %v15245_v5  ;;  %177 = vst.msk [vmem:[#allocation5 + $0x10] sm:$0xff] %vm93_vm4, %v15245_v5 }
  0x46   :  { %178 = vst.msk [vmem:[#allocation5 + $0x18] sm:$0x3] %vm95_vm5, %v15245_v5  ;;  %180 = vst.msk [vmem:[#allocation5 + $0x28] sm:$0x3] %vm95_vm5, %v15245_v5 }
  0x47   :  { %179 = vst.msk [vmem:[#allocation5 + $0x20] sm:$0xff] %vm93_vm4, %v15245_v5  ;;  %181 = vst.msk [vmem:[#allocation5 + $0x30] sm:$0xff] %vm93_vm4, %v15245_v5 }
  0x48   :  { %182 = vst.msk [vmem:[#allocation5 + $0x38] sm:$0x3] %vm95_vm5, %v15245_v5  ;;  %184 = vst.msk [vmem:[#allocation5 + $0x48] sm:$0x3] %vm95_vm5, %v15245_v5 }
  0x49   :  { %13019 = vmatmul.mubr.msk.bf16.gmra.mrb[4].mxu1 %vm51_vm2, %v267_v49  ;;  %13099 = vmatmul.mubr.msk.bf16.gmra.mrb[12].mxu0 %vm51_vm2, %v1072_v46  ;;  %v1231_v46 = vld [vmem:[#allocation2 + $0x130] sm:$0xff]  ;;  %183 = vst.msk [vmem:[#allocation5 + $0x40] sm:$0xff] %vm93_vm4, %v15245_v5  ;;  %185 = vst.msk [vmem:[#allocation5 + $0x50] sm:$0xff] %vm93_vm4, %v15245_v5 }
  0x4a   :  { %13022 = vmatprep.mubr.msk.bf16.mxu1 %vm51_vm2, %v268_v60  ;;  %13104 = vmatprep.mubr.msk.bf16.mxu0 %vm51_vm2, %v265_v32  ;;  %v15687_v32 = vld [vmem:[#allocation2 + $0x110] sm:$0xff]  ;;  %v559_v60 = vld [vmem:[#allocation2 + $0xa2] sm:$0xff]  ;;  %186 = vst.msk [vmem:[#allocation5 + $0x58] sm:$0x3] %vm95_vm5, %v15245_v5  ;;  %188 = vst.msk [vmem:[#allocation5 + $0x68] sm:$0x3] %vm95_vm5, %v15245_v5 }
  0x4b   :  { %v271_v4 = vpack.c.bf16 %v15687_v32, %v15685_v31  ;;  %187 = vst.msk [vmem:[#allocation5 + $0x60] sm:$0xff] %vm93_vm4, %v15245_v5  ;;  %189 = vst.msk [vmem:[#allocation5 + $0x70] sm:$0xff] %vm93_vm4, %v15245_v5 }
  0x4c   :  { %190 = vst.msk [vmem:[#allocation5 + $0x78] sm:$0x3] %vm95_vm5, %v15245_v5  ;;  %192 = vst.msk [vmem:[#allocation5 + $0x88] sm:$0x3] %vm95_vm5, %v15245_v5 }
  0x4d   :  { %191 = vst.msk [vmem:[#allocation5 + $0x80] sm:$0xff] %vm93_vm4, %v15245_v5  ;;  %193 = vst.msk [vmem:[#allocation5 + $0x90] sm:$0xff] %vm93_vm4, %v15245_v5 }
  0x4e   :  { %194 = vst.msk [vmem:[#allocation5 + $0x98] sm:$0x3] %vm95_vm5, %v15245_v5  ;;  %196 = vst.msk [vmem:[#allocation5 + $0xa8] sm:$0x3] %vm95_vm5, %v15245_v5 }
  0x4f   :  { %195 = vst.msk [vmem:[#allocation5 + $0xa0] sm:$0xff] %vm93_vm4, %v15245_v5  ;;  %197 = vst.msk [vmem:[#allocation5 + $0xb0] sm:$0xff] %vm93_vm4, %v15245_v5 }
  0x50   :  { %198 = vst.msk [vmem:[#allocation5 + $0xb8] sm:$0x3] %vm95_vm5, %v15245_v5  ;;  %200 = vst.msk [vmem:[#allocation5 + $0xc8] sm:$0x3] %vm95_vm5, %v15245_v5 }
  0x51   :  { %13023 = vmatmul.mubr.msk.bf16.gmra.mrb[8].mxu1 %vm51_vm2, %v269_v12  ;;  %13105 = vmatmul.mubr.msk.bf16.vlgmr.msra.gmra.mrb[0].mxu0 %vm51_vm2, %v266_v34  ;;  %v567_v34 = vpack.c.bf16 %v15523_v51, %v551_v35  ;;  %v1230_v51 = vld [vmem:[#allocation2 + $0x120] sm:$0xff]  ;;  %199 = vst.msk [vmem:[#allocation5 + $0xc0] sm:$0xff] %vm93_vm4, %v15245_v5  ;;  %201 = vst.msk [vmem:[#allocation5 + $0xd0] sm:$0xff] %vm93_vm4, %v15245_v5 }
  0x52   :  { %13121 = vmatpush3.bf16.msra.mxu0 %v15578_v11  ;;  %13026 = vmatprep.mubr.msk.bf16.mxu1 %vm51_vm2, %v270_v20  ;;  %v568_v11 = vpack.c.bf16 %v15554_v63, %v15532_v54  ;;  %v570_v54 = vpack.c.bf16 %v15587_v14, %v15560_v2  ;;  %v1239_v63 = vpack.c.bf16 %v1231_v46, %v1230_v51  ;;  %v1389_v2 = vld [vmem:[#allocation2 + $0x91] sm:$0xff] }
  0x53   :  { %13108 = vmatprep.mubr.msk.bf16.mxu0 %vm51_vm2, %v267_v49  ;;  %13138 = vmatprep.subr.bf16.mxu0 %v1599_v21  ;;  %v569_v49 = vpack.c.bf16 %v15558_v1, %v15556_v0  ;;  %v571_v0 = vpack.c.bf16 %v15594_v17, %v559_v60  ;;  %v572_v1 = vpack.c.bf16 %v15617_v25, %v15596_v18 }
  0x54   :  { %v1401_v14 = vpack.c.bf16 %v1389_v2, %v15518_v48  ;;  %v733_v17 = vpack.c.bf16 %v15611_v23, %v15592_v16  ;;  %v1396_v48 = vld [vmem:[#allocation2 + $0x121] sm:$0xff]  ;;  %v1397_v16 = vld [vmem:[#allocation2 + $0x131] sm:$0xff]  ;;  %v737_v23 = vpack.c.bf16 %v15665_v61, %v15654_v47  ;;  %202 = vst.msk [vmem:[#allocation5 + $0xd8] sm:$0x3] %vm95_vm5, %v15245_v5  ;;  %204 = vst.msk [vmem:[#allocation5 + $0xe8] sm:$0x3] %vm95_vm5, %v15245_v5 }
  0x55   :  { %v1405_v18 = vpack.c.bf16 %v1397_v16, %v1396_v48  ;;  %v906_v43 = vpack.c.bf16 %v1396_v48, %v15585_v13  ;;  %203 = vst.msk [vmem:[#allocation5 + $0xe0] sm:$0xff] %vm93_vm4, %v15245_v5  ;;  %205 = vst.msk [vmem:[#allocation5 + $0xf0] sm:$0xff] %vm93_vm4, %v15245_v5 }
  0x56   :  { %206 = vst.msk [vmem:[#allocation5 + $0xf8] sm:$0x3] %vm95_vm5, %v15245_v5  ;;  %208 = vst.msk [vmem:[#allocation5 + $0x108] sm:$0x3] %vm95_vm5, %v15245_v5 }
  0x57   :  { %207 = vst.msk [vmem:[#allocation5 + $0x100] sm:$0xff] %vm93_vm4, %v15245_v5  ;;  %209 = vst.msk [vmem:[#allocation5 + $0x110] sm:$0xff] %vm93_vm4, %v15245_v5 }
  0x58   :  { %210 = vst.msk [vmem:[#allocation5 + $0x118] sm:$0x3] %vm95_vm5, %v15245_v5  ;;  %212 = vst.msk [vmem:[#allocation5 + $0x128] sm:$0x3] %vm95_vm5, %v15245_v5 }
  0x59   :  { %13027 = vmatmul.mubr.msk.bf16.gmra.mrb[12].mxu1 %vm51_vm2, %v271_v4  ;;  %13109 = vmatmul.mubr.msk.bf16.gmra.mrb[4].mxu0 %vm51_vm2, %v1235_v44  ;;  %211 = vst.msk [vmem:[#allocation5 + $0x120] sm:$0xff] %vm93_vm4, %v15245_v5  ;;  %213 = vst.msk [vmem:[#allocation5 + $0x130] sm:$0xff] %vm93_vm4, %v15245_v5 }
  0x5a   :  { %13032 = vmatprep.mubr.msk.bf16.mxu1 %vm51_vm2, %v567_v34  ;;  %13112 = vmatprep.mubr.msk.bf16.mxu0 %vm51_vm2, %v269_v12  ;;  %214 = vst.msk [vmem:[#allocation5 + $0x138] sm:$0x3] %vm95_vm5, %v15245_v5 }
  0x61   :  { %13033 = vmatmul.mubr.msk.bf16.vlgmr.msra.gmra.mrb[0].mxu1 %vm51_vm2, %v568_v11  ;;  %13113 = vmatmul.mubr.msk.bf16.gmra.mrb[8].mxu0 %vm51_vm2, %v270_v20 }
  0x62   :  { %13049 = vmatpush3.bf16.msra.mxu1 %v768_v37  ;;  %13036 = vmatprep.mubr.msk.bf16.mxu1 %vm51_vm2, %v569_v49  ;;  %v573_v37 = vpack.c.bf16 %v15625_v29, %v15619_v26  ;;  %v16022_v29 = vld [vmem:[%s18623_s2] ss:$0 sm:$0xff] }
  0x63   :  { %13116 = vmatprep.mubr.msk.bf16.mxu0 %vm51_vm2, %v271_v4  ;;  %14236 = vmatprep.subr.bf16.mxu1 %v15385_v10  ;;  %v1799_v4 = vld [vmem:[#allocation4 + $0x1] sm:$0xff] }
  0x69   :  { %13037 = vmatmul.mubr.msk.bf16.gmra.mrb[4].mxu1 %vm51_vm2, %v570_v54  ;;  %13117 = vmatmul.mubr.msk.bf16.gmra.mrb[12].mxu0 %vm51_vm2, %v1239_v63 }
  0x6a   :  { %13040 = vmatprep.mubr.msk.bf16.mxu1 %vm51_vm2, %v571_v0  ;;  %13122 = vmatprep.mubr.msk.bf16.mxu0 %vm51_vm2, %v15501_v36  ;;  %v574_v36 = vpack.c.bf16 %v15649_v40, %v15627_v30 }
  0x71   :  { %13041 = vmatmul.mubr.msk.bf16.gmra.mrb[8].mxu1 %vm51_vm2, %v572_v1  ;;  %13123 = vmatmul.mubr.msk.bf16.vlgmr.msra.gmra.mrb[0].mxu0 %vm51_vm2, %v15503_v41  ;;  %v734_v41 = vpack.c.bf16 %v15621_v27, %v15615_v24  ;;  %v740_v24 = vpack.c.bf16 %v1230_v51, %v15687_v32 }
  0x72   :  { %13139 = vmatpush3.bf16.msra.mxu0 %v1599_v21  ;;  %13044 = vmatprep.mubr.msk.bf16.mxu1 %vm51_vm2, %v573_v37 }
  0x73   :  { %13126 = vmatprep.mubr.msk.bf16.mxu0 %vm51_vm2, %v15543_v59  ;;  %v735_v59 = vpack.c.bf16 %v15643_v38, %v15623_v28 }
  0x79   :  { %13045 = vmatmul.mubr.msk.bf16.gmra.mrb[12].mxu1 %vm51_vm2, %v574_v36  ;;  %13127 = vmatmul.mubr.msk.bf16.gmra.mrb[4].mxu0 %vm51_vm2, %v1401_v14 }
  0x7a   :  { %13050 = vmatprep.mubr.msk.bf16.mxu1 %vm51_vm2, %v733_v17  ;;  %13130 = vmatprep.mubr.msk.bf16.mxu0 %vm51_vm2, %v15567_v6  ;;  %v736_v6 = vpack.c.bf16 %v1222_v33, %v15647_v39 }
  0x81   :  { %13051 = vmatmul.mubr.msk.bf16.vlgmr.msra.gmra.mrb[0].mxu1 %vm51_vm2, %v734_v41  ;;  %13131 = vmatmul.mubr.msk.bf16.gmra.mrb[8].mxu0 %vm51_vm2, %v15573_v8  ;;  %v739_v8 = vpack.c.bf16 %v15685_v31, %v15671_v7 }
  0x82   :  { %14237 = vmatpush3.bf16.msra.mxu1 %v15385_v10  ;;  %13054 = vmatprep.mubr.msk.bf16.mxu1 %vm51_vm2, %v735_v59  ;;  %v738_v10 = vpack.c.bf16 %v15669_v3, %v15667_v62 }
  0x83   :  { %13134 = vmatprep.mubr.msk.bf16.mxu0 %vm51_vm2, %v15601_v19  ;;  %v1555_v19 = vld [vmem:[#allocation2 + $0x92] sm:$0xff] }
  0x84   :  { %v1567_v25 = vpack.c.bf16 %v1555_v19, %v15589_v15  ;;  %v1563_v15 = vld [vmem:[#allocation2 + $0x132] sm:$0xff] }
  0x85   :  { %v1571_v45 = vpack.c.bf16 %v1563_v15, %v15651_v42 }
  0x89   :  { %13055 = vmatmul.mubr.msk.bf16.gmra.mrb[4].mxu1 %vm51_vm2, %v736_v6  ;;  %13135 = vmatmul.mubr.msk.bf16.gmra.mrb[12].mxu0 %vm51_vm2, %v1405_v18 }
  0x8a   :  { %13058 = vmatprep.mubr.msk.bf16.mxu1 %vm51_vm2, %v737_v23  ;;  %13140 = vmatprep.mubr.msk.bf16.mxu0 %vm51_vm2, %v568_v11 }
  0x91   :  { %13059 = vmatmul.mubr.msk.bf16.gmra.mrb[8].mxu1 %vm51_vm2, %v738_v10  ;;  %13141 = vmatmul.mubr.msk.bf16.vlgmr.msra.gmra.mrb[0].mxu0 %vm51_vm2, %v569_v49 }
  0x92   :  { %13062 = vmatprep.mubr.msk.bf16.mxu1 %vm51_vm2, %v739_v8  ;;  %13144 = vmatprep.mubr.msk.bf16.mxu0 %vm51_vm2, %v570_v54  ;;  %v16071_v8 = vld [vmem:[%s18622_s3 + $0x20] sm:$0xff]  }
  0x99   :  { %13063 = vmatmul.mubr.msk.bf16.gmra.mrb[12].mxu1 %vm51_vm2, %v740_v24  ;;  %13145 = vmatmul.mubr.msk.bf16.gmra.mrb[4].mxu0 %vm51_vm2, %v1567_v25 }
  0x9a   :  { %13076 = vmatprep.mubr.msk.bf16.mxu1 %vm51_vm2, %v903_v50  ;;  %13148 = vmatprep.mubr.msk.bf16.mxu0 %vm51_vm2, %v572_v1  ;;  %v15136_v50 = vld [vmem:[%s18622_s3 + $0x10] sm:$0xff]  }
  0x9b   :  { %13156 = vmatprep.subr.bf16.mxu1 %v15136_v50 }
  0xa1   :  { %13077 = vmatmul.mubr.msk.bf16.vlgmr.msra.gmra.mrb[8].mxu1 %vm51_vm2, %v904_v57  ;;  %13149 = vmatmul.mubr.msk.bf16.gmra.mrb[8].mxu0 %vm51_vm2, %v573_v37  ;;  %v15139_v37 = vld [vmem:[%s18622_s3 + $0x8] sm:$0xff]  }
  0xa2   :  { %13080 = vmatprep.mubr.msk.bf16.mxu1 %vm51_vm2, %v905_v58  ;;  %13152 = vmatprep.mubr.msk.bf16.mxu0 %vm51_vm2, %v574_v36 }
  0xa3   :  { %13157 = vmatpush3.bf16.msra.mxu1 %v15136_v50 }
  0xa4   :  { %13158 = vmatprep.subr.bf16.mxu1 %v15137_v52 }
  0xa7   :  { %13159 = vmatpush3.bf16.msra.mxu1 %v15137_v52 }
  0xa8   :  { %13176 = vmatprep.subr.bf16.mxu1 %v16016_v53 }
  0xa9   :  { %13081 = vmatmul.mubr.msk.bf16.gmra.mrb[12].mxu1 %vm51_vm2, %v906_v43  ;;  %13153 = vmatmul.mubr.msk.bf16.gmra.mrb[12].mxu0 %vm51_vm2, %v1571_v45 }
 0x154   :  { %v13052_v5 = vpop.f32.mrb[0].mxu1 }
 0x155   :  { %v804_v55 = vpop.f32.mrb[1].mxu1 }
 0x156   :  { %v13053_v56 = vpop.f32.mrb[2].mxu1 }
 0x157   :  { %v807_v57 = vpop.f32.mrb[3].mxu1 }
 0x15c   :  { %v13056_v58 = vpop.f32.mrb[4].mxu1 }
 0x15d   :  { %v820_v13 = vpop.f32.mrb[5].mxu1 }
 0x15e   :  { %v13057_v26 = vpop.f32.mrb[6].mxu1 }
 0x15f   :  { %v823_v27 = vpop.f32.mrb[7].mxu1 }
 0x164   :  { %v13142_v28 = vpop.f32.mrb[0].mxu0 }
 0x165   :  { %v14238_v30 = vadd.f32 %v13142_v28, %v13052_v5  ;;  %v1635_v38 = vpop.f32.mrb[1].mxu0 }
 0x166   :  { %v14239_v39 = vadd.f32 %v1635_v38, %v804_v55  ;;  %v13143_v40 = vpop.f32.mrb[2].mxu0 }
 0x167   :  { %v1723_v42 = vadd.f32 %v14238_v30, %v16022_v29  ;;  %v14240_v47 = vadd.f32 %v13143_v40, %v13053_v56  ;;  %v1638_v61 = vpop.f32.mrb[3].mxu0 }
 0x168   :  { %v1721_v62 = vadd.f32 %v14239_v39, %v16022_v29  ;;  %v14241_v3 = vadd.f32 %v1638_v61, %v807_v57  ;;  %v1807_v39 = vld [vmem:[#allocation4 + $0xa1] sm:$0xff] }
 0x169   :  { %1740 = vst.msk [vmem:[#allocation3 + $0x31] sm:$0xff] %vm93_vm4, %v1723_v42  ;;  %1757 = vst.msk [vmem:[#allocation4 + $0x31] sm:$0xff] %vm93_vm4, %v1723_v42  ;;  %v1724_v7 = vadd.f32 %v14240_v47, %v16022_v29 }
 0x16a   :  { %1738 = vst.msk [vmem:[#allocation3 + $0x11] sm:$0xff] %vm93_vm4, %v1721_v62  ;;  %1755 = vst.msk [vmem:[#allocation4 + $0x11] sm:$0xff] %vm93_vm4, %v1721_v62  ;;  %v1722_v9 = vadd.f32 %v14241_v3, %v16022_v29 }
 0x16b   :  { %1741 = vst.msk [vmem:[#allocation3 + $0x41] sm:$0xff] %vm93_vm4, %v1724_v7  ;;  %1758 = vst.msk [vmem:[#allocation4 + $0x41] sm:$0xff] %vm93_vm4, %v1724_v7 }
 0x16c   :  { %1739 = vst.msk [vmem:[#allocation3 + $0x21] sm:$0xff] %vm93_vm4, %v1722_v9  ;;  %1756 = vst.msk [vmem:[#allocation4 + $0x21] sm:$0xff] %vm93_vm4, %v1722_v9  ;;  %v13146_v12 = vpop.f32.mrb[4].mxu0 }
 0x16d   :  { %v14242_v20 = vadd.f32 %v13146_v12, %v13056_v58  ;;  %v1651_v21 = vpop.f32.mrb[5].mxu0 }
 0x16e   :  { %v14243_v22 = vadd.f32 %v1651_v21, %v820_v13  ;;  %v13147_v31 = vpop.f32.mrb[6].mxu0 }
 0x16f   :  { %v1727_v32 = vadd.f32 %v14242_v20, %v16022_v29  ;;  %v14244_v33 = vadd.f32 %v13147_v31, %v13057_v26  ;;  %v1654_v35 = vpop.f32.mrb[7].mxu0 }
 0x170   :  { %v1725_v44 = vadd.f32 %v14243_v22, %v16022_v29  ;;  %v14245_v34 = vadd.f32 %v1654_v35, %v823_v27  ;;  %v16051_v54 = vld [vmem:[#allocation4 + $0x31] sm:$0xff]  ;;  %v1771_v22 = vld [vmem:[#allocation4] sm:$0xff] }
 0x171   :  { %1744 = vst.msk [vmem:[#allocation3 + $0x71] sm:$0xff] %vm93_vm4, %v1727_v32  ;;  %1761 = vst.msk [vmem:[#allocation4 + $0x71] sm:$0xff] %vm93_vm4, %v1727_v32  ;;  %v1728_v11 = vadd.f32 %v14244_v33, %v16022_v29  ;;  %v16041_v49 = vld [vmem:[#allocation4 + $0x11] sm:$0xff] }
 0x172   :  { %1742 = vst.msk [vmem:[#allocation3 + $0x51] sm:$0xff] %vm93_vm4, %v1725_v44  ;;  %1759 = vst.msk [vmem:[#allocation4 + $0x51] sm:$0xff] %vm93_vm4, %v1725_v44  ;;  %v1726_v51 = vadd.f32 %v14245_v34, %v16022_v29  ;;  %v1815_v46 = vpack.c.bf16 %v16041_v49, %v1799_v4  ;;  %v16076_v24 = vld [vmem:[#allocation4 + $0x41] sm:$0xff]  ;;  %v16138_v31 = vld [vmem:[#allocation4 + $0x10] sm:$0xff] }
 0x173   :  { %1745 = vst.msk [vmem:[#allocation3 + $0x81] sm:$0xff] %vm93_vm4, %v1728_v11  ;;  %1762 = vst.msk [vmem:[#allocation4 + $0x81] sm:$0xff] %vm93_vm4, %v1728_v11  ;;  %v16049_v60 = vld [vmem:[#allocation4 + $0x21] sm:$0xff]  ;;  %v1787_v4 = vpack.c.bf16 %v16138_v31, %v1771_v22  ;;  %v16158_v11 = vld [vmem:[#allocation4 + $0x30] sm:$0xff] }
 0x174   :  { %1743 = vst.msk [vmem:[#allocation3 + $0x61] sm:$0xff] %vm93_vm4, %v1726_v51  ;;  %1760 = vst.msk [vmem:[#allocation4 + $0x61] sm:$0xff] %vm93_vm4, %v1726_v51  ;;  %v13078_v63 = vpop.f32.mrb[8].mxu1  ;;  %v13150_v0 = vpop.f32.mrb[8].mxu0  ;;  %13160 = vmatprep.mubr.msk.bf16.mxu1 %vm93_vm4, %v1815_v46  ;;  %v16058_v1 = vpack.c.bf16 %v16051_v54, %v16049_v60  ;;  %v16154_v44 = vld [vmem:[#allocation4 + $0x20] sm:$0xff] }
 0x175   :  { %v14246_v2 = vadd.f32 %v13150_v0, %v13078_v63  ;;  %v1002_v36 = vpop.f32.mrb[9].mxu1  ;;  %v1667_v14 = vpop.f32.mrb[9].mxu0  ;;  %v16162_v51 = vpack.c.bf16 %v16158_v11, %v16154_v44  ;;  %v16164_v46 = vld [vmem:[#allocation4 + $0x40] sm:$0xff]  ;;  %v15141_v63 = vld [vmem:[%s18622_s3 + $0x28] sm:$0xff]  }
 0x176   :  { %v14247_v17 = vadd.f32 %v1667_v14, %v1002_v36  ;;  %v13079_v41 = vpop.f32.mrb[10].mxu1  ;;  %v13151_v59 = vpop.f32.mrb[10].mxu0  ;;  %13161 = vmatmul.mubr.msk.bf16.vlgmr.msra.gmra.mrb[16].mxu1 %vm93_vm4, %v16058_v1  ;;  %v1779_v36 = vld [vmem:[#allocation4 + $0xa0] sm:$0xff] }
 0x177   :  { %v1731_v48 = vadd.f32 %v14246_v2, %v16022_v29  ;;  %v14248_v16 = vadd.f32 %v13151_v59, %v13079_v41  ;;  %13177 = vmatpush3.bf16.msra.mxu1 %v16016_v53  ;;  %v1005_v6 = vpop.f32.mrb[11].mxu1  ;;  %v1670_v18 = vpop.f32.mrb[11].mxu0 }
 0x178   :  { %v1729_v23 = vadd.f32 %v14247_v17, %v16022_v29  ;;  %v14249_v10 = vadd.f32 %v1670_v18, %v1005_v6  ;;  %13178 = vmatprep.subr.bf16.mxu1 %v15139_v37  ;;  %v16091_v50 = vld [vmem:[#allocation4 + $0x71] sm:$0xff] }
 0x179   :  { %1748 = vst.msk [vmem:[#allocation3 + $0xd1] sm:$0xff] %vm93_vm4, %v1731_v48  ;;  %1765 = vst.msk [vmem:[#allocation4 + $0xd1] sm:$0xff] %vm93_vm4, %v1731_v48  ;;  %v1732_v19 = vadd.f32 %v14248_v16, %v16022_v29  ;;  %v16078_v25 = vld [vmem:[#allocation4 + $0x51] sm:$0xff] }
 0x17a   :  { %1746 = vst.msk [vmem:[#allocation3 + $0xb1] sm:$0xff] %vm93_vm4, %v1729_v23  ;;  %1763 = vst.msk [vmem:[#allocation4 + $0xb1] sm:$0xff] %vm93_vm4, %v1729_v23  ;;  %v1730_v15 = vadd.f32 %v14249_v10, %v16022_v29  ;;  %v16085_v43 = vpack.c.bf16 %v16078_v25, %v16076_v24  ;;  %v16156_v34 = vld [vmem:[#allocation4 + $0x50] sm:$0xff] }
 0x17b   :  { %1749 = vst.msk [vmem:[#allocation3 + $0xe1] sm:$0xff] %vm93_vm4, %v1732_v19  ;;  %1766 = vst.msk [vmem:[#allocation4 + $0xe1] sm:$0xff] %vm93_vm4, %v1732_v19  ;;  %v16089_v45 = vld [vmem:[#allocation4 + $0x61] sm:$0xff]  ;;  %13179 = vmatpush3.bf16.msra.mxu1 %v15139_v37  ;;  %v16171_v0 = vpack.c.bf16 %v16156_v34, %v16164_v46  ;;  %v15142_v37 = vld [vmem:[%s18622_s3 + $0x30] sm:$0xff]  }
 0x17c   :  { %1747 = vst.msk [vmem:[#allocation3 + $0xc1] sm:$0xff] %vm93_vm4, %v1730_v15  ;;  %1764 = vst.msk [vmem:[#allocation4 + $0xc1] sm:$0xff] %vm93_vm4, %v1730_v15  ;;  %v13082_v52 = vpop.f32.mrb[12].mxu1  ;;  %v13154_v53 = vpop.f32.mrb[12].mxu0  ;;  %13164 = vmatprep.mubr.msk.bf16.mxu1 %vm93_vm4, %v16085_v43  ;;  %v16099_v5 = vpack.c.bf16 %v16091_v50, %v16089_v45  ;;  %13196 = vmatprep.subr.bf16.mxu1 %v16071_v8  ;;  %v16181_v2 = vld [vmem:[#allocation4 + $0x60] sm:$0xff]  ;;  %v16185_v17 = vld [vmem:[#allocation4 + $0x70] sm:$0xff] }
 0x17d   :  { %v14250_v55 = vadd.f32 %v13154_v53, %v13082_v52  ;;  %v1018_v56 = vpop.f32.mrb[13].mxu1  ;;  %v1683_v57 = vpop.f32.mrb[13].mxu0  ;;  %v16189_v41 = vpack.c.bf16 %v16185_v17, %v16181_v2  ;;  %v2094_v19 = vld [vmem:[#allocation4 + $0x2] sm:$0xff]  ;;  %v16217_v15 = vld [vmem:[#allocation4 + $0x12] sm:$0xff] }
 0x17e   :  { %v14251_v58 = vadd.f32 %v1683_v57, %v1018_v56  ;;  %v13083_v13 = vpop.f32.mrb[14].mxu1  ;;  %v13155_v26 = vpop.f32.mrb[14].mxu0  ;;  %13165 = vmatmul.mubr.msk.bf16.gmra.mrb[20].mxu1 %vm93_vm4, %v16099_v5  ;;  %v16229_v56 = vld [vmem:[#allocation4 + $0x22] sm:$0xff]  ;;  %v16231_v57 = vld [vmem:[#allocation4 + $0x52] sm:$0xff] }
 0x17f   :  { %v1735_v27 = vadd.f32 %v14250_v55, %v16022_v29  ;;  %v14252_v28 = vadd.f32 %v13155_v26, %v13083_v13  ;;  %v1021_v30 = vpop.f32.mrb[15].mxu1  ;;  %v1686_v38 = vpop.f32.mrb[15].mxu0  ;;  %v2110_v55 = vpack.c.bf16 %v16217_v15, %v2094_v19  ;;  %v16239_v26 = vld [vmem:[#allocation4 + $0x42] sm:$0xff] }
 0x180   :  { %v1733_v40 = vadd.f32 %v14251_v58, %v16022_v29  ;;  %v14253_v42 = vadd.f32 %v1686_v38, %v1021_v30  ;;  %v16119_v9 = vld [vmem:[#allocation4 + $0xd1] sm:$0xff]  ;;  %v15144_v30 = vld [vmem:[%s18622_s3 + $0x40] sm:$0xff]  }
 0x181   :  { %1752 = vst.msk [vmem:[#allocation3 + $0x111] sm:$0xff] %vm93_vm4, %v1735_v27  ;;  %1769 = vst.msk [vmem:[#allocation4 + $0x111] sm:$0xff] %vm93_vm4, %v1735_v27  ;;  %v1736_v47 = vadd.f32 %v14252_v28, %v16022_v29  ;;  %v16109_v61 = vld [vmem:[#allocation4 + $0xb1] sm:$0xff]  ;;  %v16246_v28 = vpack.c.bf16 %v16231_v57, %v16239_v26  ;;  %v16255_v38 = vld [vmem:[#allocation4 + $0x62] sm:$0xff] }
 0x182   :  { %1750 = vst.msk [vmem:[#allocation3 + $0xf1] sm:$0xff] %vm93_vm4, %v1733_v40  ;;  %1767 = vst.msk [vmem:[#allocation4 + $0xf1] sm:$0xff] %vm93_vm4, %v1733_v40  ;;  %v1734_v62 = vadd.f32 %v14253_v42, %v16022_v29  ;;  %v1819_v3 = vpack.c.bf16 %v16109_v61, %v1807_v39  ;;  %v16130_v29 = vld [vmem:[#allocation4 + $0xe1] sm:$0xff]  ;;  %v16183_v14 = vld [vmem:[#allocation4 + $0xb0] sm:$0xff] }
 0x183   :  { %1753 = vst.msk [vmem:[#allocation3 + $0x121] sm:$0xff] %vm93_vm4, %v1736_v47  ;;  %1770 = vst.msk [vmem:[#allocation4 + $0x121] sm:$0xff] %vm93_vm4, %v1736_v47  ;;  %v16117_v7 = vld [vmem:[#allocation4 + $0xc1] sm:$0xff]  ;;  %v1791_v59 = vpack.c.bf16 %v16183_v14, %v1779_v36  ;;  %v16199_v6 = vld [vmem:[#allocation4 + $0xd0] sm:$0xff] }
 0x184   :  { %1751 = vst.msk [vmem:[#allocation3 + $0x101] sm:$0xff] %vm93_vm4, %v1734_v62  ;;  %1768 = vst.msk [vmem:[#allocation4 + $0x101] sm:$0xff] %vm93_vm4, %v1734_v62  ;;  %13168 = vmatprep.mubr.msk.bf16.mxu1 %vm93_vm4, %v1819_v3  ;;  %v16126_v12 = vpack.c.bf16 %v16119_v9, %v16117_v7  ;;  %v16195_v48 = vld [vmem:[#allocation4 + $0xc0] sm:$0xff]  ;;  %v16233_v58 = vld [vmem:[#allocation4 + $0x32] sm:$0xff] }
 0x185   :  { %v16203_v18 = vpack.c.bf16 %v16199_v6, %v16195_v48  ;;  %v16205_v23 = vld [vmem:[#allocation4 + $0xe0] sm:$0xff]  ;;  %v16237_v13 = vpack.c.bf16 %v16233_v58, %v16229_v56  ;;  %v15143_v27 = vld [vmem:[%s18622_s3 + $0x38] sm:$0xff]  }
 0x186   :  { %13169 = vmatmul.mubr.msk.bf16.gmra.mrb[24].mxu1 %vm93_vm4, %v16126_v12  ;;  %v2102_v39 = vld [vmem:[#allocation4 + $0xa2] sm:$0xff]  ;;  %v16257_v40 = vld [vmem:[#allocation4 + $0xb2] sm:$0xff] }
 0x187   :  { %v16259_v42 = vld [vmem:[#allocation4 + $0x72] sm:$0xff]  ;;  %v2114_v62 = vpack.c.bf16 %v16257_v40, %v2102_v39  ;;  %v16269_v3 = vld [vmem:[#allocation4 + $0xc2] sm:$0xff]  ;;  %v2289_v39 = vpack.c.bf16 %v16164_v46, %v16158_v11  ;;  %v2293_v46 = vpack.c.bf16 %v16205_v23, %v16199_v6  ;;  %v2468_v6 = vpack.c.bf16 %v16089_v45, %v16078_v25 }
 0x188   :  { %v16142_v33 = vld [vmem:[#allocation4 + $0x111] sm:$0xff]  ;;  %v16263_v47 = vpack.c.bf16 %v16259_v42, %v16255_v38  ;;  %v2471_v25 = vpack.c.bf16 %v16130_v29, %v16119_v9  ;;  %v15149_v9 = vld [vmem:[%s18622_s3 + $0x68] sm:$0xff]  }
 0x189   :  { %v16132_v20 = vld [vmem:[#allocation4 + $0xf1] sm:$0xff] }
 0x18a   :  { %v16136_v21 = vpack.c.bf16 %v16132_v20, %v16130_v29  ;;  %v16197_v16 = vld [vmem:[#allocation4 + $0xf0] sm:$0xff]  ;;  %v2645_v29 = vpack.c.bf16 %v16239_v26, %v16233_v58  ;;  %v15151_v26 = vld [vmem:[%s18622_s3 + $0x78] sm:$0xff]  }
 0x18b   :  { %v16140_v32 = vld [vmem:[#allocation4 + $0x101] sm:$0xff]  ;;  %v16209_v10 = vpack.c.bf16 %v16197_v16, %v16205_v23  ;;  %v16219_v52 = vld [vmem:[#allocation4 + $0x110] sm:$0xff] }
 0x18c   :  { %13172 = vmatprep.mubr.msk.bf16.mxu1 %vm93_vm4, %v16136_v21  ;;  %v16148_v35 = vpack.c.bf16 %v16142_v33, %v16140_v32  ;;  %v16271_v22 = vld [vmem:[#allocation4 + $0xf2] sm:$0xff]  ;;  %v2472_v45 = vpack.c.bf16 %v16140_v32, %v16132_v20  ;;  %v16362_v23 = vld [vmem:[#allocation4 + $0x121] sm:$0xff]  ;;  %v2646_v20 = vpack.c.bf16 %v16255_v38, %v16231_v57 }
 0x18d   :  { %v16291_v19 = vld [vmem:[#allocation4 + $0x112] sm:$0xff]  ;;  %v2643_v57 = vld [vmem:[#allocation4 + $0x122] sm:$0xff] }
 0x18e   :  { %13173 = vmatmul.mubr.msk.bf16.gmra.mrb[28].mxu1 %vm93_vm4, %v16148_v35  ;;  %v15150_v32 = vld [vmem:[%s18622_s3 + $0x70] sm:$0xff]   ;;  %v2651_v58 = vpack.c.bf16 %v2643_v57, %v16291_v19  ;;  %v15152_v38 = vld [vmem:[%s18622_s3 + $0x80] sm:$0xff]  }
 0x18f   :  { %13180 = vmatprep.mubr.msk.bf16.mxu1 %vm93_vm4, %v1787_v4  ;;  %v16273_v4 = vld [vmem:[#allocation4 + $0xd2] sm:$0xff] }
 0x196   :  { %13181 = vmatmul.mubr.msk.bf16.vlgmr.msra.gmra.mrb[16].mxu1 %vm93_vm4, %v16162_v51 }
 0x197   :  { %13197 = vmatpush3.bf16.msra.mxu1 %v16071_v8  ;;  %13184 = vmatprep.mubr.msk.bf16.mxu1 %vm93_vm4, %v16171_v0  ;;  %v16215_v8 = vld [vmem:[#allocation4 + $0x100] sm:$0xff] }
 0x198   :  { %13198 = vmatprep.subr.bf16.mxu1 %v15141_v63  ;;  %v16223_v53 = vpack.c.bf16 %v16219_v52, %v16215_v8 }
 0x19b   :  { %13199 = vmatpush3.bf16.msra.mxu1 %v15141_v63  ;;  %v16277_v63 = vpack.c.bf16 %v16273_v4, %v16269_v3 }
 0x19c   :  { %13216 = vmatprep.subr.bf16.mxu1 %v15142_v37 }
 0x19e   :  { %13185 = vmatmul.mubr.msk.bf16.gmra.mrb[20].mxu1 %vm93_vm4, %v16189_v41 }
 0x19f   :  { %13188 = vmatprep.mubr.msk.bf16.mxu1 %vm93_vm4, %v1791_v59  ;;  %v16289_v59 = vld [vmem:[#allocation4 + $0x102] sm:$0xff] }
 0x1a6   :  { %13189 = vmatmul.mubr.msk.bf16.gmra.mrb[24].mxu1 %vm93_vm4, %v16203_v18 }
 0x1a7   :  { %13192 = vmatprep.mubr.msk.bf16.mxu1 %vm93_vm4, %v16209_v10 }
 0x1ae   :  { %13193 = vmatmul.mubr.msk.bf16.gmra.mrb[28].mxu1 %vm93_vm4, %v16223_v53 }
 0x1af   :  { %13200 = vmatprep.mubr.msk.bf16.mxu1 %vm93_vm4, %v2110_v55  ;;  %v16295_v55 = vpack.c.bf16 %v16291_v19, %v16289_v59 }
 0x1b6   :  { %13201 = vmatmul.mubr.msk.bf16.vlgmr.msra.gmra.mrb[16].mxu1 %vm93_vm4, %v16237_v13 }
 0x1b7   :  { %13217 = vmatpush3.bf16.msra.mxu1 %v15142_v37  ;;  %13204 = vmatprep.mubr.msk.bf16.mxu1 %vm93_vm4, %v16246_v28  ;;  %v16279_v37 = vld [vmem:[#allocation4 + $0xe2] sm:$0xff] }
 0x1b8   :  { %13218 = vmatprep.subr.bf16.mxu1 %v15143_v27  ;;  %v16283_v36 = vpack.c.bf16 %v16271_v22, %v16279_v37 }
 0x1ba   :  { %18654 = vst [vmem:[#allocation6_spill] sm:$0xff] %v16283_v36 }
 0x1bb   :  { %13219 = vmatpush3.bf16.msra.mxu1 %v15143_v27  ;;  %v2288_v27 = vpack.c.bf16 %v16154_v44, %v16138_v31  ;;  %v15146_v31 = vld [vmem:[%s18622_s3 + $0x50] sm:$0xff]   ;;  %v16314_v44 = vld [vmem:[#allocation4 + $0x80] sm:$0xff] }
 0x1bc   :  { %13236 = vmatprep.subr.bf16.mxu1 %v15144_v30  ;;  %v2291_v11 = vpack.c.bf16 %v16314_v44, %v16185_v17 }
 0x1be   :  { %13205 = vmatmul.mubr.msk.bf16.gmra.mrb[20].mxu1 %vm93_vm4, %v16263_v47 }
 0x1bf   :  { %13208 = vmatprep.mubr.msk.bf16.mxu1 %vm93_vm4, %v2114_v62  ;;  %v15145_v62 = vld [vmem:[%s18622_s3 + $0x48] sm:$0xff]  }
 0x1c6   :  { %13209 = vmatmul.mubr.msk.bf16.gmra.mrb[24].mxu1 %vm93_vm4, %v16277_v63 }
 0x1c7   :  { %13212 = vmatprep.mubr.msk.bf16.mxu1 %vm93_vm4, %v16283_v36  ;;  %v2290_v36 = vpack.c.bf16 %v16181_v2, %v16156_v34  ;;  %v2292_v34 = vpack.c.bf16 %v16195_v48, %v16183_v14  ;;  %v2294_v2 = vpack.c.bf16 %v16215_v8, %v16197_v16  ;;  %v2466_v14 = vpack.c.bf16 %v16049_v60, %v16041_v49  ;;  %v15147_v16 = vld [vmem:[%s18622_s3 + $0x58] sm:$0xff]   ;;  %v15148_v49 = vld [vmem:[%s18622_s3 + $0x60] sm:$0xff]  }
 0x1c8   :  { %v2467_v48 = vpack.c.bf16 %v16076_v24, %v16051_v54  ;;  %v16348_v60 = vld [vmem:[#allocation4 + $0x81] sm:$0xff]  ;;  %v2470_v24 = vpack.c.bf16 %v16117_v7, %v16109_v61  ;;  %v2644_v61 = vpack.c.bf16 %v16229_v56, %v16217_v15  ;;  %v15154_v7 = vld [vmem:[%s18624_s5 + $0x10] sm:$0xff]   ;;  %v2648_v15 = vpack.c.bf16 %v16269_v3, %v16257_v40 }
 0x1c9   :  { %v2469_v54 = vpack.c.bf16 %v16348_v60, %v16091_v50  ;;  %v2473_v50 = vpack.c.bf16 %v16362_v23, %v16142_v33  ;;  %13336 = vmatprep.subr.bf16.mxu0 %v15154_v7  ;;  %v2635_v33 = vld [vmem:[#allocation4 + $0x82] sm:$0xff]  ;;  %v2650_v56 = vpack.c.bf16 %v16289_v59, %v16271_v22  ;;  %v2814_v40 = vld [vmem:[#allocation4 + $0x90] sm:$0xff] }
 0x1ca   :  { %13337 = vmatpush3.bf16.msra.mxu0 %v15154_v7  ;;  %v2647_v8 = vpack.c.bf16 %v2635_v33, %v16259_v42  ;;  %v15153_v42 = vld [vmem:[%s18622_s3 + $0x88] sm:$0xff]  }
 0x1ce   :  { %13213 = vmatmul.mubr.msk.bf16.gmra.mrb[28].mxu1 %vm93_vm4, %v16295_v55 }
 0x1cf   :  { %13220 = vmatprep.mubr.msk.bf16.mxu1 %vm93_vm4, %v2288_v27 }
 0x1d6   :  { %13221 = vmatmul.mubr.msk.bf16.vlgmr.msra.gmra.mrb[16].mxu1 %vm93_vm4, %v2289_v39 }
 0x1d7   :  { %13237 = vmatpush3.bf16.msra.mxu1 %v15144_v30  ;;  %13224 = vmatprep.mubr.msk.bf16.mxu1 %vm93_vm4, %v2290_v36  ;;  %v16328_v30 = vld [vmem:[#allocation4 + $0x120] sm:$0xff] }
 0x1d8   :  { %13238 = vmatprep.subr.bf16.mxu1 %v15145_v62  ;;  %v2295_v17 = vpack.c.bf16 %v16328_v30, %v16219_v52  ;;  %v2649_v52 = vpack.c.bf16 %v16279_v37, %v16273_v4 }
 0x1db   :  { %13239 = vmatpush3.bf16.msra.mxu1 %v15145_v62 }
 0x1dc   :  { %13256 = vmatprep.subr.bf16.mxu1 %v15146_v31 }
 0x1de   :  { %13225 = vmatmul.mubr.msk.bf16.gmra.mrb[20].mxu1 %vm93_vm4, %v2291_v11 }
 0x1df   :  { %13228 = vmatprep.mubr.msk.bf16.mxu1 %vm93_vm4, %v2292_v34 }
 0x1e6   :  { %13229 = vmatmul.mubr.msk.bf16.gmra.mrb[24].mxu1 %vm93_vm4, %v2293_v46 }
 0x1e7   :  { %13232 = vmatprep.mubr.msk.bf16.mxu1 %vm93_vm4, %v2294_v2 }
 0x1ee   :  { %13233 = vmatmul.mubr.msk.bf16.gmra.mrb[28].mxu1 %vm93_vm4, %v2295_v17 }
 0x1ef   :  { %13240 = vmatprep.mubr.msk.bf16.mxu1 %vm93_vm4, %v2466_v14  ;;  %v3441_v14 = vld [vmem:[#allocation5 + $0x1] sm:$0xff] }
 0x1f6   :  { %13241 = vmatmul.mubr.msk.bf16.vlgmr.msra.gmra.mrb[16].mxu1 %vm93_vm4, %v2467_v48 }
 0x1f7   :  { %13257 = vmatpush3.bf16.msra.mxu1 %v15146_v31  ;;  %13244 = vmatprep.mubr.msk.bf16.mxu1 %vm93_vm4, %v2468_v6 }
 0x1f8   :  { %13258 = vmatprep.subr.bf16.mxu1 %v15147_v16 }
 0x1fb   :  { %13259 = vmatpush3.bf16.msra.mxu1 %v15147_v16 }
 0x1fc   :  { %13276 = vmatprep.subr.bf16.mxu1 %v15148_v49 }
 0x1fe   :  { %13245 = vmatmul.mubr.msk.bf16.gmra.mrb[20].mxu1 %vm93_vm4, %v2469_v54 }
 0x1ff   :  { %13248 = vmatprep.mubr.msk.bf16.mxu1 %vm93_vm4, %v2470_v24 }
 0x206   :  { %13249 = vmatmul.mubr.msk.bf16.gmra.mrb[24].mxu1 %vm93_vm4, %v2471_v25 }
 0x207   :  { %13252 = vmatprep.mubr.msk.bf16.mxu1 %vm93_vm4, %v2472_v45 }
 0x20e   :  { %13253 = vmatmul.mubr.msk.bf16.gmra.mrb[28].mxu1 %vm93_vm4, %v2473_v50  ;;  %v15157_v50 = vld [vmem:[%s18624_s5 + $0x8] sm:$0xff]  }
 0x20f   :  { %13260 = vmatprep.mubr.msk.bf16.mxu1 %vm93_vm4, %v2644_v61 }
 0x216   :  { %13261 = vmatmul.mubr.msk.bf16.vlgmr.msra.gmra.mrb[16].mxu1 %vm93_vm4, %v2645_v29 }
 0x217   :  { %13277 = vmatpush3.bf16.msra.mxu1 %v15148_v49  ;;  %13264 = vmatprep.mubr.msk.bf16.mxu1 %vm93_vm4, %v2646_v20 }
 0x218   :  { %13278 = vmatprep.subr.bf16.mxu1 %v15149_v9 }
 0x21b   :  { %13279 = vmatpush3.bf16.msra.mxu1 %v15149_v9 }
 0x21c   :  { %13296 = vmatprep.subr.bf16.mxu1 %v15150_v32 }
 0x21e   :  { %13265 = vmatmul.mubr.msk.bf16.gmra.mrb[20].mxu1 %vm93_vm4, %v2647_v8 }
 0x21f   :  { %13268 = vmatprep.mubr.msk.bf16.mxu1 %vm93_vm4, %v2648_v15 }
 0x226   :  { %13269 = vmatmul.mubr.msk.bf16.gmra.mrb[24].mxu1 %vm93_vm4, %v2649_v52  ;;  %v15158_v52 = vld [vmem:[%s18624_s5 + $0x20] sm:$0xff]  }
 0x227   :  { %13272 = vmatprep.mubr.msk.bf16.mxu1 %vm93_vm4, %v2650_v56 }
 0x22e   :  { %13273 = vmatmul.mubr.msk.bf16.gmra.mrb[28].mxu1 %vm93_vm4, %v2651_v58 }
 0x22f   :  { %13280 = vmatprep.mubr.msk.bf16.mxu1 %vm93_vm4, %v16162_v51  ;;  %v2826_v51 = vpack.c.bf16 %v2814_v40, %v16314_v44 }
 0x236   :  { %13281 = vmatmul.mubr.msk.bf16.vlgmr.msra.gmra.mrb[16].mxu1 %vm93_vm4, %v16171_v0  ;;  %v2822_v0 = vld [vmem:[#allocation4 + $0x130] sm:$0xff] }
 0x237   :  { %13297 = vmatpush3.bf16.msra.mxu1 %v15150_v32  ;;  %13284 = vmatprep.mubr.msk.bf16.mxu1 %vm93_vm4, %v16189_v41  ;;  %v2830_v41 = vpack.c.bf16 %v2822_v0, %v16328_v30 }
 0x238   :  { %13298 = vmatprep.subr.bf16.mxu1 %v15151_v26 }
 0x23b   :  { %13299 = vmatpush3.bf16.msra.mxu1 %v15151_v26 }
 0x23c   :  { %13316 = vmatprep.subr.bf16.mxu1 %v15152_v38 }
 0x23e   :  { %13285 = vmatmul.mubr.msk.bf16.gmra.mrb[20].mxu1 %vm93_vm4, %v2826_v51 }
 0x23f   :  { %13288 = vmatprep.mubr.msk.bf16.mxu1 %vm93_vm4, %v16203_v18  ;;  %v2992_v18 = vld [vmem:[#allocation4 + $0x91] sm:$0xff] }
 0x246   :  { %13289 = vmatmul.mubr.msk.bf16.gmra.mrb[24].mxu1 %vm93_vm4, %v16209_v10  ;;  %v3004_v10 = vpack.c.bf16 %v2992_v18, %v16348_v60 }
 0x247   :  { %13292 = vmatprep.mubr.msk.bf16.mxu1 %vm93_vm4, %v16223_v53 }
 0x24e   :  { %13293 = vmatmul.mubr.msk.bf16.gmra.mrb[28].mxu1 %vm93_vm4, %v2830_v41 }
 0x24f   :  { %13300 = vmatprep.mubr.msk.bf16.mxu1 %vm93_vm4, %v16058_v1  ;;  %v3000_v1 = vld [vmem:[#allocation4 + $0x131] sm:$0xff] }
 0x256   :  { %13301 = vmatmul.mubr.msk.bf16.vlgmr.msra.gmra.mrb[16].mxu1 %vm93_vm4, %v16085_v43  ;;  %v3008_v43 = vpack.c.bf16 %v3000_v1, %v16362_v23 }
 0x257   :  { %13317 = vmatpush3.bf16.msra.mxu1 %v15152_v38  ;;  %13304 = vmatprep.mubr.msk.bf16.mxu1 %vm93_vm4, %v16099_v5  ;;  %v3170_v5 = vld [vmem:[#allocation4 + $0x92] sm:$0xff] }
 0x258   :  { %13318 = vmatprep.subr.bf16.mxu1 %v15153_v42 }
 0x25b   :  { %13319 = vmatpush3.bf16.msra.mxu1 %v15153_v42 }
 0x25e   :  { %13305 = vmatmul.mubr.msk.bf16.gmra.mrb[20].mxu1 %vm93_vm4, %v3004_v10 }
 0x25f   :  { %13308 = vmatprep.mubr.msk.bf16.mxu1 %vm93_vm4, %v16126_v12  ;;  %v3182_v12 = vpack.c.bf16 %v3170_v5, %v2635_v33 }
 0x266   :  { %13309 = vmatmul.mubr.msk.bf16.gmra.mrb[24].mxu1 %vm93_vm4, %v16136_v21  ;;  %v18655_v21 = vld [vmem:[#allocation6_spill] sm:$0xff] }
 0x267   :  { %13312 = vmatprep.mubr.msk.bf16.mxu1 %vm93_vm4, %v16148_v35  ;;  %v3178_v35 = vld [vmem:[#allocation4 + $0x132] sm:$0xff] }
 0x268   :  { %v3186_v53 = vpack.c.bf16 %v3178_v35, %v2643_v57 }
 0x26e   :  { %13313 = vmatmul.mubr.msk.bf16.gmra.mrb[28].mxu1 %vm93_vm4, %v3008_v43 }
 0x26f   :  { %13320 = vmatprep.mubr.msk.bf16.mxu1 %vm93_vm4, %v16237_v13  ;;  %v15155_v13 = vld [vmem:[%s18624_s5 + $0x18] sm:$0xff]  }
 0x270   :  { %13338 = vmatprep.subr.bf16.mxu0 %v15155_v13 }
 0x271   :  { %13339 = vmatpush3.bf16.msra.mxu0 %v15155_v13 }
 0x276   :  { %13321 = vmatmul.mubr.msk.bf16.vlgmr.msra.gmra.mrb[16].mxu1 %vm93_vm4, %v16246_v28  ;;  %v15156_v28 = vld [vmem:[%s18624_s5] sm:$0xff]  }
 0x277   :  { %13324 = vmatprep.mubr.msk.bf16.mxu1 %vm93_vm4, %v16263_v47  ;;  %13356 = vmatprep.subr.bf16.mxu0 %v15156_v28  ;;  %v16462_v47 = vld [vmem:[%s18625_s4] ss:$0 sm:$0xff] }
 0x27e   :  { %13325 = vmatmul.mubr.msk.bf16.gmra.mrb[20].mxu1 %vm93_vm4, %v3182_v12 }
 0x27f   :  { %13328 = vmatprep.mubr.msk.bf16.mxu1 %vm93_vm4, %v16277_v63 }
 0x286   :  { %13329 = vmatmul.mubr.msk.bf16.gmra.mrb[24].mxu1 %vm93_vm4, %v18655_v21  ;;  %v3449_v21 = vld [vmem:[#allocation5 + $0xa1] sm:$0xff] }
 0x287   :  { %13332 = vmatprep.mubr.msk.bf16.mxu1 %vm93_vm4, %v16295_v55 }
 0x28e   :  { %13333 = vmatmul.mubr.msk.bf16.gmra.mrb[28].mxu1 %vm93_vm4, %v3186_v53 }
 0x349   :  { %v13322_v3 = vpop.f32.mrb[16].mxu1 }
 0x34a   :  { %v3350_v22 = vadd.f32 %v13322_v3, %v16462_v47  ;;  %v3262_v4 = vpop.f32.mrb[17].mxu1 }
 0x34b   :  { %v3348_v63 = vadd.f32 %v16462_v47, %v3262_v4  ;;  %v13323_v37 = vpop.f32.mrb[18].mxu1 }
 0x34c   :  { %v3366_v36 = vmax.f32 %v3350_v22, 0.0  ;;  %v3351_v59 = vadd.f32 %v13323_v37, %v16462_v47  ;;  %v3265_v19 = vpop.f32.mrb[19].mxu1 }
 0x34d   :  { %v3364_v55 = vmax.f32 %v3348_v63, 0.0  ;;  %v3349_v27 = vadd.f32 %v16462_v47, %v3265_v19  ;;  %v3413_v19 = vld [vmem:[#allocation5] sm:$0xff] }
 0x34e   :  { %3383 = vst.msk [vmem:[#allocation5 + $0x31] sm:$0xff] %vm93_vm4, %v3366_v36  ;;  %v3367_v39 = vmax.f32 %v3351_v59, 0.0 }
 0x34f   :  { %3381 = vst.msk [vmem:[#allocation5 + $0x11] sm:$0xff] %vm93_vm4, %v3364_v55  ;;  %v3365_v62 = vmax.f32 %v3349_v27, 0.0 }
 0x350   :  { %3384 = vst.msk [vmem:[#allocation5 + $0x41] sm:$0xff] %vm93_vm4, %v3367_v39 }
 0x351   :  { %3382 = vst.msk [vmem:[#allocation5 + $0x21] sm:$0xff] %vm93_vm4, %v3365_v62  ;;  %v13326_v31 = vpop.f32.mrb[20].mxu1 }
 0x352   :  { %v3354_v44 = vadd.f32 %v13326_v31, %v16462_v47  ;;  %v3278_v11 = vpop.f32.mrb[21].mxu1 }
 0x353   :  { %v3352_v34 = vadd.f32 %v16462_v47, %v3278_v11  ;;  %v13327_v46 = vpop.f32.mrb[22].mxu1 }
 0x354   :  { %v3370_v2 = vmax.f32 %v3354_v44, 0.0  ;;  %v3355_v30 = vadd.f32 %v13327_v46, %v16462_v47  ;;  %v3281_v17 = vpop.f32.mrb[23].mxu1 }
 0x355   :  { %v3368_v48 = vmax.f32 %v3352_v34, 0.0  ;;  %v3353_v16 = vadd.f32 %v16462_v47, %v3281_v17  ;;  %v16484_v25 = vld [vmem:[#allocation5 + $0x31] sm:$0xff] }
 0x356   :  { %3387 = vst.msk [vmem:[#allocation5 + $0x71] sm:$0xff] %vm93_vm4, %v3370_v2  ;;  %v3371_v6 = vmax.f32 %v3355_v30, 0.0  ;;  %v16477_v49 = vld [vmem:[#allocation5 + $0x11] sm:$0xff]  ;;  %v15159_v30 = vld [vmem:[%s18624_s5 + $0x28] sm:$0xff]  }
 0x357   :  { %3385 = vst.msk [vmem:[#allocation5 + $0x51] sm:$0xff] %vm93_vm4, %v3368_v48  ;;  %v3369_v60 = vmax.f32 %v3353_v16, 0.0  ;;  %v3457_v54 = vpack.c.bf16 %v16477_v49, %v3441_v14  ;;  %v16505_v57 = vld [vmem:[#allocation5 + $0x41] sm:$0xff]  ;;  %v16558_v55 = vld [vmem:[#allocation5 + $0x10] sm:$0xff] }
 0x358   :  { %3388 = vst.msk [vmem:[#allocation5 + $0x81] sm:$0xff] %vm93_vm4, %v3371_v6  ;;  %v16482_v24 = vld [vmem:[#allocation5 + $0x21] sm:$0xff]  ;;  %v3429_v31 = vpack.c.bf16 %v16558_v55, %v3413_v19  ;;  %v16578_v34 = vld [vmem:[#allocation5 + $0x30] sm:$0xff] }
 0x359   :  { %3386 = vst.msk [vmem:[#allocation5 + $0x61] sm:$0xff] %vm93_vm4, %v3369_v60  ;;  %v13330_v45 = vpop.f32.mrb[24].mxu1  ;;  %13340 = vmatprep.mubr.msk.bf16.mxu0 %vm93_vm4, %v3457_v54  ;;  %v16490_v23 = vpack.c.bf16 %v16484_v25, %v16482_v24  ;;  %v16574_v44 = vld [vmem:[#allocation5 + $0x20] sm:$0xff]  ;;  %v15160_v14 = vld [vmem:[%s18624_s5 + $0x30] sm:$0xff]  }
 0x35a   :  { %v3358_v61 = vadd.f32 %v13330_v45, %v16462_v47  ;;  %v3294_v7 = vpop.f32.mrb[25].mxu1  ;;  %v16582_v46 = vpack.c.bf16 %v16578_v34, %v16574_v44  ;;  %v16584_v2 = vld [vmem:[#allocation5 + $0x40] sm:$0xff] }
 0x35b   :  { %v3356_v9 = vadd.f32 %v16462_v47, %v3294_v7  ;;  %v13331_v29 = vpop.f32.mrb[26].mxu1  ;;  %13341 = vmatmul.mubr.msk.bf16.vlgmr.msra.gmra.mrb[16].mxu0 %vm93_vm4, %v16490_v23  ;;  %v3421_v16 = vld [vmem:[#allocation5 + $0xa0] sm:$0xff] }
 0x35c   :  { %v3374_v20 = vmax.f32 %v3358_v61, 0.0  ;;  %v3359_v32 = vadd.f32 %v13331_v29, %v16462_v47  ;;  %13357 = vmatpush3.bf16.msra.mxu0 %v15156_v28  ;;  %v3297_v33 = vpop.f32.mrb[27].mxu1 }
 0x35d   :  { %v3372_v8 = vmax.f32 %v3356_v9, 0.0  ;;  %v3357_v15 = vadd.f32 %v16462_v47, %v3297_v33  ;;  %13358 = vmatprep.subr.bf16.mxu0 %v15157_v50  ;;  %v16517_v51 = vld [vmem:[#allocation5 + $0x71] sm:$0xff]  ;;  %v3736_v33 = vld [vmem:[#allocation5 + $0x2] sm:$0xff] }
 0x35e   :  { %3391 = vst.msk [vmem:[#allocation5 + $0xd1] sm:$0xff] %vm93_vm4, %v3374_v20  ;;  %v3375_v56 = vmax.f32 %v3359_v32, 0.0  ;;  %v16507_v58 = vld [vmem:[#allocation5 + $0x51] sm:$0xff] }
 0x35f   :  { %3389 = vst.msk [vmem:[#allocation5 + $0xb1] sm:$0xff] %vm93_vm4, %v3372_v8  ;;  %v3373_v26 = vmax.f32 %v3357_v15, 0.0  ;;  %v16512_v38 = vpack.c.bf16 %v16507_v58, %v16505_v57  ;;  %v16576_v11 = vld [vmem:[#allocation5 + $0x50] sm:$0xff] }
 0x360   :  { %3392 = vst.msk [vmem:[#allocation5 + $0xe1] sm:$0xff] %vm93_vm4, %v3375_v56  ;;  %v16515_v40 = vld [vmem:[#allocation5 + $0x61] sm:$0xff]  ;;  %13359 = vmatpush3.bf16.msra.mxu0 %v15157_v50  ;;  %v16591_v17 = vpack.c.bf16 %v16576_v11, %v16584_v2  ;;  %v16604_v60 = vld [vmem:[#allocation5 + $0x70] sm:$0xff] }
 0x361   :  { %3390 = vst.msk [vmem:[#allocation5 + $0xc1] sm:$0xff] %vm93_vm4, %v3373_v26  ;;  %v13334_v0 = vpop.f32.mrb[28].mxu1  ;;  %13344 = vmatprep.mubr.msk.bf16.mxu0 %vm93_vm4, %v16512_v38  ;;  %v16524_v41 = vpack.c.bf16 %v16517_v51, %v16515_v40  ;;  %13376 = vmatprep.subr.bf16.mxu0 %v15158_v52  ;;  %v16600_v48 = vld [vmem:[#allocation5 + $0x60] sm:$0xff]  ;;  %v16636_v8 = vld [vmem:[#allocation5 + $0x12] sm:$0xff] }
 0x362   :  { %v3362_v42 = vadd.f32 %v13334_v0, %v16462_v47  ;;  %v3310_v18 = vpop.f32.mrb[29].mxu1  ;;  %v16608_v54 = vpack.c.bf16 %v16604_v60, %v16600_v48  ;;  %v3752_v56 = vpack.c.bf16 %v16636_v8, %v3736_v33  ;;  %v16648_v26 = vld [vmem:[#allocation5 + $0x22] sm:$0xff]  ;;  %v16650_v0 = vld [vmem:[#allocation5 + $0x52] sm:$0xff] }
 0x363   :  { %v3360_v10 = vadd.f32 %v16462_v47, %v3310_v18  ;;  %v13335_v1 = vpop.f32.mrb[30].mxu1  ;;  %13345 = vmatmul.mubr.msk.bf16.gmra.mrb[20].mxu0 %vm93_vm4, %v16524_v41 }
 0x364   :  { %v3378_v43 = vmax.f32 %v3362_v42, 0.0  ;;  %v3363_v5 = vadd.f32 %v13335_v1, %v16462_v47  ;;  %v3313_v12 = vpop.f32.mrb[31].mxu1  ;;  %v16652_v42 = vld [vmem:[#allocation5 + $0x32] sm:$0xff] }
 0x365   :  { %v3376_v35 = vmax.f32 %v3360_v10, 0.0  ;;  %v3361_v53 = vadd.f32 %v16462_v47, %v3313_v12  ;;  %v16540_v63 = vld [vmem:[#allocation5 + $0xd1] sm:$0xff]  ;;  %v16656_v18 = vpack.c.bf16 %v16652_v42, %v16648_v26  ;;  %v16658_v10 = vld [vmem:[#allocation5 + $0x42] sm:$0xff] }
 0x366   :  { %3395 = vst.msk [vmem:[#allocation5 + $0x111] sm:$0xff] %vm93_vm4, %v3378_v43  ;;  %v3379_v13 = vmax.f32 %v3363_v5, 0.0  ;;  %v16533_v28 = vld [vmem:[#allocation5 + $0xb1] sm:$0xff]  ;;  %v16665_v43 = vpack.c.bf16 %v16650_v0, %v16658_v10  ;;  %v15162_v5 = vld [vmem:[%s18624_s5 + $0x40] sm:$0xff]  }
 0x367   :  { %3393 = vst.msk [vmem:[#allocation5 + $0xf1] sm:$0xff] %vm93_vm4, %v3376_v35  ;;  %v3377_v3 = vmax.f32 %v3361_v53, 0.0  ;;  %v3461_v22 = vpack.c.bf16 %v16533_v28, %v3449_v21  ;;  %v16550_v37 = vld [vmem:[#allocation5 + $0xe1] sm:$0xff]  ;;  %v16602_v6 = vld [vmem:[#allocation5 + $0xb0] sm:$0xff]  ;;  %v15161_v1 = vld [vmem:[%s18624_s5 + $0x38] sm:$0xff]  }
 0x368   :  { %3396 = vst.msk [vmem:[#allocation5 + $0x121] sm:$0xff] %vm93_vm4, %v3379_v13  ;;  %v16538_v4 = vld [vmem:[#allocation5 + $0xc1] sm:$0xff]  ;;  %v3433_v45 = vpack.c.bf16 %v16602_v6, %v3421_v16  ;;  %v16618_v7 = vld [vmem:[#allocation5 + $0xd0] sm:$0xff] }
 0x369   :  { %3394 = vst.msk [vmem:[#allocation5 + $0x101] sm:$0xff] %vm93_vm4, %v3377_v3  ;;  %13348 = vmatprep.mubr.msk.bf16.mxu0 %vm93_vm4, %v3461_v22  ;;  %v16546_v47 = vpack.c.bf16 %v16540_v63, %v16538_v4  ;;  %v16614_v50 = vld [vmem:[#allocation5 + $0xc0] sm:$0xff]  ;;  %v16676_v35 = vld [vmem:[#allocation5 + $0xb2] sm:$0xff] }
 0x36a   :  { %v16622_v9 = vpack.c.bf16 %v16618_v7, %v16614_v50  ;;  %v16624_v29 = vld [vmem:[#allocation5 + $0xe0] sm:$0xff]  ;;  %v16678_v53 = vld [vmem:[#allocation5 + $0x72] sm:$0xff] }
 0x36b   :  { %13349 = vmatmul.mubr.msk.bf16.gmra.mrb[24].mxu0 %vm93_vm4, %v16546_v47  ;;  %v16674_v12 = vld [vmem:[#allocation5 + $0x62] sm:$0xff] }
 0x36c   :  { %v3744_v21 = vld [vmem:[#allocation5 + $0xa2] sm:$0xff]  ;;  %v16682_v13 = vpack.c.bf16 %v16678_v53, %v16674_v12 }
 0x36d   :  { %v16562_v39 = vld [vmem:[#allocation5 + $0x111] sm:$0xff]  ;;  %v3756_v3 = vpack.c.bf16 %v16676_v35, %v3744_v21  ;;  %v16688_v22 = vld [vmem:[#allocation5 + $0xc2] sm:$0xff]  ;;  %v3931_v21 = vpack.c.bf16 %v16584_v2, %v16578_v34  ;;  %v3935_v2 = vpack.c.bf16 %v16624_v29, %v16618_v7  ;;  %v4110_v7 = vpack.c.bf16 %v16515_v40, %v16507_v58 }
 0x36e   :  { %v16552_v36 = vld [vmem:[#allocation5 + $0xf1] sm:$0xff]  ;;  %v4113_v58 = vpack.c.bf16 %v16550_v37, %v16540_v63  ;;  %v15167_v63 = vld [vmem:[%s18624_s5 + $0x68] sm:$0xff]  }
 0x36f   :  { %v16556_v59 = vpack.c.bf16 %v16552_v36, %v16550_v37  ;;  %v16616_v61 = vld [vmem:[#allocation5 + $0xf0] sm:$0xff]  ;;  %v4287_v37 = vpack.c.bf16 %v16658_v10, %v16652_v42  ;;  %v15169_v10 = vld [vmem:[%s18624_s5 + $0x78] sm:$0xff]  }
 0x370   :  { %v16560_v27 = vld [vmem:[#allocation5 + $0x101] sm:$0xff]  ;;  %v16628_v20 = vpack.c.bf16 %v16616_v61, %v16624_v29  ;;  %v16638_v15 = vld [vmem:[#allocation5 + $0x110] sm:$0xff] }
 0x371   :  { %13352 = vmatprep.mubr.msk.bf16.mxu0 %vm93_vm4, %v16556_v59  ;;  %v16568_v62 = vpack.c.bf16 %v16562_v39, %v16560_v27  ;;  %v16634_v32 = vld [vmem:[#allocation5 + $0x100] sm:$0xff]  ;;  %v16690_v19 = vld [vmem:[#allocation5 + $0xf2] sm:$0xff]  ;;  %v4114_v40 = vpack.c.bf16 %v16560_v27, %v16552_v36  ;;  %v4288_v36 = vpack.c.bf16 %v16674_v12, %v16650_v0 }
 0x372   :  { %v16710_v33 = vld [vmem:[#allocation5 + $0x112] sm:$0xff]  ;;  %v16781_v29 = vld [vmem:[#allocation5 + $0x121] sm:$0xff] }
 0x373   :  { %13353 = vmatmul.mubr.msk.bf16.gmra.mrb[28].mxu0 %vm93_vm4, %v16568_v62  ;;  %v15168_v27 = vld [vmem:[%s18624_s5 + $0x70] sm:$0xff]   ;;  %v4285_v0 = vld [vmem:[#allocation5 + $0x122] sm:$0xff] }
 0x374   :  { %13360 = vmatprep.mubr.msk.bf16.mxu0 %vm93_vm4, %v3429_v31  ;;  %v16692_v31 = vld [vmem:[#allocation5 + $0xd2] sm:$0xff]  ;;  %v4293_v42 = vpack.c.bf16 %v4285_v0, %v16710_v33  ;;  %v15170_v12 = vld [vmem:[%s18624_s5 + $0x80] sm:$0xff]  }
 0x37b   :  { %13361 = vmatmul.mubr.msk.bf16.vlgmr.msra.gmra.mrb[16].mxu0 %vm93_vm4, %v16582_v46 }
 0x37c   :  { %13377 = vmatpush3.bf16.msra.mxu0 %v15158_v52  ;;  %13364 = vmatprep.mubr.msk.bf16.mxu0 %vm93_vm4, %v16591_v17  ;;  %v16642_v52 = vpack.c.bf16 %v16638_v15, %v16634_v32 }
 0x37d   :  { %13378 = vmatprep.subr.bf16.mxu0 %v15159_v30 }
 0x380   :  { %13379 = vmatpush3.bf16.msra.mxu0 %v15159_v30  ;;  %v16696_v30 = vpack.c.bf16 %v16692_v31, %v16688_v22 }
 0x381   :  { %13396 = vmatprep.subr.bf16.mxu0 %v15160_v14 }
 0x383   :  { %13365 = vmatmul.mubr.msk.bf16.gmra.mrb[20].mxu0 %vm93_vm4, %v16608_v54 }
 0x384   :  { %13368 = vmatprep.mubr.msk.bf16.mxu0 %vm93_vm4, %v3433_v45  ;;  %v16708_v45 = vld [vmem:[#allocation5 + $0x102] sm:$0xff] }
 0x38b   :  { %13369 = vmatmul.mubr.msk.bf16.gmra.mrb[24].mxu0 %vm93_vm4, %v16622_v9 }
 0x38c   :  { %13372 = vmatprep.mubr.msk.bf16.mxu0 %vm93_vm4, %v16628_v20 }
 0x393   :  { %13373 = vmatmul.mubr.msk.bf16.gmra.mrb[28].mxu0 %vm93_vm4, %v16642_v52 }
 0x394   :  { %13380 = vmatprep.mubr.msk.bf16.mxu0 %vm93_vm4, %v3752_v56  ;;  %v16714_v56 = vpack.c.bf16 %v16710_v33, %v16708_v45  ;;  %v3397_v33 = vld [vmem:[#allocation4 + $0x11] sm:$0xff] }
 0x39b   :  { %13381 = vmatmul.mubr.msk.bf16.vlgmr.msra.gmra.mrb[16].mxu0 %vm93_vm4, %v16656_v18 }
 0x39c   :  { %13397 = vmatpush3.bf16.msra.mxu0 %v15160_v14  ;;  %13384 = vmatprep.mubr.msk.bf16.mxu0 %vm93_vm4, %v16665_v43  ;;  %v16698_v14 = vld [vmem:[#allocation5 + $0xe2] sm:$0xff] }
 0x39d   :  { %13398 = vmatprep.subr.bf16.mxu0 %v15161_v1  ;;  %v16702_v16 = vpack.c.bf16 %v16690_v19, %v16698_v14 }
 0x39f   :  { %18656 = vst [vmem:[#allocation6_spill] sm:$0xff] %v16702_v16 }
 0x3a0   :  { %13399 = vmatpush3.bf16.msra.mxu0 %v15161_v1  ;;  %v3930_v1 = vpack.c.bf16 %v16574_v44, %v16558_v55  ;;  %v15164_v55 = vld [vmem:[%s18624_s5 + $0x50] sm:$0xff]   ;;  %v16733_v44 = vld [vmem:[#allocation5 + $0x80] sm:$0xff] }
 0x3a1   :  { %13416 = vmatprep.subr.bf16.mxu0 %v15162_v5  ;;  %v3933_v34 = vpack.c.bf16 %v16733_v44, %v16604_v60 }
 0x3a3   :  { %13385 = vmatmul.mubr.msk.bf16.gmra.mrb[20].mxu0 %vm93_vm4, %v16682_v13 }
 0x3a4   :  { %13388 = vmatprep.mubr.msk.bf16.mxu0 %vm93_vm4, %v3756_v3  ;;  %v15163_v3 = vld [vmem:[%s18624_s5 + $0x48] sm:$0xff]  }
 0x3ab   :  { %13389 = vmatmul.mubr.msk.bf16.gmra.mrb[24].mxu0 %vm93_vm4, %v16696_v30 }
 0x3ac   :  { %13392 = vmatprep.mubr.msk.bf16.mxu0 %vm93_vm4, %v16702_v16  ;;  %v3932_v16 = vpack.c.bf16 %v16600_v48, %v16576_v11  ;;  %v3934_v11 = vpack.c.bf16 %v16614_v50, %v16602_v6  ;;  %v3936_v48 = vpack.c.bf16 %v16634_v32, %v16616_v61  ;;  %v4108_v6 = vpack.c.bf16 %v16482_v24, %v16477_v49  ;;  %v15165_v61 = vld [vmem:[%s18624_s5 + $0x58] sm:$0xff]   ;;  %v15166_v49 = vld [vmem:[%s18624_s5 + $0x60] sm:$0xff]  }
 0x3ad   :  { %v4109_v50 = vpack.c.bf16 %v16505_v57, %v16484_v25  ;;  %v16767_v24 = vld [vmem:[#allocation5 + $0x81] sm:$0xff]  ;;  %v4112_v57 = vpack.c.bf16 %v16538_v4, %v16533_v28  ;;  %v4286_v28 = vpack.c.bf16 %v16648_v26, %v16636_v8  ;;  %v15172_v4 = vld [vmem:[%s18626_s7 + $0x10] sm:$0xff]   ;;  %v4290_v8 = vpack.c.bf16 %v16688_v22, %v16676_v35 }
 0x3ae   :  { %v4111_v25 = vpack.c.bf16 %v16767_v24, %v16517_v51  ;;  %v4115_v51 = vpack.c.bf16 %v16781_v29, %v16562_v39  ;;  %13516 = vmatprep.subr.bf16.mxu1 %v15172_v4  ;;  %v4277_v39 = vld [vmem:[#allocation5 + $0x82] sm:$0xff]  ;;  %v4292_v26 = vpack.c.bf16 %v16708_v45, %v16690_v19  ;;  %v4456_v35 = vld [vmem:[#allocation5 + $0x90] sm:$0xff] }
 0x3af   :  { %13517 = vmatpush3.bf16.msra.mxu1 %v15172_v4  ;;  %v4289_v32 = vpack.c.bf16 %v4277_v39, %v16678_v53  ;;  %v15171_v53 = vld [vmem:[%s18624_s5 + $0x88] sm:$0xff]  }
 0x3b3   :  { %13393 = vmatmul.mubr.msk.bf16.gmra.mrb[28].mxu0 %vm93_vm4, %v16714_v56 }
 0x3b4   :  { %13400 = vmatprep.mubr.msk.bf16.mxu0 %vm93_vm4, %v3930_v1 }
 0x3bb   :  { %13401 = vmatmul.mubr.msk.bf16.vlgmr.msra.gmra.mrb[16].mxu0 %vm93_vm4, %v3931_v21 }
 0x3bc   :  { %13417 = vmatpush3.bf16.msra.mxu0 %v15162_v5  ;;  %13404 = vmatprep.mubr.msk.bf16.mxu0 %vm93_vm4, %v3932_v16  ;;  %v16747_v5 = vld [vmem:[#allocation5 + $0x120] sm:$0xff] }
 0x3bd   :  { %13418 = vmatprep.subr.bf16.mxu0 %v15163_v3  ;;  %v3937_v60 = vpack.c.bf16 %v16747_v5, %v16638_v15  ;;  %v4291_v15 = vpack.c.bf16 %v16698_v14, %v16692_v31 }
 0x3c0   :  { %13419 = vmatpush3.bf16.msra.mxu0 %v15163_v3  ;;  %v3400_v3 = vld [vmem:[#allocation4 + $0x41] sm:$0xff] }
 0x3c1   :  { %13436 = vmatprep.subr.bf16.mxu0 %v15164_v55 }
 0x3c3   :  { %13405 = vmatmul.mubr.msk.bf16.gmra.mrb[20].mxu0 %vm93_vm4, %v3933_v34  ;;  %v3398_v34 = vld [vmem:[#allocation4 + $0x21] sm:$0xff] }
 0x3c4   :  { %13408 = vmatprep.mubr.msk.bf16.mxu0 %vm93_vm4, %v3934_v11 }
 0x3cb   :  { %13409 = vmatmul.mubr.msk.bf16.gmra.mrb[24].mxu0 %vm93_vm4, %v3935_v2 }
 0x3cc   :  { %13412 = vmatprep.mubr.msk.bf16.mxu0 %vm93_vm4, %v3936_v48 }
 0x3d3   :  { %13413 = vmatmul.mubr.msk.bf16.gmra.mrb[28].mxu0 %vm93_vm4, %v3937_v60  ;;  %v3403_v60 = vld [vmem:[#allocation4 + $0x71] sm:$0xff] }
 0x3d4   :  { %13420 = vmatprep.mubr.msk.bf16.mxu0 %vm93_vm4, %v4108_v6 }
 0x3db   :  { %13421 = vmatmul.mubr.msk.bf16.vlgmr.msra.gmra.mrb[16].mxu0 %vm93_vm4, %v4109_v50 }
 0x3dc   :  { %13437 = vmatpush3.bf16.msra.mxu0 %v15164_v55  ;;  %13424 = vmatprep.mubr.msk.bf16.mxu0 %vm93_vm4, %v4110_v7  ;;  %v3401_v7 = vld [vmem:[#allocation4 + $0x51] sm:$0xff] }
 0x3dd   :  { %13438 = vmatprep.subr.bf16.mxu0 %v15165_v61 }
 0x3e0   :  { %13439 = vmatpush3.bf16.msra.mxu0 %v15165_v61 }
 0x3e1   :  { %13456 = vmatprep.subr.bf16.mxu0 %v15166_v49 }
 0x3e3   :  { %13425 = vmatmul.mubr.msk.bf16.gmra.mrb[20].mxu0 %vm93_vm4, %v4111_v25  ;;  %v5066_v25 = vld [vmem:[#allocation4 + $0x1] sm:$0xff] }
 0x3e4   :  { %13428 = vmatprep.mubr.msk.bf16.mxu0 %vm93_vm4, %v4112_v57 }
 0x3eb   :  { %13429 = vmatmul.mubr.msk.bf16.gmra.mrb[24].mxu0 %vm93_vm4, %v4113_v58  ;;  %v3404_v58 = vld [vmem:[#allocation4 + $0x81] sm:$0xff] }
 0x3ec   :  { %13432 = vmatprep.mubr.msk.bf16.mxu0 %vm93_vm4, %v4114_v40 }
 0x3f3   :  { %13433 = vmatmul.mubr.msk.bf16.gmra.mrb[28].mxu0 %vm93_vm4, %v4115_v51  ;;  %v3402_v51 = vld [vmem:[#allocation4 + $0x61] sm:$0xff] }
 0x3f4   :  { %13440 = vmatprep.mubr.msk.bf16.mxu0 %vm93_vm4, %v4286_v28 }
 0x3fb   :  { %13441 = vmatmul.mubr.msk.bf16.vlgmr.msra.gmra.mrb[16].mxu0 %vm93_vm4, %v4287_v37 }
 0x3fc   :  { %13457 = vmatpush3.bf16.msra.mxu0 %v15166_v49  ;;  %13444 = vmatprep.mubr.msk.bf16.mxu0 %vm93_vm4, %v4288_v36 }
 0x3fd   :  { %13458 = vmatprep.subr.bf16.mxu0 %v15167_v63 }
 0x400   :  { %13459 = vmatpush3.bf16.msra.mxu0 %v15167_v63 }
 0x401   :  { %13476 = vmatprep.subr.bf16.mxu0 %v15168_v27 }
 0x403   :  { %13445 = vmatmul.mubr.msk.bf16.gmra.mrb[20].mxu0 %vm93_vm4, %v4289_v32  ;;  %v15175_v32 = vld [vmem:[%s18626_s7 + $0x8] sm:$0xff]  }
 0x404   :  { %13448 = vmatprep.mubr.msk.bf16.mxu0 %vm93_vm4, %v4290_v8 }
 0x40b   :  { %13449 = vmatmul.mubr.msk.bf16.gmra.mrb[24].mxu0 %vm93_vm4, %v4291_v15 }
 0x40c   :  { %13452 = vmatprep.mubr.msk.bf16.mxu0 %vm93_vm4, %v4292_v26  ;;  %v3407_v26 = vld [vmem:[#allocation4 + $0xd1] sm:$0xff] }
 0x413   :  { %13453 = vmatmul.mubr.msk.bf16.gmra.mrb[28].mxu0 %vm93_vm4, %v4293_v42 }
 0x414   :  { %13460 = vmatprep.mubr.msk.bf16.mxu0 %vm93_vm4, %v16582_v46  ;;  %v4468_v46 = vpack.c.bf16 %v4456_v35, %v16733_v44 }
 0x41b   :  { %13461 = vmatmul.mubr.msk.bf16.vlgmr.msra.gmra.mrb[16].mxu0 %vm93_vm4, %v16591_v17  ;;  %v4464_v17 = vld [vmem:[#allocation5 + $0x130] sm:$0xff] }
 0x41c   :  { %13477 = vmatpush3.bf16.msra.mxu0 %v15168_v27  ;;  %13464 = vmatprep.mubr.msk.bf16.mxu0 %vm93_vm4, %v16608_v54  ;;  %v4472_v54 = vpack.c.bf16 %v4464_v17, %v16747_v5 }
 0x41d   :  { %13478 = vmatprep.subr.bf16.mxu0 %v15169_v10 }
 0x420   :  { %13479 = vmatpush3.bf16.msra.mxu0 %v15169_v10 }
 0x421   :  { %13496 = vmatprep.subr.bf16.mxu0 %v15170_v12 }
 0x423   :  { %13465 = vmatmul.mubr.msk.bf16.gmra.mrb[20].mxu0 %vm93_vm4, %v4468_v46 }
 0x424   :  { %13468 = vmatprep.mubr.msk.bf16.mxu0 %vm93_vm4, %v16622_v9  ;;  %v4634_v9 = vld [vmem:[#allocation5 + $0x91] sm:$0xff] }
 0x42b   :  { %13469 = vmatmul.mubr.msk.bf16.gmra.mrb[24].mxu0 %vm93_vm4, %v16628_v20  ;;  %v4646_v20 = vpack.c.bf16 %v4634_v9, %v16767_v24  ;;  %v16923_v9 = vld [vmem:[%s18626_s7 + $0x20] sm:$0xff]  }
 0x42c   :  { %13472 = vmatprep.mubr.msk.bf16.mxu0 %vm93_vm4, %v16642_v52 }
 0x433   :  { %13473 = vmatmul.mubr.msk.bf16.gmra.mrb[28].mxu0 %vm93_vm4, %v4472_v54  ;;  %v3408_v54 = vld [vmem:[#allocation4 + $0xe1] sm:$0xff] }
 0x434   :  { %13480 = vmatprep.mubr.msk.bf16.mxu0 %vm93_vm4, %v16490_v23  ;;  %v4642_v23 = vld [vmem:[#allocation5 + $0x131] sm:$0xff] }
 0x43b   :  { %13481 = vmatmul.mubr.msk.bf16.vlgmr.msra.gmra.mrb[16].mxu0 %vm93_vm4, %v16512_v38  ;;  %v4650_v38 = vpack.c.bf16 %v4642_v23, %v16781_v29  ;;  %v3406_v23 = vld [vmem:[#allocation4 + $0xc1] sm:$0xff] }
 0x43c   :  { %13497 = vmatpush3.bf16.msra.mxu0 %v15170_v12  ;;  %13484 = vmatprep.mubr.msk.bf16.mxu0 %vm93_vm4, %v16524_v41  ;;  %v4812_v41 = vld [vmem:[#allocation5 + $0x92] sm:$0xff] }
 0x43d   :  { %13498 = vmatprep.subr.bf16.mxu0 %v15171_v53  ;;  %v3405_v12 = vld [vmem:[#allocation4 + $0xb1] sm:$0xff] }
 0x440   :  { %13499 = vmatpush3.bf16.msra.mxu0 %v15171_v53 }
 0x443   :  { %13485 = vmatmul.mubr.msk.bf16.gmra.mrb[20].mxu0 %vm93_vm4, %v4646_v20 }
 0x444   :  { %13488 = vmatprep.mubr.msk.bf16.mxu0 %vm93_vm4, %v16546_v47  ;;  %v4824_v47 = vpack.c.bf16 %v4812_v41, %v4277_v39 }
 0x44b   :  { %13489 = vmatmul.mubr.msk.bf16.gmra.mrb[24].mxu0 %vm93_vm4, %v16556_v59  ;;  %v18657_v59 = vld [vmem:[#allocation6_spill] sm:$0xff] }
 0x44c   :  { %13492 = vmatprep.mubr.msk.bf16.mxu0 %vm93_vm4, %v16568_v62  ;;  %v4820_v62 = vld [vmem:[#allocation5 + $0x132] sm:$0xff] }
 0x44d   :  { %v4828_v52 = vpack.c.bf16 %v4820_v62, %v4285_v0 }
 0x453   :  { %13493 = vmatmul.mubr.msk.bf16.gmra.mrb[28].mxu0 %vm93_vm4, %v4650_v38 }
 0x454   :  { %13500 = vmatprep.mubr.msk.bf16.mxu0 %vm93_vm4, %v16656_v18  ;;  %v15173_v18 = vld [vmem:[%s18626_s7 + $0x18] sm:$0xff]  }
 0x455   :  { %13518 = vmatprep.subr.bf16.mxu1 %v15173_v18 }
 0x456   :  { %13519 = vmatpush3.bf16.msra.mxu1 %v15173_v18 }
 0x45b   :  { %13501 = vmatmul.mubr.msk.bf16.vlgmr.msra.gmra.mrb[16].mxu0 %vm93_vm4, %v16665_v43  ;;  %v15174_v43 = vld [vmem:[%s18626_s7] sm:$0xff]  }
 0x45c   :  { %13504 = vmatprep.mubr.msk.bf16.mxu0 %vm93_vm4, %v16682_v13  ;;  %13536 = vmatprep.subr.bf16.mxu1 %v15174_v43  ;;  %v16881_v13 = vld [vmem:[%s18627_s6] ss:$0 sm:$0xff] }
 0x463   :  { %13505 = vmatmul.mubr.msk.bf16.gmra.mrb[20].mxu0 %vm93_vm4, %v4824_v47 }
 0x464   :  { %13508 = vmatprep.mubr.msk.bf16.mxu0 %vm93_vm4, %v16696_v30  ;;  %v3399_v30 = vld [vmem:[#allocation4 + $0x31] sm:$0xff] }
 0x46b   :  { %13509 = vmatmul.mubr.msk.bf16.gmra.mrb[24].mxu0 %vm93_vm4, %v18657_v59 }
 0x46c   :  { %13512 = vmatprep.mubr.msk.bf16.mxu0 %vm93_vm4, %v16714_v56 }
 0x473   :  { %13513 = vmatmul.mubr.msk.bf16.gmra.mrb[28].mxu0 %vm93_vm4, %v4828_v52 }
 0x52e   :  { %v13502_v22 = vpop.f32.mrb[16].mxu0 }
 0x52f   :  { %v4992_v19 = vadd.f32 %v13502_v22, %v16881_v13  ;;  %v4904_v31 = vpop.f32.mrb[17].mxu0 }
 0x530   :  { %v4990_v14 = vadd.f32 %v16881_v13, %v4904_v31  ;;  %v13503_v16 = vpop.f32.mrb[18].mxu0  ;;  %v3411_v31 = vld [vmem:[#allocation4 + $0x111] sm:$0xff] }
 0x531   :  { %v5008_v45 = vadd.f32 %v4992_v19, %v3399_v30  ;;  %v4993_v56 = vadd.f32 %v13503_v16, %v16881_v13  ;;  %v4907_v1 = vpop.f32.mrb[19].mxu0 }
 0x532   :  { %v5006_v21 = vadd.f32 %v4990_v14, %v3397_v33  ;;  %v4991_v55 = vadd.f32 %v16881_v13, %v4907_v1  ;;  %v5074_v1 = vld [vmem:[#allocation4 + $0xa1] sm:$0xff] }
 0x533   :  { %5024 = vst.msk [vmem:[#allocation4 + $0x31] sm:$0xff] %vm93_vm4, %v5008_v45  ;;  %v5009_v44 = vadd.f32 %v4993_v56, %v3400_v3  ;;  %v3409_v45 = vld [vmem:[#allocation4 + $0xf1] sm:$0xff]  ;;  %v3412_v3 = vld [vmem:[#allocation4 + $0x121] sm:$0xff] }
 0x534   :  { %5022 = vst.msk [vmem:[#allocation4 + $0x11] sm:$0xff] %vm93_vm4, %v5006_v21  ;;  %v5007_v11 = vadd.f32 %v4991_v55, %v3398_v34  ;;  %v3410_v34 = vld [vmem:[#allocation4 + $0x101] sm:$0xff] }
 0x535   :  { %5025 = vst.msk [vmem:[#allocation4 + $0x41] sm:$0xff] %vm93_vm4, %v5009_v44 }
 0x536   :  { %5023 = vst.msk [vmem:[#allocation4 + $0x21] sm:$0xff] %vm93_vm4, %v5007_v11  ;;  %v13506_v2 = vpop.f32.mrb[20].mxu0 }
 0x537   :  { %v4996_v48 = vadd.f32 %v13506_v2, %v16881_v13  ;;  %v4920_v5 = vpop.f32.mrb[21].mxu0 }
 0x538   :  { %v4994_v6 = vadd.f32 %v16881_v13, %v4920_v5  ;;  %v13507_v50 = vpop.f32.mrb[22].mxu0 }
 0x539   :  { %v5012_v61 = vadd.f32 %v4996_v48, %v3403_v60  ;;  %v4997_v49 = vadd.f32 %v13507_v50, %v16881_v13  ;;  %v4923_v24 = vpop.f32.mrb[23].mxu0 }
 0x53a   :  { %v5010_v57 = vadd.f32 %v4994_v6, %v3401_v7  ;;  %v4995_v40 = vadd.f32 %v16881_v13, %v4923_v24  ;;  %v16903_v36 = vld [vmem:[#allocation4 + $0x31] sm:$0xff]  ;;  %v5038_v7 = vld [vmem:[#allocation4] sm:$0xff] }
 0x53b   :  { %5028 = vst.msk [vmem:[#allocation4 + $0x71] sm:$0xff] %vm93_vm4, %v5012_v61  ;;  %v5013_v29 = vadd.f32 %v4997_v49, %v3404_v58  ;;  %v16896_v28 = vld [vmem:[#allocation4 + $0x11] sm:$0xff] }
 0x53c   :  { %5026 = vst.msk [vmem:[#allocation4 + $0x51] sm:$0xff] %vm93_vm4, %v5010_v57  ;;  %v5011_v4 = vadd.f32 %v4995_v40, %v3402_v51  ;;  %v5082_v63 = vpack.c.bf16 %v16896_v28, %v5066_v25  ;;  %v16926_v38 = vld [vmem:[#allocation4 + $0x41] sm:$0xff]  ;;  %v16980_v49 = vld [vmem:[#allocation4 + $0x10] sm:$0xff] }
 0x53d   :  { %5029 = vst.msk [vmem:[#allocation4 + $0x81] sm:$0xff] %vm93_vm4, %v5013_v29  ;;  %v16901_v37 = vld [vmem:[#allocation4 + $0x21] sm:$0xff]  ;;  %v5054_v58 = vpack.c.bf16 %v16980_v49, %v5038_v7  ;;  %v17000_v51 = vld [vmem:[#allocation4 + $0x30] sm:$0xff] }
 0x53e   :  { %5027 = vst.msk [vmem:[#allocation4 + $0x61] sm:$0xff] %vm93_vm4, %v5011_v4  ;;  %v13510_v27 = vpop.f32.mrb[24].mxu0  ;;  %13520 = vmatprep.mubr.msk.bf16.mxu1 %vm93_vm4, %v5082_v63  ;;  %v16909_v39 = vpack.c.bf16 %v16903_v36, %v16901_v37  ;;  %v16996_v40 = vld [vmem:[#allocation4 + $0x20] sm:$0xff] }
 0x53f   :  { %v5000_v8 = vadd.f32 %v13510_v27, %v16881_v13  ;;  %v4936_v15 = vpop.f32.mrb[25].mxu0  ;;  %v17004_v4 = vpack.c.bf16 %v17000_v51, %v16996_v40  ;;  %v17006_v63 = vld [vmem:[#allocation4 + $0x40] sm:$0xff]  ;;  %v15177_v27 = vld [vmem:[%s18626_s7 + $0x28] sm:$0xff]  }
 0x540   :  { %v4998_v0 = vadd.f32 %v16881_v13, %v4936_v15  ;;  %v13511_v42 = vpop.f32.mrb[26].mxu0  ;;  %13521 = vmatmul.mubr.msk.bf16.vlgmr.msra.gmra.mrb[32].mxu1 %vm93_vm4, %v16909_v39 }
 0x541   :  { %v5016_v10 = vadd.f32 %v5000_v8, %v3407_v26  ;;  %v5001_v35 = vadd.f32 %v13511_v42, %v16881_v13  ;;  %13537 = vmatpush3.bf16.msra.mxu1 %v15174_v43  ;;  %v4939_v46 = vpop.f32.mrb[27].mxu0  ;;  %v15178_v8 = vld [vmem:[%s18626_s7 + $0x30] sm:$0xff]   ;;  %v5046_v26 = vld [vmem:[#allocation4 + $0xa0] sm:$0xff] }
 0x542   :  { %v5014_v17 = vadd.f32 %v4998_v0, %v3405_v12  ;;  %v4999_v53 = vadd.f32 %v16881_v13, %v4939_v46  ;;  %13538 = vmatprep.subr.bf16.mxu1 %v15175_v32  ;;  %v16938_v52 = vld [vmem:[#allocation4 + $0x71] sm:$0xff] }
 0x543   :  { %5032 = vst.msk [vmem:[#allocation4 + $0xd1] sm:$0xff] %vm93_vm4, %v5016_v10  ;;  %v5017_v20 = vadd.f32 %v5001_v35, %v3408_v54  ;;  %v16928_v41 = vld [vmem:[#allocation4 + $0x51] sm:$0xff] }
 0x544   :  { %5030 = vst.msk [vmem:[#allocation4 + $0xb1] sm:$0xff] %vm93_vm4, %v5014_v17  ;;  %v5015_v47 = vadd.f32 %v4999_v53, %v3406_v23  ;;  %v16933_v59 = vpack.c.bf16 %v16928_v41, %v16926_v38  ;;  %v16998_v29 = vld [vmem:[#allocation4 + $0x50] sm:$0xff]  ;;  %v5361_v23 = vld [vmem:[#allocation4 + $0x2] sm:$0xff] }
 0x545   :  { %5033 = vst.msk [vmem:[#allocation4 + $0xe1] sm:$0xff] %vm93_vm4, %v5017_v20  ;;  %v16936_v62 = vld [vmem:[#allocation4 + $0x61] sm:$0xff]  ;;  %13539 = vmatpush3.bf16.msra.mxu1 %v15175_v32  ;;  %v17013_v32 = vpack.c.bf16 %v16998_v29, %v17006_v63  ;;  %v17027_v42 = vld [vmem:[#allocation4 + $0x70] sm:$0xff] }
 0x546   :  { %5031 = vst.msk [vmem:[#allocation4 + $0xc1] sm:$0xff] %vm93_vm4, %v5015_v47  ;;  %v13514_v18 = vpop.f32.mrb[28].mxu0  ;;  %13524 = vmatprep.mubr.msk.bf16.mxu1 %vm93_vm4, %v16933_v59  ;;  %v16945_v43 = vpack.c.bf16 %v16938_v52, %v16936_v62  ;;  %13556 = vmatprep.subr.bf16.mxu1 %v16923_v9  ;;  %v17023_v15 = vld [vmem:[#allocation4 + $0x60] sm:$0xff]  ;;  %v17059_v47 = vld [vmem:[#allocation4 + $0x12] sm:$0xff] }
 0x547   :  { %v5004_v22 = vadd.f32 %v13514_v18, %v16881_v13  ;;  %v4952_v19 = vpop.f32.mrb[29].mxu0  ;;  %v17031_v10 = vpack.c.bf16 %v17027_v42, %v17023_v15 }
 0x548   :  { %v5002_v30 = vadd.f32 %v16881_v13, %v4952_v19  ;;  %v13515_v14 = vpop.f32.mrb[30].mxu0  ;;  %13525 = vmatmul.mubr.msk.bf16.gmra.mrb[36].mxu1 %vm93_vm4, %v16945_v43  ;;  %v5377_v19 = vpack.c.bf16 %v17059_v47, %v5361_v23 }
 0x549   :  { %v5020_v16 = vadd.f32 %v5004_v22, %v3411_v31  ;;  %v5005_v33 = vadd.f32 %v13515_v14, %v16881_v13  ;;  %v4955_v56 = vpop.f32.mrb[31].mxu0  ;;  %v17071_v31 = vld [vmem:[#allocation4 + $0x22] sm:$0xff]  ;;  %v17075_v14 = vld [vmem:[#allocation4 + $0x32] sm:$0xff] }
 0x54a   :  { %v5018_v21 = vadd.f32 %v5002_v30, %v3409_v45  ;;  %v5003_v55 = vadd.f32 %v16881_v13, %v4955_v56  ;;  %v16962_v60 = vld [vmem:[#allocation4 + $0xd1] sm:$0xff]  ;;  %v17081_v45 = vld [vmem:[#allocation4 + $0x42] sm:$0xff] }
 0x54b   :  { %5036 = vst.msk [vmem:[#allocation4 + $0x111] sm:$0xff] %vm93_vm4, %v5020_v16  ;;  %v5021_v44 = vadd.f32 %v5005_v33, %v3412_v3  ;;  %v16955_v11 = vld [vmem:[#allocation4 + $0xb1] sm:$0xff]  ;;  %v17079_v16 = vpack.c.bf16 %v17075_v14, %v17071_v31  ;;  %v5369_v3 = vld [vmem:[#allocation4 + $0xa2] sm:$0xff] }
 0x54c   :  { %5034 = vst.msk [vmem:[#allocation4 + $0xf1] sm:$0xff] %vm93_vm4, %v5018_v21  ;;  %v5019_v2 = vadd.f32 %v5003_v55, %v3410_v34  ;;  %v5086_v48 = vpack.c.bf16 %v16955_v11, %v5074_v1  ;;  %v16972_v6 = vld [vmem:[#allocation4 + $0xe1] sm:$0xff]  ;;  %v17025_v0 = vld [vmem:[#allocation4 + $0xb0] sm:$0xff]  ;;  %v15179_v33 = vld [vmem:[%s18626_s7 + $0x38] sm:$0xff]  }
 0x54d   :  { %5037 = vst.msk [vmem:[#allocation4 + $0x121] sm:$0xff] %vm93_vm4, %v5021_v44  ;;  %v16960_v5 = vld [vmem:[#allocation4 + $0xc1] sm:$0xff]  ;;  %v5058_v12 = vpack.c.bf16 %v17025_v0, %v5046_v26  ;;  %v17041_v17 = vld [vmem:[#allocation4 + $0xd0] sm:$0xff] }
 0x54e   :  { %5035 = vst.msk [vmem:[#allocation4 + $0x101] sm:$0xff] %vm93_vm4, %v5019_v2  ;;  %13528 = vmatprep.mubr.msk.bf16.mxu1 %vm93_vm4, %v5086_v48  ;;  %v16968_v13 = vpack.c.bf16 %v16962_v60, %v16960_v5  ;;  %v17037_v35 = vld [vmem:[#allocation4 + $0xc0] sm:$0xff]  ;;  %v17073_v30 = vld [vmem:[#allocation4 + $0x52] sm:$0xff] }
 0x54f   :  { %v17045_v54 = vpack.c.bf16 %v17041_v17, %v17037_v35  ;;  %v17047_v53 = vld [vmem:[#allocation4 + $0xe0] sm:$0xff]  ;;  %v17088_v56 = vpack.c.bf16 %v17073_v30, %v17081_v45  ;;  %v17099_v55 = vld [vmem:[#allocation4 + $0xb2] sm:$0xff] }
 0x550   :  { %13529 = vmatmul.mubr.msk.bf16.gmra.mrb[40].mxu1 %vm93_vm4, %v16968_v13  ;;  %v15180_v1 = vld [vmem:[%s18626_s7 + $0x40] sm:$0xff]   ;;  %v17101_v44 = vld [vmem:[#allocation4 + $0x72] sm:$0xff]  ;;  %v5381_v2 = vpack.c.bf16 %v17099_v55, %v5369_v3  ;;  %v5556_v3 = vpack.c.bf16 %v17006_v63, %v17000_v51  ;;  %v5560_v63 = vpack.c.bf16 %v17047_v53, %v17041_v17  ;;  %v5735_v17 = vpack.c.bf16 %v16936_v62, %v16928_v41 }
 0x551   :  { %v17097_v21 = vld [vmem:[#allocation4 + $0x62] sm:$0xff]  ;;  %v5738_v41 = vpack.c.bf16 %v16972_v6, %v16962_v60 }
 0x552   :  { %v16984_v25 = vld [vmem:[#allocation4 + $0x111] sm:$0xff]  ;;  %v17105_v34 = vpack.c.bf16 %v17101_v44, %v17097_v21  ;;  %v17111_v48 = vld [vmem:[#allocation4 + $0xc2] sm:$0xff] }
 0x553   :  { %v16974_v50 = vld [vmem:[#allocation4 + $0xf1] sm:$0xff]  ;;  %v15185_v60 = vld [vmem:[%s18626_s7 + $0x68] sm:$0xff]  }
 0x554   :  { %v16978_v61 = vpack.c.bf16 %v16974_v50, %v16972_v6  ;;  %v17039_v46 = vld [vmem:[#allocation4 + $0xf0] sm:$0xff]  ;;  %v5912_v6 = vpack.c.bf16 %v17081_v45, %v17075_v14  ;;  %v15187_v45 = vld [vmem:[%s18626_s7 + $0x78] sm:$0xff]  }
 0x555   :  { %v16982_v24 = vld [vmem:[#allocation4 + $0x101] sm:$0xff]  ;;  %v17061_v18 = vld [vmem:[#allocation4 + $0x110] sm:$0xff] }
 0x556   :  { %13532 = vmatprep.mubr.msk.bf16.mxu1 %vm93_vm4, %v16978_v61  ;;  %v16990_v57 = vpack.c.bf16 %v16984_v25, %v16982_v24  ;;  %v17057_v20 = vld [vmem:[#allocation4 + $0x100] sm:$0xff]  ;;  %v17113_v7 = vld [vmem:[#allocation4 + $0xf2] sm:$0xff]  ;;  %v5739_v62 = vpack.c.bf16 %v16982_v24, %v16974_v50  ;;  %v5913_v50 = vpack.c.bf16 %v17097_v21, %v17073_v30 }
 0x557   :  { %v17065_v22 = vpack.c.bf16 %v17061_v18, %v17057_v20  ;;  %v17133_v23 = vld [vmem:[#allocation4 + $0x112] sm:$0xff]  ;;  %v5910_v30 = vld [vmem:[#allocation4 + $0x122] sm:$0xff] }
 0x558   :  { %13533 = vmatmul.mubr.msk.bf16.gmra.mrb[44].mxu1 %vm93_vm4, %v16990_v57  ;;  %v15186_v24 = vld [vmem:[%s18626_s7 + $0x70] sm:$0xff]   ;;  %v5918_v14 = vpack.c.bf16 %v5910_v30, %v17133_v23  ;;  %v15188_v21 = vld [vmem:[%s18626_s7 + $0x80] sm:$0xff]  }
 0x559   :  { %13540 = vmatprep.mubr.msk.bf16.mxu1 %vm93_vm4, %v5054_v58  ;;  %v17115_v58 = vld [vmem:[#allocation4 + $0xd2] sm:$0xff] }
 0x560   :  { %13541 = vmatmul.mubr.msk.bf16.vlgmr.msra.gmra.mrb[32].mxu1 %vm93_vm4, %v17004_v4 }
 0x561   :  { %13557 = vmatpush3.bf16.msra.mxu1 %v16923_v9  ;;  %13544 = vmatprep.mubr.msk.bf16.mxu1 %vm93_vm4, %v17013_v32  ;;  %v17051_v9 = vpack.c.bf16 %v17039_v46, %v17047_v53  ;;  %v17204_v53 = vld [vmem:[#allocation4 + $0x121] sm:$0xff] }
 0x562   :  { %13558 = vmatprep.subr.bf16.mxu1 %v15177_v27 }
 0x565   :  { %13559 = vmatpush3.bf16.msra.mxu1 %v15177_v27  ;;  %v17119_v27 = vpack.c.bf16 %v17115_v58, %v17111_v48 }
 0x566   :  { %13576 = vmatprep.subr.bf16.mxu1 %v15178_v8 }
 0x568   :  { %13545 = vmatmul.mubr.msk.bf16.gmra.mrb[36].mxu1 %vm93_vm4, %v17031_v10 }
 0x569   :  { %13548 = vmatprep.mubr.msk.bf16.mxu1 %vm93_vm4, %v5058_v12  ;;  %v17131_v12 = vld [vmem:[#allocation4 + $0x102] sm:$0xff] }
 0x570   :  { %13549 = vmatmul.mubr.msk.bf16.gmra.mrb[40].mxu1 %vm93_vm4, %v17045_v54 }
 0x571   :  { %13552 = vmatprep.mubr.msk.bf16.mxu1 %vm93_vm4, %v17051_v9 }
 0x578   :  { %13553 = vmatmul.mubr.msk.bf16.gmra.mrb[44].mxu1 %vm93_vm4, %v17065_v22 }
 0x579   :  { %13560 = vmatprep.mubr.msk.bf16.mxu1 %vm93_vm4, %v5377_v19  ;;  %v17137_v19 = vpack.c.bf16 %v17133_v23, %v17131_v12 }
 0x580   :  { %13561 = vmatmul.mubr.msk.bf16.vlgmr.msra.gmra.mrb[32].mxu1 %vm93_vm4, %v17079_v16 }
 0x581   :  { %13577 = vmatpush3.bf16.msra.mxu1 %v15178_v8  ;;  %13564 = vmatprep.mubr.msk.bf16.mxu1 %vm93_vm4, %v17088_v56  ;;  %v17121_v8 = vld [vmem:[#allocation4 + $0xe2] sm:$0xff] }
 0x582   :  { %13578 = vmatprep.subr.bf16.mxu1 %v15179_v33  ;;  %v17125_v26 = vpack.c.bf16 %v17113_v7, %v17121_v8 }
 0x584   :  { %18658 = vst [vmem:[#allocation6_spill] sm:$0xff] %v17125_v26 }
 0x585   :  { %13579 = vmatpush3.bf16.msra.mxu1 %v15179_v33  ;;  %v5555_v33 = vpack.c.bf16 %v16996_v40, %v16980_v49  ;;  %v15182_v49 = vld [vmem:[%s18626_s7 + $0x50] sm:$0xff]   ;;  %v17156_v40 = vld [vmem:[#allocation4 + $0x80] sm:$0xff] }
 0x586   :  { %13596 = vmatprep.subr.bf16.mxu1 %v15180_v1  ;;  %v5558_v51 = vpack.c.bf16 %v17156_v40, %v17027_v42 }
 0x588   :  { %13565 = vmatmul.mubr.msk.bf16.gmra.mrb[36].mxu1 %vm93_vm4, %v17105_v34 }
 0x589   :  { %13568 = vmatprep.mubr.msk.bf16.mxu1 %vm93_vm4, %v5381_v2  ;;  %v15181_v2 = vld [vmem:[%s18626_s7 + $0x48] sm:$0xff]  }
 0x590   :  { %13569 = vmatmul.mubr.msk.bf16.gmra.mrb[40].mxu1 %vm93_vm4, %v17119_v27 }
 0x591   :  { %13572 = vmatprep.mubr.msk.bf16.mxu1 %vm93_vm4, %v17125_v26  ;;  %v5557_v26 = vpack.c.bf16 %v17023_v15, %v16998_v29  ;;  %v5559_v29 = vpack.c.bf16 %v17037_v35, %v17025_v0  ;;  %v5561_v15 = vpack.c.bf16 %v17057_v20, %v17039_v46  ;;  %v5733_v0 = vpack.c.bf16 %v16901_v37, %v16896_v28  ;;  %v15183_v46 = vld [vmem:[%s18626_s7 + $0x58] sm:$0xff]   ;;  %v15184_v28 = vld [vmem:[%s18626_s7 + $0x60] sm:$0xff]  }
 0x592   :  { %v5734_v35 = vpack.c.bf16 %v16926_v38, %v16903_v36  ;;  %v17190_v37 = vld [vmem:[#allocation4 + $0x81] sm:$0xff]  ;;  %v5737_v38 = vpack.c.bf16 %v16960_v5, %v16955_v11  ;;  %v5911_v11 = vpack.c.bf16 %v17071_v31, %v17059_v47  ;;  %v15190_v5 = vld [vmem:[%s18628_s9 + $0x10] sm:$0xff]   ;;  %v5915_v47 = vpack.c.bf16 %v17111_v48, %v17099_v55 }
 0x593   :  { %v5736_v36 = vpack.c.bf16 %v17190_v37, %v16938_v52  ;;  %v5740_v52 = vpack.c.bf16 %v17204_v53, %v16984_v25  ;;  %13696 = vmatprep.subr.bf16.mxu0 %v15190_v5  ;;  %v5902_v25 = vld [vmem:[#allocation4 + $0x82] sm:$0xff]  ;;  %v5917_v31 = vpack.c.bf16 %v17131_v12, %v17113_v7  ;;  %v6080_v55 = vld [vmem:[#allocation4 + $0x90] sm:$0xff] }
 0x594   :  { %13697 = vmatpush3.bf16.msra.mxu0 %v15190_v5  ;;  %v5914_v20 = vpack.c.bf16 %v5902_v25, %v17101_v44  ;;  %v15189_v44 = vld [vmem:[%s18626_s7 + $0x88] sm:$0xff]  }
 0x598   :  { %13573 = vmatmul.mubr.msk.bf16.gmra.mrb[44].mxu1 %vm93_vm4, %v17137_v19 }
 0x599   :  { %13580 = vmatprep.mubr.msk.bf16.mxu1 %vm93_vm4, %v5555_v33 }
 0x5a0   :  { %13581 = vmatmul.mubr.msk.bf16.vlgmr.msra.gmra.mrb[32].mxu1 %vm93_vm4, %v5556_v3 }
 0x5a1   :  { %13597 = vmatpush3.bf16.msra.mxu1 %v15180_v1  ;;  %13584 = vmatprep.mubr.msk.bf16.mxu1 %vm93_vm4, %v5557_v26  ;;  %v17170_v1 = vld [vmem:[#allocation4 + $0x120] sm:$0xff] }
 0x5a2   :  { %13598 = vmatprep.subr.bf16.mxu1 %v15181_v2  ;;  %v5562_v42 = vpack.c.bf16 %v17170_v1, %v17061_v18  ;;  %v5916_v18 = vpack.c.bf16 %v17121_v8, %v17115_v58 }
 0x5a5   :  { %13599 = vmatpush3.bf16.msra.mxu1 %v15181_v2 }
 0x5a6   :  { %13616 = vmatprep.subr.bf16.mxu1 %v15182_v49 }
 0x5a8   :  { %13585 = vmatmul.mubr.msk.bf16.gmra.mrb[36].mxu1 %vm93_vm4, %v5558_v51 }
 0x5a9   :  { %13588 = vmatprep.mubr.msk.bf16.mxu1 %vm93_vm4, %v5559_v29 }
 0x5b0   :  { %13589 = vmatmul.mubr.msk.bf16.gmra.mrb[40].mxu1 %vm93_vm4, %v5560_v63 }
 0x5b1   :  { %13592 = vmatprep.mubr.msk.bf16.mxu1 %vm93_vm4, %v5561_v15 }
 0x5b8   :  { %13593 = vmatmul.mubr.msk.bf16.gmra.mrb[44].mxu1 %vm93_vm4, %v5562_v42 }
 0x5b9   :  { %13600 = vmatprep.mubr.msk.bf16.mxu1 %vm93_vm4, %v5733_v0  ;;  %v6706_v0 = vld [vmem:[#allocation5 + $0x1] sm:$0xff] }
 0x5c0   :  { %13601 = vmatmul.mubr.msk.bf16.vlgmr.msra.gmra.mrb[32].mxu1 %vm93_vm4, %v5734_v35 }
 0x5c1   :  { %13617 = vmatpush3.bf16.msra.mxu1 %v15182_v49  ;;  %13604 = vmatprep.mubr.msk.bf16.mxu1 %vm93_vm4, %v5735_v17 }
 0x5c2   :  { %13618 = vmatprep.subr.bf16.mxu1 %v15183_v46 }
 0x5c5   :  { %13619 = vmatpush3.bf16.msra.mxu1 %v15183_v46 }
 0x5c6   :  { %13636 = vmatprep.subr.bf16.mxu1 %v15184_v28 }
 0x5c8   :  { %13605 = vmatmul.mubr.msk.bf16.gmra.mrb[36].mxu1 %vm93_vm4, %v5736_v36 }
 0x5c9   :  { %13608 = vmatprep.mubr.msk.bf16.mxu1 %vm93_vm4, %v5737_v38 }
 0x5d0   :  { %13609 = vmatmul.mubr.msk.bf16.gmra.mrb[40].mxu1 %vm93_vm4, %v5738_v41 }
 0x5d1   :  { %13612 = vmatprep.mubr.msk.bf16.mxu1 %vm93_vm4, %v5739_v62 }
 0x5d8   :  { %13613 = vmatmul.mubr.msk.bf16.gmra.mrb[44].mxu1 %vm93_vm4, %v5740_v52 }
 0x5d9   :  { %13620 = vmatprep.mubr.msk.bf16.mxu1 %vm93_vm4, %v5911_v11 }
 0x5e0   :  { %13621 = vmatmul.mubr.msk.bf16.vlgmr.msra.gmra.mrb[32].mxu1 %vm93_vm4, %v5912_v6 }
 0x5e1   :  { %13637 = vmatpush3.bf16.msra.mxu1 %v15184_v28  ;;  %13624 = vmatprep.mubr.msk.bf16.mxu1 %vm93_vm4, %v5913_v50 }
 0x5e2   :  { %13638 = vmatprep.subr.bf16.mxu1 %v15185_v60 }
 0x5e5   :  { %13639 = vmatpush3.bf16.msra.mxu1 %v15185_v60  ;;  %v15197_v60 = vld [vmem:[%s18628_s9 + $0x38] sm:$0xff]  }
 0x5e6   :  { %13656 = vmatprep.subr.bf16.mxu1 %v15186_v24 }
 0x5e8   :  { %13625 = vmatmul.mubr.msk.bf16.gmra.mrb[36].mxu1 %vm93_vm4, %v5914_v20 }
 0x5e9   :  { %13628 = vmatprep.mubr.msk.bf16.mxu1 %vm93_vm4, %v5915_v47 }
 0x5f0   :  { %13629 = vmatmul.mubr.msk.bf16.gmra.mrb[40].mxu1 %vm93_vm4, %v5916_v18  ;;  %v15199_v18 = vld [vmem:[%s18628_s9 + $0x48] sm:$0xff]  }
 0x5f1   :  { %13632 = vmatprep.mubr.msk.bf16.mxu1 %vm93_vm4, %v5917_v31 }
 0x5f8   :  { %13633 = vmatmul.mubr.msk.bf16.gmra.mrb[44].mxu1 %vm93_vm4, %v5918_v14 }
 0x5f9   :  { %13640 = vmatprep.mubr.msk.bf16.mxu1 %vm93_vm4, %v17004_v4  ;;  %v6092_v4 = vpack.c.bf16 %v6080_v55, %v17156_v40 }
 0x600   :  { %13641 = vmatmul.mubr.msk.bf16.vlgmr.msra.gmra.mrb[32].mxu1 %vm93_vm4, %v17013_v32  ;;  %v6088_v32 = vld [vmem:[#allocation4 + $0x130] sm:$0xff] }
 0x601   :  { %13657 = vmatpush3.bf16.msra.mxu1 %v15186_v24  ;;  %13644 = vmatprep.mubr.msk.bf16.mxu1 %vm93_vm4, %v17031_v10  ;;  %v6096_v10 = vpack.c.bf16 %v6088_v32, %v17170_v1  ;;  %v15193_v24 = vld [vmem:[%s18628_s9 + $0x8] sm:$0xff]  }
 0x602   :  { %13658 = vmatprep.subr.bf16.mxu1 %v15187_v45 }
 0x605   :  { %13659 = vmatpush3.bf16.msra.mxu1 %v15187_v45 }
 0x606   :  { %13676 = vmatprep.subr.bf16.mxu1 %v15188_v21 }
 0x608   :  { %13645 = vmatmul.mubr.msk.bf16.gmra.mrb[36].mxu1 %vm93_vm4, %v6092_v4 }
 0x609   :  { %13648 = vmatprep.mubr.msk.bf16.mxu1 %vm93_vm4, %v17045_v54  ;;  %v6258_v54 = vld [vmem:[#allocation4 + $0x91] sm:$0xff] }
 0x610   :  { %13649 = vmatmul.mubr.msk.bf16.gmra.mrb[40].mxu1 %vm93_vm4, %v17051_v9  ;;  %v6270_v9 = vpack.c.bf16 %v6258_v54, %v17190_v37 }
 0x611   :  { %13652 = vmatprep.mubr.msk.bf16.mxu1 %vm93_vm4, %v17065_v22 }
 0x618   :  { %13653 = vmatmul.mubr.msk.bf16.gmra.mrb[44].mxu1 %vm93_vm4, %v6096_v10  ;;  %v17364_v10 = vld [vmem:[%s18628_s9 + $0x20] sm:$0xff]  }
 0x619   :  { %13660 = vmatprep.mubr.msk.bf16.mxu1 %vm93_vm4, %v16909_v39  ;;  %v6266_v39 = vld [vmem:[#allocation4 + $0x131] sm:$0xff] }
 0x620   :  { %13661 = vmatmul.mubr.msk.bf16.vlgmr.msra.gmra.mrb[32].mxu1 %vm93_vm4, %v16933_v59  ;;  %v6274_v59 = vpack.c.bf16 %v6266_v39, %v17204_v53 }
 0x621   :  { %13677 = vmatpush3.bf16.msra.mxu1 %v15188_v21  ;;  %13664 = vmatprep.mubr.msk.bf16.mxu1 %vm93_vm4, %v16945_v43  ;;  %v6436_v43 = vld [vmem:[#allocation4 + $0x92] sm:$0xff] }
 0x622   :  { %13678 = vmatprep.subr.bf16.mxu1 %v15189_v44 }
 0x625   :  { %13679 = vmatpush3.bf16.msra.mxu1 %v15189_v44 }
 0x628   :  { %13665 = vmatmul.mubr.msk.bf16.gmra.mrb[36].mxu1 %vm93_vm4, %v6270_v9 }
 0x629   :  { %13668 = vmatprep.mubr.msk.bf16.mxu1 %vm93_vm4, %v16968_v13  ;;  %v6448_v13 = vpack.c.bf16 %v6436_v43, %v5902_v25 }
 0x630   :  { %13669 = vmatmul.mubr.msk.bf16.gmra.mrb[40].mxu1 %vm93_vm4, %v16978_v61  ;;  %v18659_v61 = vld [vmem:[#allocation6_spill] sm:$0xff] }
 0x631   :  { %13672 = vmatprep.mubr.msk.bf16.mxu1 %vm93_vm4, %v16990_v57  ;;  %v6444_v57 = vld [vmem:[#allocation4 + $0x132] sm:$0xff] }
 0x632   :  { %v6452_v22 = vpack.c.bf16 %v6444_v57, %v5910_v30 }
 0x638   :  { %13673 = vmatmul.mubr.msk.bf16.gmra.mrb[44].mxu1 %vm93_vm4, %v6274_v59 }
 0x639   :  { %13680 = vmatprep.mubr.msk.bf16.mxu1 %vm93_vm4, %v17079_v16  ;;  %v15191_v16 = vld [vmem:[%s18628_s9 + $0x18] sm:$0xff]  }
 0x63a   :  { %13698 = vmatprep.subr.bf16.mxu0 %v15191_v16 }
 0x63b   :  { %13699 = vmatpush3.bf16.msra.mxu0 %v15191_v16 }
 0x640   :  { %13681 = vmatmul.mubr.msk.bf16.vlgmr.msra.gmra.mrb[32].mxu1 %vm93_vm4, %v17088_v56  ;;  %v15192_v56 = vld [vmem:[%s18628_s9] sm:$0xff]  }
 0x641   :  { %13684 = vmatprep.mubr.msk.bf16.mxu1 %vm93_vm4, %v17105_v34  ;;  %13716 = vmatprep.subr.bf16.mxu0 %v15192_v56  ;;  %v17304_v34 = vld [vmem:[%s18629_s8] ss:$0 sm:$0xff] }
 0x648   :  { %13685 = vmatmul.mubr.msk.bf16.gmra.mrb[36].mxu1 %vm93_vm4, %v6448_v13 }
 0x649   :  { %13688 = vmatprep.mubr.msk.bf16.mxu1 %vm93_vm4, %v17119_v27 }
 0x650   :  { %13689 = vmatmul.mubr.msk.bf16.gmra.mrb[40].mxu1 %vm93_vm4, %v18659_v61 }
 0x651   :  { %13692 = vmatprep.mubr.msk.bf16.mxu1 %vm93_vm4, %v17137_v19 }
 0x658   :  { %13693 = vmatmul.mubr.msk.bf16.gmra.mrb[44].mxu1 %vm93_vm4, %v6452_v22 }
 0x713   :  { %v13682_v48 = vpop.f32.mrb[32].mxu1 }
 0x714   :  { %v6616_v7 = vadd.f32 %v13682_v48, %v17304_v34  ;;  %v6528_v58 = vpop.f32.mrb[33].mxu1 }
 0x715   :  { %v6614_v27 = vadd.f32 %v17304_v34, %v6528_v58  ;;  %v13683_v8 = vpop.f32.mrb[34].mxu1 }
 0x716   :  { %v6632_v26 = vmax.f32 %v6616_v7, 0.0  ;;  %v6617_v12 = vadd.f32 %v13683_v8, %v17304_v34  ;;  %v6531_v23 = vpop.f32.mrb[35].mxu1 }
 0x717   :  { %v6630_v19 = vmax.f32 %v6614_v27, 0.0  ;;  %v6615_v33 = vadd.f32 %v17304_v34, %v6531_v23  ;;  %v6714_v23 = vld [vmem:[#allocation5 + $0xa1] sm:$0xff] }
 0x718   :  { %6648 = vst.msk [vmem:[#allocation5 + $0x31] sm:$0xff] %vm93_vm4, %v6632_v26  ;;  %v6633_v3 = vmax.f32 %v6617_v12, 0.0 }
 0x719   :  { %6646 = vst.msk [vmem:[#allocation5 + $0x11] sm:$0xff] %vm93_vm4, %v6630_v19  ;;  %v6631_v2 = vmax.f32 %v6615_v33, 0.0 }
 0x71a   :  { %6649 = vst.msk [vmem:[#allocation5 + $0x41] sm:$0xff] %vm93_vm4, %v6633_v3 }
 0x71b   :  { %6647 = vst.msk [vmem:[#allocation5 + $0x21] sm:$0xff] %vm93_vm4, %v6631_v2  ;;  %v13686_v49 = vpop.f32.mrb[36].mxu1 }
 0x71c   :  { %v6620_v40 = vadd.f32 %v13686_v49, %v17304_v34  ;;  %v6544_v51 = vpop.f32.mrb[37].mxu1 }
 0x71d   :  { %v6618_v29 = vadd.f32 %v17304_v34, %v6544_v51  ;;  %v13687_v63 = vpop.f32.mrb[38].mxu1 }
 0x71e   :  { %v6636_v15 = vmax.f32 %v6620_v40, 0.0  ;;  %v6621_v1 = vadd.f32 %v13687_v63, %v17304_v34  ;;  %v6547_v42 = vpop.f32.mrb[39].mxu1 }
 0x71f   :  { %v6634_v35 = vmax.f32 %v6618_v29, 0.0  ;;  %v6619_v46 = vadd.f32 %v17304_v34, %v6547_v42  ;;  %v17321_v37 = vld [vmem:[#allocation5 + $0x31] sm:$0xff] }
 0x720   :  { %6652 = vst.msk [vmem:[#allocation5 + $0x71] sm:$0xff] %vm93_vm4, %v6636_v15  ;;  %v6637_v17 = vmax.f32 %v6621_v1, 0.0  ;;  %v17319_v28 = vld [vmem:[#allocation5 + $0x11] sm:$0xff] }
 0x721   :  { %6650 = vst.msk [vmem:[#allocation5 + $0x51] sm:$0xff] %vm93_vm4, %v6634_v35  ;;  %v6635_v36 = vmax.f32 %v6619_v46, 0.0  ;;  %v6722_v38 = vpack.c.bf16 %v17319_v28, %v6706_v0  ;;  %v17325_v41 = vld [vmem:[#allocation5 + $0x41] sm:$0xff]  ;;  %v17327_v62 = vld [vmem:[#allocation5 + $0x32] sm:$0xff] }
 0x722   :  { %v17329_v53 = vld [vmem:[#allocation5 + $0x42] sm:$0xff]  ;;  %6653 = vst.msk [vmem:[#allocation5 + $0x81] sm:$0xff] %vm93_vm4, %v6637_v17  ;;  %v17349_v25 = vld [vmem:[#allocation5 + $0x12] sm:$0xff] }
 0x723   :  { %v17332_v52 = vld [vmem:[#allocation5 + $0x21] sm:$0xff]  ;;  %6651 = vst.msk [vmem:[#allocation5 + $0x61] sm:$0xff] %vm93_vm4, %v6635_v36  ;;  %v13690_v6 = vpop.f32.mrb[40].mxu1  ;;  %13700 = vmatprep.mubr.msk.bf16.mxu0 %vm93_vm4, %v6722_v38 }
 0x724   :  { %v17334_v11 = vld [vmem:[#allocation5 + $0x22] sm:$0xff]  ;;  %v17344_v50 = vpack.c.bf16 %v17321_v37, %v17332_v52  ;;  %v6624_v20 = vadd.f32 %v13690_v6, %v17304_v34  ;;  %v6560_v47 = vpop.f32.mrb[41].mxu1 }
 0x725   :  { %v6622_v30 = vadd.f32 %v17304_v34, %v6560_v47  ;;  %v13691_v14 = vpop.f32.mrb[42].mxu1  ;;  %v17512_v7 = vpack.c.bf16 %v17327_v62, %v17334_v11 }
 0x726   :  { %13701 = vmatmul.mubr.msk.bf16.vlgmr.msra.gmra.mrb[32].mxu0 %vm93_vm4, %v17344_v50  ;;  %v6640_v45 = vmax.f32 %v6624_v20, 0.0  ;;  %v6625_v21 = vadd.f32 %v13691_v14, %v17304_v34  ;;  %v6563_v55 = vpop.f32.mrb[43].mxu1  ;;  %v17443_v20 = vld [vmem:[#allocation5 + $0x10] sm:$0xff] }
 0x727   :  { %13717 = vmatpush3.bf16.msra.mxu0 %v15192_v56  ;;  %v6638_v4 = vmax.f32 %v6622_v30, 0.0  ;;  %v6623_v32 = vadd.f32 %v17304_v34, %v6563_v55  ;;  %v17377_v43 = vld [vmem:[#allocation5 + $0x71] sm:$0xff] }
 0x728   :  { %13718 = vmatprep.subr.bf16.mxu0 %v15193_v24  ;;  %6656 = vst.msk [vmem:[#allocation5 + $0xd1] sm:$0xff] %vm93_vm4, %v6640_v45  ;;  %v6641_v44 = vmax.f32 %v6625_v21, 0.0  ;;  %v17367_v54 = vld [vmem:[#allocation5 + $0x51] sm:$0xff] }
 0x729   :  { %6654 = vst.msk [vmem:[#allocation5 + $0xb1] sm:$0xff] %vm93_vm4, %v6638_v4  ;;  %v6639_v9 = vmax.f32 %v6623_v32, 0.0  ;;  %v17372_v39 = vpack.c.bf16 %v17367_v54, %v17325_v41  ;;  %v17389_v22 = vld [vmem:[#allocation5 + $0x52] sm:$0xff] }
 0x72a   :  { %6657 = vst.msk [vmem:[#allocation5 + $0xe1] sm:$0xff] %vm93_vm4, %v6641_v44  ;;  %v17375_v59 = vld [vmem:[#allocation5 + $0x61] sm:$0xff]  ;;  %v17519_v31 = vpack.c.bf16 %v17389_v22, %v17329_v53  ;;  %v17528_v4 = vld [vmem:[#allocation5 + $0x72] sm:$0xff] }
 0x72b   :  { %13719 = vmatpush3.bf16.msra.mxu0 %v15193_v24  ;;  %v17379_v13 = vld [vmem:[#allocation5 + $0x62] sm:$0xff]  ;;  %6655 = vst.msk [vmem:[#allocation5 + $0xc1] sm:$0xff] %vm93_vm4, %v6639_v9  ;;  %v13694_v61 = vpop.f32.mrb[44].mxu1  ;;  %13704 = vmatprep.mubr.msk.bf16.mxu0 %vm93_vm4, %v17372_v39  ;;  %v17386_v57 = vpack.c.bf16 %v17377_v43, %v17375_v59  ;;  %v17467_v9 = vld [vmem:[#allocation5 + $0x50] sm:$0xff] }
 0x72c   :  { %13736 = vmatprep.subr.bf16.mxu0 %v17364_v10  ;;  %v6628_v16 = vadd.f32 %v13694_v61, %v17304_v34  ;;  %v6576_v56 = vpop.f32.mrb[45].mxu1  ;;  %v6678_v24 = vld [vmem:[#allocation5] sm:$0xff]  ;;  %v17469_v61 = vld [vmem:[#allocation5 + $0x30] sm:$0xff]  ;;  %v17532_v42 = vpack.c.bf16 %v17528_v4, %v17379_v13 }
 0x72d   :  { %v6626_v58 = vadd.f32 %v17304_v34, %v6576_v56  ;;  %v13695_v27 = vpop.f32.mrb[46].mxu1  ;;  %v6694_v55 = vpack.c.bf16 %v17443_v20, %v6678_v24  ;;  %v6680_v44 = vld [vmem:[#allocation5 + $0x20] sm:$0xff] }
 0x72e   :  { %13705 = vmatmul.mubr.msk.bf16.gmra.mrb[36].mxu0 %vm93_vm4, %v17386_v57  ;;  %v6644_v8 = vmax.f32 %v6628_v16, 0.0  ;;  %v6629_v26 = vadd.f32 %v13695_v27, %v17304_v34  ;;  %v6579_v12 = vpop.f32.mrb[47].mxu1  ;;  %v17472_v16 = vpack.c.bf16 %v17469_v61, %v6680_v44  ;;  %v6682_v56 = vld [vmem:[#allocation5 + $0x40] sm:$0xff] }
 0x72f   :  { %v6642_v19 = vmax.f32 %v6626_v58, 0.0  ;;  %v6627_v33 = vadd.f32 %v17304_v34, %v6579_v12  ;;  %v17404_v49 = vld [vmem:[#allocation5 + $0xd1] sm:$0xff]  ;;  %v15195_v58 = vld [vmem:[%s18628_s9 + $0x28] sm:$0xff]   ;;  %v17478_v27 = vpack.c.bf16 %v17467_v9, %v6682_v56  ;;  %v6686_v12 = vld [vmem:[#allocation5 + $0xa0] sm:$0xff]  ;;  %v7196_v5 = vpack.c.bf16 %v6682_v56, %v17469_v61 }
 0x730   :  { %6660 = vst.msk [vmem:[#allocation5 + $0x111] sm:$0xff] %vm93_vm4, %v6644_v8  ;;  %v6645_v3 = vmax.f32 %v6629_v26, 0.0  ;;  %v17402_v2 = vld [vmem:[#allocation5 + $0xb1] sm:$0xff]  ;;  %v6684_v26 = vld [vmem:[#allocation5 + $0x60] sm:$0xff] }
 0x731   :  { %6658 = vst.msk [vmem:[#allocation5 + $0xf1] sm:$0xff] %vm93_vm4, %v6642_v19  ;;  %v6643_v40 = vmax.f32 %v6627_v33, 0.0  ;;  %v6726_v51 = vpack.c.bf16 %v17402_v2, %v6714_v23  ;;  %v17408_v29 = vld [vmem:[#allocation5 + $0xe1] sm:$0xff]  ;;  %v17410_v63 = vld [vmem:[#allocation5 + $0xd2] sm:$0xff] }
 0x732   :  { %v17412_v15 = vld [vmem:[#allocation5 + $0xe2] sm:$0xff]  ;;  %6661 = vst.msk [vmem:[#allocation5 + $0x121] sm:$0xff] %vm93_vm4, %v6645_v3  ;;  %v17429_v46 = vld [vmem:[#allocation5 + $0xb2] sm:$0xff] }
 0x733   :  { %v17415_v34 = vld [vmem:[#allocation5 + $0xc1] sm:$0xff]  ;;  %6659 = vst.msk [vmem:[#allocation5 + $0x101] sm:$0xff] %vm93_vm4, %v6643_v40  ;;  %13708 = vmatprep.mubr.msk.bf16.mxu0 %vm93_vm4, %v6726_v51  ;;  %v15196_v8 = vld [vmem:[%s18628_s9 + $0x30] sm:$0xff]  }
 0x734   :  { %v17417_v1 = vld [vmem:[#allocation5 + $0xc2] sm:$0xff]  ;;  %v17427_v35 = vpack.c.bf16 %v17404_v49, %v17415_v34  ;;  %v17488_v23 = vld [vmem:[#allocation5 + $0xb0] sm:$0xff] }
 0x735   :  { %v6685_v19 = vld [vmem:[#allocation5 + $0x70] sm:$0xff]  ;;  %v6698_v3 = vpack.c.bf16 %v17488_v23, %v6686_v12  ;;  %v7001_v12 = vld [vmem:[#allocation5 + $0x2] sm:$0xff] }
 0x736   :  { %13709 = vmatmul.mubr.msk.bf16.gmra.mrb[40].mxu0 %vm93_vm4, %v17427_v35  ;;  %v17490_v33 = vpack.c.bf16 %v6685_v19, %v6684_v26  ;;  %v6689_v51 = vld [vmem:[#allocation5 + $0xd0] sm:$0xff] }
 0x737   :  { %v17447_v30 = vld [vmem:[#allocation5 + $0x111] sm:$0xff] }
 0x738   :  { %v17437_v38 = vld [vmem:[#allocation5 + $0xf1] sm:$0xff] }
 0x739   :  { %v17441_v6 = vpack.c.bf16 %v17437_v38, %v17408_v29  ;;  %v17457_v21 = vld [vmem:[#allocation5 + $0xf2] sm:$0xff] }
 0x73a   :  { %v17445_v47 = vld [vmem:[#allocation5 + $0x101] sm:$0xff]  ;;  %v6691_v40 = vld [vmem:[#allocation5 + $0xf0] sm:$0xff]  ;;  %v17544_v48 = vpack.c.bf16 %v17457_v21, %v17412_v15 }
 0x73b   :  { %v17449_v14 = vld [vmem:[#allocation5 + $0x102] sm:$0xff]  ;;  %13712 = vmatprep.mubr.msk.bf16.mxu0 %vm93_vm4, %v17441_v6  ;;  %v17455_v45 = vpack.c.bf16 %v17447_v30, %v17445_v47  ;;  %v6693_v0 = vld [vmem:[#allocation5 + $0x110] sm:$0xff] }
 0x73c   :  { %18660 = vst [vmem:[#allocation6_spill] sm:$0xff] %v17544_v48 }
 0x73e   :  { %13713 = vmatmul.mubr.msk.bf16.gmra.mrb[44].mxu0 %vm93_vm4, %v17455_v45 }
 0x73f   :  { %13720 = vmatprep.mubr.msk.bf16.mxu0 %vm93_vm4, %v6694_v55  ;;  %v6690_v55 = vld [vmem:[#allocation5 + $0xe0] sm:$0xff] }
 0x740   :  { %v17498_v32 = vpack.c.bf16 %v6691_v40, %v6690_v55 }
 0x746   :  { %13721 = vmatmul.mubr.msk.bf16.vlgmr.msra.gmra.mrb[32].mxu0 %vm93_vm4, %v17472_v16 }
 0x747   :  { %13737 = vmatpush3.bf16.msra.mxu0 %v17364_v10  ;;  %13724 = vmatprep.mubr.msk.bf16.mxu0 %vm93_vm4, %v17478_v27  ;;  %v6688_v10 = vld [vmem:[#allocation5 + $0xc0] sm:$0xff] }
 0x748   :  { %13738 = vmatprep.subr.bf16.mxu0 %v15195_v58  ;;  %v17496_v24 = vpack.c.bf16 %v6689_v51, %v6688_v10  ;;  %v7199_v56 = vpack.c.bf16 %v6688_v10, %v17488_v23  ;;  %v15201_v23 = vld [vmem:[%s18628_s9 + $0x58] sm:$0xff]  }
 0x74b   :  { %13739 = vmatpush3.bf16.msra.mxu0 %v15195_v58  ;;  %v6692_v58 = vld [vmem:[#allocation5 + $0x100] sm:$0xff] }
 0x74c   :  { %13756 = vmatprep.subr.bf16.mxu0 %v15196_v8  ;;  %v17504_v36 = vpack.c.bf16 %v6693_v0, %v6692_v58 }
 0x74e   :  { %13725 = vmatmul.mubr.msk.bf16.gmra.mrb[36].mxu0 %vm93_vm4, %v17490_v33 }
 0x74f   :  { %13728 = vmatprep.mubr.msk.bf16.mxu0 %vm93_vm4, %v6698_v3  ;;  %v7017_v3 = vpack.c.bf16 %v17349_v25, %v7001_v12  ;;  %v15198_v12 = vld [vmem:[%s18628_s9 + $0x40] sm:$0xff]  }
 0x756   :  { %13729 = vmatmul.mubr.msk.bf16.gmra.mrb[40].mxu0 %vm93_vm4, %v17496_v24 }
 0x757   :  { %13732 = vmatprep.mubr.msk.bf16.mxu0 %vm93_vm4, %v17498_v32 }
 0x75e   :  { %13733 = vmatmul.mubr.msk.bf16.gmra.mrb[44].mxu0 %vm93_vm4, %v17504_v36 }
 0x75f   :  { %13740 = vmatprep.mubr.msk.bf16.mxu0 %vm93_vm4, %v7017_v3  ;;  %v7009_v3 = vld [vmem:[#allocation5 + $0xa2] sm:$0xff] }
 0x760   :  { %v7021_v17 = vpack.c.bf16 %v17429_v46, %v7009_v3 }
 0x766   :  { %13741 = vmatmul.mubr.msk.bf16.vlgmr.msra.gmra.mrb[32].mxu0 %vm93_vm4, %v17512_v7 }
 0x767   :  { %13757 = vmatpush3.bf16.msra.mxu0 %v15196_v8  ;;  %13744 = vmatprep.mubr.msk.bf16.mxu0 %vm93_vm4, %v17519_v31  ;;  %v17540_v8 = vpack.c.bf16 %v17410_v63, %v17417_v1 }
 0x768   :  { %13758 = vmatprep.subr.bf16.mxu0 %v15197_v60 }
 0x76b   :  { %13759 = vmatpush3.bf16.msra.mxu0 %v15197_v60  ;;  %v17550_v60 = vld [vmem:[#allocation5 + $0x112] sm:$0xff] }
 0x76c   :  { %13776 = vmatprep.subr.bf16.mxu0 %v15198_v12  ;;  %v17554_v3 = vpack.c.bf16 %v17550_v60, %v17449_v14 }
 0x76e   :  { %13745 = vmatmul.mubr.msk.bf16.gmra.mrb[36].mxu0 %vm93_vm4, %v17532_v42 }
 0x76f   :  { %13748 = vmatprep.mubr.msk.bf16.mxu0 %vm93_vm4, %v7021_v17  ;;  %v7195_v17 = vpack.c.bf16 %v6680_v44, %v17443_v20  ;;  %v15200_v20 = vld [vmem:[%s18628_s9 + $0x50] sm:$0xff]   ;;  %v17570_v44 = vld [vmem:[#allocation5 + $0x80] sm:$0xff] }
 0x770   :  { %v7198_v61 = vpack.c.bf16 %v17570_v44, %v6685_v19  ;;  %v18662_v19 = vpack.c.bf16 %v17325_v41, %v17321_v37  ;;  %v18664_v37 = vpack.c.bf16 %v17415_v34, %v17402_v2  ;;  %v18665_v41 = vpack.c.bf16 %v17408_v29, %v17404_v49  ;;  %v15208_v49 = vld [vmem:[%s18630_s11 + $0x10] sm:$0xff]   ;;  %v15203_v29 = vld [vmem:[%s18628_s9 + $0x68] sm:$0xff]  }
 0x771   :  { %v18667_v2 = vpack.c.bf16 %v17334_v11, %v17349_v25  ;;  %13876 = vmatprep.subr.bf16.mxu1 %v15208_v49  ;;  %v18668_v34 = vpack.c.bf16 %v17329_v53, %v17327_v62  ;;  %v15204_v11 = vld [vmem:[%s18628_s9 + $0x70] sm:$0xff]   ;;  %v18669_v25 = vpack.c.bf16 %v17379_v13, %v17389_v22  ;;  %v18670_v62 = vpack.c.bf16 %v17417_v1, %v17429_v46  ;;  %v7550_v22 = vld [vmem:[#allocation5 + $0x122] sm:$0xff]  ;;  %v15205_v1 = vld [vmem:[%s18628_s9 + $0x78] sm:$0xff]  }
 0x772   :  { %13877 = vmatpush3.bf16.msra.mxu1 %v15208_v49  ;;  %v18671_v53 = vpack.c.bf16 %v17412_v15, %v17410_v63  ;;  %v18672_v13 = vpack.c.bf16 %v17449_v14, %v17457_v21  ;;  %v15206_v63 = vld [vmem:[%s18628_s9 + $0x80] sm:$0xff]   ;;  %v7720_v15 = vld [vmem:[#allocation5 + $0x90] sm:$0xff] }
 0x773   :  { %v7732_v46 = vpack.c.bf16 %v7720_v15, %v17570_v44  ;;  %v7728_v14 = vld [vmem:[#allocation5 + $0x130] sm:$0xff] }
 0x776   :  { %13749 = vmatmul.mubr.msk.bf16.gmra.mrb[40].mxu0 %vm93_vm4, %v17540_v8 }
 0x777   :  { %13752 = vmatprep.mubr.msk.bf16.mxu0 %vm93_vm4, %v17544_v48  ;;  %v7197_v48 = vpack.c.bf16 %v6684_v26, %v17467_v9  ;;  %v7201_v9 = vpack.c.bf16 %v6692_v58, %v6691_v40 }
 0x77e   :  { %13753 = vmatmul.mubr.msk.bf16.gmra.mrb[44].mxu0 %vm93_vm4, %v17554_v3 }
 0x77f   :  { %13760 = vmatprep.mubr.msk.bf16.mxu0 %vm93_vm4, %v7195_v17  ;;  %v6665_v17 = vld [vmem:[#allocation4 + $0x41] sm:$0xff] }
 0x786   :  { %13761 = vmatmul.mubr.msk.bf16.vlgmr.msra.gmra.mrb[32].mxu0 %vm93_vm4, %v7196_v5  ;;  %v7200_v5 = vpack.c.bf16 %v6690_v55, %v6689_v51  ;;  %v6664_v51 = vld [vmem:[#allocation4 + $0x31] sm:$0xff] }
 0x787   :  { %13777 = vmatpush3.bf16.msra.mxu0 %v15198_v12  ;;  %13764 = vmatprep.mubr.msk.bf16.mxu0 %vm93_vm4, %v7197_v48  ;;  %v7194_v48 = vld [vmem:[#allocation5 + $0x120] sm:$0xff]  ;;  %v6662_v12 = vld [vmem:[#allocation4 + $0x11] sm:$0xff] }
 0x788   :  { %13778 = vmatprep.subr.bf16.mxu0 %v15199_v18  ;;  %v7202_v26 = vpack.c.bf16 %v7194_v48, %v6693_v0  ;;  %v18663_v0 = vpack.c.bf16 %v17375_v59, %v17367_v54  ;;  %v18666_v54 = vpack.c.bf16 %v17445_v47, %v17437_v38  ;;  %v7372_v59 = vld [vmem:[#allocation5 + $0x121] sm:$0xff]  ;;  %v7736_v21 = vpack.c.bf16 %v7728_v14, %v7194_v48 }
 0x789   :  { %v7542_v38 = vld [vmem:[#allocation5 + $0x82] sm:$0xff] }
 0x78a   :  { %v7554_v47 = vpack.c.bf16 %v7542_v38, %v17528_v4  ;;  %v15207_v4 = vld [vmem:[%s18628_s9 + $0x88] sm:$0xff]  }
 0x78b   :  { %13779 = vmatpush3.bf16.msra.mxu0 %v15199_v18  ;;  %v18661_v18 = vpack.c.bf16 %v17332_v52, %v17319_v28  ;;  %v15202_v28 = vld [vmem:[%s18628_s9 + $0x60] sm:$0xff]  }
 0x78c   :  { %13796 = vmatprep.subr.bf16.mxu0 %v15200_v20  ;;  %v7364_v52 = vld [vmem:[#allocation5 + $0x81] sm:$0xff] }
 0x78d   :  { %v7376_v10 = vpack.c.bf16 %v7364_v52, %v17377_v43  ;;  %v7380_v43 = vpack.c.bf16 %v7372_v59, %v17447_v30  ;;  %v7558_v30 = vpack.c.bf16 %v7550_v22, %v17550_v60 }
 0x78e   :  { %13765 = vmatmul.mubr.msk.bf16.gmra.mrb[36].mxu0 %vm93_vm4, %v7198_v61  ;;  %v6663_v61 = vld [vmem:[#allocation4 + $0x21] sm:$0xff] }
 0x78f   :  { %13768 = vmatprep.mubr.msk.bf16.mxu0 %vm93_vm4, %v7199_v56 }
 0x796   :  { %13769 = vmatmul.mubr.msk.bf16.gmra.mrb[40].mxu0 %vm93_vm4, %v7200_v5 }
 0x797   :  { %13772 = vmatprep.mubr.msk.bf16.mxu0 %vm93_vm4, %v7201_v9 }
 0x79e   :  { %13773 = vmatmul.mubr.msk.bf16.gmra.mrb[44].mxu0 %vm93_vm4, %v7202_v26  ;;  %v6668_v26 = vld [vmem:[#allocation4 + $0x71] sm:$0xff] }
 0x79f   :  { %13780 = vmatprep.mubr.msk.bf16.mxu0 %vm93_vm4, %v18661_v18 }
 0x7a6   :  { %13781 = vmatmul.mubr.msk.bf16.vlgmr.msra.gmra.mrb[32].mxu0 %vm93_vm4, %v18662_v19 }
 0x7a7   :  { %13797 = vmatpush3.bf16.msra.mxu0 %v15200_v20  ;;  %13784 = vmatprep.mubr.msk.bf16.mxu0 %vm93_vm4, %v18663_v0  ;;  %v6666_v0 = vld [vmem:[#allocation4 + $0x51] sm:$0xff] }
 0x7a8   :  { %13798 = vmatprep.subr.bf16.mxu0 %v15201_v23 }
 0x7ab   :  { %13799 = vmatpush3.bf16.msra.mxu0 %v15201_v23 }
 0x7ac   :  { %13816 = vmatprep.subr.bf16.mxu0 %v15202_v28 }
 0x7ae   :  { %13785 = vmatmul.mubr.msk.bf16.gmra.mrb[36].mxu0 %vm93_vm4, %v7376_v10  ;;  %v17724_v10 = vld [vmem:[#allocation4 + $0x1] sm:$0xff] }
 0x7af   :  { %13788 = vmatprep.mubr.msk.bf16.mxu0 %vm93_vm4, %v18664_v37 }
 0x7b6   :  { %13789 = vmatmul.mubr.msk.bf16.gmra.mrb[40].mxu0 %vm93_vm4, %v18665_v41  ;;  %v6669_v41 = vld [vmem:[#allocation4 + $0x81] sm:$0xff] }
 0x7b7   :  { %13792 = vmatprep.mubr.msk.bf16.mxu0 %vm93_vm4, %v18666_v54 }
 0x7be   :  { %13793 = vmatmul.mubr.msk.bf16.gmra.mrb[44].mxu0 %vm93_vm4, %v7380_v43  ;;  %v6667_v43 = vld [vmem:[#allocation4 + $0x61] sm:$0xff] }
 0x7bf   :  { %13800 = vmatprep.mubr.msk.bf16.mxu0 %vm93_vm4, %v18667_v2 }
 0x7c6   :  { %13801 = vmatmul.mubr.msk.bf16.vlgmr.msra.gmra.mrb[32].mxu0 %vm93_vm4, %v18668_v34 }
 0x7c7   :  { %13817 = vmatpush3.bf16.msra.mxu0 %v15202_v28  ;;  %13804 = vmatprep.mubr.msk.bf16.mxu0 %vm93_vm4, %v18669_v25 }
 0x7c8   :  { %13818 = vmatprep.subr.bf16.mxu0 %v15203_v29 }
 0x7cb   :  { %13819 = vmatpush3.bf16.msra.mxu0 %v15203_v29 }
 0x7cc   :  { %13836 = vmatprep.subr.bf16.mxu0 %v15204_v11 }
 0x7ce   :  { %13805 = vmatmul.mubr.msk.bf16.gmra.mrb[36].mxu0 %vm93_vm4, %v7554_v47  ;;  %v15211_v47 = vld [vmem:[%s18630_s11 + $0x8] sm:$0xff]  }
 0x7cf   :  { %13808 = vmatprep.mubr.msk.bf16.mxu0 %vm93_vm4, %v18670_v62 }
 0x7d6   :  { %13809 = vmatmul.mubr.msk.bf16.gmra.mrb[40].mxu0 %vm93_vm4, %v18671_v53 }
 0x7d7   :  { %13812 = vmatprep.mubr.msk.bf16.mxu0 %vm93_vm4, %v18672_v13  ;;  %v6672_v13 = vld [vmem:[#allocation4 + $0xd1] sm:$0xff] }
 0x7de   :  { %13813 = vmatmul.mubr.msk.bf16.gmra.mrb[44].mxu0 %vm93_vm4, %v7558_v30 }
 0x7df   :  { %13820 = vmatprep.mubr.msk.bf16.mxu0 %vm93_vm4, %v17472_v16  ;;  %v17711_v16 = vld [vmem:[%s18631_s10] ss:$0 sm:$0xff] }
 0x7e6   :  { %13821 = vmatmul.mubr.msk.bf16.vlgmr.msra.gmra.mrb[32].mxu0 %vm93_vm4, %v17478_v27 }
 0x7e7   :  { %13837 = vmatpush3.bf16.msra.mxu0 %v15204_v11  ;;  %13824 = vmatprep.mubr.msk.bf16.mxu0 %vm93_vm4, %v17490_v33 }
 0x7e8   :  { %13838 = vmatprep.subr.bf16.mxu0 %v15205_v1 }
 0x7eb   :  { %13839 = vmatpush3.bf16.msra.mxu0 %v15205_v1 }
 0x7ec   :  { %13856 = vmatprep.subr.bf16.mxu0 %v15206_v63 }
 0x7ee   :  { %13825 = vmatmul.mubr.msk.bf16.gmra.mrb[36].mxu0 %vm93_vm4, %v7732_v46 }
 0x7ef   :  { %13828 = vmatprep.mubr.msk.bf16.mxu0 %vm93_vm4, %v17496_v24 }
 0x7f6   :  { %13829 = vmatmul.mubr.msk.bf16.gmra.mrb[40].mxu0 %vm93_vm4, %v17498_v32 }
 0x7f7   :  { %13832 = vmatprep.mubr.msk.bf16.mxu0 %vm93_vm4, %v17504_v36  ;;  %v7898_v36 = vld [vmem:[#allocation5 + $0x91] sm:$0xff] }
 0x7f8   :  { %v7910_v32 = vpack.c.bf16 %v7898_v36, %v7364_v52  ;;  %v17756_v36 = vld [vmem:[%s18630_s11 + $0x20] sm:$0xff]  }
 0x7fe   :  { %13833 = vmatmul.mubr.msk.bf16.gmra.mrb[44].mxu0 %vm93_vm4, %v7736_v21  ;;  %v6673_v21 = vld [vmem:[#allocation4 + $0xe1] sm:$0xff] }
 0x7ff   :  { %13840 = vmatprep.mubr.msk.bf16.mxu0 %vm93_vm4, %v17344_v50  ;;  %v7906_v50 = vld [vmem:[#allocation5 + $0x131] sm:$0xff] }
 0x806   :  { %13841 = vmatmul.mubr.msk.bf16.vlgmr.msra.gmra.mrb[32].mxu0 %vm93_vm4, %v17372_v39  ;;  %v7914_v39 = vpack.c.bf16 %v7906_v50, %v7372_v59  ;;  %v6671_v50 = vld [vmem:[#allocation4 + $0xc1] sm:$0xff] }
 0x807   :  { %13857 = vmatpush3.bf16.msra.mxu0 %v15206_v63  ;;  %13844 = vmatprep.mubr.msk.bf16.mxu0 %vm93_vm4, %v17386_v57  ;;  %v8076_v57 = vld [vmem:[#allocation5 + $0x92] sm:$0xff] }
 0x808   :  { %13858 = vmatprep.subr.bf16.mxu0 %v15207_v4  ;;  %v6670_v63 = vld [vmem:[#allocation4 + $0xb1] sm:$0xff] }
 0x80b   :  { %13859 = vmatpush3.bf16.msra.mxu0 %v15207_v4 }
 0x80e   :  { %13845 = vmatmul.mubr.msk.bf16.gmra.mrb[36].mxu0 %vm93_vm4, %v7910_v32 }
 0x80f   :  { %13848 = vmatprep.mubr.msk.bf16.mxu0 %vm93_vm4, %v17427_v35  ;;  %v8088_v35 = vpack.c.bf16 %v8076_v57, %v7542_v38 }
 0x816   :  { %13849 = vmatmul.mubr.msk.bf16.gmra.mrb[40].mxu0 %vm93_vm4, %v17441_v6  ;;  %v18673_v6 = vld [vmem:[#allocation6_spill] sm:$0xff] }
 0x817   :  { %13852 = vmatprep.mubr.msk.bf16.mxu0 %vm93_vm4, %v17455_v45  ;;  %18674 = vst [vmem:[#allocation6_spill] sm:$0xff] %v17724_v10 }
 0x81e   :  { %13853 = vmatmul.mubr.msk.bf16.gmra.mrb[44].mxu0 %vm93_vm4, %v7914_v39 }
 0x81f   :  { %13860 = vmatprep.mubr.msk.bf16.mxu0 %vm93_vm4, %v17512_v7  ;;  %v8084_v7 = vld [vmem:[#allocation5 + $0x132] sm:$0xff] }
 0x820   :  { %v8092_v45 = vpack.c.bf16 %v8084_v7, %v7550_v22 }
 0x826   :  { %13861 = vmatmul.mubr.msk.bf16.vlgmr.msra.gmra.mrb[32].mxu0 %vm93_vm4, %v17519_v31  ;;  %v15209_v31 = vld [vmem:[%s18630_s11 + $0x18] sm:$0xff]  }
 0x827   :  { %13864 = vmatprep.mubr.msk.bf16.mxu0 %vm93_vm4, %v17532_v42  ;;  %13878 = vmatprep.subr.bf16.mxu1 %v15209_v31  ;;  %v15210_v42 = vld [vmem:[%s18630_s11] sm:$0xff]  }
 0x828   :  { %13879 = vmatpush3.bf16.msra.mxu1 %v15209_v31 }
 0x829   :  { %13896 = vmatprep.subr.bf16.mxu1 %v15210_v42 }
 0x82e   :  { %13865 = vmatmul.mubr.msk.bf16.gmra.mrb[36].mxu0 %vm93_vm4, %v8088_v35 }
 0x82f   :  { %13868 = vmatprep.mubr.msk.bf16.mxu0 %vm93_vm4, %v17540_v8 }
 0x836   :  { %13869 = vmatmul.mubr.msk.bf16.gmra.mrb[40].mxu0 %vm93_vm4, %v18673_v6 }
 0x837   :  { %13872 = vmatprep.mubr.msk.bf16.mxu0 %vm93_vm4, %v17554_v3 }
 0x83e   :  { %13873 = vmatmul.mubr.msk.bf16.gmra.mrb[44].mxu0 %vm93_vm4, %v8092_v45 }
 0x8f9   :  { %v13862_v27 = vpop.f32.mrb[32].mxu0 }
 0x8fa   :  { %v8256_v33 = vadd.f32 %v13862_v27, %v17711_v16  ;;  %v8168_v40 = vpop.f32.mrb[33].mxu0 }
 0x8fb   :  { %v8254_v24 = vadd.f32 %v17711_v16, %v8168_v40  ;;  %v13863_v55 = vpop.f32.mrb[34].mxu0  ;;  %v6676_v40 = vld [vmem:[#allocation4 + $0x111] sm:$0xff] }
 0x8fc   :  { %v8272_v58 = vadd.f32 %v8256_v33, %v6664_v51  ;;  %v8257_v8 = vadd.f32 %v13863_v55, %v17711_v16  ;;  %v8171_v60 = vpop.f32.mrb[35].mxu0 }
 0x8fd   :  { %v8270_v3 = vadd.f32 %v8254_v24, %v6662_v12  ;;  %v8255_v20 = vadd.f32 %v17711_v16, %v8171_v60  ;;  %v17786_v60 = vld [vmem:[#allocation4 + $0xa1] sm:$0xff] }
 0x8fe   :  { %8288 = vst.msk [vmem:[#allocation4 + $0x31] sm:$0xff] %vm93_vm4, %v8272_v58  ;;  %v8273_v44 = vadd.f32 %v8257_v8, %v6665_v17  ;;  %v6674_v58 = vld [vmem:[#allocation4 + $0xf1] sm:$0xff]  ;;  %18675 = vst [vmem:[#allocation7_spill] sm:$0xff] %v17786_v60  ;;  %v6677_v17 = vld [vmem:[#allocation4 + $0x121] sm:$0xff] }
 0x8ff   :  { %8286 = vst.msk [vmem:[#allocation4 + $0x11] sm:$0xff] %vm93_vm4, %v8270_v3  ;;  %v8271_v56 = vadd.f32 %v8255_v20, %v6663_v61  ;;  %v6675_v61 = vld [vmem:[#allocation4 + $0x101] sm:$0xff] }
 0x900   :  { %8289 = vst.msk [vmem:[#allocation4 + $0x41] sm:$0xff] %vm93_vm4, %v8273_v44 }
 0x901   :  { %8287 = vst.msk [vmem:[#allocation4 + $0x21] sm:$0xff] %vm93_vm4, %v8271_v56  ;;  %v13866_v5 = vpop.f32.mrb[36].mxu0 }
 0x902   :  { %v8260_v9 = vadd.f32 %v13866_v5, %v17711_v16  ;;  %v8184_v48 = vpop.f32.mrb[37].mxu0 }
 0x903   :  { %v8258_v18 = vadd.f32 %v17711_v16, %v8184_v48  ;;  %v13867_v23 = vpop.f32.mrb[38].mxu0 }
 0x904   :  { %v8276_v19 = vadd.f32 %v8260_v9, %v6668_v26  ;;  %v8261_v28 = vadd.f32 %v13867_v23, %v17711_v16  ;;  %v8187_v52 = vpop.f32.mrb[39].mxu0 }
 0x905   :  { %v8274_v37 = vadd.f32 %v8258_v18, %v6666_v0  ;;  %v8259_v54 = vadd.f32 %v17711_v16, %v8187_v52  ;;  %v17736_v11 = vld [vmem:[#allocation4 + $0x31] sm:$0xff]  ;;  %v17816_v0 = vld [vmem:[#allocation4] sm:$0xff] }
 0x906   :  { %8292 = vst.msk [vmem:[#allocation4 + $0x71] sm:$0xff] %vm93_vm4, %v8276_v19  ;;  %v8277_v59 = vadd.f32 %v8261_v28, %v6669_v41  ;;  %v17728_v2 = vld [vmem:[#allocation4 + $0x11] sm:$0xff]  ;;  %18676 = vst [vmem:[#allocation8_spill] sm:$0xff] %v17816_v0 }
 0x907   :  { %8290 = vst.msk [vmem:[#allocation4 + $0x51] sm:$0xff] %vm93_vm4, %v8274_v37  ;;  %v8275_v49 = vadd.f32 %v8259_v54, %v6667_v43  ;;  %v8362_v29 = vpack.c.bf16 %v17728_v2, %v17724_v10  ;;  %v17759_v39 = vld [vmem:[#allocation4 + $0x41] sm:$0xff]  ;;  %v17818_v28 = vld [vmem:[#allocation4 + $0x10] sm:$0xff] }
 0x908   :  { %8293 = vst.msk [vmem:[#allocation4 + $0x81] sm:$0xff] %vm93_vm4, %v8277_v59  ;;  %v17734_v34 = vld [vmem:[#allocation4 + $0x21] sm:$0xff]  ;;  %v8334_v54 = vpack.c.bf16 %v17818_v28, %v17816_v0 }
 0x909   :  { %8291 = vst.msk [vmem:[#allocation4 + $0x61] sm:$0xff] %vm93_vm4, %v8275_v49  ;;  %v13870_v25 = vpop.f32.mrb[40].mxu0  ;;  %13880 = vmatprep.mubr.msk.bf16.mxu1 %vm93_vm4, %v8362_v29  ;;  %v17742_v38 = vpack.c.bf16 %v17736_v11, %v17734_v34  ;;  %v17835_v59 = vld [vmem:[#allocation4 + $0x20] sm:$0xff]  ;;  %v17839_v49 = vld [vmem:[#allocation4 + $0x30] sm:$0xff]  ;;  %v15217_v10 = vld [vmem:[%s18630_s11 + $0x48] sm:$0xff]  }
 0x90a   :  { %v8264_v62 = vadd.f32 %v13870_v25, %v17711_v16  ;;  %v8200_v53 = vpop.f32.mrb[41].mxu0  ;;  %v17843_v29 = vpack.c.bf16 %v17839_v49, %v17835_v59  ;;  %v17845_v25 = vld [vmem:[#allocation4 + $0x40] sm:$0xff]  ;;  %v8835_v0 = vpack.c.bf16 %v17835_v59, %v17818_v28 }
 0x90b   :  { %v8262_v22 = vadd.f32 %v17711_v16, %v8200_v53  ;;  %v13871_v30 = vpop.f32.mrb[42].mxu0  ;;  %13881 = vmatmul.mubr.msk.bf16.vlgmr.msra.gmra.mrb[48].mxu1 %vm93_vm4, %v17742_v38  ;;  %v15214_v53 = vld [vmem:[%s18630_s11 + $0x30] sm:$0xff]  }
 0x90c   :  { %v8280_v1 = vadd.f32 %v8264_v62, %v6672_v13  ;;  %v8265_v15 = vadd.f32 %v13871_v30, %v17711_v16  ;;  %13897 = vmatpush3.bf16.msra.mxu1 %v15210_v42  ;;  %v8203_v46 = vpop.f32.mrb[43].mxu0 }
 0x90d   :  { %v8278_v14 = vadd.f32 %v8262_v22, %v6670_v63  ;;  %v8263_v4 = vadd.f32 %v17711_v16, %v8203_v46  ;;  %13898 = vmatprep.subr.bf16.mxu1 %v15211_v47  ;;  %v17771_v45 = vld [vmem:[#allocation4 + $0x71] sm:$0xff]  ;;  %v17864_v22 = vld [vmem:[#allocation4 + $0xa0] sm:$0xff] }
 0x90e   :  { %8296 = vst.msk [vmem:[#allocation4 + $0xd1] sm:$0xff] %vm93_vm4, %v8280_v1  ;;  %v8281_v32 = vadd.f32 %v8265_v15, %v6673_v21  ;;  %v17761_v57 = vld [vmem:[#allocation4 + $0x51] sm:$0xff]  ;;  %18677 = vst [vmem:[#allocation9_spill] sm:$0xff] %v17864_v22 }
 0x90f   :  { %8294 = vst.msk [vmem:[#allocation4 + $0xb1] sm:$0xff] %vm93_vm4, %v8278_v14  ;;  %v8279_v35 = vadd.f32 %v8263_v4, %v6671_v50  ;;  %v17766_v6 = vpack.c.bf16 %v17761_v57, %v17759_v39  ;;  %v17837_v43 = vld [vmem:[#allocation4 + $0x50] sm:$0xff]  ;;  %v18004_v28 = vld [vmem:[#allocation4 + $0x80] sm:$0xff] }
 0x910   :  { %8297 = vst.msk [vmem:[#allocation4 + $0xe1] sm:$0xff] %vm93_vm4, %v8281_v32  ;;  %v17769_v7 = vld [vmem:[#allocation4 + $0x61] sm:$0xff]  ;;  %13899 = vmatpush3.bf16.msra.mxu1 %v15211_v47  ;;  %v17852_v62 = vpack.c.bf16 %v17837_v43, %v17845_v25  ;;  %v17868_v1 = vld [vmem:[#allocation4 + $0x70] sm:$0xff] }
 0x911   :  { %8295 = vst.msk [vmem:[#allocation4 + $0xc1] sm:$0xff] %vm93_vm4, %v8279_v35  ;;  %v13874_v31 = vpop.f32.mrb[44].mxu0  ;;  %13884 = vmatprep.mubr.msk.bf16.mxu1 %vm93_vm4, %v17766_v6  ;;  %v17778_v42 = vpack.c.bf16 %v17771_v45, %v17769_v7  ;;  %13916 = vmatprep.subr.bf16.mxu1 %v17756_v36  ;;  %v15213_v47 = vld [vmem:[%s18630_s11 + $0x28] sm:$0xff]   ;;  %v17862_v13 = vld [vmem:[#allocation4 + $0x60] sm:$0xff]  ;;  %v8838_v59 = vpack.c.bf16 %v18004_v28, %v17868_v1 }
 0x912   :  { %v8268_v27 = vadd.f32 %v13874_v31, %v17711_v16  ;;  %v8216_v33 = vpop.f32.mrb[45].mxu0  ;;  %v17872_v63 = vpack.c.bf16 %v17868_v1, %v17862_v13  ;;  %v17901_v35 = vld [vmem:[#allocation4 + $0x2] sm:$0xff]  ;;  %v17903_v31 = vld [vmem:[#allocation4 + $0x12] sm:$0xff] }
 0x913   :  { %v8266_v51 = vadd.f32 %v17711_v16, %v8216_v33  ;;  %v13875_v24 = vpop.f32.mrb[46].mxu0  ;;  %13885 = vmatmul.mubr.msk.bf16.gmra.mrb[52].mxu1 %vm93_vm4, %v17778_v42  ;;  %18678 = vst [vmem:[#allocation10_spill] sm:$0xff] %v17901_v35  ;;  %v15219_v1 = vld [vmem:[%s18630_s11 + $0x58] sm:$0xff]  }
 0x914   :  { %v8284_v55 = vadd.f32 %v8268_v27, %v6676_v40  ;;  %v8269_v12 = vadd.f32 %v13875_v24, %v17711_v16  ;;  %v8219_v8 = vpop.f32.mrb[47].mxu0  ;;  %v8657_v40 = vpack.c.bf16 %v17903_v31, %v17901_v35  ;;  %v17918_v24 = vld [vmem:[#allocation4 + $0x52] sm:$0xff] }
 0x915   :  { %v8282_v3 = vadd.f32 %v8266_v51, %v6674_v58  ;;  %v8267_v20 = vadd.f32 %v17711_v16, %v8219_v8  ;;  %v17798_v26 = vld [vmem:[#allocation4 + $0xd1] sm:$0xff]  ;;  %v17916_v51 = vld [vmem:[#allocation4 + $0x22] sm:$0xff] }
 0x916   :  { %8300 = vst.msk [vmem:[#allocation4 + $0x111] sm:$0xff] %vm93_vm4, %v8284_v55  ;;  %v8285_v44 = vadd.f32 %v8269_v12, %v6677_v17  ;;  %v17790_v56 = vld [vmem:[#allocation4 + $0xb1] sm:$0xff]  ;;  %v17926_v12 = vld [vmem:[#allocation4 + $0x42] sm:$0xff] }
 0x917   :  { %8298 = vst.msk [vmem:[#allocation4 + $0xf1] sm:$0xff] %vm93_vm4, %v8282_v3  ;;  %v8283_v5 = vadd.f32 %v8267_v20, %v6675_v61  ;;  %v8366_v9 = vpack.c.bf16 %v17790_v56, %v17786_v60  ;;  %v17808_v18 = vld [vmem:[#allocation4 + $0xe1] sm:$0xff]  ;;  %v17866_v30 = vld [vmem:[#allocation4 + $0xb0] sm:$0xff]  ;;  %v15215_v8 = vld [vmem:[%s18630_s11 + $0x38] sm:$0xff]   ;;  %v17933_v3 = vpack.c.bf16 %v17918_v24, %v17926_v12  ;;  %v8836_v60 = vpack.c.bf16 %v17845_v25, %v17839_v49 }
 0x918   :  { %8301 = vst.msk [vmem:[#allocation4 + $0x121] sm:$0xff] %vm93_vm4, %v8285_v44  ;;  %v17796_v48 = vld [vmem:[#allocation4 + $0xc1] sm:$0xff]  ;;  %v8338_v15 = vpack.c.bf16 %v17866_v30, %v17864_v22  ;;  %v17883_v21 = vld [vmem:[#allocation4 + $0xd0] sm:$0xff] }
 0x919   :  { %8299 = vst.msk [vmem:[#allocation4 + $0x101] sm:$0xff] %vm93_vm4, %v8283_v5  ;;  %13888 = vmatprep.mubr.msk.bf16.mxu1 %vm93_vm4, %v8366_v9  ;;  %v17804_v16 = vpack.c.bf16 %v17798_v26, %v17796_v48  ;;  %v17879_v46 = vld [vmem:[#allocation4 + $0xc0] sm:$0xff]  ;;  %v17920_v55 = vld [vmem:[#allocation4 + $0x32] sm:$0xff] }
 0x91a   :  { %v17887_v4 = vpack.c.bf16 %v17883_v21, %v17879_v46  ;;  %v17924_v58 = vpack.c.bf16 %v17920_v55, %v17916_v51  ;;  %v15216_v17 = vld [vmem:[%s18630_s11 + $0x40] sm:$0xff]   ;;  %v17946_v61 = vld [vmem:[#allocation4 + $0xb2] sm:$0xff] }
 0x91b   :  { %13889 = vmatmul.mubr.msk.bf16.gmra.mrb[56].mxu1 %vm93_vm4, %v17804_v16  ;;  %v17942_v20 = vld [vmem:[#allocation4 + $0x62] sm:$0xff]  ;;  %v17948_v5 = vld [vmem:[#allocation4 + $0x72] sm:$0xff] }
 0x91c   :  { %v17944_v44 = vld [vmem:[#allocation4 + $0xa2] sm:$0xff]  ;;  %v17952_v9 = vpack.c.bf16 %v17948_v5, %v17942_v20 }
 0x91d   :  { %v17822_v37 = vld [vmem:[#allocation4 + $0x111] sm:$0xff]  ;;  %18679 = vst [vmem:[#allocation11_spill] sm:$0xff] %v17944_v44 }
 0x91e   :  { %v17810_v23 = vld [vmem:[#allocation4 + $0xf1] sm:$0xff] }
 0x91f   :  { %v17814_v19 = vpack.c.bf16 %v17810_v23, %v17808_v18  ;;  %v17881_v14 = vld [vmem:[#allocation4 + $0xf0] sm:$0xff] }
 0x920   :  { %v17820_v52 = vld [vmem:[#allocation4 + $0x101] sm:$0xff]  ;;  %v17905_v27 = vld [vmem:[#allocation4 + $0x110] sm:$0xff] }
 0x921   :  { %13892 = vmatprep.mubr.msk.bf16.mxu1 %vm93_vm4, %v17814_v19  ;;  %v17828_v41 = vpack.c.bf16 %v17822_v37, %v17820_v52  ;;  %v17899_v50 = vld [vmem:[#allocation4 + $0x100] sm:$0xff]  ;;  %v17981_v35 = vld [vmem:[#allocation4 + $0x112] sm:$0xff] }
 0x922   :  { %v17909_v33 = vpack.c.bf16 %v17905_v27, %v17899_v50  ;;  %v8841_v49 = vpack.c.bf16 %v17899_v50, %v17881_v14 }
 0x923   :  { %13893 = vmatmul.mubr.msk.bf16.gmra.mrb[60].mxu1 %vm93_vm4, %v17828_v41 }
 0x924   :  { %13900 = vmatprep.mubr.msk.bf16.mxu1 %vm93_vm4, %v8334_v54  ;;  %v8661_v54 = vpack.c.bf16 %v17946_v61, %v17944_v44 }
 0x92b   :  { %13901 = vmatmul.mubr.msk.bf16.vlgmr.msra.gmra.mrb[48].mxu1 %vm93_vm4, %v17843_v29 }
 0x92c   :  { %13917 = vmatpush3.bf16.msra.mxu1 %v17756_v36  ;;  %13904 = vmatprep.mubr.msk.bf16.mxu1 %vm93_vm4, %v17852_v62  ;;  %v17889_v36 = vld [vmem:[#allocation4 + $0xe0] sm:$0xff] }
 0x92d   :  { %13918 = vmatprep.subr.bf16.mxu1 %v15213_v47  ;;  %v17893_v32 = vpack.c.bf16 %v17881_v14, %v17889_v36  ;;  %v18052_v14 = vld [vmem:[#allocation4 + $0x121] sm:$0xff] }
 0x930   :  { %13919 = vmatpush3.bf16.msra.mxu1 %v15213_v47  ;;  %v17959_v47 = vld [vmem:[#allocation4 + $0xc2] sm:$0xff] }
 0x931   :  { %13936 = vmatprep.subr.bf16.mxu1 %v15214_v53 }
 0x933   :  { %13905 = vmatmul.mubr.msk.bf16.gmra.mrb[52].mxu1 %vm93_vm4, %v17872_v63 }
 0x934   :  { %13908 = vmatprep.mubr.msk.bf16.mxu1 %vm93_vm4, %v8338_v15  ;;  %v17963_v15 = vld [vmem:[#allocation4 + $0xd2] sm:$0xff] }
 0x93b   :  { %13909 = vmatmul.mubr.msk.bf16.gmra.mrb[56].mxu1 %vm93_vm4, %v17887_v4 }
 0x93c   :  { %13912 = vmatprep.mubr.msk.bf16.mxu1 %vm93_vm4, %v17893_v32 }
 0x943   :  { %13913 = vmatmul.mubr.msk.bf16.gmra.mrb[60].mxu1 %vm93_vm4, %v17909_v33 }
 0x944   :  { %13920 = vmatprep.mubr.msk.bf16.mxu1 %vm93_vm4, %v8657_v40  ;;  %v17967_v40 = vpack.c.bf16 %v17963_v15, %v17959_v47 }
 0x94b   :  { %13921 = vmatmul.mubr.msk.bf16.vlgmr.msra.gmra.mrb[48].mxu1 %vm93_vm4, %v17924_v58 }
 0x94c   :  { %13937 = vmatpush3.bf16.msra.mxu1 %v15214_v53  ;;  %13924 = vmatprep.mubr.msk.bf16.mxu1 %vm93_vm4, %v17933_v3  ;;  %v17961_v53 = vld [vmem:[#allocation4 + $0xf2] sm:$0xff] }
 0x94d   :  { %13938 = vmatprep.subr.bf16.mxu1 %v15215_v8 }
 0x950   :  { %13939 = vmatpush3.bf16.msra.mxu1 %v15215_v8  ;;  %v17969_v8 = vld [vmem:[#allocation4 + $0xe2] sm:$0xff] }
 0x951   :  { %13956 = vmatprep.subr.bf16.mxu1 %v15216_v17  ;;  %v17973_v44 = vpack.c.bf16 %v17961_v53, %v17969_v8  ;;  %v9196_v50 = vpack.c.bf16 %v17969_v8, %v17963_v15 }
 0x953   :  { %13925 = vmatmul.mubr.msk.bf16.gmra.mrb[52].mxu1 %vm93_vm4, %v17952_v9  ;;  %18680 = vst [vmem:[#allocation12_spill] sm:$0xff] %v17973_v44 }
 0x954   :  { %13928 = vmatprep.mubr.msk.bf16.mxu1 %vm93_vm4, %v8661_v54  ;;  %v17979_v54 = vld [vmem:[#allocation4 + $0x102] sm:$0xff] }
 0x955   :  { %v17985_v22 = vpack.c.bf16 %v17981_v35, %v17979_v54 }
 0x95b   :  { %13929 = vmatmul.mubr.msk.bf16.gmra.mrb[56].mxu1 %vm93_vm4, %v17967_v40 }
 0x95c   :  { %13932 = vmatprep.mubr.msk.bf16.mxu1 %vm93_vm4, %v17973_v44  ;;  %v8837_v44 = vpack.c.bf16 %v17862_v13, %v17837_v43  ;;  %v8839_v43 = vpack.c.bf16 %v17879_v46, %v17866_v30  ;;  %v9013_v13 = vpack.c.bf16 %v17734_v34, %v17728_v2  ;;  %v9014_v30 = vpack.c.bf16 %v17759_v39, %v17736_v11  ;;  %v15220_v2 = vld [vmem:[%s18630_s11 + $0x60] sm:$0xff]  }
 0x95d   :  { %v9015_v46 = vpack.c.bf16 %v17769_v7, %v17761_v57  ;;  %v18038_v34 = vld [vmem:[#allocation4 + $0x81] sm:$0xff]  ;;  %v9017_v39 = vpack.c.bf16 %v17796_v48, %v17790_v56  ;;  %v9018_v57 = vpack.c.bf16 %v17808_v18, %v17798_v26  ;;  %v9019_v7 = vpack.c.bf16 %v17820_v52, %v17810_v23  ;;  %v15226_v48 = vld [vmem:[%s18632_s13 + $0x10] sm:$0xff]  }
 0x95e   :  { %v9016_v11 = vpack.c.bf16 %v18038_v34, %v17771_v45  ;;  %v9020_v45 = vpack.c.bf16 %v18052_v14, %v17822_v37  ;;  %v9191_v56 = vpack.c.bf16 %v17916_v51, %v17903_v31  ;;  %14056 = vmatprep.subr.bf16.mxu0 %v15226_v48  ;;  %v15221_v26 = vld [vmem:[%s18630_s11 + $0x68] sm:$0xff]   ;;  %v9192_v18 = vpack.c.bf16 %v17926_v12, %v17920_v55  ;;  %v15222_v52 = vld [vmem:[%s18630_s11 + $0x70] sm:$0xff]   ;;  %v15227_v12 = vld [vmem:[%s18632_s13 + $0x18] sm:$0xff]  }
 0x95f   :  { %14057 = vmatpush3.bf16.msra.mxu0 %v15226_v48  ;;  %v9193_v23 = vpack.c.bf16 %v17942_v20, %v17918_v24  ;;  %v9182_v37 = vld [vmem:[#allocation4 + $0x82] sm:$0xff]  ;;  %v9197_v31 = vpack.c.bf16 %v17979_v54, %v17961_v53  ;;  %v15223_v24 = vld [vmem:[%s18630_s11 + $0x78] sm:$0xff]   ;;  %v18100_v55 = vld [vmem:[#allocation4 + $0x90] sm:$0xff] }
 0x960   :  { %14058 = vmatprep.subr.bf16.mxu0 %v15227_v12  ;;  %v8302_v53 = vld [vmem:[#allocation3 + $0x11] sm:$0xff]  ;;  %v8305_v54 = vld [vmem:[#allocation3 + $0x41] sm:$0xff] }
 0x963   :  { %13933 = vmatmul.mubr.msk.bf16.gmra.mrb[60].mxu1 %vm93_vm4, %v17985_v22  ;;  %14059 = vmatpush3.bf16.msra.mxu0 %v15227_v12  ;;  %v8310_v12 = vld [vmem:[#allocation3 + $0xb1] sm:$0xff] }
 0x964   :  { %13940 = vmatprep.mubr.msk.bf16.mxu1 %vm93_vm4, %v8835_v0  ;;  %v15218_v0 = vld [vmem:[%s18630_s11 + $0x50] sm:$0xff]  }
 0x96b   :  { %13941 = vmatmul.mubr.msk.bf16.vlgmr.msra.gmra.mrb[48].mxu1 %vm93_vm4, %v8836_v60  ;;  %v8840_v60 = vpack.c.bf16 %v17889_v36, %v17883_v21  ;;  %v9194_v21 = vpack.c.bf16 %v9182_v37, %v17948_v5  ;;  %v9195_v36 = vpack.c.bf16 %v17959_v47, %v17946_v61  ;;  %v8304_v61 = vld [vmem:[#allocation3 + $0x31] sm:$0xff] }
 0x96c   :  { %13957 = vmatpush3.bf16.msra.mxu1 %v15216_v17  ;;  %13944 = vmatprep.mubr.msk.bf16.mxu1 %vm93_vm4, %v8837_v44 }
 0x96d   :  { %13958 = vmatprep.subr.bf16.mxu1 %v15217_v10 }
 0x970   :  { %13959 = vmatpush3.bf16.msra.mxu1 %v15217_v10  ;;  %v18018_v10 = vld [vmem:[#allocation4 + $0x120] sm:$0xff] }
 0x971   :  { %13976 = vmatprep.subr.bf16.mxu1 %v15218_v0  ;;  %v8842_v25 = vpack.c.bf16 %v18018_v10, %v17905_v27  ;;  %v9190_v27 = vld [vmem:[#allocation4 + $0x122] sm:$0xff] }
 0x972   :  { %v9198_v51 = vpack.c.bf16 %v9190_v27, %v17981_v35  ;;  %v15224_v35 = vld [vmem:[%s18630_s11 + $0x80] sm:$0xff]  }
 0x973   :  { %13945 = vmatmul.mubr.msk.bf16.gmra.mrb[52].mxu1 %vm93_vm4, %v8838_v59  ;;  %v8303_v59 = vld [vmem:[#allocation3 + $0x21] sm:$0xff] }
 0x974   :  { %13948 = vmatprep.mubr.msk.bf16.mxu1 %vm93_vm4, %v8839_v43 }
 0x97b   :  { %13949 = vmatmul.mubr.msk.bf16.gmra.mrb[56].mxu1 %vm93_vm4, %v8840_v60 }
 0x97c   :  { %13952 = vmatprep.mubr.msk.bf16.mxu1 %vm93_vm4, %v8841_v49 }
 0x983   :  { %13953 = vmatmul.mubr.msk.bf16.gmra.mrb[60].mxu1 %vm93_vm4, %v8842_v25  ;;  %v8308_v25 = vld [vmem:[#allocation3 + $0x71] sm:$0xff] }
 0x984   :  { %13960 = vmatprep.mubr.msk.bf16.mxu1 %vm93_vm4, %v9013_v13 }
 0x98b   :  { %13961 = vmatmul.mubr.msk.bf16.vlgmr.msra.gmra.mrb[48].mxu1 %vm93_vm4, %v9014_v30 }
 0x98c   :  { %13977 = vmatpush3.bf16.msra.mxu1 %v15218_v0  ;;  %13964 = vmatprep.mubr.msk.bf16.mxu1 %vm93_vm4, %v9015_v46  ;;  %v8306_v46 = vld [vmem:[#allocation3 + $0x51] sm:$0xff] }
 0x98d   :  { %13978 = vmatprep.subr.bf16.mxu1 %v15219_v1 }
 0x990   :  { %13979 = vmatpush3.bf16.msra.mxu1 %v15219_v1 }
 0x991   :  { %13996 = vmatprep.subr.bf16.mxu1 %v15220_v2 }
 0x993   :  { %13965 = vmatmul.mubr.msk.bf16.gmra.mrb[52].mxu1 %vm93_vm4, %v9016_v11 }
 0x994   :  { %13968 = vmatprep.mubr.msk.bf16.mxu1 %vm93_vm4, %v9017_v39  ;;  %v8309_v39 = vld [vmem:[#allocation3 + $0x81] sm:$0xff] }
 0x99b   :  { %13969 = vmatmul.mubr.msk.bf16.gmra.mrb[56].mxu1 %vm93_vm4, %v9018_v57 }
 0x99c   :  { %13972 = vmatprep.mubr.msk.bf16.mxu1 %vm93_vm4, %v9019_v7 }
 0x9a3   :  { %13973 = vmatmul.mubr.msk.bf16.gmra.mrb[60].mxu1 %vm93_vm4, %v9020_v45 }
 0x9a4   :  { %13980 = vmatprep.mubr.msk.bf16.mxu1 %vm93_vm4, %v9191_v56 }
 0x9ab   :  { %13981 = vmatmul.mubr.msk.bf16.vlgmr.msra.gmra.mrb[48].mxu1 %vm93_vm4, %v9192_v18 }
 0x9ac   :  { %13997 = vmatpush3.bf16.msra.mxu1 %v15220_v2  ;;  %13984 = vmatprep.mubr.msk.bf16.mxu1 %vm93_vm4, %v9193_v23 }
 0x9ad   :  { %13998 = vmatprep.subr.bf16.mxu1 %v15221_v26 }
 0x9b0   :  { %13999 = vmatpush3.bf16.msra.mxu1 %v15221_v26  ;;  %v18684_v26 = vld [vmem:[#allocation6_spill] sm:$0xff] }
 0x9b1   :  { %14016 = vmatprep.subr.bf16.mxu1 %v15222_v52 }
 0x9b3   :  { %13985 = vmatmul.mubr.msk.bf16.gmra.mrb[52].mxu1 %vm93_vm4, %v9194_v21 }
 0x9b4   :  { %13988 = vmatprep.mubr.msk.bf16.mxu1 %vm93_vm4, %v9195_v36 }
 0x9bb   :  { %13989 = vmatmul.mubr.msk.bf16.gmra.mrb[56].mxu1 %vm93_vm4, %v9196_v50  ;;  %v15233_v50 = vld [vmem:[%s18632_s13 + $0x38] sm:$0xff]  }
 0x9bc   :  { %13992 = vmatprep.mubr.msk.bf16.mxu1 %vm93_vm4, %v9197_v31 }
 0x9c3   :  { %13993 = vmatmul.mubr.msk.bf16.gmra.mrb[60].mxu1 %vm93_vm4, %v9198_v51 }
 0x9c4   :  { %14000 = vmatprep.mubr.msk.bf16.mxu1 %vm93_vm4, %v17843_v29  ;;  %v9372_v29 = vpack.c.bf16 %v18100_v55, %v18004_v28 }
 0x9cb   :  { %14001 = vmatmul.mubr.msk.bf16.vlgmr.msra.gmra.mrb[48].mxu1 %vm93_vm4, %v17852_v62  ;;  %v18111_v62 = vld [vmem:[#allocation4 + $0x130] sm:$0xff] }
 0x9cc   :  { %14017 = vmatpush3.bf16.msra.mxu1 %v15222_v52  ;;  %14004 = vmatprep.mubr.msk.bf16.mxu1 %vm93_vm4, %v17872_v63  ;;  %v9376_v63 = vpack.c.bf16 %v18111_v62, %v18018_v10 }
 0x9cd   :  { %14018 = vmatprep.subr.bf16.mxu1 %v15223_v24 }
 0x9d0   :  { %14019 = vmatpush3.bf16.msra.mxu1 %v15223_v24  ;;  %v15229_v24 = vld [vmem:[%s18632_s13 + $0x8] sm:$0xff]  }
 0x9d1   :  { %14036 = vmatprep.subr.bf16.mxu1 %v15224_v35 }
 0x9d3   :  { %14005 = vmatmul.mubr.msk.bf16.gmra.mrb[52].mxu1 %vm93_vm4, %v9372_v29 }
 0x9d4   :  { %14008 = vmatprep.mubr.msk.bf16.mxu1 %vm93_vm4, %v17887_v4  ;;  %v15225_v4 = vld [vmem:[%s18630_s11 + $0x88] sm:$0xff]  }
 0x9db   :  { %14009 = vmatmul.mubr.msk.bf16.gmra.mrb[56].mxu1 %vm93_vm4, %v17893_v32  ;;  %v18125_v32 = vld [vmem:[#allocation4 + $0x91] sm:$0xff] }
 0x9dc   :  { %14012 = vmatprep.mubr.msk.bf16.mxu1 %vm93_vm4, %v17909_v33  ;;  %v9550_v33 = vpack.c.bf16 %v18125_v32, %v18038_v34 }
 0x9e3   :  { %14013 = vmatmul.mubr.msk.bf16.gmra.mrb[60].mxu1 %vm93_vm4, %v9376_v63 }
 0x9e4   :  { %14020 = vmatprep.mubr.msk.bf16.mxu1 %vm93_vm4, %v17742_v38  ;;  %v18136_v38 = vld [vmem:[#allocation4 + $0x131] sm:$0xff] }
 0x9eb   :  { %14021 = vmatmul.mubr.msk.bf16.vlgmr.msra.gmra.mrb[48].mxu1 %vm93_vm4, %v17766_v6  ;;  %v9554_v6 = vpack.c.bf16 %v18136_v38, %v18052_v14  ;;  %v8307_v14 = vld [vmem:[#allocation3 + $0x61] sm:$0xff] }
 0x9ec   :  { %14037 = vmatpush3.bf16.msra.mxu1 %v15224_v35  ;;  %14024 = vmatprep.mubr.msk.bf16.mxu1 %vm93_vm4, %v17778_v42  ;;  %v18147_v42 = vld [vmem:[#allocation4 + $0x92] sm:$0xff] }
 0x9ed   :  { %14038 = vmatprep.subr.bf16.mxu1 %v15225_v4  ;;  %18681 = vst [vmem:[#allocation13_spill] sm:$0xff] %v18147_v42 }
 0x9f0   :  { %14039 = vmatpush3.bf16.msra.mxu1 %v15225_v4 }
 0x9f3   :  { %14025 = vmatmul.mubr.msk.bf16.gmra.mrb[52].mxu1 %vm93_vm4, %v9550_v33 }
 0x9f4   :  { %14028 = vmatprep.mubr.msk.bf16.mxu1 %vm93_vm4, %v17804_v16  ;;  %v9728_v16 = vpack.c.bf16 %v18147_v42, %v9182_v37  ;;  %v18692_v42 = vld [vmem:[#allocation11_spill] sm:$0xff] }
 0x9fb   :  { %14029 = vmatmul.mubr.msk.bf16.gmra.mrb[56].mxu1 %vm93_vm4, %v17814_v19  ;;  %v18682_v19 = vld [vmem:[#allocation12_spill] sm:$0xff] }
 0x9fc   :  { %14032 = vmatprep.mubr.msk.bf16.mxu1 %vm93_vm4, %v17828_v41  ;;  %v18157_v41 = vld [vmem:[#allocation4 + $0x132] sm:$0xff] }
 0x9fd   :  { %18683 = vst [vmem:[#allocation12_spill] sm:$0xff] %v18157_v41 }
 0xa03   :  { %14033 = vmatmul.mubr.msk.bf16.gmra.mrb[60].mxu1 %vm93_vm4, %v9554_v6  ;;  %v8312_v6 = vld [vmem:[#allocation3 + $0xd1] sm:$0xff] }
 0xa04   :  { %14040 = vmatprep.mubr.msk.bf16.mxu1 %vm93_vm4, %v17924_v58  ;;  %v9732_v58 = vpack.c.bf16 %v18157_v41, %v9190_v27 }
 0xa0b   :  { %14041 = vmatmul.mubr.msk.bf16.vlgmr.msra.gmra.mrb[48].mxu1 %vm93_vm4, %v17933_v3  ;;  %v18167_v3 = vld [vmem:[%s18632_s13] sm:$0xff]  }
 0xa0c   :  { %14044 = vmatprep.mubr.msk.bf16.mxu1 %vm93_vm4, %v17952_v9  ;;  %14076 = vmatprep.subr.bf16.mxu0 %v18167_v3 }
 0xa13   :  { %14045 = vmatmul.mubr.msk.bf16.gmra.mrb[52].mxu1 %vm93_vm4, %v9728_v16 }
 0xa14   :  { %14048 = vmatprep.mubr.msk.bf16.mxu1 %vm93_vm4, %v17967_v40 }
 0xa1b   :  { %14049 = vmatmul.mubr.msk.bf16.gmra.mrb[56].mxu1 %vm93_vm4, %v18682_v19 }
 0xa1c   :  { %14052 = vmatprep.mubr.msk.bf16.mxu1 %vm93_vm4, %v17985_v22  ;;  %v18173_v22 = vld [vmem:[%s18633_s12] ss:$0 sm:$0xff] }
 0xa23   :  { %14053 = vmatmul.mubr.msk.bf16.gmra.mrb[60].mxu1 %vm93_vm4, %v9732_v58 }
 0xade   :  { %v14042_v17 = vpop.f32.mrb[48].mxu1 }
 0xadf   :  { %v9896_v20 = vadd.f32 %v14042_v17, %v18173_v22  ;;  %v9808_v44 = vpop.f32.mrb[49].mxu1 }
 0xae0   :  { %v9894_v5 = vadd.f32 %v18173_v22, %v9808_v44  ;;  %v14043_v9 = vpop.f32.mrb[50].mxu1 }
 0xae1   :  { %v9912_v47 = vadd.f32 %v9896_v20, %v8304_v61  ;;  %v9897_v15 = vadd.f32 %v14043_v9, %v18173_v22  ;;  %v9811_v40 = vpop.f32.mrb[51].mxu1  ;;  %v8313_v61 = vld [vmem:[#allocation3 + $0xe1] sm:$0xff] }
 0xae2   :  { %v9910_v8 = vadd.f32 %v9894_v5, %v8302_v53  ;;  %v9895_v0 = vadd.f32 %v18173_v22, %v9811_v40  ;;  %v18235_v9 = vld [vmem:[%s18632_s13 + $0x20] sm:$0xff]  }
 0xae3   :  { %9928 = vst.msk [vmem:[#allocation4 + $0x31] sm:$0xff] %vm93_vm4, %v9912_v47  ;;  %v9913_v28 = vadd.f32 %v9897_v15, %v8305_v54  ;;  %v8311_v53 = vld [vmem:[#allocation3 + $0xc1] sm:$0xff] }
 0xae4   :  { %9926 = vst.msk [vmem:[#allocation4 + $0x11] sm:$0xff] %vm93_vm4, %v9910_v8  ;;  %v9911_v43 = vadd.f32 %v9895_v0, %v8303_v59 }
 0xae5   :  { %9929 = vst.msk [vmem:[#allocation4 + $0x41] sm:$0xff] %vm93_vm4, %v9913_v28 }
 0xae6   :  { %9927 = vst.msk [vmem:[#allocation4 + $0x21] sm:$0xff] %vm93_vm4, %v9911_v43  ;;  %v14046_v60 = vpop.f32.mrb[52].mxu1 }
 0xae7   :  { %v9900_v49 = vadd.f32 %v14046_v60, %v18173_v22  ;;  %v9824_v10 = vpop.f32.mrb[53].mxu1 }
 0xae8   :  { %v9898_v13 = vadd.f32 %v18173_v22, %v9824_v10  ;;  %v14047_v30 = vpop.f32.mrb[54].mxu1 }
 0xae9   :  { %v9916_v1 = vadd.f32 %v9900_v49, %v8308_v25  ;;  %v9901_v2 = vadd.f32 %v14047_v30, %v18173_v22  ;;  %v9827_v34 = vpop.f32.mrb[55].mxu1 }
 0xaea   :  { %v9914_v11 = vadd.f32 %v9898_v13, %v8306_v46  ;;  %v9899_v57 = vadd.f32 %v18173_v22, %v9827_v34  ;;  %v18190_v56 = vld [vmem:[#allocation4 + $0x31] sm:$0xff] }
 0xaeb   :  { %9932 = vst.msk [vmem:[#allocation4 + $0x71] sm:$0xff] %vm93_vm4, %v9916_v1  ;;  %v9917_v7 = vadd.f32 %v9901_v2, %v8309_v39  ;;  %v18188_v45 = vld [vmem:[#allocation4 + $0x11] sm:$0xff] }
 0xaec   :  { %9930 = vst.msk [vmem:[#allocation4 + $0x51] sm:$0xff] %vm93_vm4, %v9914_v11  ;;  %v9915_v48 = vadd.f32 %v9899_v57, %v8307_v14  ;;  %v9986_v18 = vpack.c.bf16 %v18188_v45, %v18684_v26  ;;  %v18195_v23 = vld [vmem:[#allocation4 + $0x41] sm:$0xff]  ;;  %v18197_v52 = vld [vmem:[#allocation4 + $0x32] sm:$0xff] }
 0xaed   :  { %v18199_v37 = vld [vmem:[#allocation4 + $0x42] sm:$0xff]  ;;  %9933 = vst.msk [vmem:[#allocation4 + $0x81] sm:$0xff] %vm93_vm4, %v9917_v7  ;;  %v18219_v35 = vld [vmem:[#allocation4 + $0x12] sm:$0xff] }
 0xaee   :  { %v18202_v21 = vld [vmem:[#allocation4 + $0x21] sm:$0xff]  ;;  %9931 = vst.msk [vmem:[#allocation4 + $0x61] sm:$0xff] %vm93_vm4, %v9915_v48  ;;  %v14050_v27 = vpop.f32.mrb[56].mxu1  ;;  %14060 = vmatprep.mubr.msk.bf16.mxu0 %vm93_vm4, %v9986_v18  ;;  %v8316_v13 = vld [vmem:[#allocation3 + $0x111] sm:$0xff] }
 0xaef   :  { %v18204_v36 = vld [vmem:[#allocation4 + $0x22] sm:$0xff]  ;;  %v18214_v51 = vpack.c.bf16 %v18190_v56, %v18202_v21  ;;  %v9904_v29 = vadd.f32 %v14050_v27, %v18173_v22  ;;  %v9840_v63 = vpop.f32.mrb[57].mxu1  ;;  %v8314_v2 = vld [vmem:[#allocation3 + $0xf1] sm:$0xff] }
 0xaf0   :  { %v9902_v16 = vadd.f32 %v18173_v22, %v9840_v63  ;;  %v14051_v19 = vpop.f32.mrb[58].mxu1  ;;  %v8317_v57 = vld [vmem:[#allocation3 + $0x121] sm:$0xff]  ;;  %v18381_v10 = vpack.c.bf16 %v18197_v52, %v18204_v36 }
 0xaf1   :  { %14061 = vmatmul.mubr.msk.bf16.vlgmr.msra.gmra.mrb[48].mxu0 %vm93_vm4, %v18214_v51  ;;  %v9920_v58 = vadd.f32 %v9904_v29, %v8312_v6  ;;  %v9905_v17 = vadd.f32 %v14051_v19, %v18173_v22  ;;  %v9843_v20 = vpop.f32.mrb[59].mxu1  ;;  %v8315_v48 = vld [vmem:[#allocation3 + $0x101] sm:$0xff] }
 0xaf2   :  { %14077 = vmatpush3.bf16.msra.mxu0 %v18167_v3  ;;  %v9918_v44 = vadd.f32 %v9902_v16, %v8310_v12  ;;  %v9903_v5 = vadd.f32 %v18173_v22, %v9843_v20  ;;  %v18248_v54 = vld [vmem:[#allocation4 + $0x71] sm:$0xff]  ;;  %18689 = vst [vmem:[#allocation6_spill] sm:$0xff] %v18381_v10 }
 0xaf3   :  { %14078 = vmatprep.subr.bf16.mxu0 %v15229_v24  ;;  %9936 = vst.msk [vmem:[#allocation4 + $0xd1] sm:$0xff] %vm93_vm4, %v9920_v58  ;;  %v9921_v47 = vadd.f32 %v9905_v17, %v8313_v61  ;;  %v18238_v15 = vld [vmem:[#allocation4 + $0x51] sm:$0xff] }
 0xaf4   :  { %9934 = vst.msk [vmem:[#allocation4 + $0xb1] sm:$0xff] %vm93_vm4, %v9918_v44  ;;  %v9919_v3 = vadd.f32 %v9903_v5, %v8311_v53  ;;  %v18243_v40 = vpack.c.bf16 %v18238_v15, %v18195_v23  ;;  %v18260_v43 = vld [vmem:[#allocation4 + $0x52] sm:$0xff]  ;;  %v18688_v44 = vld [vmem:[#allocation10_spill] sm:$0xff] }
 0xaf5   :  { %9937 = vst.msk [vmem:[#allocation4 + $0xe1] sm:$0xff] %vm93_vm4, %v9921_v47  ;;  %v18246_v8 = vld [vmem:[#allocation4 + $0x61] sm:$0xff]  ;;  %v18315_v53 = vld [vmem:[#allocation4 + $0x10] sm:$0xff]  ;;  %v18388_v4 = vpack.c.bf16 %v18260_v43, %v18199_v37 }
 0xaf6   :  { %14079 = vmatpush3.bf16.msra.mxu0 %v15229_v24  ;;  %v18250_v0 = vld [vmem:[#allocation4 + $0x62] sm:$0xff]  ;;  %9935 = vst.msk [vmem:[#allocation4 + $0xc1] sm:$0xff] %vm93_vm4, %v9919_v3  ;;  %v14054_v28 = vpop.f32.mrb[60].mxu1  ;;  %14064 = vmatprep.mubr.msk.bf16.mxu0 %vm93_vm4, %v18243_v40  ;;  %v18257_v59 = vpack.c.bf16 %v18248_v54, %v18246_v8 }
 0xaf7   :  { %14096 = vmatprep.subr.bf16.mxu0 %v18235_v9  ;;  %v9908_v60 = vadd.f32 %v14054_v28, %v18173_v22  ;;  %v9856_v49 = vpop.f32.mrb[61].mxu1  ;;  %v18685_v24 = vld [vmem:[#allocation7_spill] sm:$0xff] }
 0xaf8   :  { %v9906_v30 = vadd.f32 %v18173_v22, %v9856_v49  ;;  %v14055_v1 = vpop.f32.mrb[62].mxu1  ;;  %18690 = vst [vmem:[#allocation7_spill] sm:$0xff] %v18388_v4 }
 0xaf9   :  { %14065 = vmatmul.mubr.msk.bf16.gmra.mrb[52].mxu0 %vm93_vm4, %v18257_v59  ;;  %v9924_v46 = vadd.f32 %v9908_v60, %v8316_v13  ;;  %v9909_v34 = vadd.f32 %v14055_v1, %v18173_v22  ;;  %v9859_v11 = vpop.f32.mrb[63].mxu1 }
 0xafa   :  { %v9922_v39 = vadd.f32 %v9906_v30, %v8314_v2  ;;  %v9907_v7 = vadd.f32 %v18173_v22, %v9859_v11  ;;  %v18275_v18 = vld [vmem:[#allocation4 + $0xd1] sm:$0xff] }
 0xafb   :  { %9940 = vst.msk [vmem:[#allocation4 + $0x111] sm:$0xff] %vm93_vm4, %v9924_v46  ;;  %v9925_v14 = vadd.f32 %v9909_v34, %v8317_v57  ;;  %v18273_v26 = vld [vmem:[#allocation4 + $0xb1] sm:$0xff]  ;;  %v9944_v34 = vld [vmem:[#allocation4 + $0x20] sm:$0xff] }
 0xafc   :  { %9938 = vst.msk [vmem:[#allocation4 + $0xf1] sm:$0xff] %vm93_vm4, %v9922_v39  ;;  %v9923_v27 = vadd.f32 %v9907_v7, %v8315_v48  ;;  %v9990_v29 = vpack.c.bf16 %v18273_v26, %v18685_v24  ;;  %v18280_v63 = vld [vmem:[#allocation4 + $0xe1] sm:$0xff]  ;;  %v18282_v6 = vld [vmem:[#allocation4 + $0xd2] sm:$0xff] }
 0xafd   :  { %v18284_v16 = vld [vmem:[#allocation4 + $0xe2] sm:$0xff]  ;;  %9941 = vst.msk [vmem:[#allocation4 + $0x121] sm:$0xff] %vm93_vm4, %v9925_v14  ;;  %v18301_v20 = vld [vmem:[#allocation4 + $0xb2] sm:$0xff] }
 0xafe   :  { %v18287_v22 = vld [vmem:[#allocation4 + $0xc1] sm:$0xff]  ;;  %9939 = vst.msk [vmem:[#allocation4 + $0x101] sm:$0xff] %vm93_vm4, %v9923_v27  ;;  %14068 = vmatprep.mubr.msk.bf16.mxu0 %vm93_vm4, %v9990_v29  ;;  %v18686_v30 = vld [vmem:[#allocation8_spill] sm:$0xff]  ;;  %v18687_v2 = vld [vmem:[#allocation9_spill] sm:$0xff] }
 0xaff   :  { %v18289_v19 = vld [vmem:[#allocation4 + $0xc2] sm:$0xff]  ;;  %v18299_v17 = vpack.c.bf16 %v18275_v18, %v18287_v22  ;;  %v9958_v1 = vpack.c.bf16 %v18315_v53, %v18686_v30  ;;  %v18340_v11 = vld [vmem:[#allocation4 + $0x50] sm:$0xff] }
 0xb00   :  { %v9945_v39 = vld [vmem:[#allocation4 + $0x30] sm:$0xff]  ;;  %v9946_v7 = vld [vmem:[#allocation4 + $0x40] sm:$0xff]  ;;  %v15231_v14 = vld [vmem:[%s18632_s13 + $0x28] sm:$0xff]  }
 0xb01   :  { %14069 = vmatmul.mubr.msk.bf16.gmra.mrb[56].mxu0 %vm93_vm4, %v18299_v17  ;;  %v18342_v57 = vpack.c.bf16 %v9945_v39, %v9944_v34  ;;  %v18348_v48 = vpack.c.bf16 %v18340_v11, %v9946_v7  ;;  %v15232_v27 = vld [vmem:[%s18632_s13 + $0x30] sm:$0xff]   ;;  %v9948_v24 = vld [vmem:[#allocation4 + $0x60] sm:$0xff] }
 0xb02   :  { %v18319_v28 = vld [vmem:[#allocation4 + $0x111] sm:$0xff]  ;;  %v9954_v33 = vld [vmem:[#allocation4 + $0xe0] sm:$0xff] }
 0xb03   :  { %v18309_v5 = vld [vmem:[#allocation4 + $0xf1] sm:$0xff] }
 0xb04   :  { %v18313_v47 = vpack.c.bf16 %v18309_v5, %v18280_v63  ;;  %v18329_v13 = vld [vmem:[#allocation4 + $0xf2] sm:$0xff] }
 0xb05   :  { %v18317_v3 = vld [vmem:[#allocation4 + $0x101] sm:$0xff]  ;;  %v9951_v29 = vld [vmem:[#allocation4 + $0xb0] sm:$0xff] }
 0xb06   :  { %v18321_v60 = vld [vmem:[#allocation4 + $0x102] sm:$0xff]  ;;  %14072 = vmatprep.mubr.msk.bf16.mxu0 %vm93_vm4, %v18313_v47  ;;  %v18327_v49 = vpack.c.bf16 %v18319_v28, %v18317_v3  ;;  %v9949_v30 = vld [vmem:[#allocation4 + $0x70] sm:$0xff]  ;;  %v9962_v12 = vpack.c.bf16 %v9951_v29, %v18687_v2 }
 0xb07   :  { %v9955_v61 = vld [vmem:[#allocation4 + $0xf0] sm:$0xff]  ;;  %v9956_v2 = vld [vmem:[#allocation4 + $0x100] sm:$0xff] }
 0xb08   :  { %v9953_v25 = vld [vmem:[#allocation4 + $0xd0] sm:$0xff]  ;;  %v18366_v46 = vpack.c.bf16 %v9955_v61, %v9954_v33 }
 0xb09   :  { %14073 = vmatmul.mubr.msk.bf16.gmra.mrb[60].mxu0 %vm93_vm4, %v18327_v49 }
 0xb0a   :  { %14080 = vmatprep.mubr.msk.bf16.mxu0 %vm93_vm4, %v9958_v1  ;;  %v18358_v1 = vpack.c.bf16 %v9949_v30, %v9948_v24 }
 0xb11   :  { %14081 = vmatmul.mubr.msk.bf16.vlgmr.msra.gmra.mrb[48].mxu0 %vm93_vm4, %v18342_v57 }
 0xb12   :  { %14097 = vmatpush3.bf16.msra.mxu0 %v18235_v9  ;;  %14084 = vmatprep.mubr.msk.bf16.mxu0 %vm93_vm4, %v18348_v48  ;;  %v9952_v9 = vld [vmem:[#allocation4 + $0xc0] sm:$0xff] }
 0xb13   :  { %14098 = vmatprep.subr.bf16.mxu0 %v15231_v14  ;;  %v18364_v31 = vpack.c.bf16 %v9953_v25, %v9952_v9 }
 0xb16   :  { %14099 = vmatpush3.bf16.msra.mxu0 %v15231_v14  ;;  %v9957_v14 = vld [vmem:[#allocation4 + $0x110] sm:$0xff] }
 0xb17   :  { %14116 = vmatprep.subr.bf16.mxu0 %v15232_v27  ;;  %v18372_v58 = vpack.c.bf16 %v9957_v14, %v9956_v2 }
 0xb19   :  { %14085 = vmatmul.mubr.msk.bf16.gmra.mrb[52].mxu0 %vm93_vm4, %v18358_v1 }
 0xb1a   :  { %14088 = vmatprep.mubr.msk.bf16.mxu0 %vm93_vm4, %v9962_v12  ;;  %v10281_v12 = vpack.c.bf16 %v18219_v35, %v18688_v44  ;;  %v15234_v44 = vld [vmem:[%s18632_s13 + $0x40] sm:$0xff]  }
 0xb21   :  { %14089 = vmatmul.mubr.msk.bf16.gmra.mrb[56].mxu0 %vm93_vm4, %v18364_v31 }
 0xb22   :  { %14092 = vmatprep.mubr.msk.bf16.mxu0 %vm93_vm4, %v18366_v46 }
 0xb29   :  { %14093 = vmatmul.mubr.msk.bf16.gmra.mrb[60].mxu0 %vm93_vm4, %v18372_v58 }
 0xb2a   :  { %14100 = vmatprep.mubr.msk.bf16.mxu0 %vm93_vm4, %v10281_v12  ;;  %v18397_v12 = vld [vmem:[#allocation4 + $0x72] sm:$0xff] }
 0xb2b   :  { %v18401_v41 = vpack.c.bf16 %v18397_v12, %v18250_v0 }
 0xb2d   :  { %18691 = vst [vmem:[#allocation8_spill] sm:$0xff] %v18401_v41 }
 0xb31   :  { %14101 = vmatmul.mubr.msk.bf16.vlgmr.msra.gmra.mrb[48].mxu0 %vm93_vm4, %v18381_v10  ;;  %v10285_v10 = vpack.c.bf16 %v18301_v20, %v18692_v42  ;;  %v18420_v42 = vld [vmem:[#allocation4 + $0x112] sm:$0xff] }
 0xb32   :  { %14117 = vmatpush3.bf16.msra.mxu0 %v15232_v27  ;;  %14104 = vmatprep.mubr.msk.bf16.mxu0 %vm93_vm4, %v18388_v4  ;;  %v18410_v27 = vpack.c.bf16 %v18282_v6, %v18289_v19  ;;  %v10460_v4 = vpack.c.bf16 %v9946_v7, %v9945_v39  ;;  %v10463_v39 = vpack.c.bf16 %v9952_v9, %v9951_v29  ;;  %v15237_v29 = vld [vmem:[%s18632_s13 + $0x58] sm:$0xff]  }
 0xb33   :  { %14118 = vmatprep.subr.bf16.mxu0 %v15233_v50  ;;  %v10465_v7 = vpack.c.bf16 %v9956_v2, %v9955_v61 }
 0xb34   :  { %18693 = vst [vmem:[#allocation9_spill] sm:$0xff] %v18410_v27 }
 0xb36   :  { %14119 = vmatpush3.bf16.msra.mxu0 %v15233_v50  ;;  %v18414_v50 = vpack.c.bf16 %v18329_v13, %v18284_v16 }
 0xb37   :  { %14136 = vmatprep.subr.bf16.mxu0 %v15234_v44 }
 0xb38   :  { %18694 = vst [vmem:[#allocation10_spill] sm:$0xff] %v18414_v50 }
 0xb39   :  { %14105 = vmatmul.mubr.msk.bf16.gmra.mrb[52].mxu0 %vm93_vm4, %v18401_v41  ;;  %v18424_v41 = vpack.c.bf16 %v18420_v42, %v18321_v60 }
 0xb3a   :  { %14108 = vmatprep.mubr.msk.bf16.mxu0 %vm93_vm4, %v10285_v10  ;;  %v10459_v10 = vpack.c.bf16 %v9944_v34, %v18315_v53  ;;  %v15236_v53 = vld [vmem:[%s18632_s13 + $0x50] sm:$0xff]   ;;  %v10450_v34 = vld [vmem:[#allocation4 + $0x80] sm:$0xff] }
 0xb41   :  { %14109 = vmatmul.mubr.msk.bf16.gmra.mrb[56].mxu0 %vm93_vm4, %v18410_v27  ;;  %v15235_v27 = vld [vmem:[%s18632_s13 + $0x48] sm:$0xff]  }
 0xb42   :  { %14112 = vmatprep.mubr.msk.bf16.mxu0 %vm93_vm4, %v18414_v50  ;;  %v10461_v50 = vpack.c.bf16 %v9948_v24, %v18340_v11  ;;  %v10464_v11 = vpack.c.bf16 %v9954_v33, %v9953_v25  ;;  %v18696_v33 = vpack.c.bf16 %v18195_v23, %v18190_v56  ;;  %v18697_v25 = vpack.c.bf16 %v18246_v8, %v18238_v15  ;;  %v10636_v8 = vld [vmem:[#allocation4 + $0x121] sm:$0xff] }
 0xb43   :  { %v18698_v56 = vpack.c.bf16 %v18287_v22, %v18273_v26  ;;  %v18699_v23 = vpack.c.bf16 %v18280_v63, %v18275_v18  ;;  %v18700_v15 = vpack.c.bf16 %v18317_v3, %v18309_v5  ;;  %v18701_v26 = vpack.c.bf16 %v18204_v36, %v18219_v35  ;;  %v15239_v18 = vld [vmem:[%s18632_s13 + $0x68] sm:$0xff]   ;;  %v15240_v36 = vld [vmem:[%s18632_s13 + $0x70] sm:$0xff]  }
 0xb44   :  { %v18702_v63 = vpack.c.bf16 %v18199_v37, %v18197_v52  ;;  %v18703_v22 = vpack.c.bf16 %v18250_v0, %v18260_v43  ;;  %v10806_v35 = vld [vmem:[#allocation4 + $0x82] sm:$0xff]  ;;  %v18704_v52 = vpack.c.bf16 %v18289_v19, %v18301_v20  ;;  %v18705_v37 = vpack.c.bf16 %v18284_v16, %v18282_v6  ;;  %v15241_v19 = vld [vmem:[%s18632_s13 + $0x78] sm:$0xff]  }
 0xb45   :  { %v10818_v5 = vpack.c.bf16 %v10806_v35, %v18397_v12  ;;  %v18706_v0 = vpack.c.bf16 %v18321_v60, %v18329_v13  ;;  %v10814_v43 = vld [vmem:[#allocation4 + $0x122] sm:$0xff]  ;;  %v10996_v16 = vpack.c.bf16 %v18100_v55, %v10450_v34  ;;  %v12372_v60 = vld [vmem:[%s18634_s14] ss:$0 sm:$0xff] }
 0xb46   :  { %v10822_v3 = vpack.c.bf16 %v10814_v43, %v18420_v42  ;;  %v15242_v6 = vld [vmem:[%s18632_s13 + $0x80] sm:$0xff]   ;;  %v15243_v55 = vld [vmem:[%s18632_s13 + $0x88] sm:$0xff]  }
 0xb49   :  { %14113 = vmatmul.mubr.msk.bf16.gmra.mrb[60].mxu0 %vm93_vm4, %v18424_v41 }
 0xb4a   :  { %14120 = vmatprep.mubr.msk.bf16.mxu0 %vm93_vm4, %v10459_v10  ;;  %v10462_v10 = vpack.c.bf16 %v10450_v34, %v9949_v30 }
 0xb51   :  { %14121 = vmatmul.mubr.msk.bf16.vlgmr.msra.gmra.mrb[48].mxu0 %vm93_vm4, %v10460_v4  ;;  %v10458_v4 = vld [vmem:[#allocation4 + $0x120] sm:$0xff] }
 0xb52   :  { %14137 = vmatpush3.bf16.msra.mxu0 %v15234_v44  ;;  %14124 = vmatprep.mubr.msk.bf16.mxu0 %vm93_vm4, %v10461_v50  ;;  %v10466_v24 = vpack.c.bf16 %v10458_v4, %v9957_v14  ;;  %v18695_v44 = vpack.c.bf16 %v18202_v21, %v18188_v45  ;;  %v15238_v45 = vld [vmem:[%s18632_s13 + $0x60] sm:$0xff]   ;;  %v11000_v20 = vpack.c.bf16 %v18111_v62, %v10458_v4 }
 0xb53   :  { %14138 = vmatprep.subr.bf16.mxu0 %v15235_v27  ;;  %v10628_v21 = vld [vmem:[#allocation4 + $0x81] sm:$0xff] }
 0xb54   :  { %v10640_v61 = vpack.c.bf16 %v10628_v21, %v18248_v54  ;;  %v10644_v54 = vpack.c.bf16 %v10636_v8, %v18319_v28  ;;  %v11174_v62 = vpack.c.bf16 %v18125_v32, %v10628_v21  ;;  %v18709_v32 = vld [vmem:[#allocation8_spill] sm:$0xff] }
 0xb56   :  { %14139 = vmatpush3.bf16.msra.mxu0 %v15235_v27 }
 0xb57   :  { %14156 = vmatprep.subr.bf16.mxu0 %v15236_v53 }
 0xb59   :  { %14125 = vmatmul.mubr.msk.bf16.gmra.mrb[52].mxu0 %vm93_vm4, %v10462_v10 }
 0xb5a   :  { %14128 = vmatprep.mubr.msk.bf16.mxu0 %vm93_vm4, %v10463_v39 }
 0xb61   :  { %14129 = vmatmul.mubr.msk.bf16.gmra.mrb[56].mxu0 %vm93_vm4, %v10464_v11 }
 0xb62   :  { %14132 = vmatprep.mubr.msk.bf16.mxu0 %vm93_vm4, %v10465_v7 }
 0xb69   :  { %14133 = vmatmul.mubr.msk.bf16.gmra.mrb[60].mxu0 %vm93_vm4, %v10466_v24 }
 0xb6a   :  { %14140 = vmatprep.mubr.msk.bf16.mxu0 %vm93_vm4, %v18695_v44 }
 0xb71   :  { %14141 = vmatmul.mubr.msk.bf16.vlgmr.msra.gmra.mrb[48].mxu0 %vm93_vm4, %v18696_v33 }
 0xb72   :  { %14157 = vmatpush3.bf16.msra.mxu0 %v15236_v53  ;;  %14144 = vmatprep.mubr.msk.bf16.mxu0 %vm93_vm4, %v18697_v25 }
 0xb73   :  { %14158 = vmatprep.subr.bf16.mxu0 %v15237_v29 }
 0xb76   :  { %14159 = vmatpush3.bf16.msra.mxu0 %v15237_v29 }
 0xb77   :  { %14176 = vmatprep.subr.bf16.mxu0 %v15238_v45 }
 0xb79   :  { %14145 = vmatmul.mubr.msk.bf16.gmra.mrb[52].mxu0 %vm93_vm4, %v10640_v61 }
 0xb7a   :  { %14148 = vmatprep.mubr.msk.bf16.mxu0 %vm93_vm4, %v18698_v56 }
 0xb81   :  { %14149 = vmatmul.mubr.msk.bf16.gmra.mrb[56].mxu0 %vm93_vm4, %v18699_v23 }
 0xb82   :  { %14152 = vmatprep.mubr.msk.bf16.mxu0 %vm93_vm4, %v18700_v15 }
 0xb89   :  { %14153 = vmatmul.mubr.msk.bf16.gmra.mrb[60].mxu0 %vm93_vm4, %v10644_v54 }
 0xb8a   :  { %14160 = vmatprep.mubr.msk.bf16.mxu0 %vm93_vm4, %v18701_v26 }
 0xb91   :  { %14161 = vmatmul.mubr.msk.bf16.vlgmr.msra.gmra.mrb[48].mxu0 %vm93_vm4, %v18702_v63 }
 0xb92   :  { %14177 = vmatpush3.bf16.msra.mxu0 %v15238_v45  ;;  %14164 = vmatprep.mubr.msk.bf16.mxu0 %vm93_vm4, %v18703_v22 }
 0xb93   :  { %14178 = vmatprep.subr.bf16.mxu0 %v15239_v18 }
 0xb96   :  { %14179 = vmatpush3.bf16.msra.mxu0 %v15239_v18 }
 0xb97   :  { %14196 = vmatprep.subr.bf16.mxu0 %v15240_v36 }
 0xb99   :  { %14165 = vmatmul.mubr.msk.bf16.gmra.mrb[52].mxu0 %vm93_vm4, %v10818_v5 }
 0xb9a   :  { %14168 = vmatprep.mubr.msk.bf16.mxu0 %vm93_vm4, %v18704_v52 }
 0xba1   :  { %14169 = vmatmul.mubr.msk.bf16.gmra.mrb[56].mxu0 %vm93_vm4, %v18705_v37 }
 0xba2   :  { %14172 = vmatprep.mubr.msk.bf16.mxu0 %vm93_vm4, %v18706_v0 }
 0xba9   :  { %14173 = vmatmul.mubr.msk.bf16.gmra.mrb[60].mxu0 %vm93_vm4, %v10822_v3 }
 0xbaa   :  { %14180 = vmatprep.mubr.msk.bf16.mxu0 %vm93_vm4, %v18342_v57 }
 0xbb1   :  { %14181 = vmatmul.mubr.msk.bf16.vlgmr.msra.gmra.mrb[48].mxu0 %vm93_vm4, %v18348_v48 }
 0xbb2   :  { %14197 = vmatpush3.bf16.msra.mxu0 %v15240_v36  ;;  %14184 = vmatprep.mubr.msk.bf16.mxu0 %vm93_vm4, %v18358_v1 }
 0xbb3   :  { %14198 = vmatprep.subr.bf16.mxu0 %v15241_v19 }
 0xbb6   :  { %14199 = vmatpush3.bf16.msra.mxu0 %v15241_v19 }
 0xbb7   :  { %14216 = vmatprep.subr.bf16.mxu0 %v15242_v6 }
 0xbb9   :  { %14185 = vmatmul.mubr.msk.bf16.gmra.mrb[52].mxu0 %vm93_vm4, %v10996_v16 }
 0xbba   :  { %14188 = vmatprep.mubr.msk.bf16.mxu0 %vm93_vm4, %v18364_v31  ;;  %v11178_v31 = vpack.c.bf16 %v18136_v38, %v10636_v8  ;;  %v18713_v38 = vld [vmem:[#allocation12_spill] sm:$0xff] }
 0xbbb   :  { %v11356_v28 = vpack.c.bf16 %v18713_v38, %v10814_v43 }
 0xbc1   :  { %14189 = vmatmul.mubr.msk.bf16.gmra.mrb[56].mxu0 %vm93_vm4, %v18366_v46 }
 0xbc2   :  { %14192 = vmatprep.mubr.msk.bf16.mxu0 %vm93_vm4, %v18372_v58 }
 0xbc9   :  { %14193 = vmatmul.mubr.msk.bf16.gmra.mrb[60].mxu0 %vm93_vm4, %v11000_v20 }
 0xbca   :  { %14200 = vmatprep.mubr.msk.bf16.mxu0 %vm93_vm4, %v18214_v51  ;;  %v18707_v51 = vld [vmem:[#allocation6_spill] sm:$0xff] }
 0xbd1   :  { %14201 = vmatmul.mubr.msk.bf16.vlgmr.msra.gmra.mrb[48].mxu0 %vm93_vm4, %v18243_v40  ;;  %v18708_v40 = vld [vmem:[#allocation7_spill] sm:$0xff] }
 0xbd2   :  { %14217 = vmatpush3.bf16.msra.mxu0 %v15242_v6  ;;  %14204 = vmatprep.mubr.msk.bf16.mxu0 %vm93_vm4, %v18257_v59  ;;  %v18710_v59 = vld [vmem:[#allocation13_spill] sm:$0xff] }
 0xbd3   :  { %14218 = vmatprep.subr.bf16.mxu0 %v15243_v55  ;;  %v11352_v58 = vpack.c.bf16 %v18710_v59, %v10806_v35 }
 0xbd6   :  { %14219 = vmatpush3.bf16.msra.mxu0 %v15243_v55 }
 0xbd9   :  { %14205 = vmatmul.mubr.msk.bf16.gmra.mrb[52].mxu0 %vm93_vm4, %v11174_v62 }
 0xbda   :  { %14208 = vmatprep.mubr.msk.bf16.mxu0 %vm93_vm4, %v18299_v17  ;;  %v18711_v17 = vld [vmem:[#allocation9_spill] sm:$0xff] }
 0xbe1   :  { %14209 = vmatmul.mubr.msk.bf16.gmra.mrb[56].mxu0 %vm93_vm4, %v18313_v47  ;;  %v18712_v47 = vld [vmem:[#allocation10_spill] sm:$0xff] }
 0xbe2   :  { %14212 = vmatprep.mubr.msk.bf16.mxu0 %vm93_vm4, %v18327_v49 }
 0xbe9   :  { %14213 = vmatmul.mubr.msk.bf16.gmra.mrb[60].mxu0 %vm93_vm4, %v11178_v31 }
 0xbea   :  { %14220 = vmatprep.mubr.msk.bf16.mxu0 %vm93_vm4, %v18707_v51 }
 0xbf1   :  { %14221 = vmatmul.mubr.msk.bf16.vlgmr.msra.gmra.mrb[48].mxu0 %vm93_vm4, %v18708_v40 }
 0xbf2   :  { %14224 = vmatprep.mubr.msk.bf16.mxu0 %vm93_vm4, %v18709_v32 }
 0xbf9   :  { %14225 = vmatmul.mubr.msk.bf16.gmra.mrb[52].mxu0 %vm93_vm4, %v11352_v58 }
 0xbfa   :  { %14228 = vmatprep.mubr.msk.bf16.mxu0 %vm93_vm4, %v18711_v17 }
 0xc01   :  { %14229 = vmatmul.mubr.msk.bf16.gmra.mrb[56].mxu0 %vm93_vm4, %v18712_v47 }
 0xc02   :  { %14232 = vmatprep.mubr.msk.bf16.mxu0 %vm93_vm4, %v18424_v41 }
 0xc09   :  { %14233 = vmatmul.mubr.msk.bf16.gmra.mrb[60].mxu0 %vm93_vm4, %v11356_v28 }
 0xcc4   :  { %v14222_v49 = vpop.f32.mrb[48].mxu0 }
 0xcc5   :  { %v11520_v13 = vadd.f32 %v14222_v49, %v12372_v60  ;;  %v11432_v46 = vpop.f32.mrb[49].mxu0 }
 0xcc6   :  { %v11518_v57 = vadd.f32 %v12372_v60, %v11432_v46  ;;  %v14223_v48 = vpop.f32.mrb[50].mxu0 }
 0xcc7   :  { %11536 = vst [vmem:[%s18635_s15 + $0x10] sm:$0xff] %v11520_v13  ;;  %v11521_v30 = vadd.f32 %v14223_v48, %v12372_v60  ;;  %v11435_v1 = vpop.f32.mrb[51].mxu0 }
 0xcc8   :  { %11534 = vst [vmem:[%s18635_s15] sm:$0xff] %v11518_v57  ;;  %v11519_v41 = vadd.f32 %v12372_v60, %v11435_v1 }
 0xcc9   :  { %11537 = vst [vmem:[%s18635_s15 + $0x18] sm:$0xff] %v11521_v30 }
 0xcca   :  { %11535 = vst [vmem:[%s18635_s15 + $0x8] sm:$0xff] %v11519_v41 }
 0xccc   :  { %v14226_v9 = vpop.f32.mrb[52].mxu0 }
 0xccd   :  { %v11524_v2 = vadd.f32 %v14226_v9, %v12372_v60  ;;  %v11448_v14 = vpop.f32.mrb[53].mxu0 }
 0xcce   :  { %v11522_v12 = vadd.f32 %v12372_v60, %v11448_v14  ;;  %v14227_v27 = vpop.f32.mrb[54].mxu0 }
 0xccf   :  { %11540 = vst [vmem:[%s18635_s15 + $0x30] sm:$0xff] %v11524_v2  ;;  %v11525_v50 = vadd.f32 %v14227_v27, %v12372_v60  ;;  %v11451_v42 = vpop.f32.mrb[55].mxu0 }
 0xcd0   :  { %11538 = vst [vmem:[%s18635_s15 + $0x20] sm:$0xff] %v11522_v12  ;;  %v11523_v53 = vadd.f32 %v12372_v60, %v11451_v42 }
 0xcd1   :  { %11541 = vst [vmem:[%s18635_s15 + $0x38] sm:$0xff] %v11525_v50 }
 0xcd2   :  { %11539 = vst [vmem:[%s18635_s15 + $0x28] sm:$0xff] %v11523_v53 }
 0xcd4   :  { %v14230_v34 = vpop.f32.mrb[56].mxu0 }
 0xcd5   :  { %v11528_v10 = vadd.f32 %v14230_v34, %v12372_v60  ;;  %v11464_v39 = vpop.f32.mrb[57].mxu0 }
 0xcd6   :  { %v11526_v11 = vadd.f32 %v12372_v60, %v11464_v39  ;;  %v14231_v7 = vpop.f32.mrb[58].mxu0 }
 0xcd7   :  { %11544 = vst [vmem:[%s18635_s15 + $0x50] sm:$0xff] %v11528_v10  ;;  %v11529_v4 = vadd.f32 %v14231_v7, %v12372_v60  ;;  %v11467_v24 = vpop.f32.mrb[59].mxu0 }
 0xcd8   :  { %11542 = vst [vmem:[%s18635_s15 + $0x40] sm:$0xff] %v11526_v11  ;;  %v11527_v44 = vadd.f32 %v12372_v60, %v11467_v24 }
 0xcd9   :  { %11545 = vst [vmem:[%s18635_s15 + $0x58] sm:$0xff] %v11529_v4 }
 0xcda   :  { %11543 = vst [vmem:[%s18635_s15 + $0x48] sm:$0xff] %v11527_v44 }
 0xcdc   :  { %v14234_v29 = vpop.f32.mrb[60].mxu0 }
 0xcdd   :  { %v11532_v33 = vadd.f32 %v14234_v29, %v12372_v60  ;;  %v11480_v25 = vpop.f32.mrb[61].mxu0 }
 0xcde   :  { %v11530_v45 = vadd.f32 %v12372_v60, %v11480_v25  ;;  %v14235_v21 = vpop.f32.mrb[62].mxu0 }
 0xcdf   :  { %11548 = vst [vmem:[%s18635_s15 + $0x70] sm:$0xff] %v11532_v33  ;;  %v11533_v61 = vadd.f32 %v14235_v21, %v12372_v60  ;;  %v11483_v56 = vpop.f32.mrb[63].mxu0 }
 0xce0   :  { %11546 = vst [vmem:[%s18635_s15 + $0x60] sm:$0xff] %v11530_v45  ;;  %v11531_v23 = vadd.f32 %v12372_v60, %v11483_v56 }
 0xce1   :  { %11549 = vst [vmem:[%s18635_s15 + $0x78] sm:$0xff] %v11533_v61 }
 0xce2   :  { %11547 = vst [vmem:[%s18635_s15 + $0x68] sm:$0xff] %v11531_v23 }

</bundles_post_ra>
